<compile_context>
chip_gen: v5e
topology: v5e:2x2
jax: 0.10.0
libtpu: 0.0.40
codegen_flags: <defaults>
</compile_context>

<pallas_src>
import jax
import jax.numpy as jnp
from jax import lax
from jax.experimental import pallas as pl
from jax.experimental.pallas import tpu as pltpu

NH = 20          # MLP hidden width
NC = 20          # conv channels
SX = 128         # size_x (image width)  -> lane axis
SY = 64          # size_y (image height) -> sublane axis
K = 5            # conv kernel size
KK = K * K
PAD = K // 2
EPS = 1e-5
SLOPE = 0.2      # LeakyReLU negative slope


def _leaky(v):
    return jnp.where(v >= 0.0, v, SLOPE * v)


def _shift_lanes(v, d):
    """result[y, x] = v[y, x + d], zero-filled outside 0 <= x + d < SX."""
    if d == 0:
        return v
    rolled = pltpu.roll(v, (-d) % SX, axis=1)
    col = lax.broadcasted_iota(jnp.int32, v.shape, 1)
    if d < 0:
        return jnp.where(col >= -d, rolled, 0.0)
    return jnp.where(col < SX - d, rolled, 0.0)


# -----------------------------------------------------------------------------
# Fused kernel: MLP -> view(64,128) -> BN2d(1) -> Conv(1,NC,5) -> LReLU ->
#               BN2d(NC) -> Conv(NC,1,5) -> Sigmoid           (one image/step)
# -----------------------------------------------------------------------------
def fused_kernel(x_ref, a1_ref, c1_ref, misc_ref, w1_ref, b1_ref,
                 tcg_ref, w2g_ref,               # SMEM scalar params
                 w2r_ref, b2r_ref,               # VMEM, resident across grid
                 o_ref,                          # (1, SY, SX) output block
                 xbuf_ref, hbuf_ref):            # VMEM scratch
    b = pl.program_id(0)

    # Zero ONLY the 2-row vertical padding borders; interior is fully
    # overwritten below.  (Cheap: ~30 masked stores per image.)
    xbuf_ref[:, 0:PAD, :] = jnp.zeros((K, PAD, SX), jnp.float32)
    xbuf_ref[:, PAD + SY:PAD + SY + PAD, :] = jnp.zeros((K, PAD, SX), jnp.float32)
    hbuf_ref[:, 0:PAD, :] = jnp.zeros((NC, PAD, SX), jnp.float32)
    hbuf_ref[:, PAD + SY:PAD + SY + PAD, :] = jnp.zeros((NC, PAD, SX), jnp.float32)

    # ---- fused MLP ----------------------------------------------------------
    # u_h = a1[h]*x + c1[h]   (BN1d(1) + Linear(1,NH), scalar path)
    # m   = leaky( b2r_eff + sum_h leaky(u_h) * w2r_eff[h] )
    #       with BN1d(NH) gamma/beta pre-folded into w2r_eff / b2r_eff.
    xb = x_ref[b]
    m = b2r_ref[...]
    for h in range(NH):
        u = xb * a1_ref[h] + c1_ref[h]
        uv = jnp.full((SY, SX), u, jnp.float32)
        t = u * w2r_ref[h]
        m = m + jnp.where(uv >= 0.0, t, SLOPE * t)   # LeakyReLU folded in
    m = _leaky(m)
    m = misc_ref[0] * m + misc_ref[1]                # BN2d(1) affine

    # ---- conv1 input: 5 lane-shifted, vertically zero-padded copies --------
    for dx in range(K):
        xbuf_ref[dx, PAD:PAD + SY, :] = _shift_lanes(m, dx - PAD)

    # ---- Conv2d(1 -> NC, 5x5, 'same') + LeakyReLU + BN2d(NC) shift ----------
    def conv1_body(c, carry):
        acc = jnp.zeros((SY, SX), jnp.float32)
        for dy in range(K):
            for dx in range(K):
                w = w1_ref[c * KK + dy * K + dx]
                acc = acc + w * xbuf_ref[dx, pl.ds(dy, SY), :]
        hc = _leaky(acc + b1_ref[c])
        # BN2d(NC): gamma folded into conv2 weights, only the shift added here.
        hbuf_ref[c, pl.ds(PAD, SY), :] = hc + tcg_ref[c]
        return carry

    lax.fori_loop(0, NC, conv1_body, 0)

    # ---- Conv2d(NC -> 1, 5x5, 'same'): per-dx partial sums (lane-aligned
    #      loads only), then one roll + mask per dx to combine. -------------
    out = jnp.zeros((SY, SX), jnp.float32)
    for dx in range(K):
        def conv2_body(i, s, dx=dx):
            for cc in range(2):                      # manual 2x channel unroll
                c = i * 2 + cc
                for dy in range(K):
                    w = w2g_ref[c * KK + dy * K + dx]
                    s = s + w * hbuf_ref[c, pl.ds(dy, SY), :]
            return s

        s_dx = lax.fori_loop(0, NC // 2, conv2_body,
                             jnp.zeros((SY, SX), jnp.float32))
        out = out + _shift_lanes(s_dx, dx - PAD)
    out = out + misc_ref[2]                          # conv2 bias

    # ---- numerically stable sigmoid (exp on the EUP, no inf intermediates) -
    e = jnp.exp(-jnp.abs(out))
    r = 1.0 / (1.0 + e)
    o_ref[0] = jnp.where(out >= 0.0, r, 1.0 - r)


def poly_forward(x, f):
    B = x.shape[0]
    xf = x.reshape(B)
    smem = pl.BlockSpec(memory_space=pltpu.MemorySpace.SMEM)
    return pl.pallas_call(
        fused_kernel,
        out_shape=jax.ShapeDtypeStruct((B, SY, SX), jnp.float32),
        grid=(B,),
        in_specs=[smem] * 8 + [
            pl.BlockSpec((NH, SY, SX), lambda b: (0, 0, 0)),   # w2r_eff resident
            pl.BlockSpec((SY, SX), lambda b: (0, 0)),          # b2r_eff resident
        ],
        out_specs=pl.BlockSpec((1, SY, SX), lambda b: (b, 0, 0)),
        scratch_shapes=[
            pltpu.VMEM((K, SY + 2 * PAD, SX), jnp.float32),    # shifted input
            pltpu.VMEM((NC, SY + 2 * PAD, SX), jnp.float32),   # conv1 activations
        ],
        compiler_params=pltpu.CompilerParams(
            dimension_semantics=("parallel",)),                # v7x: 2 TCs
    )(xf, f["a1"], f["c1"], f["misc"], f["w1f"], f["b1"],
      f["tcg"], f["w2g"], f["w2r"], f["b2r"])


poly_params_to_image = jax.jit(poly_forward)


# -----------------------------------------------------------------------------
# Deterministic parameter construction (shapes follow the nn.Module __init__)
# -----------------------------------------------------------------------------
def _bn_affine(gamma, beta, rmean, rvar):
    s = gamma / jnp.sqrt(rvar + EPS)
    return s, beta - rmean * s


def init_params(key):
    ks = jax.random.split(key, 20)
    n = lambda i, shape, s=0.1: s * jax.random.normal(ks[i], shape, jnp.float32)
    p = {}
    # BatchNorm1d(1): (gamma, beta, running_mean, running_var)
    p["bn1"] = (1.0 + n(0, (1,)), n(1, (1,)), n(2, (1,)),
                1.0 + 0.1 * jnp.abs(jax.random.normal(ks[3], (1,), jnp.float32)))
    p["w_l1"] = n(4, (NH, 1), 0.5)                 # Linear(1, NH)
    p["b_l1"] = n(5, (NH,), 0.1)
    # BatchNorm1d(NH)
    p["bn2"] = (1.0 + n(6, (NH,)), n(7, (NH,)), n(8, (NH,)),
                1.0 + 0.1 * jnp.abs(jax.random.normal(ks[9], (NH,), jnp.float32)))
    p["w_l2"] = n(10, (SY * SX, NH), 0.05)         # Linear(NH, SY*SX)
    p["b_l2"] = n(11, (SY * SX,), 0.05)
    # BatchNorm2d(1)
    p["bn3"] = (1.0 + n(12, (1,)), n(13, (1,)), n(14, (1,)),
                jnp.ones((1,), jnp.float32))
    p["w_c1"] = n(15, (NC, 1, K, K), 0.1)          # Conv2d(1, NC, 5)
    p["b_c1"] = n(16, (NC,), 0.1)
    # BatchNorm2d(NC)
    p["bn4"] = (1.0 + n(17, (NC,)), n(18, (NC,)),
                jnp.zeros((NC,), jnp.float32), jnp.ones((NC,), jnp.float32))
    p["w_c2"] = n(19, (1, NC, K, K), 0.1)          # Conv2d(NC, 1, 5)
    p["b_c2"] = 0.02 * jnp.ones((1,), jnp.float32)
    return p


def fold_params(p):
    # --- MLP folding (exact) ---
    s1, t1 = _bn_affine(*p["bn1"])                            # BN1d(1)
    w1v = p["w_l1"][:, 0]
    a1 = s1[0] * w1v                                          # (NH,)
    c1 = t1[0] * w1v + p["b_l1"]                              # (NH,)
    g2, t2 = _bn_affine(*p["bn2"])                            # BN1d(NH)
    w2r = jnp.transpose(p["w_l2"]).reshape(NH, SY, SX)        # (NH, SY, SX)
    b2r = p["b_l2"].reshape(SY, SX) + jnp.einsum("h,hyx->yx", t2, w2r)
    w2r_eff = g2[:, None, None] * w2r
    # --- conv folding ---
    s0, t0 = _bn_affine(*p["bn3"])                            # BN2d(1)
    gc, tc = _bn_affine(*p["bn4"])                            # BN2d(NC)
    w1f = p["w_c1"].reshape(NC * KK)                          # (c, ky, kx) flat
    # Fold gamma into conv2 weights; the shift tc is applied as +tc/gc before
    # the zero-padded conv2 (exact; tc cannot go into the conv2 bias).
    w2g = (p["w_c2"][0] * gc[:, None, None]).reshape(NC * KK)
    tcg = tc / gc
    misc = jnp.stack([s0[0], t0[0], p["b_c2"][0]])            # [s0, t0, b_c2]
    return dict(a1=a1, c1=c1, misc=misc, w1f=w1f, b1=p["b_c1"],
                tcg=tcg, w2g=w2g, w2r=w2r_eff, b2r=b2r)


# -----------------------------------------------------------------------------
# Pure-JAX reference (eval-mode BN), built directly from the unfolded params.
# -----------------------------------------------------------------------------
def reference_forward(x, p):
    g, be, rm, rv = p["bn1"]
    z = (x - rm) * (g / jnp.sqrt(rv + EPS)) + be
    z = z @ p["w_l1"].T + p["b_l1"]
    z = _leaky(z)
    g, be, rm, rv = p["bn2"]
    z = (z - rm) * (g / jnp.sqrt(rv + EPS)) + be
    z = z @ p["w_l2"].T + p["b_l2"]
    z = _leaky(z)
    img = z.reshape(-1, 1, SY, SX)
    g, be, rm, rv = p["bn3"]
    img = (img - rm[None, :, None, None]) \
        * (g / jnp.sqrt(rv + EPS))[None, :, None, None] + be[None, :, None, None]
    h = lax.conv_general_dilated(img, p["w_c1"], (1, 1), "SAME",
                                 dimension_numbers=("NCHW", "OIHW", "NCHW"))
    h = _leaky(h + p["b_c1"][None, :, None, None])
    g, be, rm, rv = p["bn4"]
    h = (h - rm[None, :, None, None]) \
        * (g / jnp.sqrt(rv + EPS))[None, :, None, None] + be[None, :, None, None]
    o = lax.conv_general_dilated(h, p["w_c2"], (1, 1), "SAME",
                                 dimension_numbers=("NCHW", "OIHW", "NCHW"))
    o = jax.nn.sigmoid(o + p["b_c2"][None, :, None, None])
    return o[:, 0]


if __name__ == "__main__":
    key = jax.random.PRNGKey(0)
    kp, kx = jax.random.split(key)
    params = init_params(kp)
    folded = fold_params(params)

    x = jax.random.normal(kx, (2, 1), jnp.float32)   # (batch, 1) poly parameter

    out = jax.block_until_ready(poly_params_to_image(x, folded))
    assert out.shape == (2, SY, SX) and out.dtype == jnp.float32

    ref = reference_forward(x, params)
    err = float(jnp.max(jnp.abs(out - ref)))
    assert jnp.allclose(out, ref, atol=1e-3, rtol=1e-3), err

    print("KERNEL_OK")
</pallas_src>

<mosaic_0001>
module attributes {stable_mosaic.version = 11 : i64} {
  func.func @fused_kernel(%arg0: i32, %arg1: memref<2xf32, #tpu.memory_space<smem>>, %arg2: memref<20xf32, #tpu.memory_space<smem>>, %arg3: memref<20xf32, #tpu.memory_space<smem>>, %arg4: memref<3xf32, #tpu.memory_space<smem>>, %arg5: memref<500xf32, #tpu.memory_space<smem>>, %arg6: memref<20xf32, #tpu.memory_space<smem>>, %arg7: memref<20xf32, #tpu.memory_space<smem>>, %arg8: memref<500xf32, #tpu.memory_space<smem>>, %arg9: memref<20x64x128xf32, #tpu.memory_space<vmem>>, %arg10: memref<64x128xf32, #tpu.memory_space<vmem>>, %arg11: memref<1x64x128xf32, #tpu.memory_space<vmem>>, %arg12: memref<5x68x128xf32, #tpu.memory_space<vmem>>, %arg13: memref<20x68x128xf32, #tpu.memory_space<vmem>>) attributes {dimension_semantics = [#tpu.dimension_semantics<parallel>], iteration_bounds = array<i64: 2>, scalar_prefetch = 0 : i64, scratch_operands = 2 : i64, tpu.core_type = #tpu.core_type<tc>, window_params = [{transform_indices = @transform_0, window_bounds = array<i64: 2>}, {transform_indices = @transform_1, window_bounds = array<i64: 20>}, {transform_indices = @transform_2, window_bounds = array<i64: 20>}, {transform_indices = @transform_3, window_bounds = array<i64: 3>}, {transform_indices = @transform_4, window_bounds = array<i64: 500>}, {transform_indices = @transform_5, window_bounds = array<i64: 20>}, {transform_indices = @transform_6, window_bounds = array<i64: 20>}, {transform_indices = @transform_7, window_bounds = array<i64: 500>}, {pipeline_mode = #tpu.pipeline_mode<synchronous>, transform_indices = @transform_8, window_bounds = array<i64: 20, 64, 128>}, {pipeline_mode = #tpu.pipeline_mode<synchronous>, transform_indices = @transform_9, window_bounds = array<i64: 64, 128>}, {transform_indices = @transform_10, window_bounds = array<i64: 1, 64, 128>}]} {
    %cst = arith.constant 0.000000e+00 : f32
    %0 = vector.broadcast %cst : f32 to vector<5x2x128xf32>
    %c0 = arith.constant 0 : index
    %c0_0 = arith.constant 0 : index
    %c0_1 = arith.constant 0 : index
    %1 = vector.load %arg12[%c0, %c0_0, %c0_1] : memref<5x68x128xf32, #tpu.memory_space<vmem>>, vector<5x2x128xf32>
    tpu.vector_store %arg12[%c0, %c0_0, %c0_1], %0 {strides = array<i32>} : memref<5x68x128xf32, #tpu.memory_space<vmem>>, vector<5x2x128xf32>,
    %cst_2 = arith.constant 0.000000e+00 : f32
    %2 = vector.broadcast %cst_2 : f32 to vector<5x2x128xf32>
    %c0_3 = arith.constant 0 : index
    %c66 = arith.constant 66 : index
    %c0_4 = arith.constant 0 : index
    %3 = vector.load %arg12[%c0_3, %c66, %c0_4] : memref<5x68x128xf32, #tpu.memory_space<vmem>>, vector<5x2x128xf32>
    tpu.vector_store %arg12[%c0_3, %c66, %c0_4], %2 {strides = array<i32>} : memref<5x68x128xf32, #tpu.memory_space<vmem>>, vector<5x2x128xf32>,
    %cst_5 = arith.constant 0.000000e+00 : f32
    %4 = vector.broadcast %cst_5 : f32 to vector<20x2x128xf32>
    %c0_6 = arith.constant 0 : index
    %c0_7 = arith.constant 0 : index
    %c0_8 = arith.constant 0 : index
    %5 = vector.load %arg13[%c0_6, %c0_7, %c0_8] : memref<20x68x128xf32, #tpu.memory_space<vmem>>, vector<20x2x128xf32>
    tpu.vector_store %arg13[%c0_6, %c0_7, %c0_8], %4 {strides = array<i32>} : memref<20x68x128xf32, #tpu.memory_space<vmem>>, vector<20x2x128xf32>,
    %cst_9 = arith.constant 0.000000e+00 : f32
    %6 = vector.broadcast %cst_9 : f32 to vector<20x2x128xf32>
    %c0_10 = arith.constant 0 : index
    %c66_11 = arith.constant 66 : index
    %c0_12 = arith.constant 0 : index
    %7 = vector.load %arg13[%c0_10, %c66_11, %c0_12] : memref<20x68x128xf32, #tpu.memory_space<vmem>>, vector<20x2x128xf32>
    tpu.vector_store %arg13[%c0_10, %c66_11, %c0_12], %6 {strides = array<i32>} : memref<20x68x128xf32, #tpu.memory_space<vmem>>, vector<20x2x128xf32>,
    %8 = arith.index_cast %arg0 : i32 to index
    %9 = memref.load %arg1[%8] : memref<2xf32, #tpu.memory_space<smem>>
    %c0_13 = arith.constant 0 : index
    %c0_14 = arith.constant 0 : index
    %10 = vector.load %arg10[%c0_13, %c0_14] : memref<64x128xf32, #tpu.memory_space<vmem>>, vector<64x128xf32>
    %c0_15 = arith.constant 0 : index
    %11 = memref.load %arg2[%c0_15] : memref<20xf32, #tpu.memory_space<smem>>
    %12 = arith.mulf %9, %11 : f32
    %c0_16 = arith.constant 0 : index
    %13 = memref.load %arg3[%c0_16] : memref<20xf32, #tpu.memory_space<smem>>
    %14 = arith.addf %12, %13 : f32
    %15 = vector.broadcast %14 : f32 to vector<64x128xf32>
    %c0_17 = arith.constant 0 : index
    %c0_18 = arith.constant 0 : index
    %c0_19 = arith.constant 0 : index
    %16 = vector.load %arg9[%c0_17, %c0_18, %c0_19] : memref<20x64x128xf32, #tpu.memory_space<vmem>>, vector<1x64x128xf32>
    %17 = vector.shape_cast %16 : vector<1x64x128xf32> to vector<64x128xf32>
    %18 = vector.broadcast %14 : f32 to vector<64x128xf32>
    %19 = arith.mulf %18, %17 : vector<64x128xf32>
    %cst_20 = arith.constant 0.000000e+00 : f32
    %20 = vector.broadcast %cst_20 : f32 to vector<64x128xf32>
    %21 = arith.cmpf oge, %15, %20 : vector<64x128xf32>
    %cst_21 = arith.constant 2.000000e-01 : f32
    %22 = vector.broadcast %cst_21 : f32 to vector<64x128xf32>
    %23 = arith.mulf %22, %19 : vector<64x128xf32>
    %24 = arith.select %21, %19, %23 : vector<64x128xi1>, vector<64x128xf32>
    %25 = arith.addf %10, %24 : vector<64x128xf32>
    %c1 = arith.constant 1 : index
    %26 = memref.load %arg2[%c1] : memref<20xf32, #tpu.memory_space<smem>>
    %27 = arith.mulf %9, %26 : f32
    %c1_22 = arith.constant 1 : index
    %28 = memref.load %arg3[%c1_22] : memref<20xf32, #tpu.memory_space<smem>>
    %29 = arith.addf %27, %28 : f32
    %30 = vector.broadcast %29 : f32 to vector<64x128xf32>
    %c1_23 = arith.constant 1 : index
    %c0_24 = arith.constant 0 : index
    %c0_25 = arith.constant 0 : index
    %31 = vector.load %arg9[%c1_23, %c0_24, %c0_25] : memref<20x64x128xf32, #tpu.memory_space<vmem>>, vector<1x64x128xf32>
    %32 = vector.shape_cast %31 : vector<1x64x128xf32> to vector<64x128xf32>
    %33 = vector.broadcast %29 : f32 to vector<64x128xf32>
    %34 = arith.mulf %33, %32 : vector<64x128xf32>
    %cst_26 = arith.constant 0.000000e+00 : f32
    %35 = vector.broadcast %cst_26 : f32 to vector<64x128xf32>
    %36 = arith.cmpf oge, %30, %35 : vector<64x128xf32>
    %cst_27 = arith.constant 2.000000e-01 : f32
    %37 = vector.broadcast %cst_27 : f32 to vector<64x128xf32>
    %38 = arith.mulf %37, %34 : vector<64x128xf32>
    %39 = arith.select %36, %34, %38 : vector<64x128xi1>, vector<64x128xf32>
    %40 = arith.addf %25, %39 : vector<64x128xf32>
    %c2 = arith.constant 2 : index
    %41 = memref.load %arg2[%c2] : memref<20xf32, #tpu.memory_space<smem>>
    %42 = arith.mulf %9, %41 : f32
    %c2_28 = arith.constant 2 : index
    %43 = memref.load %arg3[%c2_28] : memref<20xf32, #tpu.memory_space<smem>>
    %44 = arith.addf %42, %43 : f32
    %45 = vector.broadcast %44 : f32 to vector<64x128xf32>
    %c2_29 = arith.constant 2 : index
    %c0_30 = arith.constant 0 : index
    %c0_31 = arith.constant 0 : index
    %46 = vector.load %arg9[%c2_29, %c0_30, %c0_31] : memref<20x64x128xf32, #tpu.memory_space<vmem>>, vector<1x64x128xf32>
    %47 = vector.shape_cast %46 : vector<1x64x128xf32> to vector<64x128xf32>
    %48 = vector.broadcast %44 : f32 to vector<64x128xf32>
    %49 = arith.mulf %48, %47 : vector<64x128xf32>
    %cst_32 = arith.constant 0.000000e+00 : f32
    %50 = vector.broadcast %cst_32 : f32 to vector<64x128xf32>
    %51 = arith.cmpf oge, %45, %50 : vector<64x128xf32>
    %cst_33 = arith.constant 2.000000e-01 : f32
    %52 = vector.broadcast %cst_33 : f32 to vector<64x128xf32>
    %53 = arith.mulf %52, %49 : vector<64x128xf32>
    %54 = arith.select %51, %49, %53 : vector<64x128xi1>, vector<64x128xf32>
    %55 = arith.addf %40, %54 : vector<64x128xf32>
    %c3 = arith.constant 3 : index
    %56 = memref.load %arg2[%c3] : memref<20xf32, #tpu.memory_space<smem>>
    %57 = arith.mulf %9, %56 : f32
    %c3_34 = arith.constant 3 : index
    %58 = memref.load %arg3[%c3_34] : memref<20xf32, #tpu.memory_space<smem>>
    %59 = arith.addf %57, %58 : f32
    %60 = vector.broadcast %59 : f32 to vector<64x128xf32>
    %c3_35 = arith.constant 3 : index
    %c0_36 = arith.constant 0 : index
    %c0_37 = arith.constant 0 : index
    %61 = vector.load %arg9[%c3_35, %c0_36, %c0_37] : memref<20x64x128xf32, #tpu.memory_space<vmem>>, vector<1x64x128xf32>
    %62 = vector.shape_cast %61 : vector<1x64x128xf32> to vector<64x128xf32>
    %63 = vector.broadcast %59 : f32 to vector<64x128xf32>
    %64 = arith.mulf %63, %62 : vector<64x128xf32>
    %cst_38 = arith.constant 0.000000e+00 : f32
    %65 = vector.broadcast %cst_38 : f32 to vector<64x128xf32>
    %66 = arith.cmpf oge, %60, %65 : vector<64x128xf32>
    %cst_39 = arith.constant 2.000000e-01 : f32
    %67 = vector.broadcast %cst_39 : f32 to vector<64x128xf32>
    %68 = arith.mulf %67, %64 : vector<64x128xf32>
    %69 = arith.select %66, %64, %68 : vector<64x128xi1>, vector<64x128xf32>
    %70 = arith.addf %55, %69 : vector<64x128xf32>
    %c4 = arith.constant 4 : index
    %71 = memref.load %arg2[%c4] : memref<20xf32, #tpu.memory_space<smem>>
    %72 = arith.mulf %9, %71 : f32
    %c4_40 = arith.constant 4 : index
    %73 = memref.load %arg3[%c4_40] : memref<20xf32, #tpu.memory_space<smem>>
    %74 = arith.addf %72, %73 : f32
    %75 = vector.broadcast %74 : f32 to vector<64x128xf32>
    %c4_41 = arith.constant 4 : index
    %c0_42 = arith.constant 0 : index
    %c0_43 = arith.constant 0 : index
    %76 = vector.load %arg9[%c4_41, %c0_42, %c0_43] : memref<20x64x128xf32, #tpu.memory_space<vmem>>, vector<1x64x128xf32>
    %77 = vector.shape_cast %76 : vector<1x64x128xf32> to vector<64x128xf32>
    %78 = vector.broadcast %74 : f32 to vector<64x128xf32>
    %79 = arith.mulf %78, %77 : vector<64x128xf32>
    %cst_44 = arith.constant 0.000000e+00 : f32
    %80 = vector.broadcast %cst_44 : f32 to vector<64x128xf32>
    %81 = arith.cmpf oge, %75, %80 : vector<64x128xf32>
    %cst_45 = arith.constant 2.000000e-01 : f32
    %82 = vector.broadcast %cst_45 : f32 to vector<64x128xf32>
    %83 = arith.mulf %82, %79 : vector<64x128xf32>
    %84 = arith.select %81, %79, %83 : vector<64x128xi1>, vector<64x128xf32>
    %85 = arith.addf %70, %84 : vector<64x128xf32>
    %c5 = arith.constant 5 : index
    %86 = memref.load %arg2[%c5] : memref<20xf32, #tpu.memory_space<smem>>
    %87 = arith.mulf %9, %86 : f32
    %c5_46 = arith.constant 5 : index
    %88 = memref.load %arg3[%c5_46] : memref<20xf32, #tpu.memory_space<smem>>
    %89 = arith.addf %87, %88 : f32
    %90 = vector.broadcast %89 : f32 to vector<64x128xf32>
    %c5_47 = arith.constant 5 : index
    %c0_48 = arith.constant 0 : index
    %c0_49 = arith.constant 0 : index
    %91 = vector.load %arg9[%c5_47, %c0_48, %c0_49] : memref<20x64x128xf32, #tpu.memory_space<vmem>>, vector<1x64x128xf32>
    %92 = vector.shape_cast %91 : vector<1x64x128xf32> to vector<64x128xf32>
    %93 = vector.broadcast %89 : f32 to vector<64x128xf32>
    %94 = arith.mulf %93, %92 : vector<64x128xf32>
    %cst_50 = arith.constant 0.000000e+00 : f32
    %95 = vector.broadcast %cst_50 : f32 to vector<64x128xf32>
    %96 = arith.cmpf oge, %90, %95 : vector<64x128xf32>
    %cst_51 = arith.constant 2.000000e-01 : f32
    %97 = vector.broadcast %cst_51 : f32 to vector<64x128xf32>
    %98 = arith.mulf %97, %94 : vector<64x128xf32>
    %99 = arith.select %96, %94, %98 : vector<64x128xi1>, vector<64x128xf32>
    %100 = arith.addf %85, %99 : vector<64x128xf32>
    %c6 = arith.constant 6 : index
    %101 = memref.load %arg2[%c6] : memref<20xf32, #tpu.memory_space<smem>>
    %102 = arith.mulf %9, %101 : f32
    %c6_52 = arith.constant 6 : index
    %103 = memref.load %arg3[%c6_52] : memref<20xf32, #tpu.memory_space<smem>>
    %104 = arith.addf %102, %103 : f32
    %105 = vector.broadcast %104 : f32 to vector<64x128xf32>
    %c6_53 = arith.constant 6 : index
    %c0_54 = arith.constant 0 : index
    %c0_55 = arith.constant 0 : index
    %106 = vector.load %arg9[%c6_53, %c0_54, %c0_55] : memref<20x64x128xf32, #tpu.memory_space<vmem>>, vector<1x64x128xf32>
    %107 = vector.shape_cast %106 : vector<1x64x128xf32> to vector<64x128xf32>
    %108 = vector.broadcast %104 : f32 to vector<64x128xf32>
    %109 = arith.mulf %108, %107 : vector<64x128xf32>
    %cst_56 = arith.constant 0.000000e+00 : f32
    %110 = vector.broadcast %cst_56 : f32 to vector<64x128xf32>
    %111 = arith.cmpf oge, %105, %110 : vector<64x128xf32>
    %cst_57 = arith.constant 2.000000e-01 : f32
    %112 = vector.broadcast %cst_57 : f32 to vector<64x128xf32>
    %113 = arith.mulf %112, %109 : vector<64x128xf32>
    %114 = arith.select %111, %109, %113 : vector<64x128xi1>, vector<64x128xf32>
    %115 = arith.addf %100, %114 : vector<64x128xf32>
    %c7 = arith.constant 7 : index
    %116 = memref.load %arg2[%c7] : memref<20xf32, #tpu.memory_space<smem>>
    %117 = arith.mulf %9, %116 : f32
    %c7_58 = arith.constant 7 : index
    %118 = memref.load %arg3[%c7_58] : memref<20xf32, #tpu.memory_space<smem>>
    %119 = arith.addf %117, %118 : f32
    %120 = vector.broadcast %119 : f32 to vector<64x128xf32>
    %c7_59 = arith.constant 7 : index
    %c0_60 = arith.constant 0 : index
    %c0_61 = arith.constant 0 : index
    %121 = vector.load %arg9[%c7_59, %c0_60, %c0_61] : memref<20x64x128xf32, #tpu.memory_space<vmem>>, vector<1x64x128xf32>
    %122 = vector.shape_cast %121 : vector<1x64x128xf32> to vector<64x128xf32>
    %123 = vector.broadcast %119 : f32 to vector<64x128xf32>
    %124 = arith.mulf %123, %122 : vector<64x128xf32>
    %cst_62 = arith.constant 0.000000e+00 : f32
    %125 = vector.broadcast %cst_62 : f32 to vector<64x128xf32>
    %126 = arith.cmpf oge, %120, %125 : vector<64x128xf32>
    %cst_63 = arith.constant 2.000000e-01 : f32
    %127 = vector.broadcast %cst_63 : f32 to vector<64x128xf32>
    %128 = arith.mulf %127, %124 : vector<64x128xf32>
    %129 = arith.select %126, %124, %128 : vector<64x128xi1>, vector<64x128xf32>
    %130 = arith.addf %115, %129 : vector<64x128xf32>
    %c8 = arith.constant 8 : index
    %131 = memref.load %arg2[%c8] : memref<20xf32, #tpu.memory_space<smem>>
    %132 = arith.mulf %9, %131 : f32
    %c8_64 = arith.constant 8 : index
    %133 = memref.load %arg3[%c8_64] : memref<20xf32, #tpu.memory_space<smem>>
    %134 = arith.addf %132, %133 : f32
    %135 = vector.broadcast %134 : f32 to vector<64x128xf32>
    %c8_65 = arith.constant 8 : index
    %c0_66 = arith.constant 0 : index
    %c0_67 = arith.constant 0 : index
    %136 = vector.load %arg9[%c8_65, %c0_66, %c0_67] : memref<20x64x128xf32, #tpu.memory_space<vmem>>, vector<1x64x128xf32>
    %137 = vector.shape_cast %136 : vector<1x64x128xf32> to vector<64x128xf32>
    %138 = vector.broadcast %134 : f32 to vector<64x128xf32>
    %139 = arith.mulf %138, %137 : vector<64x128xf32>
    %cst_68 = arith.constant 0.000000e+00 : f32
    %140 = vector.broadcast %cst_68 : f32 to vector<64x128xf32>
    %141 = arith.cmpf oge, %135, %140 : vector<64x128xf32>
    %cst_69 = arith.constant 2.000000e-01 : f32
    %142 = vector.broadcast %cst_69 : f32 to vector<64x128xf32>
    %143 = arith.mulf %142, %139 : vector<64x128xf32>
    %144 = arith.select %141, %139, %143 : vector<64x128xi1>, vector<64x128xf32>
    %145 = arith.addf %130, %144 : vector<64x128xf32>
    %c9 = arith.constant 9 : index
    %146 = memref.load %arg2[%c9] : memref<20xf32, #tpu.memory_space<smem>>
    %147 = arith.mulf %9, %146 : f32
    %c9_70 = arith.constant 9 : index
    %148 = memref.load %arg3[%c9_70] : memref<20xf32, #tpu.memory_space<smem>>
    %149 = arith.addf %147, %148 : f32
    %150 = vector.broadcast %149 : f32 to vector<64x128xf32>
    %c9_71 = arith.constant 9 : index
    %c0_72 = arith.constant 0 : index
    %c0_73 = arith.constant 0 : index
    %151 = vector.load %arg9[%c9_71, %c0_72, %c0_73] : memref<20x64x128xf32, #tpu.memory_space<vmem>>, vector<1x64x128xf32>
    %152 = vector.shape_cast %151 : vector<1x64x128xf32> to vector<64x128xf32>
    %153 = vector.broadcast %149 : f32 to vector<64x128xf32>
    %154 = arith.mulf %153, %152 : vector<64x128xf32>
    %cst_74 = arith.constant 0.000000e+00 : f32
    %155 = vector.broadcast %cst_74 : f32 to vector<64x128xf32>
    %156 = arith.cmpf oge, %150, %155 : vector<64x128xf32>
    %cst_75 = arith.constant 2.000000e-01 : f32
    %157 = vector.broadcast %cst_75 : f32 to vector<64x128xf32>
    %158 = arith.mulf %157, %154 : vector<64x128xf32>
    %159 = arith.select %156, %154, %158 : vector<64x128xi1>, vector<64x128xf32>
    %160 = arith.addf %145, %159 : vector<64x128xf32>
    %c10 = arith.constant 10 : index
    %161 = memref.load %arg2[%c10] : memref<20xf32, #tpu.memory_space<smem>>
    %162 = arith.mulf %9, %161 : f32
    %c10_76 = arith.constant 10 : index
    %163 = memref.load %arg3[%c10_76] : memref<20xf32, #tpu.memory_space<smem>>
    %164 = arith.addf %162, %163 : f32
    %165 = vector.broadcast %164 : f32 to vector<64x128xf32>
    %c10_77 = arith.constant 10 : index
    %c0_78 = arith.constant 0 : index
    %c0_79 = arith.constant 0 : index
    %166 = vector.load %arg9[%c10_77, %c0_78, %c0_79] : memref<20x64x128xf32, #tpu.memory_space<vmem>>, vector<1x64x128xf32>
    %167 = vector.shape_cast %166 : vector<1x64x128xf32> to vector<64x128xf32>
    %168 = vector.broadcast %164 : f32 to vector<64x128xf32>
    %169 = arith.mulf %168, %167 : vector<64x128xf32>
    %cst_80 = arith.constant 0.000000e+00 : f32
    %170 = vector.broadcast %cst_80 : f32 to vector<64x128xf32>
    %171 = arith.cmpf oge, %165, %170 : vector<64x128xf32>
    %cst_81 = arith.constant 2.000000e-01 : f32
    %172 = vector.broadcast %cst_81 : f32 to vector<64x128xf32>
    %173 = arith.mulf %172, %169 : vector<64x128xf32>
    %174 = arith.select %171, %169, %173 : vector<64x128xi1>, vector<64x128xf32>
    %175 = arith.addf %160, %174 : vector<64x128xf32>
    %c11 = arith.constant 11 : index
    %176 = memref.load %arg2[%c11] : memref<20xf32, #tpu.memory_space<smem>>
    %177 = arith.mulf %9, %176 : f32
    %c11_82 = arith.constant 11 : index
    %178 = memref.load %arg3[%c11_82] : memref<20xf32, #tpu.memory_space<smem>>
    %179 = arith.addf %177, %178 : f32
    %180 = vector.broadcast %179 : f32 to vector<64x128xf32>
    %c11_83 = arith.constant 11 : index
    %c0_84 = arith.constant 0 : index
    %c0_85 = arith.constant 0 : index
    %181 = vector.load %arg9[%c11_83, %c0_84, %c0_85] : memref<20x64x128xf32, #tpu.memory_space<vmem>>, vector<1x64x128xf32>
    %182 = vector.shape_cast %181 : vector<1x64x128xf32> to vector<64x128xf32>
    %183 = vector.broadcast %179 : f32 to vector<64x128xf32>
    %184 = arith.mulf %183, %182 : vector<64x128xf32>
    %cst_86 = arith.constant 0.000000e+00 : f32
    %185 = vector.broadcast %cst_86 : f32 to vector<64x128xf32>
    %186 = arith.cmpf oge, %180, %185 : vector<64x128xf32>
    %cst_87 = arith.constant 2.000000e-01 : f32
    %187 = vector.broadcast %cst_87 : f32 to vector<64x128xf32>
    %188 = arith.mulf %187, %184 : vector<64x128xf32>
    %189 = arith.select %186, %184, %188 : vector<64x128xi1>, vector<64x128xf32>
    %190 = arith.addf %175, %189 : vector<64x128xf32>
    %c12 = arith.constant 12 : index
    %191 = memref.load %arg2[%c12] : memref<20xf32, #tpu.memory_space<smem>>
    %192 = arith.mulf %9, %191 : f32
    %c12_88 = arith.constant 12 : index
    %193 = memref.load %arg3[%c12_88] : memref<20xf32, #tpu.memory_space<smem>>
    %194 = arith.addf %192, %193 : f32
    %195 = vector.broadcast %194 : f32 to vector<64x128xf32>
    %c12_89 = arith.constant 12 : index
    %c0_90 = arith.constant 0 : index
    %c0_91 = arith.constant 0 : index
    %196 = vector.load %arg9[%c12_89, %c0_90, %c0_91] : memref<20x64x128xf32, #tpu.memory_space<vmem>>, vector<1x64x128xf32>
    %197 = vector.shape_cast %196 : vector<1x64x128xf32> to vector<64x128xf32>
    %198 = vector.broadcast %194 : f32 to vector<64x128xf32>
    %199 = arith.mulf %198, %197 : vector<64x128xf32>
    %cst_92 = arith.constant 0.000000e+00 : f32
    %200 = vector.broadcast %cst_92 : f32 to vector<64x128xf32>
    %201 = arith.cmpf oge, %195, %200 : vector<64x128xf32>
    %cst_93 = arith.constant 2.000000e-01 : f32
    %202 = vector.broadcast %cst_93 : f32 to vector<64x128xf32>
    %203 = arith.mulf %202, %199 : vector<64x128xf32>
    %204 = arith.select %201, %199, %203 : vector<64x128xi1>, vector<64x128xf32>
    %205 = arith.addf %190, %204 : vector<64x128xf32>
    %c13 = arith.constant 13 : index
    %206 = memref.load %arg2[%c13] : memref<20xf32, #tpu.memory_space<smem>>
    %207 = arith.mulf %9, %206 : f32
    %c13_94 = arith.constant 13 : index
    %208 = memref.load %arg3[%c13_94] : memref<20xf32, #tpu.memory_space<smem>>
    %209 = arith.addf %207, %208 : f32
    %210 = vector.broadcast %209 : f32 to vector<64x128xf32>
    %c13_95 = arith.constant 13 : index
    %c0_96 = arith.constant 0 : index
    %c0_97 = arith.constant 0 : index
    %211 = vector.load %arg9[%c13_95, %c0_96, %c0_97] : memref<20x64x128xf32, #tpu.memory_space<vmem>>, vector<1x64x128xf32>
    %212 = vector.shape_cast %211 : vector<1x64x128xf32> to vector<64x128xf32>
    %213 = vector.broadcast %209 : f32 to vector<64x128xf32>
    %214 = arith.mulf %213, %212 : vector<64x128xf32>
    %cst_98 = arith.constant 0.000000e+00 : f32
    %215 = vector.broadcast %cst_98 : f32 to vector<64x128xf32>
    %216 = arith.cmpf oge, %210, %215 : vector<64x128xf32>
    %cst_99 = arith.constant 2.000000e-01 : f32
    %217 = vector.broadcast %cst_99 : f32 to vector<64x128xf32>
    %218 = arith.mulf %217, %214 : vector<64x128xf32>
    %219 = arith.select %216, %214, %218 : vector<64x128xi1>, vector<64x128xf32>
    %220 = arith.addf %205, %219 : vector<64x128xf32>
    %c14 = arith.constant 14 : index
    %221 = memref.load %arg2[%c14] : memref<20xf32, #tpu.memory_space<smem>>
    %222 = arith.mulf %9, %221 : f32
    %c14_100 = arith.constant 14 : index
    %223 = memref.load %arg3[%c14_100] : memref<20xf32, #tpu.memory_space<smem>>
    %224 = arith.addf %222, %223 : f32
    %225 = vector.broadcast %224 : f32 to vector<64x128xf32>
    %c14_101 = arith.constant 14 : index
    %c0_102 = arith.constant 0 : index
    %c0_103 = arith.constant 0 : index
    %226 = vector.load %arg9[%c14_101, %c0_102, %c0_103] : memref<20x64x128xf32, #tpu.memory_space<vmem>>, vector<1x64x128xf32>
    %227 = vector.shape_cast %226 : vector<1x64x128xf32> to vector<64x128xf32>
    %228 = vector.broadcast %224 : f32 to vector<64x128xf32>
    %229 = arith.mulf %228, %227 : vector<64x128xf32>
    %cst_104 = arith.constant 0.000000e+00 : f32
    %230 = vector.broadcast %cst_104 : f32 to vector<64x128xf32>
    %231 = arith.cmpf oge, %225, %230 : vector<64x128xf32>
    %cst_105 = arith.constant 2.000000e-01 : f32
    %232 = vector.broadcast %cst_105 : f32 to vector<64x128xf32>
    %233 = arith.mulf %232, %229 : vector<64x128xf32>
    %234 = arith.select %231, %229, %233 : vector<64x128xi1>, vector<64x128xf32>
    %235 = arith.addf %220, %234 : vector<64x128xf32>
    %c15 = arith.constant 15 : index
    %236 = memref.load %arg2[%c15] : memref<20xf32, #tpu.memory_space<smem>>
    %237 = arith.mulf %9, %236 : f32
    %c15_106 = arith.constant 15 : index
    %238 = memref.load %arg3[%c15_106] : memref<20xf32, #tpu.memory_space<smem>>
    %239 = arith.addf %237, %238 : f32
    %240 = vector.broadcast %239 : f32 to vector<64x128xf32>
    %c15_107 = arith.constant 15 : index
    %c0_108 = arith.constant 0 : index
    %c0_109 = arith.constant 0 : index
    %241 = vector.load %arg9[%c15_107, %c0_108, %c0_109] : memref<20x64x128xf32, #tpu.memory_space<vmem>>, vector<1x64x128xf32>
    %242 = vector.shape_cast %241 : vector<1x64x128xf32> to vector<64x128xf32>
    %243 = vector.broadcast %239 : f32 to vector<64x128xf32>
    %244 = arith.mulf %243, %242 : vector<64x128xf32>
    %cst_110 = arith.constant 0.000000e+00 : f32
    %245 = vector.broadcast %cst_110 : f32 to vector<64x128xf32>
    %246 = arith.cmpf oge, %240, %245 : vector<64x128xf32>
    %cst_111 = arith.constant 2.000000e-01 : f32
    %247 = vector.broadcast %cst_111 : f32 to vector<64x128xf32>
    %248 = arith.mulf %247, %244 : vector<64x128xf32>
    %249 = arith.select %246, %244, %248 : vector<64x128xi1>, vector<64x128xf32>
    %250 = arith.addf %235, %249 : vector<64x128xf32>
    %c16 = arith.constant 16 : index
    %251 = memref.load %arg2[%c16] : memref<20xf32, #tpu.memory_space<smem>>
    %252 = arith.mulf %9, %251 : f32
    %c16_112 = arith.constant 16 : index
    %253 = memref.load %arg3[%c16_112] : memref<20xf32, #tpu.memory_space<smem>>
    %254 = arith.addf %252, %253 : f32
    %255 = vector.broadcast %254 : f32 to vector<64x128xf32>
    %c16_113 = arith.constant 16 : index
    %c0_114 = arith.constant 0 : index
    %c0_115 = arith.constant 0 : index
    %256 = vector.load %arg9[%c16_113, %c0_114, %c0_115] : memref<20x64x128xf32, #tpu.memory_space<vmem>>, vector<1x64x128xf32>
    %257 = vector.shape_cast %256 : vector<1x64x128xf32> to vector<64x128xf32>
    %258 = vector.broadcast %254 : f32 to vector<64x128xf32>
    %259 = arith.mulf %258, %257 : vector<64x128xf32>
    %cst_116 = arith.constant 0.000000e+00 : f32
    %260 = vector.broadcast %cst_116 : f32 to vector<64x128xf32>
    %261 = arith.cmpf oge, %255, %260 : vector<64x128xf32>
    %cst_117 = arith.constant 2.000000e-01 : f32
    %262 = vector.broadcast %cst_117 : f32 to vector<64x128xf32>
    %263 = arith.mulf %262, %259 : vector<64x128xf32>
    %264 = arith.select %261, %259, %263 : vector<64x128xi1>, vector<64x128xf32>
    %265 = arith.addf %250, %264 : vector<64x128xf32>
    %c17 = arith.constant 17 : index
    %266 = memref.load %arg2[%c17] : memref<20xf32, #tpu.memory_space<smem>>
    %267 = arith.mulf %9, %266 : f32
    %c17_118 = arith.constant 17 : index
    %268 = memref.load %arg3[%c17_118] : memref<20xf32, #tpu.memory_space<smem>>
    %269 = arith.addf %267, %268 : f32
    %270 = vector.broadcast %269 : f32 to vector<64x128xf32>
    %c17_119 = arith.constant 17 : index
    %c0_120 = arith.constant 0 : index
    %c0_121 = arith.constant 0 : index
    %271 = vector.load %arg9[%c17_119, %c0_120, %c0_121] : memref<20x64x128xf32, #tpu.memory_space<vmem>>, vector<1x64x128xf32>
    %272 = vector.shape_cast %271 : vector<1x64x128xf32> to vector<64x128xf32>
    %273 = vector.broadcast %269 : f32 to vector<64x128xf32>
    %274 = arith.mulf %273, %272 : vector<64x128xf32>
    %cst_122 = arith.constant 0.000000e+00 : f32
    %275 = vector.broadcast %cst_122 : f32 to vector<64x128xf32>
    %276 = arith.cmpf oge, %270, %275 : vector<64x128xf32>
    %cst_123 = arith.constant 2.000000e-01 : f32
    %277 = vector.broadcast %cst_123 : f32 to vector<64x128xf32>
    %278 = arith.mulf %277, %274 : vector<64x128xf32>
    %279 = arith.select %276, %274, %278 : vector<64x128xi1>, vector<64x128xf32>
    %280 = arith.addf %265, %279 : vector<64x128xf32>
    %c18 = arith.constant 18 : index
    %281 = memref.load %arg2[%c18] : memref<20xf32, #tpu.memory_space<smem>>
    %282 = arith.mulf %9, %281 : f32
    %c18_124 = arith.constant 18 : index
    %283 = memref.load %arg3[%c18_124] : memref<20xf32, #tpu.memory_space<smem>>
    %284 = arith.addf %282, %283 : f32
    %285 = vector.broadcast %284 : f32 to vector<64x128xf32>
    %c18_125 = arith.constant 18 : index
    %c0_126 = arith.constant 0 : index
    %c0_127 = arith.constant 0 : index
    %286 = vector.load %arg9[%c18_125, %c0_126, %c0_127] : memref<20x64x128xf32, #tpu.memory_space<vmem>>, vector<1x64x128xf32>
    %287 = vector.shape_cast %286 : vector<1x64x128xf32> to vector<64x128xf32>
    %288 = vector.broadcast %284 : f32 to vector<64x128xf32>
    %289 = arith.mulf %288, %287 : vector<64x128xf32>
    %cst_128 = arith.constant 0.000000e+00 : f32
    %290 = vector.broadcast %cst_128 : f32 to vector<64x128xf32>
    %291 = arith.cmpf oge, %285, %290 : vector<64x128xf32>
    %cst_129 = arith.constant 2.000000e-01 : f32
    %292 = vector.broadcast %cst_129 : f32 to vector<64x128xf32>
    %293 = arith.mulf %292, %289 : vector<64x128xf32>
    %294 = arith.select %291, %289, %293 : vector<64x128xi1>, vector<64x128xf32>
    %295 = arith.addf %280, %294 : vector<64x128xf32>
    %c19 = arith.constant 19 : index
    %296 = memref.load %arg2[%c19] : memref<20xf32, #tpu.memory_space<smem>>
    %297 = arith.mulf %9, %296 : f32
    %c19_130 = arith.constant 19 : index
    %298 = memref.load %arg3[%c19_130] : memref<20xf32, #tpu.memory_space<smem>>
    %299 = arith.addf %297, %298 : f32
    %300 = vector.broadcast %299 : f32 to vector<64x128xf32>
    %c19_131 = arith.constant 19 : index
    %c0_132 = arith.constant 0 : index
    %c0_133 = arith.constant 0 : index
    %301 = vector.load %arg9[%c19_131, %c0_132, %c0_133] : memref<20x64x128xf32, #tpu.memory_space<vmem>>, vector<1x64x128xf32>
    %302 = vector.shape_cast %301 : vector<1x64x128xf32> to vector<64x128xf32>
    %303 = vector.broadcast %299 : f32 to vector<64x128xf32>
    %304 = arith.mulf %303, %302 : vector<64x128xf32>
    %cst_134 = arith.constant 0.000000e+00 : f32
    %305 = vector.broadcast %cst_134 : f32 to vector<64x128xf32>
    %306 = arith.cmpf oge, %300, %305 : vector<64x128xf32>
    %cst_135 = arith.constant 2.000000e-01 : f32
    %307 = vector.broadcast %cst_135 : f32 to vector<64x128xf32>
    %308 = arith.mulf %307, %304 : vector<64x128xf32>
    %309 = arith.select %306, %304, %308 : vector<64x128xi1>, vector<64x128xf32>
    %310 = arith.addf %295, %309 : vector<64x128xf32>
    %cst_136 = arith.constant 0.000000e+00 : f32
    %311 = vector.broadcast %cst_136 : f32 to vector<64x128xf32>
    %312 = arith.cmpf oge, %310, %311 : vector<64x128xf32>
    %cst_137 = arith.constant 2.000000e-01 : f32
    %313 = vector.broadcast %cst_137 : f32 to vector<64x128xf32>
    %314 = arith.mulf %313, %310 : vector<64x128xf32>
    %315 = arith.select %312, %310, %314 : vector<64x128xi1>, vector<64x128xf32>
    %c0_138 = arith.constant 0 : index
    %316 = memref.load %arg4[%c0_138] : memref<3xf32, #tpu.memory_space<smem>>
    %317 = vector.broadcast %316 : f32 to vector<64x128xf32>
    %318 = arith.mulf %317, %315 : vector<64x128xf32>
    %c1_139 = arith.constant 1 : index
    %319 = memref.load %arg4[%c1_139] : memref<3xf32, #tpu.memory_space<smem>>
    %320 = vector.broadcast %319 : f32 to vector<64x128xf32>
    %321 = arith.addf %318, %320 : vector<64x128xf32>
    %c2_i32 = arith.constant 2 : i32
    %322 = tpu.dynamic_rotate %321 by %c2_i32 dim 1 : vector<64x128xf32>, i32 -> vector<64x128xf32>
    %323 = tpu.iota {dimensions = array<i32: 1>} : vector<64x128xi32>
    %c2_i32_140 = arith.constant 2 : i32
    %324 = vector.broadcast %c2_i32_140 : i32 to vector<64x128xi32>
    %325 = arith.cmpi sge, %323, %324 : vector<64x128xi32>
    %cst_141 = arith.constant 0.000000e+00 : f32
    %326 = vector.broadcast %cst_141 : f32 to vector<64x128xf32>
    %327 = arith.select %325, %322, %326 : vector<64x128xi1>, vector<64x128xf32>
    %c0_142 = arith.constant 0 : index
    %c2_143 = arith.constant 2 : index
    %c0_144 = arith.constant 0 : index
    %328 = vector.load %arg12[%c0_142, %c2_143, %c0_144] : memref<5x68x128xf32, #tpu.memory_space<vmem>>, vector<1x64x128xf32>
    %329 = vector.shape_cast %328 : vector<1x64x128xf32> to vector<64x128xf32>
    %330 = vector.shape_cast %327 : vector<64x128xf32> to vector<1x64x128xf32>
    tpu.vector_store %arg12[%c0_142, %c2_143, %c0_144], %330 {strides = array<i32>} : memref<5x68x128xf32, #tpu.memory_space<vmem>>, vector<1x64x128xf32>,
    %c1_i32 = arith.constant 1 : i32
    %331 = tpu.dynamic_rotate %321 by %c1_i32 dim 1 : vector<64x128xf32>, i32 -> vector<64x128xf32>
    %332 = tpu.iota {dimensions = array<i32: 1>} : vector<64x128xi32>
    %c1_i32_145 = arith.constant 1 : i32
    %333 = vector.broadcast %c1_i32_145 : i32 to vector<64x128xi32>
    %334 = arith.cmpi sge, %332, %333 : vector<64x128xi32>
    %cst_146 = arith.constant 0.000000e+00 : f32
    %335 = vector.broadcast %cst_146 : f32 to vector<64x128xf32>
    %336 = arith.select %334, %331, %335 : vector<64x128xi1>, vector<64x128xf32>
    %c1_147 = arith.constant 1 : index
    %c2_148 = arith.constant 2 : index
    %c0_149 = arith.constant 0 : index
    %337 = vector.load %arg12[%c1_147, %c2_148, %c0_149] : memref<5x68x128xf32, #tpu.memory_space<vmem>>, vector<1x64x128xf32>
    %338 = vector.shape_cast %337 : vector<1x64x128xf32> to vector<64x128xf32>
    %339 = vector.shape_cast %336 : vector<64x128xf32> to vector<1x64x128xf32>
    tpu.vector_store %arg12[%c1_147, %c2_148, %c0_149], %339 {strides = array<i32>} : memref<5x68x128xf32, #tpu.memory_space<vmem>>, vector<1x64x128xf32>,
    %c2_150 = arith.constant 2 : index
    %c2_151 = arith.constant 2 : index
    %c0_152 = arith.constant 0 : index
    %340 = vector.load %arg12[%c2_150, %c2_151, %c0_152] : memref<5x68x128xf32, #tpu.memory_space<vmem>>, vector<1x64x128xf32>
    %341 = vector.shape_cast %340 : vector<1x64x128xf32> to vector<64x128xf32>
    %342 = vector.shape_cast %321 : vector<64x128xf32> to vector<1x64x128xf32>
    tpu.vector_store %arg12[%c2_150, %c2_151, %c0_152], %342 {strides = array<i32>} : memref<5x68x128xf32, #tpu.memory_space<vmem>>, vector<1x64x128xf32>,
    %c127_i32 = arith.constant 127 : i32
    %343 = tpu.dynamic_rotate %321 by %c127_i32 dim 1 : vector<64x128xf32>, i32 -> vector<64x128xf32>
    %344 = tpu.iota {dimensions = array<i32: 1>} : vector<64x128xi32>
    %c127_i32_153 = arith.constant 127 : i32
    %345 = vector.broadcast %c127_i32_153 : i32 to vector<64x128xi32>
    %346 = arith.cmpi slt, %344, %345 : vector<64x128xi32>
    %cst_154 = arith.constant 0.000000e+00 : f32
    %347 = vector.broadcast %cst_154 : f32 to vector<64x128xf32>
    %348 = arith.select %346, %343, %347 : vector<64x128xi1>, vector<64x128xf32>
    %c3_155 = arith.constant 3 : index
    %c2_156 = arith.constant 2 : index
    %c0_157 = arith.constant 0 : index
    %349 = vector.load %arg12[%c3_155, %c2_156, %c0_157] : memref<5x68x128xf32, #tpu.memory_space<vmem>>, vector<1x64x128xf32>
    %350 = vector.shape_cast %349 : vector<1x64x128xf32> to vector<64x128xf32>
    %351 = vector.shape_cast %348 : vector<64x128xf32> to vector<1x64x128xf32>
    tpu.vector_store %arg12[%c3_155, %c2_156, %c0_157], %351 {strides = array<i32>} : memref<5x68x128xf32, #tpu.memory_space<vmem>>, vector<1x64x128xf32>,
    %c126_i32 = arith.constant 126 : i32
    %352 = tpu.dynamic_rotate %321 by %c126_i32 dim 1 : vector<64x128xf32>, i32 -> vector<64x128xf32>
    %353 = tpu.iota {dimensions = array<i32: 1>} : vector<64x128xi32>
    %c126_i32_158 = arith.constant 126 : i32
    %354 = vector.broadcast %c126_i32_158 : i32 to vector<64x128xi32>
    %355 = arith.cmpi slt, %353, %354 : vector<64x128xi32>
    %cst_159 = arith.constant 0.000000e+00 : f32
    %356 = vector.broadcast %cst_159 : f32 to vector<64x128xf32>
    %357 = arith.select %355, %352, %356 : vector<64x128xi1>, vector<64x128xf32>
    %c4_160 = arith.constant 4 : index
    %c2_161 = arith.constant 2 : index
    %c0_162 = arith.constant 0 : index
    %358 = vector.load %arg12[%c4_160, %c2_161, %c0_162] : memref<5x68x128xf32, #tpu.memory_space<vmem>>, vector<1x64x128xf32>
    %359 = vector.shape_cast %358 : vector<1x64x128xf32> to vector<64x128xf32>
    %360 = vector.shape_cast %357 : vector<64x128xf32> to vector<1x64x128xf32>
    tpu.vector_store %arg12[%c4_160, %c2_161, %c0_162], %360 {strides = array<i32>} : memref<5x68x128xf32, #tpu.memory_space<vmem>>, vector<1x64x128xf32>,
    %c0_i32 = arith.constant 0 : i32
    %c20_i32 = arith.constant 20 : i32
    %361 = arith.addi %c0_i32, %c20_i32 : i32
    %c1_i32_163 = arith.constant 1 : i32
    scf.for %arg14 = %c0_i32 to %361 step %c1_i32_163  : i32 {
      %cst_211 = arith.constant 0.000000e+00 : f32
      %426 = vector.broadcast %cst_211 : f32 to vector<64x128xf32>
      %c25_i32 = arith.constant 25 : i32
      %427 = arith.muli %arg14, %c25_i32 : i32
      %c0_i32_212 = arith.constant 0 : i32
      %428 = arith.addi %427, %c0_i32_212 : i32
      %c0_i32_213 = arith.constant 0 : i32
      %429 = arith.addi %428, %c0_i32_213 : i32
      %430 = arith.index_cast %429 : i32 to index
      %431 = memref.load %arg5[%430] : memref<500xf32, #tpu.memory_space<smem>>
      %c0_214 = arith.constant 0 : index
      %c0_215 = arith.constant 0 : index
      %c0_216 = arith.constant 0 : index
      %432 = vector.load %arg12[%c0_214, %c0_215, %c0_216] : memref<5x68x128xf32, #tpu.memory_space<vmem>>, vector<1x64x128xf32>
      %433 = vector.shape_cast %432 : vector<1x64x128xf32> to vector<64x128xf32>
      %434 = vector.broadcast %431 : f32 to vector<64x128xf32>
      %435 = arith.mulf %434, %433 : vector<64x128xf32>
      %436 = arith.addf %426, %435 : vector<64x128xf32>
      %c25_i32_217 = arith.constant 25 : i32
      %437 = arith.muli %arg14, %c25_i32_217 : i32
      %c0_i32_218 = arith.constant 0 : i32
      %438 = arith.addi %437, %c0_i32_218 : i32
      %c1_i32_219 = arith.constant 1 : i32
      %439 = arith.addi %438, %c1_i32_219 : i32
      %440 = arith.index_cast %439 : i32 to index
      %441 = memref.load %arg5[%440] : memref<500xf32, #tpu.memory_space<smem>>
      %c1_220 = arith.constant 1 : index
      %c0_221 = arith.constant 0 : index
      %c0_222 = arith.constant 0 : index
      %442 = vector.load %arg12[%c1_220, %c0_221, %c0_222] : memref<5x68x128xf32, #tpu.memory_space<vmem>>, vector<1x64x128xf32>
      %443 = vector.shape_cast %442 : vector<1x64x128xf32> to vector<64x128xf32>
      %444 = vector.broadcast %441 : f32 to vector<64x128xf32>
      %445 = arith.mulf %444, %443 : vector<64x128xf32>
      %446 = arith.addf %436, %445 : vector<64x128xf32>
      %c25_i32_223 = arith.constant 25 : i32
      %447 = arith.muli %arg14, %c25_i32_223 : i32
      %c0_i32_224 = arith.constant 0 : i32
      %448 = arith.addi %447, %c0_i32_224 : i32
      %c2_i32_225 = arith.constant 2 : i32
      %449 = arith.addi %448, %c2_i32_225 : i32
      %450 = arith.index_cast %449 : i32 to index
      %451 = memref.load %arg5[%450] : memref<500xf32, #tpu.memory_space<smem>>
      %c2_226 = arith.constant 2 : index
      %c0_227 = arith.constant 0 : index
      %c0_228 = arith.constant 0 : index
      %452 = vector.load %arg12[%c2_226, %c0_227, %c0_228] : memref<5x68x128xf32, #tpu.memory_space<vmem>>, vector<1x64x128xf32>
      %453 = vector.shape_cast %452 : vector<1x64x128xf32> to vector<64x128xf32>
      %454 = vector.broadcast %451 : f32 to vector<64x128xf32>
      %455 = arith.mulf %454, %453 : vector<64x128xf32>
      %456 = arith.addf %446, %455 : vector<64x128xf32>
      %c25_i32_229 = arith.constant 25 : i32
      %457 = arith.muli %arg14, %c25_i32_229 : i32
      %c0_i32_230 = arith.constant 0 : i32
      %458 = arith.addi %457, %c0_i32_230 : i32
      %c3_i32 = arith.constant 3 : i32
      %459 = arith.addi %458, %c3_i32 : i32
      %460 = arith.index_cast %459 : i32 to index
      %461 = memref.load %arg5[%460] : memref<500xf32, #tpu.memory_space<smem>>
      %c3_231 = arith.constant 3 : index
      %c0_232 = arith.constant 0 : index
      %c0_233 = arith.constant 0 : index
      %462 = vector.load %arg12[%c3_231, %c0_232, %c0_233] : memref<5x68x128xf32, #tpu.memory_space<vmem>>, vector<1x64x128xf32>
      %463 = vector.shape_cast %462 : vector<1x64x128xf32> to vector<64x128xf32>
      %464 = vector.broadcast %461 : f32 to vector<64x128xf32>
      %465 = arith.mulf %464, %463 : vector<64x128xf32>
      %466 = arith.addf %456, %465 : vector<64x128xf32>
      %c25_i32_234 = arith.constant 25 : i32
      %467 = arith.muli %arg14, %c25_i32_234 : i32
      %c0_i32_235 = arith.constant 0 : i32
      %468 = arith.addi %467, %c0_i32_235 : i32
      %c4_i32 = arith.constant 4 : i32
      %469 = arith.addi %468, %c4_i32 : i32
      %470 = arith.index_cast %469 : i32 to index
      %471 = memref.load %arg5[%470] : memref<500xf32, #tpu.memory_space<smem>>
      %c4_236 = arith.constant 4 : index
      %c0_237 = arith.constant 0 : index
      %c0_238 = arith.constant 0 : index
      %472 = vector.load %arg12[%c4_236, %c0_237, %c0_238] : memref<5x68x128xf32, #tpu.memory_space<vmem>>, vector<1x64x128xf32>
      %473 = vector.shape_cast %472 : vector<1x64x128xf32> to vector<64x128xf32>
      %474 = vector.broadcast %471 : f32 to vector<64x128xf32>
      %475 = arith.mulf %474, %473 : vector<64x128xf32>
      %476 = arith.addf %466, %475 : vector<64x128xf32>
      %c25_i32_239 = arith.constant 25 : i32
      %477 = arith.muli %arg14, %c25_i32_239 : i32
      %c5_i32 = arith.constant 5 : i32
      %478 = arith.addi %477, %c5_i32 : i32
      %c0_i32_240 = arith.constant 0 : i32
      %479 = arith.addi %478, %c0_i32_240 : i32
      %480 = arith.index_cast %479 : i32 to index
      %481 = memref.load %arg5[%480] : memref<500xf32, #tpu.memory_space<smem>>
      %c0_241 = arith.constant 0 : index
      %c1_242 = arith.constant 1 : index
      %c0_243 = arith.constant 0 : index
      %482 = vector.load %arg12[%c0_241, %c1_242, %c0_243] : memref<5x68x128xf32, #tpu.memory_space<vmem>>, vector<1x64x128xf32>
      %483 = vector.shape_cast %482 : vector<1x64x128xf32> to vector<64x128xf32>
      %484 = vector.broadcast %481 : f32 to vector<64x128xf32>
      %485 = arith.mulf %484, %483 : vector<64x128xf32>
      %486 = arith.addf %476, %485 : vector<64x128xf32>
      %c25_i32_244 = arith.constant 25 : i32
      %487 = arith.muli %arg14, %c25_i32_244 : i32
      %c5_i32_245 = arith.constant 5 : i32
      %488 = arith.addi %487, %c5_i32_245 : i32
      %c1_i32_246 = arith.constant 1 : i32
      %489 = arith.addi %488, %c1_i32_246 : i32
      %490 = arith.index_cast %489 : i32 to index
      %491 = memref.load %arg5[%490] : memref<500xf32, #tpu.memory_space<smem>>
      %c1_247 = arith.constant 1 : index
      %c1_248 = arith.constant 1 : index
      %c0_249 = arith.constant 0 : index
      %492 = vector.load %arg12[%c1_247, %c1_248, %c0_249] : memref<5x68x128xf32, #tpu.memory_space<vmem>>, vector<1x64x128xf32>
      %493 = vector.shape_cast %492 : vector<1x64x128xf32> to vector<64x128xf32>
      %494 = vector.broadcast %491 : f32 to vector<64x128xf32>
      %495 = arith.mulf %494, %493 : vector<64x128xf32>
      %496 = arith.addf %486, %495 : vector<64x128xf32>
      %c25_i32_250 = arith.constant 25 : i32
      %497 = arith.muli %arg14, %c25_i32_250 : i32
      %c5_i32_251 = arith.constant 5 : i32
      %498 = arith.addi %497, %c5_i32_251 : i32
      %c2_i32_252 = arith.constant 2 : i32
      %499 = arith.addi %498, %c2_i32_252 : i32
      %500 = arith.index_cast %499 : i32 to index
      %501 = memref.load %arg5[%500] : memref<500xf32, #tpu.memory_space<smem>>
      %c2_253 = arith.constant 2 : index
      %c1_254 = arith.constant 1 : index
      %c0_255 = arith.constant 0 : index
      %502 = vector.load %arg12[%c2_253, %c1_254, %c0_255] : memref<5x68x128xf32, #tpu.memory_space<vmem>>, vector<1x64x128xf32>
      %503 = vector.shape_cast %502 : vector<1x64x128xf32> to vector<64x128xf32>
      %504 = vector.broadcast %501 : f32 to vector<64x128xf32>
      %505 = arith.mulf %504, %503 : vector<64x128xf32>
      %506 = arith.addf %496, %505 : vector<64x128xf32>
      %c25_i32_256 = arith.constant 25 : i32
      %507 = arith.muli %arg14, %c25_i32_256 : i32
      %c5_i32_257 = arith.constant 5 : i32
      %508 = arith.addi %507, %c5_i32_257 : i32
      %c3_i32_258 = arith.constant 3 : i32
      %509 = arith.addi %508, %c3_i32_258 : i32
      %510 = arith.index_cast %509 : i32 to index
      %511 = memref.load %arg5[%510] : memref<500xf32, #tpu.memory_space<smem>>
      %c3_259 = arith.constant 3 : index
      %c1_260 = arith.constant 1 : index
      %c0_261 = arith.constant 0 : index
      %512 = vector.load %arg12[%c3_259, %c1_260, %c0_261] : memref<5x68x128xf32, #tpu.memory_space<vmem>>, vector<1x64x128xf32>
      %513 = vector.shape_cast %512 : vector<1x64x128xf32> to vector<64x128xf32>
      %514 = vector.broadcast %511 : f32 to vector<64x128xf32>
      %515 = arith.mulf %514, %513 : vector<64x128xf32>
      %516 = arith.addf %506, %515 : vector<64x128xf32>
      %c25_i32_262 = arith.constant 25 : i32
      %517 = arith.muli %arg14, %c25_i32_262 : i32
      %c5_i32_263 = arith.constant 5 : i32
      %518 = arith.addi %517, %c5_i32_263 : i32
      %c4_i32_264 = arith.constant 4 : i32
      %519 = arith.addi %518, %c4_i32_264 : i32
      %520 = arith.index_cast %519 : i32 to index
      %521 = memref.load %arg5[%520] : memref<500xf32, #tpu.memory_space<smem>>
      %c4_265 = arith.constant 4 : index
      %c1_266 = arith.constant 1 : index
      %c0_267 = arith.constant 0 : index
      %522 = vector.load %arg12[%c4_265, %c1_266, %c0_267] : memref<5x68x128xf32, #tpu.memory_space<vmem>>, vector<1x64x128xf32>
      %523 = vector.shape_cast %522 : vector<1x64x128xf32> to vector<64x128xf32>
      %524 = vector.broadcast %521 : f32 to vector<64x128xf32>
      %525 = arith.mulf %524, %523 : vector<64x128xf32>
      %526 = arith.addf %516, %525 : vector<64x128xf32>
      %c25_i32_268 = arith.constant 25 : i32
      %527 = arith.muli %arg14, %c25_i32_268 : i32
      %c10_i32_269 = arith.constant 10 : i32
      %528 = arith.addi %527, %c10_i32_269 : i32
      %c0_i32_270 = arith.constant 0 : i32
      %529 = arith.addi %528, %c0_i32_270 : i32
      %530 = arith.index_cast %529 : i32 to index
      %531 = memref.load %arg5[%530] : memref<500xf32, #tpu.memory_space<smem>>
      %c0_271 = arith.constant 0 : index
      %c2_272 = arith.constant 2 : index
      %c0_273 = arith.constant 0 : index
      %532 = vector.load %arg12[%c0_271, %c2_272, %c0_273] : memref<5x68x128xf32, #tpu.memory_space<vmem>>, vector<1x64x128xf32>
      %533 = vector.shape_cast %532 : vector<1x64x128xf32> to vector<64x128xf32>
      %534 = vector.broadcast %531 : f32 to vector<64x128xf32>
      %535 = arith.mulf %534, %533 : vector<64x128xf32>
      %536 = arith.addf %526, %535 : vector<64x128xf32>
      %c25_i32_274 = arith.constant 25 : i32
      %537 = arith.muli %arg14, %c25_i32_274 : i32
      %c10_i32_275 = arith.constant 10 : i32
      %538 = arith.addi %537, %c10_i32_275 : i32
      %c1_i32_276 = arith.constant 1 : i32
      %539 = arith.addi %538, %c1_i32_276 : i32
      %540 = arith.index_cast %539 : i32 to index
      %541 = memref.load %arg5[%540] : memref<500xf32, #tpu.memory_space<smem>>
      %c1_277 = arith.constant 1 : index
      %c2_278 = arith.constant 2 : index
      %c0_279 = arith.constant 0 : index
      %542 = vector.load %arg12[%c1_277, %c2_278, %c0_279] : memref<5x68x128xf32, #tpu.memory_space<vmem>>, vector<1x64x128xf32>
      %543 = vector.shape_cast %542 : vector<1x64x128xf32> to vector<64x128xf32>
      %544 = vector.broadcast %541 : f32 to vector<64x128xf32>
      %545 = arith.mulf %544, %543 : vector<64x128xf32>
      %546 = arith.addf %536, %545 : vector<64x128xf32>
      %c25_i32_280 = arith.constant 25 : i32
      %547 = arith.muli %arg14, %c25_i32_280 : i32
      %c10_i32_281 = arith.constant 10 : i32
      %548 = arith.addi %547, %c10_i32_281 : i32
      %c2_i32_282 = arith.constant 2 : i32
      %549 = arith.addi %548, %c2_i32_282 : i32
      %550 = arith.index_cast %549 : i32 to index
      %551 = memref.load %arg5[%550] : memref<500xf32, #tpu.memory_space<smem>>
      %c2_283 = arith.constant 2 : index
      %c2_284 = arith.constant 2 : index
      %c0_285 = arith.constant 0 : index
      %552 = vector.load %arg12[%c2_283, %c2_284, %c0_285] : memref<5x68x128xf32, #tpu.memory_space<vmem>>, vector<1x64x128xf32>
      %553 = vector.shape_cast %552 : vector<1x64x128xf32> to vector<64x128xf32>
      %554 = vector.broadcast %551 : f32 to vector<64x128xf32>
      %555 = arith.mulf %554, %553 : vector<64x128xf32>
      %556 = arith.addf %546, %555 : vector<64x128xf32>
      %c25_i32_286 = arith.constant 25 : i32
      %557 = arith.muli %arg14, %c25_i32_286 : i32
      %c10_i32_287 = arith.constant 10 : i32
      %558 = arith.addi %557, %c10_i32_287 : i32
      %c3_i32_288 = arith.constant 3 : i32
      %559 = arith.addi %558, %c3_i32_288 : i32
      %560 = arith.index_cast %559 : i32 to index
      %561 = memref.load %arg5[%560] : memref<500xf32, #tpu.memory_space<smem>>
      %c3_289 = arith.constant 3 : index
      %c2_290 = arith.constant 2 : index
      %c0_291 = arith.constant 0 : index
      %562 = vector.load %arg12[%c3_289, %c2_290, %c0_291] : memref<5x68x128xf32, #tpu.memory_space<vmem>>, vector<1x64x128xf32>
      %563 = vector.shape_cast %562 : vector<1x64x128xf32> to vector<64x128xf32>
      %564 = vector.broadcast %561 : f32 to vector<64x128xf32>
      %565 = arith.mulf %564, %563 : vector<64x128xf32>
      %566 = arith.addf %556, %565 : vector<64x128xf32>
      %c25_i32_292 = arith.constant 25 : i32
      %567 = arith.muli %arg14, %c25_i32_292 : i32
      %c10_i32_293 = arith.constant 10 : i32
      %568 = arith.addi %567, %c10_i32_293 : i32
      %c4_i32_294 = arith.constant 4 : i32
      %569 = arith.addi %568, %c4_i32_294 : i32
      %570 = arith.index_cast %569 : i32 to index
      %571 = memref.load %arg5[%570] : memref<500xf32, #tpu.memory_space<smem>>
      %c4_295 = arith.constant 4 : index
      %c2_296 = arith.constant 2 : index
      %c0_297 = arith.constant 0 : index
      %572 = vector.load %arg12[%c4_295, %c2_296, %c0_297] : memref<5x68x128xf32, #tpu.memory_space<vmem>>, vector<1x64x128xf32>
      %573 = vector.shape_cast %572 : vector<1x64x128xf32> to vector<64x128xf32>
      %574 = vector.broadcast %571 : f32 to vector<64x128xf32>
      %575 = arith.mulf %574, %573 : vector<64x128xf32>
      %576 = arith.addf %566, %575 : vector<64x128xf32>
      %c25_i32_298 = arith.constant 25 : i32
      %577 = arith.muli %arg14, %c25_i32_298 : i32
      %c15_i32 = arith.constant 15 : i32
      %578 = arith.addi %577, %c15_i32 : i32
      %c0_i32_299 = arith.constant 0 : i32
      %579 = arith.addi %578, %c0_i32_299 : i32
      %580 = arith.index_cast %579 : i32 to index
      %581 = memref.load %arg5[%580] : memref<500xf32, #tpu.memory_space<smem>>
      %c0_300 = arith.constant 0 : index
      %c3_301 = arith.constant 3 : index
      %c0_302 = arith.constant 0 : index
      %582 = vector.load %arg12[%c0_300, %c3_301, %c0_302] : memref<5x68x128xf32, #tpu.memory_space<vmem>>, vector<1x64x128xf32>
      %583 = vector.shape_cast %582 : vector<1x64x128xf32> to vector<64x128xf32>
      %584 = vector.broadcast %581 : f32 to vector<64x128xf32>
      %585 = arith.mulf %584, %583 : vector<64x128xf32>
      %586 = arith.addf %576, %585 : vector<64x128xf32>
      %c25_i32_303 = arith.constant 25 : i32
      %587 = arith.muli %arg14, %c25_i32_303 : i32
      %c15_i32_304 = arith.constant 15 : i32
      %588 = arith.addi %587, %c15_i32_304 : i32
      %c1_i32_305 = arith.constant 1 : i32
      %589 = arith.addi %588, %c1_i32_305 : i32
      %590 = arith.index_cast %589 : i32 to index
      %591 = memref.load %arg5[%590] : memref<500xf32, #tpu.memory_space<smem>>
      %c1_306 = arith.constant 1 : index
      %c3_307 = arith.constant 3 : index
      %c0_308 = arith.constant 0 : index
      %592 = vector.load %arg12[%c1_306, %c3_307, %c0_308] : memref<5x68x128xf32, #tpu.memory_space<vmem>>, vector<1x64x128xf32>
      %593 = vector.shape_cast %592 : vector<1x64x128xf32> to vector<64x128xf32>
      %594 = vector.broadcast %591 : f32 to vector<64x128xf32>
      %595 = arith.mulf %594, %593 : vector<64x128xf32>
      %596 = arith.addf %586, %595 : vector<64x128xf32>
      %c25_i32_309 = arith.constant 25 : i32
      %597 = arith.muli %arg14, %c25_i32_309 : i32
      %c15_i32_310 = arith.constant 15 : i32
      %598 = arith.addi %597, %c15_i32_310 : i32
      %c2_i32_311 = arith.constant 2 : i32
      %599 = arith.addi %598, %c2_i32_311 : i32
      %600 = arith.index_cast %599 : i32 to index
      %601 = memref.load %arg5[%600] : memref<500xf32, #tpu.memory_space<smem>>
      %c2_312 = arith.constant 2 : index
      %c3_313 = arith.constant 3 : index
      %c0_314 = arith.constant 0 : index
      %602 = vector.load %arg12[%c2_312, %c3_313, %c0_314] : memref<5x68x128xf32, #tpu.memory_space<vmem>>, vector<1x64x128xf32>
      %603 = vector.shape_cast %602 : vector<1x64x128xf32> to vector<64x128xf32>
      %604 = vector.broadcast %601 : f32 to vector<64x128xf32>
      %605 = arith.mulf %604, %603 : vector<64x128xf32>
      %606 = arith.addf %596, %605 : vector<64x128xf32>
      %c25_i32_315 = arith.constant 25 : i32
      %607 = arith.muli %arg14, %c25_i32_315 : i32
      %c15_i32_316 = arith.constant 15 : i32
      %608 = arith.addi %607, %c15_i32_316 : i32
      %c3_i32_317 = arith.constant 3 : i32
      %609 = arith.addi %608, %c3_i32_317 : i32
      %610 = arith.index_cast %609 : i32 to index
      %611 = memref.load %arg5[%610] : memref<500xf32, #tpu.memory_space<smem>>
      %c3_318 = arith.constant 3 : index
      %c3_319 = arith.constant 3 : index
      %c0_320 = arith.constant 0 : index
      %612 = vector.load %arg12[%c3_318, %c3_319, %c0_320] : memref<5x68x128xf32, #tpu.memory_space<vmem>>, vector<1x64x128xf32>
      %613 = vector.shape_cast %612 : vector<1x64x128xf32> to vector<64x128xf32>
      %614 = vector.broadcast %611 : f32 to vector<64x128xf32>
      %615 = arith.mulf %614, %613 : vector<64x128xf32>
      %616 = arith.addf %606, %615 : vector<64x128xf32>
      %c25_i32_321 = arith.constant 25 : i32
      %617 = arith.muli %arg14, %c25_i32_321 : i32
      %c15_i32_322 = arith.constant 15 : i32
      %618 = arith.addi %617, %c15_i32_322 : i32
      %c4_i32_323 = arith.constant 4 : i32
      %619 = arith.addi %618, %c4_i32_323 : i32
      %620 = arith.index_cast %619 : i32 to index
      %621 = memref.load %arg5[%620] : memref<500xf32, #tpu.memory_space<smem>>
      %c4_324 = arith.constant 4 : index
      %c3_325 = arith.constant 3 : index
      %c0_326 = arith.constant 0 : index
      %622 = vector.load %arg12[%c4_324, %c3_325, %c0_326] : memref<5x68x128xf32, #tpu.memory_space<vmem>>, vector<1x64x128xf32>
      %623 = vector.shape_cast %622 : vector<1x64x128xf32> to vector<64x128xf32>
      %624 = vector.broadcast %621 : f32 to vector<64x128xf32>
      %625 = arith.mulf %624, %623 : vector<64x128xf32>
      %626 = arith.addf %616, %625 : vector<64x128xf32>
      %c25_i32_327 = arith.constant 25 : i32
      %627 = arith.muli %arg14, %c25_i32_327 : i32
      %c20_i32_328 = arith.constant 20 : i32
      %628 = arith.addi %627, %c20_i32_328 : i32
      %c0_i32_329 = arith.constant 0 : i32
      %629 = arith.addi %628, %c0_i32_329 : i32
      %630 = arith.index_cast %629 : i32 to index
      %631 = memref.load %arg5[%630] : memref<500xf32, #tpu.memory_space<smem>>
      %c0_330 = arith.constant 0 : index
      %c4_331 = arith.constant 4 : index
      %c0_332 = arith.constant 0 : index
      %632 = vector.load %arg12[%c0_330, %c4_331, %c0_332] : memref<5x68x128xf32, #tpu.memory_space<vmem>>, vector<1x64x128xf32>
      %633 = vector.shape_cast %632 : vector<1x64x128xf32> to vector<64x128xf32>
      %634 = vector.broadcast %631 : f32 to vector<64x128xf32>
      %635 = arith.mulf %634, %633 : vector<64x128xf32>
      %636 = arith.addf %626, %635 : vector<64x128xf32>
      %c25_i32_333 = arith.constant 25 : i32
      %637 = arith.muli %arg14, %c25_i32_333 : i32
      %c20_i32_334 = arith.constant 20 : i32
      %638 = arith.addi %637, %c20_i32_334 : i32
      %c1_i32_335 = arith.constant 1 : i32
      %639 = arith.addi %638, %c1_i32_335 : i32
      %640 = arith.index_cast %639 : i32 to index
      %641 = memref.load %arg5[%640] : memref<500xf32, #tpu.memory_space<smem>>
      %c1_336 = arith.constant 1 : index
      %c4_337 = arith.constant 4 : index
      %c0_338 = arith.constant 0 : index
      %642 = vector.load %arg12[%c1_336, %c4_337, %c0_338] : memref<5x68x128xf32, #tpu.memory_space<vmem>>, vector<1x64x128xf32>
      %643 = vector.shape_cast %642 : vector<1x64x128xf32> to vector<64x128xf32>
      %644 = vector.broadcast %641 : f32 to vector<64x128xf32>
      %645 = arith.mulf %644, %643 : vector<64x128xf32>
      %646 = arith.addf %636, %645 : vector<64x128xf32>
      %c25_i32_339 = arith.constant 25 : i32
      %647 = arith.muli %arg14, %c25_i32_339 : i32
      %c20_i32_340 = arith.constant 20 : i32
      %648 = arith.addi %647, %c20_i32_340 : i32
      %c2_i32_341 = arith.constant 2 : i32
      %649 = arith.addi %648, %c2_i32_341 : i32
      %650 = arith.index_cast %649 : i32 to index
      %651 = memref.load %arg5[%650] : memref<500xf32, #tpu.memory_space<smem>>
      %c2_342 = arith.constant 2 : index
      %c4_343 = arith.constant 4 : index
      %c0_344 = arith.constant 0 : index
      %652 = vector.load %arg12[%c2_342, %c4_343, %c0_344] : memref<5x68x128xf32, #tpu.memory_space<vmem>>, vector<1x64x128xf32>
      %653 = vector.shape_cast %652 : vector<1x64x128xf32> to vector<64x128xf32>
      %654 = vector.broadcast %651 : f32 to vector<64x128xf32>
      %655 = arith.mulf %654, %653 : vector<64x128xf32>
      %656 = arith.addf %646, %655 : vector<64x128xf32>
      %c25_i32_345 = arith.constant 25 : i32
      %657 = arith.muli %arg14, %c25_i32_345 : i32
      %c20_i32_346 = arith.constant 20 : i32
      %658 = arith.addi %657, %c20_i32_346 : i32
      %c3_i32_347 = arith.constant 3 : i32
      %659 = arith.addi %658, %c3_i32_347 : i32
      %660 = arith.index_cast %659 : i32 to index
      %661 = memref.load %arg5[%660] : memref<500xf32, #tpu.memory_space<smem>>
      %c3_348 = arith.constant 3 : index
      %c4_349 = arith.constant 4 : index
      %c0_350 = arith.constant 0 : index
      %662 = vector.load %arg12[%c3_348, %c4_349, %c0_350] : memref<5x68x128xf32, #tpu.memory_space<vmem>>, vector<1x64x128xf32>
      %663 = vector.shape_cast %662 : vector<1x64x128xf32> to vector<64x128xf32>
      %664 = vector.broadcast %661 : f32 to vector<64x128xf32>
      %665 = arith.mulf %664, %663 : vector<64x128xf32>
      %666 = arith.addf %656, %665 : vector<64x128xf32>
      %c25_i32_351 = arith.constant 25 : i32
      %667 = arith.muli %arg14, %c25_i32_351 : i32
      %c20_i32_352 = arith.constant 20 : i32
      %668 = arith.addi %667, %c20_i32_352 : i32
      %c4_i32_353 = arith.constant 4 : i32
      %669 = arith.addi %668, %c4_i32_353 : i32
      %670 = arith.index_cast %669 : i32 to index
      %671 = memref.load %arg5[%670] : memref<500xf32, #tpu.memory_space<smem>>
      %c4_354 = arith.constant 4 : index
      %c4_355 = arith.constant 4 : index
      %c0_356 = arith.constant 0 : index
      %672 = vector.load %arg12[%c4_354, %c4_355, %c0_356] : memref<5x68x128xf32, #tpu.memory_space<vmem>>, vector<1x64x128xf32>
      %673 = vector.shape_cast %672 : vector<1x64x128xf32> to vector<64x128xf32>
      %674 = vector.broadcast %671 : f32 to vector<64x128xf32>
      %675 = arith.mulf %674, %673 : vector<64x128xf32>
      %676 = arith.addf %666, %675 : vector<64x128xf32>
      %677 = arith.index_cast %arg14 : i32 to index
      %678 = memref.load %arg6[%677] : memref<20xf32, #tpu.memory_space<smem>>
      %679 = vector.broadcast %678 : f32 to vector<64x128xf32>
      %680 = arith.addf %676, %679 : vector<64x128xf32>
      %cst_357 = arith.constant 0.000000e+00 : f32
      %681 = vector.broadcast %cst_357 : f32 to vector<64x128xf32>
      %682 = arith.cmpf oge, %680, %681 : vector<64x128xf32>
      %cst_358 = arith.constant 2.000000e-01 : f32
      %683 = vector.broadcast %cst_358 : f32 to vector<64x128xf32>
      %684 = arith.mulf %683, %680 : vector<64x128xf32>
      %685 = arith.select %682, %680, %684 : vector<64x128xi1>, vector<64x128xf32>
      %686 = arith.index_cast %arg14 : i32 to index
      %687 = memref.load %arg7[%686] : memref<20xf32, #tpu.memory_space<smem>>
      %688 = vector.broadcast %687 : f32 to vector<64x128xf32>
      %689 = arith.addf %685, %688 : vector<64x128xf32>
      %690 = arith.index_cast %arg14 : i32 to index
      %c2_359 = arith.constant 2 : index
      %c0_360 = arith.constant 0 : index
      %691 = vector.load %arg13[%690, %c2_359, %c0_360] : memref<20x68x128xf32, #tpu.memory_space<vmem>>, vector<1x64x128xf32>
      %692 = vector.shape_cast %691 : vector<1x64x128xf32> to vector<64x128xf32>
      %693 = vector.shape_cast %689 : vector<64x128xf32> to vector<1x64x128xf32>
      tpu.vector_store %arg13[%690, %c2_359, %c0_360], %693 {strides = array<i32>} : memref<20x68x128xf32, #tpu.memory_space<vmem>>, vector<1x64x128xf32>,
    }
    %c20_i32_164 = arith.constant 20 : i32
    %cst_165 = arith.constant 0.000000e+00 : f32
    %362 = vector.broadcast %cst_165 : f32 to vector<64x128xf32>
    %cst_166 = arith.constant 0.000000e+00 : f32
    %363 = vector.broadcast %cst_166 : f32 to vector<64x128xf32>
    %c0_i32_167 = arith.constant 0 : i32
    %c10_i32 = arith.constant 10 : i32
    %364 = arith.addi %c0_i32_167, %c10_i32 : i32
    %c1_i32_168 = arith.constant 1 : i32
    %365 = scf.for %arg14 = %c0_i32_167 to %364 step %c1_i32_168 iter_args(%arg15 = %363) -> (vector<64x128xf32>)  : i32 {
      %c2_i32_211 = arith.constant 2 : i32
      %426 = arith.muli %arg14, %c2_i32_211 : i32
      %c0_i32_212 = arith.constant 0 : i32
      %427 = arith.addi %426, %c0_i32_212 : i32
      %c25_i32 = arith.constant 25 : i32
      %428 = arith.muli %427, %c25_i32 : i32
      %c0_i32_213 = arith.constant 0 : i32
      %429 = arith.addi %428, %c0_i32_213 : i32
      %c0_i32_214 = arith.constant 0 : i32
      %430 = arith.addi %429, %c0_i32_214 : i32
      %431 = arith.index_cast %430 : i32 to index
      %432 = memref.load %arg8[%431] : memref<500xf32, #tpu.memory_space<smem>>
      %433 = arith.index_cast %427 : i32 to index
      %c0_215 = arith.constant 0 : index
      %c0_216 = arith.constant 0 : index
      %434 = vector.load %arg13[%433, %c0_215, %c0_216] : memref<20x68x128xf32, #tpu.memory_space<vmem>>, vector<1x64x128xf32>
      %435 = vector.shape_cast %434 : vector<1x64x128xf32> to vector<64x128xf32>
      %436 = vector.broadcast %432 : f32 to vector<64x128xf32>
      %437 = arith.mulf %436, %435 : vector<64x128xf32>
      %438 = arith.addf %arg15, %437 : vector<64x128xf32>
      %c25_i32_217 = arith.constant 25 : i32
      %439 = arith.muli %427, %c25_i32_217 : i32
      %c5_i32 = arith.constant 5 : i32
      %440 = arith.addi %439, %c5_i32 : i32
      %c0_i32_218 = arith.constant 0 : i32
      %441 = arith.addi %440, %c0_i32_218 : i32
      %442 = arith.index_cast %441 : i32 to index
      %443 = memref.load %arg8[%442] : memref<500xf32, #tpu.memory_space<smem>>
      %444 = arith.index_cast %427 : i32 to index
      %c1_219 = arith.constant 1 : index
      %c0_220 = arith.constant 0 : index
      %445 = vector.load %arg13[%444, %c1_219, %c0_220] : memref<20x68x128xf32, #tpu.memory_space<vmem>>, vector<1x64x128xf32>
      %446 = vector.shape_cast %445 : vector<1x64x128xf32> to vector<64x128xf32>
      %447 = vector.broadcast %443 : f32 to vector<64x128xf32>
      %448 = arith.mulf %447, %446 : vector<64x128xf32>
      %449 = arith.addf %438, %448 : vector<64x128xf32>
      %c25_i32_221 = arith.constant 25 : i32
      %450 = arith.muli %427, %c25_i32_221 : i32
      %c10_i32_222 = arith.constant 10 : i32
      %451 = arith.addi %450, %c10_i32_222 : i32
      %c0_i32_223 = arith.constant 0 : i32
      %452 = arith.addi %451, %c0_i32_223 : i32
      %453 = arith.index_cast %452 : i32 to index
      %454 = memref.load %arg8[%453] : memref<500xf32, #tpu.memory_space<smem>>
      %455 = arith.index_cast %427 : i32 to index
      %c2_224 = arith.constant 2 : index
      %c0_225 = arith.constant 0 : index
      %456 = vector.load %arg13[%455, %c2_224, %c0_225] : memref<20x68x128xf32, #tpu.memory_space<vmem>>, vector<1x64x128xf32>
      %457 = vector.shape_cast %456 : vector<1x64x128xf32> to vector<64x128xf32>
      %458 = vector.broadcast %454 : f32 to vector<64x128xf32>
      %459 = arith.mulf %458, %457 : vector<64x128xf32>
      %460 = arith.addf %449, %459 : vector<64x128xf32>
      %c25_i32_226 = arith.constant 25 : i32
      %461 = arith.muli %427, %c25_i32_226 : i32
      %c15_i32 = arith.constant 15 : i32
      %462 = arith.addi %461, %c15_i32 : i32
      %c0_i32_227 = arith.constant 0 : i32
      %463 = arith.addi %462, %c0_i32_227 : i32
      %464 = arith.index_cast %463 : i32 to index
      %465 = memref.load %arg8[%464] : memref<500xf32, #tpu.memory_space<smem>>
      %466 = arith.index_cast %427 : i32 to index
      %c3_228 = arith.constant 3 : index
      %c0_229 = arith.constant 0 : index
      %467 = vector.load %arg13[%466, %c3_228, %c0_229] : memref<20x68x128xf32, #tpu.memory_space<vmem>>, vector<1x64x128xf32>
      %468 = vector.shape_cast %467 : vector<1x64x128xf32> to vector<64x128xf32>
      %469 = vector.broadcast %465 : f32 to vector<64x128xf32>
      %470 = arith.mulf %469, %468 : vector<64x128xf32>
      %471 = arith.addf %460, %470 : vector<64x128xf32>
      %c25_i32_230 = arith.constant 25 : i32
      %472 = arith.muli %427, %c25_i32_230 : i32
      %c20_i32_231 = arith.constant 20 : i32
      %473 = arith.addi %472, %c20_i32_231 : i32
      %c0_i32_232 = arith.constant 0 : i32
      %474 = arith.addi %473, %c0_i32_232 : i32
      %475 = arith.index_cast %474 : i32 to index
      %476 = memref.load %arg8[%475] : memref<500xf32, #tpu.memory_space<smem>>
      %477 = arith.index_cast %427 : i32 to index
      %c4_233 = arith.constant 4 : index
      %c0_234 = arith.constant 0 : index
      %478 = vector.load %arg13[%477, %c4_233, %c0_234] : memref<20x68x128xf32, #tpu.memory_space<vmem>>, vector<1x64x128xf32>
      %479 = vector.shape_cast %478 : vector<1x64x128xf32> to vector<64x128xf32>
      %480 = vector.broadcast %476 : f32 to vector<64x128xf32>
      %481 = arith.mulf %480, %479 : vector<64x128xf32>
      %482 = arith.addf %471, %481 : vector<64x128xf32>
      %c2_i32_235 = arith.constant 2 : i32
      %483 = arith.muli %arg14, %c2_i32_235 : i32
      %c1_i32_236 = arith.constant 1 : i32
      %484 = arith.addi %483, %c1_i32_236 : i32
      %c25_i32_237 = arith.constant 25 : i32
      %485 = arith.muli %484, %c25_i32_237 : i32
      %c0_i32_238 = arith.constant 0 : i32
      %486 = arith.addi %485, %c0_i32_238 : i32
      %c0_i32_239 = arith.constant 0 : i32
      %487 = arith.addi %486, %c0_i32_239 : i32
      %488 = arith.index_cast %487 : i32 to index
      %489 = memref.load %arg8[%488] : memref<500xf32, #tpu.memory_space<smem>>
      %490 = arith.index_cast %484 : i32 to index
      %c0_240 = arith.constant 0 : index
      %c0_241 = arith.constant 0 : index
      %491 = vector.load %arg13[%490, %c0_240, %c0_241] : memref<20x68x128xf32, #tpu.memory_space<vmem>>, vector<1x64x128xf32>
      %492 = vector.shape_cast %491 : vector<1x64x128xf32> to vector<64x128xf32>
      %493 = vector.broadcast %489 : f32 to vector<64x128xf32>
      %494 = arith.mulf %493, %492 : vector<64x128xf32>
      %495 = arith.addf %482, %494 : vector<64x128xf32>
      %c25_i32_242 = arith.constant 25 : i32
      %496 = arith.muli %484, %c25_i32_242 : i32
      %c5_i32_243 = arith.constant 5 : i32
      %497 = arith.addi %496, %c5_i32_243 : i32
      %c0_i32_244 = arith.constant 0 : i32
      %498 = arith.addi %497, %c0_i32_244 : i32
      %499 = arith.index_cast %498 : i32 to index
      %500 = memref.load %arg8[%499] : memref<500xf32, #tpu.memory_space<smem>>
      %501 = arith.index_cast %484 : i32 to index
      %c1_245 = arith.constant 1 : index
      %c0_246 = arith.constant 0 : index
      %502 = vector.load %arg13[%501, %c1_245, %c0_246] : memref<20x68x128xf32, #tpu.memory_space<vmem>>, vector<1x64x128xf32>
      %503 = vector.shape_cast %502 : vector<1x64x128xf32> to vector<64x128xf32>
      %504 = vector.broadcast %500 : f32 to vector<64x128xf32>
      %505 = arith.mulf %504, %503 : vector<64x128xf32>
      %506 = arith.addf %495, %505 : vector<64x128xf32>
      %c25_i32_247 = arith.constant 25 : i32
      %507 = arith.muli %484, %c25_i32_247 : i32
      %c10_i32_248 = arith.constant 10 : i32
      %508 = arith.addi %507, %c10_i32_248 : i32
      %c0_i32_249 = arith.constant 0 : i32
      %509 = arith.addi %508, %c0_i32_249 : i32
      %510 = arith.index_cast %509 : i32 to index
      %511 = memref.load %arg8[%510] : memref<500xf32, #tpu.memory_space<smem>>
      %512 = arith.index_cast %484 : i32 to index
      %c2_250 = arith.constant 2 : index
      %c0_251 = arith.constant 0 : index
      %513 = vector.load %arg13[%512, %c2_250, %c0_251] : memref<20x68x128xf32, #tpu.memory_space<vmem>>, vector<1x64x128xf32>
      %514 = vector.shape_cast %513 : vector<1x64x128xf32> to vector<64x128xf32>
      %515 = vector.broadcast %511 : f32 to vector<64x128xf32>
      %516 = arith.mulf %515, %514 : vector<64x128xf32>
      %517 = arith.addf %506, %516 : vector<64x128xf32>
      %c25_i32_252 = arith.constant 25 : i32
      %518 = arith.muli %484, %c25_i32_252 : i32
      %c15_i32_253 = arith.constant 15 : i32
      %519 = arith.addi %518, %c15_i32_253 : i32
      %c0_i32_254 = arith.constant 0 : i32
      %520 = arith.addi %519, %c0_i32_254 : i32
      %521 = arith.index_cast %520 : i32 to index
      %522 = memref.load %arg8[%521] : memref<500xf32, #tpu.memory_space<smem>>
      %523 = arith.index_cast %484 : i32 to index
      %c3_255 = arith.constant 3 : index
      %c0_256 = arith.constant 0 : index
      %524 = vector.load %arg13[%523, %c3_255, %c0_256] : memref<20x68x128xf32, #tpu.memory_space<vmem>>, vector<1x64x128xf32>
      %525 = vector.shape_cast %524 : vector<1x64x128xf32> to vector<64x128xf32>
      %526 = vector.broadcast %522 : f32 to vector<64x128xf32>
      %527 = arith.mulf %526, %525 : vector<64x128xf32>
      %528 = arith.addf %517, %527 : vector<64x128xf32>
      %c25_i32_257 = arith.constant 25 : i32
      %529 = arith.muli %484, %c25_i32_257 : i32
      %c20_i32_258 = arith.constant 20 : i32
      %530 = arith.addi %529, %c20_i32_258 : i32
      %c0_i32_259 = arith.constant 0 : i32
      %531 = arith.addi %530, %c0_i32_259 : i32
      %532 = arith.index_cast %531 : i32 to index
      %533 = memref.load %arg8[%532] : memref<500xf32, #tpu.memory_space<smem>>
      %534 = arith.index_cast %484 : i32 to index
      %c4_260 = arith.constant 4 : index
      %c0_261 = arith.constant 0 : index
      %535 = vector.load %arg13[%534, %c4_260, %c0_261] : memref<20x68x128xf32, #tpu.memory_space<vmem>>, vector<1x64x128xf32>
      %536 = vector.shape_cast %535 : vector<1x64x128xf32> to vector<64x128xf32>
      %537 = vector.broadcast %533 : f32 to vector<64x128xf32>
      %538 = arith.mulf %537, %536 : vector<64x128xf32>
      %539 = arith.addf %528, %538 : vector<64x128xf32>
      scf.yield %539 : vector<64x128xf32>
    }
    %c10_i32_169 = arith.constant 10 : i32
    %c2_i32_170 = arith.constant 2 : i32
    %366 = tpu.dynamic_rotate %365 by %c2_i32_170 dim 1 : vector<64x128xf32>, i32 -> vector<64x128xf32>
    %367 = tpu.iota {dimensions = array<i32: 1>} : vector<64x128xi32>
    %c2_i32_171 = arith.constant 2 : i32
    %368 = vector.broadcast %c2_i32_171 : i32 to vector<64x128xi32>
    %369 = arith.cmpi sge, %367, %368 : vector<64x128xi32>
    %cst_172 = arith.constant 0.000000e+00 : f32
    %370 = vector.broadcast %cst_172 : f32 to vector<64x128xf32>
    %371 = arith.select %369, %366, %370 : vector<64x128xi1>, vector<64x128xf32>
    %372 = arith.addf %362, %371 : vector<64x128xf32>
    %cst_173 = arith.constant 0.000000e+00 : f32
    %373 = vector.broadcast %cst_173 : f32 to vector<64x128xf32>
    %c0_i32_174 = arith.constant 0 : i32
    %c10_i32_175 = arith.constant 10 : i32
    %374 = arith.addi %c0_i32_174, %c10_i32_175 : i32
    %c1_i32_176 = arith.constant 1 : i32
    %375 = scf.for %arg14 = %c0_i32_174 to %374 step %c1_i32_176 iter_args(%arg15 = %373) -> (vector<64x128xf32>)  : i32 {
      %c2_i32_211 = arith.constant 2 : i32
      %426 = arith.muli %arg14, %c2_i32_211 : i32
      %c0_i32_212 = arith.constant 0 : i32
      %427 = arith.addi %426, %c0_i32_212 : i32
      %c25_i32 = arith.constant 25 : i32
      %428 = arith.muli %427, %c25_i32 : i32
      %c0_i32_213 = arith.constant 0 : i32
      %429 = arith.addi %428, %c0_i32_213 : i32
      %c1_i32_214 = arith.constant 1 : i32
      %430 = arith.addi %429, %c1_i32_214 : i32
      %431 = arith.index_cast %430 : i32 to index
      %432 = memref.load %arg8[%431] : memref<500xf32, #tpu.memory_space<smem>>
      %433 = arith.index_cast %427 : i32 to index
      %c0_215 = arith.constant 0 : index
      %c0_216 = arith.constant 0 : index
      %434 = vector.load %arg13[%433, %c0_215, %c0_216] : memref<20x68x128xf32, #tpu.memory_space<vmem>>, vector<1x64x128xf32>
      %435 = vector.shape_cast %434 : vector<1x64x128xf32> to vector<64x128xf32>
      %436 = vector.broadcast %432 : f32 to vector<64x128xf32>
      %437 = arith.mulf %436, %435 : vector<64x128xf32>
      %438 = arith.addf %arg15, %437 : vector<64x128xf32>
      %c25_i32_217 = arith.constant 25 : i32
      %439 = arith.muli %427, %c25_i32_217 : i32
      %c5_i32 = arith.constant 5 : i32
      %440 = arith.addi %439, %c5_i32 : i32
      %c1_i32_218 = arith.constant 1 : i32
      %441 = arith.addi %440, %c1_i32_218 : i32
      %442 = arith.index_cast %441 : i32 to index
      %443 = memref.load %arg8[%442] : memref<500xf32, #tpu.memory_space<smem>>
      %444 = arith.index_cast %427 : i32 to index
      %c1_219 = arith.constant 1 : index
      %c0_220 = arith.constant 0 : index
      %445 = vector.load %arg13[%444, %c1_219, %c0_220] : memref<20x68x128xf32, #tpu.memory_space<vmem>>, vector<1x64x128xf32>
      %446 = vector.shape_cast %445 : vector<1x64x128xf32> to vector<64x128xf32>
      %447 = vector.broadcast %443 : f32 to vector<64x128xf32>
      %448 = arith.mulf %447, %446 : vector<64x128xf32>
      %449 = arith.addf %438, %448 : vector<64x128xf32>
      %c25_i32_221 = arith.constant 25 : i32
      %450 = arith.muli %427, %c25_i32_221 : i32
      %c10_i32_222 = arith.constant 10 : i32
      %451 = arith.addi %450, %c10_i32_222 : i32
      %c1_i32_223 = arith.constant 1 : i32
      %452 = arith.addi %451, %c1_i32_223 : i32
      %453 = arith.index_cast %452 : i32 to index
      %454 = memref.load %arg8[%453] : memref<500xf32, #tpu.memory_space<smem>>
      %455 = arith.index_cast %427 : i32 to index
      %c2_224 = arith.constant 2 : index
      %c0_225 = arith.constant 0 : index
      %456 = vector.load %arg13[%455, %c2_224, %c0_225] : memref<20x68x128xf32, #tpu.memory_space<vmem>>, vector<1x64x128xf32>
      %457 = vector.shape_cast %456 : vector<1x64x128xf32> to vector<64x128xf32>
      %458 = vector.broadcast %454 : f32 to vector<64x128xf32>
      %459 = arith.mulf %458, %457 : vector<64x128xf32>
      %460 = arith.addf %449, %459 : vector<64x128xf32>
      %c25_i32_226 = arith.constant 25 : i32
      %461 = arith.muli %427, %c25_i32_226 : i32
      %c15_i32 = arith.constant 15 : i32
      %462 = arith.addi %461, %c15_i32 : i32
      %c1_i32_227 = arith.constant 1 : i32
      %463 = arith.addi %462, %c1_i32_227 : i32
      %464 = arith.index_cast %463 : i32 to index
      %465 = memref.load %arg8[%464] : memref<500xf32, #tpu.memory_space<smem>>
      %466 = arith.index_cast %427 : i32 to index
      %c3_228 = arith.constant 3 : index
      %c0_229 = arith.constant 0 : index
      %467 = vector.load %arg13[%466, %c3_228, %c0_229] : memref<20x68x128xf32, #tpu.memory_space<vmem>>, vector<1x64x128xf32>
      %468 = vector.shape_cast %467 : vector<1x64x128xf32> to vector<64x128xf32>
      %469 = vector.broadcast %465 : f32 to vector<64x128xf32>
      %470 = arith.mulf %469, %468 : vector<64x128xf32>
      %471 = arith.addf %460, %470 : vector<64x128xf32>
      %c25_i32_230 = arith.constant 25 : i32
      %472 = arith.muli %427, %c25_i32_230 : i32
      %c20_i32_231 = arith.constant 20 : i32
      %473 = arith.addi %472, %c20_i32_231 : i32
      %c1_i32_232 = arith.constant 1 : i32
      %474 = arith.addi %473, %c1_i32_232 : i32
      %475 = arith.index_cast %474 : i32 to index
      %476 = memref.load %arg8[%475] : memref<500xf32, #tpu.memory_space<smem>>
      %477 = arith.index_cast %427 : i32 to index
      %c4_233 = arith.constant 4 : index
      %c0_234 = arith.constant 0 : index
      %478 = vector.load %arg13[%477, %c4_233, %c0_234] : memref<20x68x128xf32, #tpu.memory_space<vmem>>, vector<1x64x128xf32>
      %479 = vector.shape_cast %478 : vector<1x64x128xf32> to vector<64x128xf32>
      %480 = vector.broadcast %476 : f32 to vector<64x128xf32>
      %481 = arith.mulf %480, %479 : vector<64x128xf32>
      %482 = arith.addf %471, %481 : vector<64x128xf32>
      %c2_i32_235 = arith.constant 2 : i32
      %483 = arith.muli %arg14, %c2_i32_235 : i32
      %c1_i32_236 = arith.constant 1 : i32
      %484 = arith.addi %483, %c1_i32_236 : i32
      %c25_i32_237 = arith.constant 25 : i32
      %485 = arith.muli %484, %c25_i32_237 : i32
      %c0_i32_238 = arith.constant 0 : i32
      %486 = arith.addi %485, %c0_i32_238 : i32
      %c1_i32_239 = arith.constant 1 : i32
      %487 = arith.addi %486, %c1_i32_239 : i32
      %488 = arith.index_cast %487 : i32 to index
      %489 = memref.load %arg8[%488] : memref<500xf32, #tpu.memory_space<smem>>
      %490 = arith.index_cast %484 : i32 to index
      %c0_240 = arith.constant 0 : index
      %c0_241 = arith.constant 0 : index
      %491 = vector.load %arg13[%490, %c0_240, %c0_241] : memref<20x68x128xf32, #tpu.memory_space<vmem>>, vector<1x64x128xf32>
      %492 = vector.shape_cast %491 : vector<1x64x128xf32> to vector<64x128xf32>
      %493 = vector.broadcast %489 : f32 to vector<64x128xf32>
      %494 = arith.mulf %493, %492 : vector<64x128xf32>
      %495 = arith.addf %482, %494 : vector<64x128xf32>
      %c25_i32_242 = arith.constant 25 : i32
      %496 = arith.muli %484, %c25_i32_242 : i32
      %c5_i32_243 = arith.constant 5 : i32
      %497 = arith.addi %496, %c5_i32_243 : i32
      %c1_i32_244 = arith.constant 1 : i32
      %498 = arith.addi %497, %c1_i32_244 : i32
      %499 = arith.index_cast %498 : i32 to index
      %500 = memref.load %arg8[%499] : memref<500xf32, #tpu.memory_space<smem>>
      %501 = arith.index_cast %484 : i32 to index
      %c1_245 = arith.constant 1 : index
      %c0_246 = arith.constant 0 : index
      %502 = vector.load %arg13[%501, %c1_245, %c0_246] : memref<20x68x128xf32, #tpu.memory_space<vmem>>, vector<1x64x128xf32>
      %503 = vector.shape_cast %502 : vector<1x64x128xf32> to vector<64x128xf32>
      %504 = vector.broadcast %500 : f32 to vector<64x128xf32>
      %505 = arith.mulf %504, %503 : vector<64x128xf32>
      %506 = arith.addf %495, %505 : vector<64x128xf32>
      %c25_i32_247 = arith.constant 25 : i32
      %507 = arith.muli %484, %c25_i32_247 : i32
      %c10_i32_248 = arith.constant 10 : i32
      %508 = arith.addi %507, %c10_i32_248 : i32
      %c1_i32_249 = arith.constant 1 : i32
      %509 = arith.addi %508, %c1_i32_249 : i32
      %510 = arith.index_cast %509 : i32 to index
      %511 = memref.load %arg8[%510] : memref<500xf32, #tpu.memory_space<smem>>
      %512 = arith.index_cast %484 : i32 to index
      %c2_250 = arith.constant 2 : index
      %c0_251 = arith.constant 0 : index
      %513 = vector.load %arg13[%512, %c2_250, %c0_251] : memref<20x68x128xf32, #tpu.memory_space<vmem>>, vector<1x64x128xf32>
      %514 = vector.shape_cast %513 : vector<1x64x128xf32> to vector<64x128xf32>
      %515 = vector.broadcast %511 : f32 to vector<64x128xf32>
      %516 = arith.mulf %515, %514 : vector<64x128xf32>
      %517 = arith.addf %506, %516 : vector<64x128xf32>
      %c25_i32_252 = arith.constant 25 : i32
      %518 = arith.muli %484, %c25_i32_252 : i32
      %c15_i32_253 = arith.constant 15 : i32
      %519 = arith.addi %518, %c15_i32_253 : i32
      %c1_i32_254 = arith.constant 1 : i32
      %520 = arith.addi %519, %c1_i32_254 : i32
      %521 = arith.index_cast %520 : i32 to index
      %522 = memref.load %arg8[%521] : memref<500xf32, #tpu.memory_space<smem>>
      %523 = arith.index_cast %484 : i32 to index
      %c3_255 = arith.constant 3 : index
      %c0_256 = arith.constant 0 : index
      %524 = vector.load %arg13[%523, %c3_255, %c0_256] : memref<20x68x128xf32, #tpu.memory_space<vmem>>, vector<1x64x128xf32>
      %525 = vector.shape_cast %524 : vector<1x64x128xf32> to vector<64x128xf32>
      %526 = vector.broadcast %522 : f32 to vector<64x128xf32>
      %527 = arith.mulf %526, %525 : vector<64x128xf32>
      %528 = arith.addf %517, %527 : vector<64x128xf32>
      %c25_i32_257 = arith.constant 25 : i32
      %529 = arith.muli %484, %c25_i32_257 : i32
      %c20_i32_258 = arith.constant 20 : i32
      %530 = arith.addi %529, %c20_i32_258 : i32
      %c1_i32_259 = arith.constant 1 : i32
      %531 = arith.addi %530, %c1_i32_259 : i32
      %532 = arith.index_cast %531 : i32 to index
      %533 = memref.load %arg8[%532] : memref<500xf32, #tpu.memory_space<smem>>
      %534 = arith.index_cast %484 : i32 to index
      %c4_260 = arith.constant 4 : index
      %c0_261 = arith.constant 0 : index
      %535 = vector.load %arg13[%534, %c4_260, %c0_261] : memref<20x68x128xf32, #tpu.memory_space<vmem>>, vector<1x64x128xf32>
      %536 = vector.shape_cast %535 : vector<1x64x128xf32> to vector<64x128xf32>
      %537 = vector.broadcast %533 : f32 to vector<64x128xf32>
      %538 = arith.mulf %537, %536 : vector<64x128xf32>
      %539 = arith.addf %528, %538 : vector<64x128xf32>
      scf.yield %539 : vector<64x128xf32>
    }
    %c10_i32_177 = arith.constant 10 : i32
    %c1_i32_178 = arith.constant 1 : i32
    %376 = tpu.dynamic_rotate %375 by %c1_i32_178 dim 1 : vector<64x128xf32>, i32 -> vector<64x128xf32>
    %377 = tpu.iota {dimensions = array<i32: 1>} : vector<64x128xi32>
    %c1_i32_179 = arith.constant 1 : i32
    %378 = vector.broadcast %c1_i32_179 : i32 to vector<64x128xi32>
    %379 = arith.cmpi sge, %377, %378 : vector<64x128xi32>
    %cst_180 = arith.constant 0.000000e+00 : f32
    %380 = vector.broadcast %cst_180 : f32 to vector<64x128xf32>
    %381 = arith.select %379, %376, %380 : vector<64x128xi1>, vector<64x128xf32>
    %382 = arith.addf %372, %381 : vector<64x128xf32>
    %cst_181 = arith.constant 0.000000e+00 : f32
    %383 = vector.broadcast %cst_181 : f32 to vector<64x128xf32>
    %c0_i32_182 = arith.constant 0 : i32
    %c10_i32_183 = arith.constant 10 : i32
    %384 = arith.addi %c0_i32_182, %c10_i32_183 : i32
    %c1_i32_184 = arith.constant 1 : i32
    %385 = scf.for %arg14 = %c0_i32_182 to %384 step %c1_i32_184 iter_args(%arg15 = %383) -> (vector<64x128xf32>)  : i32 {
      %c2_i32_211 = arith.constant 2 : i32
      %426 = arith.muli %arg14, %c2_i32_211 : i32
      %c0_i32_212 = arith.constant 0 : i32
      %427 = arith.addi %426, %c0_i32_212 : i32
      %c25_i32 = arith.constant 25 : i32
      %428 = arith.muli %427, %c25_i32 : i32
      %c0_i32_213 = arith.constant 0 : i32
      %429 = arith.addi %428, %c0_i32_213 : i32
      %c2_i32_214 = arith.constant 2 : i32
      %430 = arith.addi %429, %c2_i32_214 : i32
      %431 = arith.index_cast %430 : i32 to index
      %432 = memref.load %arg8[%431] : memref<500xf32, #tpu.memory_space<smem>>
      %433 = arith.index_cast %427 : i32 to index
      %c0_215 = arith.constant 0 : index
      %c0_216 = arith.constant 0 : index
      %434 = vector.load %arg13[%433, %c0_215, %c0_216] : memref<20x68x128xf32, #tpu.memory_space<vmem>>, vector<1x64x128xf32>
      %435 = vector.shape_cast %434 : vector<1x64x128xf32> to vector<64x128xf32>
      %436 = vector.broadcast %432 : f32 to vector<64x128xf32>
      %437 = arith.mulf %436, %435 : vector<64x128xf32>
      %438 = arith.addf %arg15, %437 : vector<64x128xf32>
      %c25_i32_217 = arith.constant 25 : i32
      %439 = arith.muli %427, %c25_i32_217 : i32
      %c5_i32 = arith.constant 5 : i32
      %440 = arith.addi %439, %c5_i32 : i32
      %c2_i32_218 = arith.constant 2 : i32
      %441 = arith.addi %440, %c2_i32_218 : i32
      %442 = arith.index_cast %441 : i32 to index
      %443 = memref.load %arg8[%442] : memref<500xf32, #tpu.memory_space<smem>>
      %444 = arith.index_cast %427 : i32 to index
      %c1_219 = arith.constant 1 : index
      %c0_220 = arith.constant 0 : index
      %445 = vector.load %arg13[%444, %c1_219, %c0_220] : memref<20x68x128xf32, #tpu.memory_space<vmem>>, vector<1x64x128xf32>
      %446 = vector.shape_cast %445 : vector<1x64x128xf32> to vector<64x128xf32>
      %447 = vector.broadcast %443 : f32 to vector<64x128xf32>
      %448 = arith.mulf %447, %446 : vector<64x128xf32>
      %449 = arith.addf %438, %448 : vector<64x128xf32>
      %c25_i32_221 = arith.constant 25 : i32
      %450 = arith.muli %427, %c25_i32_221 : i32
      %c10_i32_222 = arith.constant 10 : i32
      %451 = arith.addi %450, %c10_i32_222 : i32
      %c2_i32_223 = arith.constant 2 : i32
      %452 = arith.addi %451, %c2_i32_223 : i32
      %453 = arith.index_cast %452 : i32 to index
      %454 = memref.load %arg8[%453] : memref<500xf32, #tpu.memory_space<smem>>
      %455 = arith.index_cast %427 : i32 to index
      %c2_224 = arith.constant 2 : index
      %c0_225 = arith.constant 0 : index
      %456 = vector.load %arg13[%455, %c2_224, %c0_225] : memref<20x68x128xf32, #tpu.memory_space<vmem>>, vector<1x64x128xf32>
      %457 = vector.shape_cast %456 : vector<1x64x128xf32> to vector<64x128xf32>
      %458 = vector.broadcast %454 : f32 to vector<64x128xf32>
      %459 = arith.mulf %458, %457 : vector<64x128xf32>
      %460 = arith.addf %449, %459 : vector<64x128xf32>
      %c25_i32_226 = arith.constant 25 : i32
      %461 = arith.muli %427, %c25_i32_226 : i32
      %c15_i32 = arith.constant 15 : i32
      %462 = arith.addi %461, %c15_i32 : i32
      %c2_i32_227 = arith.constant 2 : i32
      %463 = arith.addi %462, %c2_i32_227 : i32
      %464 = arith.index_cast %463 : i32 to index
      %465 = memref.load %arg8[%464] : memref<500xf32, #tpu.memory_space<smem>>
      %466 = arith.index_cast %427 : i32 to index
      %c3_228 = arith.constant 3 : index
      %c0_229 = arith.constant 0 : index
      %467 = vector.load %arg13[%466, %c3_228, %c0_229] : memref<20x68x128xf32, #tpu.memory_space<vmem>>, vector<1x64x128xf32>
      %468 = vector.shape_cast %467 : vector<1x64x128xf32> to vector<64x128xf32>
      %469 = vector.broadcast %465 : f32 to vector<64x128xf32>
      %470 = arith.mulf %469, %468 : vector<64x128xf32>
      %471 = arith.addf %460, %470 : vector<64x128xf32>
      %c25_i32_230 = arith.constant 25 : i32
      %472 = arith.muli %427, %c25_i32_230 : i32
      %c20_i32_231 = arith.constant 20 : i32
      %473 = arith.addi %472, %c20_i32_231 : i32
      %c2_i32_232 = arith.constant 2 : i32
      %474 = arith.addi %473, %c2_i32_232 : i32
      %475 = arith.index_cast %474 : i32 to index
      %476 = memref.load %arg8[%475] : memref<500xf32, #tpu.memory_space<smem>>
      %477 = arith.index_cast %427 : i32 to index
      %c4_233 = arith.constant 4 : index
      %c0_234 = arith.constant 0 : index
      %478 = vector.load %arg13[%477, %c4_233, %c0_234] : memref<20x68x128xf32, #tpu.memory_space<vmem>>, vector<1x64x128xf32>
      %479 = vector.shape_cast %478 : vector<1x64x128xf32> to vector<64x128xf32>
      %480 = vector.broadcast %476 : f32 to vector<64x128xf32>
      %481 = arith.mulf %480, %479 : vector<64x128xf32>
      %482 = arith.addf %471, %481 : vector<64x128xf32>
      %c2_i32_235 = arith.constant 2 : i32
      %483 = arith.muli %arg14, %c2_i32_235 : i32
      %c1_i32_236 = arith.constant 1 : i32
      %484 = arith.addi %483, %c1_i32_236 : i32
      %c25_i32_237 = arith.constant 25 : i32
      %485 = arith.muli %484, %c25_i32_237 : i32
      %c0_i32_238 = arith.constant 0 : i32
      %486 = arith.addi %485, %c0_i32_238 : i32
      %c2_i32_239 = arith.constant 2 : i32
      %487 = arith.addi %486, %c2_i32_239 : i32
      %488 = arith.index_cast %487 : i32 to index
      %489 = memref.load %arg8[%488] : memref<500xf32, #tpu.memory_space<smem>>
      %490 = arith.index_cast %484 : i32 to index
      %c0_240 = arith.constant 0 : index
      %c0_241 = arith.constant 0 : index
      %491 = vector.load %arg13[%490, %c0_240, %c0_241] : memref<20x68x128xf32, #tpu.memory_space<vmem>>, vector<1x64x128xf32>
      %492 = vector.shape_cast %491 : vector<1x64x128xf32> to vector<64x128xf32>
      %493 = vector.broadcast %489 : f32 to vector<64x128xf32>
      %494 = arith.mulf %493, %492 : vector<64x128xf32>
      %495 = arith.addf %482, %494 : vector<64x128xf32>
      %c25_i32_242 = arith.constant 25 : i32
      %496 = arith.muli %484, %c25_i32_242 : i32
      %c5_i32_243 = arith.constant 5 : i32
      %497 = arith.addi %496, %c5_i32_243 : i32
      %c2_i32_244 = arith.constant 2 : i32
      %498 = arith.addi %497, %c2_i32_244 : i32
      %499 = arith.index_cast %498 : i32 to index
      %500 = memref.load %arg8[%499] : memref<500xf32, #tpu.memory_space<smem>>
      %501 = arith.index_cast %484 : i32 to index
      %c1_245 = arith.constant 1 : index
      %c0_246 = arith.constant 0 : index
      %502 = vector.load %arg13[%501, %c1_245, %c0_246] : memref<20x68x128xf32, #tpu.memory_space<vmem>>, vector<1x64x128xf32>
      %503 = vector.shape_cast %502 : vector<1x64x128xf32> to vector<64x128xf32>
      %504 = vector.broadcast %500 : f32 to vector<64x128xf32>
      %505 = arith.mulf %504, %503 : vector<64x128xf32>
      %506 = arith.addf %495, %505 : vector<64x128xf32>
      %c25_i32_247 = arith.constant 25 : i32
      %507 = arith.muli %484, %c25_i32_247 : i32
      %c10_i32_248 = arith.constant 10 : i32
      %508 = arith.addi %507, %c10_i32_248 : i32
      %c2_i32_249 = arith.constant 2 : i32
      %509 = arith.addi %508, %c2_i32_249 : i32
      %510 = arith.index_cast %509 : i32 to index
      %511 = memref.load %arg8[%510] : memref<500xf32, #tpu.memory_space<smem>>
      %512 = arith.index_cast %484 : i32 to index
      %c2_250 = arith.constant 2 : index
      %c0_251 = arith.constant 0 : index
      %513 = vector.load %arg13[%512, %c2_250, %c0_251] : memref<20x68x128xf32, #tpu.memory_space<vmem>>, vector<1x64x128xf32>
      %514 = vector.shape_cast %513 : vector<1x64x128xf32> to vector<64x128xf32>
      %515 = vector.broadcast %511 : f32 to vector<64x128xf32>
      %516 = arith.mulf %515, %514 : vector<64x128xf32>
      %517 = arith.addf %506, %516 : vector<64x128xf32>
      %c25_i32_252 = arith.constant 25 : i32
      %518 = arith.muli %484, %c25_i32_252 : i32
      %c15_i32_253 = arith.constant 15 : i32
      %519 = arith.addi %518, %c15_i32_253 : i32
      %c2_i32_254 = arith.constant 2 : i32
      %520 = arith.addi %519, %c2_i32_254 : i32
      %521 = arith.index_cast %520 : i32 to index
      %522 = memref.load %arg8[%521] : memref<500xf32, #tpu.memory_space<smem>>
      %523 = arith.index_cast %484 : i32 to index
      %c3_255 = arith.constant 3 : index
      %c0_256 = arith.constant 0 : index
      %524 = vector.load %arg13[%523, %c3_255, %c0_256] : memref<20x68x128xf32, #tpu.memory_space<vmem>>, vector<1x64x128xf32>
      %525 = vector.shape_cast %524 : vector<1x64x128xf32> to vector<64x128xf32>
      %526 = vector.broadcast %522 : f32 to vector<64x128xf32>
      %527 = arith.mulf %526, %525 : vector<64x128xf32>
      %528 = arith.addf %517, %527 : vector<64x128xf32>
      %c25_i32_257 = arith.constant 25 : i32
      %529 = arith.muli %484, %c25_i32_257 : i32
      %c20_i32_258 = arith.constant 20 : i32
      %530 = arith.addi %529, %c20_i32_258 : i32
      %c2_i32_259 = arith.constant 2 : i32
      %531 = arith.addi %530, %c2_i32_259 : i32
      %532 = arith.index_cast %531 : i32 to index
      %533 = memref.load %arg8[%532] : memref<500xf32, #tpu.memory_space<smem>>
      %534 = arith.index_cast %484 : i32 to index
      %c4_260 = arith.constant 4 : index
      %c0_261 = arith.constant 0 : index
      %535 = vector.load %arg13[%534, %c4_260, %c0_261] : memref<20x68x128xf32, #tpu.memory_space<vmem>>, vector<1x64x128xf32>
      %536 = vector.shape_cast %535 : vector<1x64x128xf32> to vector<64x128xf32>
      %537 = vector.broadcast %533 : f32 to vector<64x128xf32>
      %538 = arith.mulf %537, %536 : vector<64x128xf32>
      %539 = arith.addf %528, %538 : vector<64x128xf32>
      scf.yield %539 : vector<64x128xf32>
    }
    %c10_i32_185 = arith.constant 10 : i32
    %386 = arith.addf %382, %385 : vector<64x128xf32>
    %cst_186 = arith.constant 0.000000e+00 : f32
    %387 = vector.broadcast %cst_186 : f32 to vector<64x128xf32>
    %c0_i32_187 = arith.constant 0 : i32
    %c10_i32_188 = arith.constant 10 : i32
    %388 = arith.addi %c0_i32_187, %c10_i32_188 : i32
    %c1_i32_189 = arith.constant 1 : i32
    %389 = scf.for %arg14 = %c0_i32_187 to %388 step %c1_i32_189 iter_args(%arg15 = %387) -> (vector<64x128xf32>)  : i32 {
      %c2_i32_211 = arith.constant 2 : i32
      %426 = arith.muli %arg14, %c2_i32_211 : i32
      %c0_i32_212 = arith.constant 0 : i32
      %427 = arith.addi %426, %c0_i32_212 : i32
      %c25_i32 = arith.constant 25 : i32
      %428 = arith.muli %427, %c25_i32 : i32
      %c0_i32_213 = arith.constant 0 : i32
      %429 = arith.addi %428, %c0_i32_213 : i32
      %c3_i32 = arith.constant 3 : i32
      %430 = arith.addi %429, %c3_i32 : i32
      %431 = arith.index_cast %430 : i32 to index
      %432 = memref.load %arg8[%431] : memref<500xf32, #tpu.memory_space<smem>>
      %433 = arith.index_cast %427 : i32 to index
      %c0_214 = arith.constant 0 : index
      %c0_215 = arith.constant 0 : index
      %434 = vector.load %arg13[%433, %c0_214, %c0_215] : memref<20x68x128xf32, #tpu.memory_space<vmem>>, vector<1x64x128xf32>
      %435 = vector.shape_cast %434 : vector<1x64x128xf32> to vector<64x128xf32>
      %436 = vector.broadcast %432 : f32 to vector<64x128xf32>
      %437 = arith.mulf %436, %435 : vector<64x128xf32>
      %438 = arith.addf %arg15, %437 : vector<64x128xf32>
      %c25_i32_216 = arith.constant 25 : i32
      %439 = arith.muli %427, %c25_i32_216 : i32
      %c5_i32 = arith.constant 5 : i32
      %440 = arith.addi %439, %c5_i32 : i32
      %c3_i32_217 = arith.constant 3 : i32
      %441 = arith.addi %440, %c3_i32_217 : i32
      %442 = arith.index_cast %441 : i32 to index
      %443 = memref.load %arg8[%442] : memref<500xf32, #tpu.memory_space<smem>>
      %444 = arith.index_cast %427 : i32 to index
      %c1_218 = arith.constant 1 : index
      %c0_219 = arith.constant 0 : index
      %445 = vector.load %arg13[%444, %c1_218, %c0_219] : memref<20x68x128xf32, #tpu.memory_space<vmem>>, vector<1x64x128xf32>
      %446 = vector.shape_cast %445 : vector<1x64x128xf32> to vector<64x128xf32>
      %447 = vector.broadcast %443 : f32 to vector<64x128xf32>
      %448 = arith.mulf %447, %446 : vector<64x128xf32>
      %449 = arith.addf %438, %448 : vector<64x128xf32>
      %c25_i32_220 = arith.constant 25 : i32
      %450 = arith.muli %427, %c25_i32_220 : i32
      %c10_i32_221 = arith.constant 10 : i32
      %451 = arith.addi %450, %c10_i32_221 : i32
      %c3_i32_222 = arith.constant 3 : i32
      %452 = arith.addi %451, %c3_i32_222 : i32
      %453 = arith.index_cast %452 : i32 to index
      %454 = memref.load %arg8[%453] : memref<500xf32, #tpu.memory_space<smem>>
      %455 = arith.index_cast %427 : i32 to index
      %c2_223 = arith.constant 2 : index
      %c0_224 = arith.constant 0 : index
      %456 = vector.load %arg13[%455, %c2_223, %c0_224] : memref<20x68x128xf32, #tpu.memory_space<vmem>>, vector<1x64x128xf32>
      %457 = vector.shape_cast %456 : vector<1x64x128xf32> to vector<64x128xf32>
      %458 = vector.broadcast %454 : f32 to vector<64x128xf32>
      %459 = arith.mulf %458, %457 : vector<64x128xf32>
      %460 = arith.addf %449, %459 : vector<64x128xf32>
      %c25_i32_225 = arith.constant 25 : i32
      %461 = arith.muli %427, %c25_i32_225 : i32
      %c15_i32 = arith.constant 15 : i32
      %462 = arith.addi %461, %c15_i32 : i32
      %c3_i32_226 = arith.constant 3 : i32
      %463 = arith.addi %462, %c3_i32_226 : i32
      %464 = arith.index_cast %463 : i32 to index
      %465 = memref.load %arg8[%464] : memref<500xf32, #tpu.memory_space<smem>>
      %466 = arith.index_cast %427 : i32 to index
      %c3_227 = arith.constant 3 : index
      %c0_228 = arith.constant 0 : index
      %467 = vector.load %arg13[%466, %c3_227, %c0_228] : memref<20x68x128xf32, #tpu.memory_space<vmem>>, vector<1x64x128xf32>
      %468 = vector.shape_cast %467 : vector<1x64x128xf32> to vector<64x128xf32>
      %469 = vector.broadcast %465 : f32 to vector<64x128xf32>
      %470 = arith.mulf %469, %468 : vector<64x128xf32>
      %471 = arith.addf %460, %470 : vector<64x128xf32>
      %c25_i32_229 = arith.constant 25 : i32
      %472 = arith.muli %427, %c25_i32_229 : i32
      %c20_i32_230 = arith.constant 20 : i32
      %473 = arith.addi %472, %c20_i32_230 : i32
      %c3_i32_231 = arith.constant 3 : i32
      %474 = arith.addi %473, %c3_i32_231 : i32
      %475 = arith.index_cast %474 : i32 to index
      %476 = memref.load %arg8[%475] : memref<500xf32, #tpu.memory_space<smem>>
      %477 = arith.index_cast %427 : i32 to index
      %c4_232 = arith.constant 4 : index
      %c0_233 = arith.constant 0 : index
      %478 = vector.load %arg13[%477, %c4_232, %c0_233] : memref<20x68x128xf32, #tpu.memory_space<vmem>>, vector<1x64x128xf32>
      %479 = vector.shape_cast %478 : vector<1x64x128xf32> to vector<64x128xf32>
      %480 = vector.broadcast %476 : f32 to vector<64x128xf32>
      %481 = arith.mulf %480, %479 : vector<64x128xf32>
      %482 = arith.addf %471, %481 : vector<64x128xf32>
      %c2_i32_234 = arith.constant 2 : i32
      %483 = arith.muli %arg14, %c2_i32_234 : i32
      %c1_i32_235 = arith.constant 1 : i32
      %484 = arith.addi %483, %c1_i32_235 : i32
      %c25_i32_236 = arith.constant 25 : i32
      %485 = arith.muli %484, %c25_i32_236 : i32
      %c0_i32_237 = arith.constant 0 : i32
      %486 = arith.addi %485, %c0_i32_237 : i32
      %c3_i32_238 = arith.constant 3 : i32
      %487 = arith.addi %486, %c3_i32_238 : i32
      %488 = arith.index_cast %487 : i32 to index
      %489 = memref.load %arg8[%488] : memref<500xf32, #tpu.memory_space<smem>>
      %490 = arith.index_cast %484 : i32 to index
      %c0_239 = arith.constant 0 : index
      %c0_240 = arith.constant 0 : index
      %491 = vector.load %arg13[%490, %c0_239, %c0_240] : memref<20x68x128xf32, #tpu.memory_space<vmem>>, vector<1x64x128xf32>
      %492 = vector.shape_cast %491 : vector<1x64x128xf32> to vector<64x128xf32>
      %493 = vector.broadcast %489 : f32 to vector<64x128xf32>
      %494 = arith.mulf %493, %492 : vector<64x128xf32>
      %495 = arith.addf %482, %494 : vector<64x128xf32>
      %c25_i32_241 = arith.constant 25 : i32
      %496 = arith.muli %484, %c25_i32_241 : i32
      %c5_i32_242 = arith.constant 5 : i32
      %497 = arith.addi %496, %c5_i32_242 : i32
      %c3_i32_243 = arith.constant 3 : i32
      %498 = arith.addi %497, %c3_i32_243 : i32
      %499 = arith.index_cast %498 : i32 to index
      %500 = memref.load %arg8[%499] : memref<500xf32, #tpu.memory_space<smem>>
      %501 = arith.index_cast %484 : i32 to index
      %c1_244 = arith.constant 1 : index
      %c0_245 = arith.constant 0 : index
      %502 = vector.load %arg13[%501, %c1_244, %c0_245] : memref<20x68x128xf32, #tpu.memory_space<vmem>>, vector<1x64x128xf32>
      %503 = vector.shape_cast %502 : vector<1x64x128xf32> to vector<64x128xf32>
      %504 = vector.broadcast %500 : f32 to vector<64x128xf32>
      %505 = arith.mulf %504, %503 : vector<64x128xf32>
      %506 = arith.addf %495, %505 : vector<64x128xf32>
      %c25_i32_246 = arith.constant 25 : i32
      %507 = arith.muli %484, %c25_i32_246 : i32
      %c10_i32_247 = arith.constant 10 : i32
      %508 = arith.addi %507, %c10_i32_247 : i32
      %c3_i32_248 = arith.constant 3 : i32
      %509 = arith.addi %508, %c3_i32_248 : i32
      %510 = arith.index_cast %509 : i32 to index
      %511 = memref.load %arg8[%510] : memref<500xf32, #tpu.memory_space<smem>>
      %512 = arith.index_cast %484 : i32 to index
      %c2_249 = arith.constant 2 : index
      %c0_250 = arith.constant 0 : index
      %513 = vector.load %arg13[%512, %c2_249, %c0_250] : memref<20x68x128xf32, #tpu.memory_space<vmem>>, vector<1x64x128xf32>
      %514 = vector.shape_cast %513 : vector<1x64x128xf32> to vector<64x128xf32>
      %515 = vector.broadcast %511 : f32 to vector<64x128xf32>
      %516 = arith.mulf %515, %514 : vector<64x128xf32>
      %517 = arith.addf %506, %516 : vector<64x128xf32>
      %c25_i32_251 = arith.constant 25 : i32
      %518 = arith.muli %484, %c25_i32_251 : i32
      %c15_i32_252 = arith.constant 15 : i32
      %519 = arith.addi %518, %c15_i32_252 : i32
      %c3_i32_253 = arith.constant 3 : i32
      %520 = arith.addi %519, %c3_i32_253 : i32
      %521 = arith.index_cast %520 : i32 to index
      %522 = memref.load %arg8[%521] : memref<500xf32, #tpu.memory_space<smem>>
      %523 = arith.index_cast %484 : i32 to index
      %c3_254 = arith.constant 3 : index
      %c0_255 = arith.constant 0 : index
      %524 = vector.load %arg13[%523, %c3_254, %c0_255] : memref<20x68x128xf32, #tpu.memory_space<vmem>>, vector<1x64x128xf32>
      %525 = vector.shape_cast %524 : vector<1x64x128xf32> to vector<64x128xf32>
      %526 = vector.broadcast %522 : f32 to vector<64x128xf32>
      %527 = arith.mulf %526, %525 : vector<64x128xf32>
      %528 = arith.addf %517, %527 : vector<64x128xf32>
      %c25_i32_256 = arith.constant 25 : i32
      %529 = arith.muli %484, %c25_i32_256 : i32
      %c20_i32_257 = arith.constant 20 : i32
      %530 = arith.addi %529, %c20_i32_257 : i32
      %c3_i32_258 = arith.constant 3 : i32
      %531 = arith.addi %530, %c3_i32_258 : i32
      %532 = arith.index_cast %531 : i32 to index
      %533 = memref.load %arg8[%532] : memref<500xf32, #tpu.memory_space<smem>>
      %534 = arith.index_cast %484 : i32 to index
      %c4_259 = arith.constant 4 : index
      %c0_260 = arith.constant 0 : index
      %535 = vector.load %arg13[%534, %c4_259, %c0_260] : memref<20x68x128xf32, #tpu.memory_space<vmem>>, vector<1x64x128xf32>
      %536 = vector.shape_cast %535 : vector<1x64x128xf32> to vector<64x128xf32>
      %537 = vector.broadcast %533 : f32 to vector<64x128xf32>
      %538 = arith.mulf %537, %536 : vector<64x128xf32>
      %539 = arith.addf %528, %538 : vector<64x128xf32>
      scf.yield %539 : vector<64x128xf32>
    }
    %c10_i32_190 = arith.constant 10 : i32
    %c127_i32_191 = arith.constant 127 : i32
    %390 = tpu.dynamic_rotate %389 by %c127_i32_191 dim 1 : vector<64x128xf32>, i32 -> vector<64x128xf32>
    %391 = tpu.iota {dimensions = array<i32: 1>} : vector<64x128xi32>
    %c127_i32_192 = arith.constant 127 : i32
    %392 = vector.broadcast %c127_i32_192 : i32 to vector<64x128xi32>
    %393 = arith.cmpi slt, %391, %392 : vector<64x128xi32>
    %cst_193 = arith.constant 0.000000e+00 : f32
    %394 = vector.broadcast %cst_193 : f32 to vector<64x128xf32>
    %395 = arith.select %393, %390, %394 : vector<64x128xi1>, vector<64x128xf32>
    %396 = arith.addf %386, %395 : vector<64x128xf32>
    %cst_194 = arith.constant 0.000000e+00 : f32
    %397 = vector.broadcast %cst_194 : f32 to vector<64x128xf32>
    %c0_i32_195 = arith.constant 0 : i32
    %c10_i32_196 = arith.constant 10 : i32
    %398 = arith.addi %c0_i32_195, %c10_i32_196 : i32
    %c1_i32_197 = arith.constant 1 : i32
    %399 = scf.for %arg14 = %c0_i32_195 to %398 step %c1_i32_197 iter_args(%arg15 = %397) -> (vector<64x128xf32>)  : i32 {
      %c2_i32_211 = arith.constant 2 : i32
      %426 = arith.muli %arg14, %c2_i32_211 : i32
      %c0_i32_212 = arith.constant 0 : i32
      %427 = arith.addi %426, %c0_i32_212 : i32
      %c25_i32 = arith.constant 25 : i32
      %428 = arith.muli %427, %c25_i32 : i32
      %c0_i32_213 = arith.constant 0 : i32
      %429 = arith.addi %428, %c0_i32_213 : i32
      %c4_i32 = arith.constant 4 : i32
      %430 = arith.addi %429, %c4_i32 : i32
      %431 = arith.index_cast %430 : i32 to index
      %432 = memref.load %arg8[%431] : memref<500xf32, #tpu.memory_space<smem>>
      %433 = arith.index_cast %427 : i32 to index
      %c0_214 = arith.constant 0 : index
      %c0_215 = arith.constant 0 : index
      %434 = vector.load %arg13[%433, %c0_214, %c0_215] : memref<20x68x128xf32, #tpu.memory_space<vmem>>, vector<1x64x128xf32>
      %435 = vector.shape_cast %434 : vector<1x64x128xf32> to vector<64x128xf32>
      %436 = vector.broadcast %432 : f32 to vector<64x128xf32>
      %437 = arith.mulf %436, %435 : vector<64x128xf32>
      %438 = arith.addf %arg15, %437 : vector<64x128xf32>
      %c25_i32_216 = arith.constant 25 : i32
      %439 = arith.muli %427, %c25_i32_216 : i32
      %c5_i32 = arith.constant 5 : i32
      %440 = arith.addi %439, %c5_i32 : i32
      %c4_i32_217 = arith.constant 4 : i32
      %441 = arith.addi %440, %c4_i32_217 : i32
      %442 = arith.index_cast %441 : i32 to index
      %443 = memref.load %arg8[%442] : memref<500xf32, #tpu.memory_space<smem>>
      %444 = arith.index_cast %427 : i32 to index
      %c1_218 = arith.constant 1 : index
      %c0_219 = arith.constant 0 : index
      %445 = vector.load %arg13[%444, %c1_218, %c0_219] : memref<20x68x128xf32, #tpu.memory_space<vmem>>, vector<1x64x128xf32>
      %446 = vector.shape_cast %445 : vector<1x64x128xf32> to vector<64x128xf32>
      %447 = vector.broadcast %443 : f32 to vector<64x128xf32>
      %448 = arith.mulf %447, %446 : vector<64x128xf32>
      %449 = arith.addf %438, %448 : vector<64x128xf32>
      %c25_i32_220 = arith.constant 25 : i32
      %450 = arith.muli %427, %c25_i32_220 : i32
      %c10_i32_221 = arith.constant 10 : i32
      %451 = arith.addi %450, %c10_i32_221 : i32
      %c4_i32_222 = arith.constant 4 : i32
      %452 = arith.addi %451, %c4_i32_222 : i32
      %453 = arith.index_cast %452 : i32 to index
      %454 = memref.load %arg8[%453] : memref<500xf32, #tpu.memory_space<smem>>
      %455 = arith.index_cast %427 : i32 to index
      %c2_223 = arith.constant 2 : index
      %c0_224 = arith.constant 0 : index
      %456 = vector.load %arg13[%455, %c2_223, %c0_224] : memref<20x68x128xf32, #tpu.memory_space<vmem>>, vector<1x64x128xf32>
      %457 = vector.shape_cast %456 : vector<1x64x128xf32> to vector<64x128xf32>
      %458 = vector.broadcast %454 : f32 to vector<64x128xf32>
      %459 = arith.mulf %458, %457 : vector<64x128xf32>
      %460 = arith.addf %449, %459 : vector<64x128xf32>
      %c25_i32_225 = arith.constant 25 : i32
      %461 = arith.muli %427, %c25_i32_225 : i32
      %c15_i32 = arith.constant 15 : i32
      %462 = arith.addi %461, %c15_i32 : i32
      %c4_i32_226 = arith.constant 4 : i32
      %463 = arith.addi %462, %c4_i32_226 : i32
      %464 = arith.index_cast %463 : i32 to index
      %465 = memref.load %arg8[%464] : memref<500xf32, #tpu.memory_space<smem>>
      %466 = arith.index_cast %427 : i32 to index
      %c3_227 = arith.constant 3 : index
      %c0_228 = arith.constant 0 : index
      %467 = vector.load %arg13[%466, %c3_227, %c0_228] : memref<20x68x128xf32, #tpu.memory_space<vmem>>, vector<1x64x128xf32>
      %468 = vector.shape_cast %467 : vector<1x64x128xf32> to vector<64x128xf32>
      %469 = vector.broadcast %465 : f32 to vector<64x128xf32>
      %470 = arith.mulf %469, %468 : vector<64x128xf32>
      %471 = arith.addf %460, %470 : vector<64x128xf32>
      %c25_i32_229 = arith.constant 25 : i32
      %472 = arith.muli %427, %c25_i32_229 : i32
      %c20_i32_230 = arith.constant 20 : i32
      %473 = arith.addi %472, %c20_i32_230 : i32
      %c4_i32_231 = arith.constant 4 : i32
      %474 = arith.addi %473, %c4_i32_231 : i32
      %475 = arith.index_cast %474 : i32 to index
      %476 = memref.load %arg8[%475] : memref<500xf32, #tpu.memory_space<smem>>
      %477 = arith.index_cast %427 : i32 to index
      %c4_232 = arith.constant 4 : index
      %c0_233 = arith.constant 0 : index
      %478 = vector.load %arg13[%477, %c4_232, %c0_233] : memref<20x68x128xf32, #tpu.memory_space<vmem>>, vector<1x64x128xf32>
      %479 = vector.shape_cast %478 : vector<1x64x128xf32> to vector<64x128xf32>
      %480 = vector.broadcast %476 : f32 to vector<64x128xf32>
      %481 = arith.mulf %480, %479 : vector<64x128xf32>
      %482 = arith.addf %471, %481 : vector<64x128xf32>
      %c2_i32_234 = arith.constant 2 : i32
      %483 = arith.muli %arg14, %c2_i32_234 : i32
      %c1_i32_235 = arith.constant 1 : i32
      %484 = arith.addi %483, %c1_i32_235 : i32
      %c25_i32_236 = arith.constant 25 : i32
      %485 = arith.muli %484, %c25_i32_236 : i32
      %c0_i32_237 = arith.constant 0 : i32
      %486 = arith.addi %485, %c0_i32_237 : i32
      %c4_i32_238 = arith.constant 4 : i32
      %487 = arith.addi %486, %c4_i32_238 : i32
      %488 = arith.index_cast %487 : i32 to index
      %489 = memref.load %arg8[%488] : memref<500xf32, #tpu.memory_space<smem>>
      %490 = arith.index_cast %484 : i32 to index
      %c0_239 = arith.constant 0 : index
      %c0_240 = arith.constant 0 : index
      %491 = vector.load %arg13[%490, %c0_239, %c0_240] : memref<20x68x128xf32, #tpu.memory_space<vmem>>, vector<1x64x128xf32>
      %492 = vector.shape_cast %491 : vector<1x64x128xf32> to vector<64x128xf32>
      %493 = vector.broadcast %489 : f32 to vector<64x128xf32>
      %494 = arith.mulf %493, %492 : vector<64x128xf32>
      %495 = arith.addf %482, %494 : vector<64x128xf32>
      %c25_i32_241 = arith.constant 25 : i32
      %496 = arith.muli %484, %c25_i32_241 : i32
      %c5_i32_242 = arith.constant 5 : i32
      %497 = arith.addi %496, %c5_i32_242 : i32
      %c4_i32_243 = arith.constant 4 : i32
      %498 = arith.addi %497, %c4_i32_243 : i32
      %499 = arith.index_cast %498 : i32 to index
      %500 = memref.load %arg8[%499] : memref<500xf32, #tpu.memory_space<smem>>
      %501 = arith.index_cast %484 : i32 to index
      %c1_244 = arith.constant 1 : index
      %c0_245 = arith.constant 0 : index
      %502 = vector.load %arg13[%501, %c1_244, %c0_245] : memref<20x68x128xf32, #tpu.memory_space<vmem>>, vector<1x64x128xf32>
      %503 = vector.shape_cast %502 : vector<1x64x128xf32> to vector<64x128xf32>
      %504 = vector.broadcast %500 : f32 to vector<64x128xf32>
      %505 = arith.mulf %504, %503 : vector<64x128xf32>
      %506 = arith.addf %495, %505 : vector<64x128xf32>
      %c25_i32_246 = arith.constant 25 : i32
      %507 = arith.muli %484, %c25_i32_246 : i32
      %c10_i32_247 = arith.constant 10 : i32
      %508 = arith.addi %507, %c10_i32_247 : i32
      %c4_i32_248 = arith.constant 4 : i32
      %509 = arith.addi %508, %c4_i32_248 : i32
      %510 = arith.index_cast %509 : i32 to index
      %511 = memref.load %arg8[%510] : memref<500xf32, #tpu.memory_space<smem>>
      %512 = arith.index_cast %484 : i32 to index
      %c2_249 = arith.constant 2 : index
      %c0_250 = arith.constant 0 : index
      %513 = vector.load %arg13[%512, %c2_249, %c0_250] : memref<20x68x128xf32, #tpu.memory_space<vmem>>, vector<1x64x128xf32>
      %514 = vector.shape_cast %513 : vector<1x64x128xf32> to vector<64x128xf32>
      %515 = vector.broadcast %511 : f32 to vector<64x128xf32>
      %516 = arith.mulf %515, %514 : vector<64x128xf32>
      %517 = arith.addf %506, %516 : vector<64x128xf32>
      %c25_i32_251 = arith.constant 25 : i32
      %518 = arith.muli %484, %c25_i32_251 : i32
      %c15_i32_252 = arith.constant 15 : i32
      %519 = arith.addi %518, %c15_i32_252 : i32
      %c4_i32_253 = arith.constant 4 : i32
      %520 = arith.addi %519, %c4_i32_253 : i32
      %521 = arith.index_cast %520 : i32 to index
      %522 = memref.load %arg8[%521] : memref<500xf32, #tpu.memory_space<smem>>
      %523 = arith.index_cast %484 : i32 to index
      %c3_254 = arith.constant 3 : index
      %c0_255 = arith.constant 0 : index
      %524 = vector.load %arg13[%523, %c3_254, %c0_255] : memref<20x68x128xf32, #tpu.memory_space<vmem>>, vector<1x64x128xf32>
      %525 = vector.shape_cast %524 : vector<1x64x128xf32> to vector<64x128xf32>
      %526 = vector.broadcast %522 : f32 to vector<64x128xf32>
      %527 = arith.mulf %526, %525 : vector<64x128xf32>
      %528 = arith.addf %517, %527 : vector<64x128xf32>
      %c25_i32_256 = arith.constant 25 : i32
      %529 = arith.muli %484, %c25_i32_256 : i32
      %c20_i32_257 = arith.constant 20 : i32
      %530 = arith.addi %529, %c20_i32_257 : i32
      %c4_i32_258 = arith.constant 4 : i32
      %531 = arith.addi %530, %c4_i32_258 : i32
      %532 = arith.index_cast %531 : i32 to index
      %533 = memref.load %arg8[%532] : memref<500xf32, #tpu.memory_space<smem>>
      %534 = arith.index_cast %484 : i32 to index
      %c4_259 = arith.constant 4 : index
      %c0_260 = arith.constant 0 : index
      %535 = vector.load %arg13[%534, %c4_259, %c0_260] : memref<20x68x128xf32, #tpu.memory_space<vmem>>, vector<1x64x128xf32>
      %536 = vector.shape_cast %535 : vector<1x64x128xf32> to vector<64x128xf32>
      %537 = vector.broadcast %533 : f32 to vector<64x128xf32>
      %538 = arith.mulf %537, %536 : vector<64x128xf32>
      %539 = arith.addf %528, %538 : vector<64x128xf32>
      scf.yield %539 : vector<64x128xf32>
    }
    %c10_i32_198 = arith.constant 10 : i32
    %c126_i32_199 = arith.constant 126 : i32
    %400 = tpu.dynamic_rotate %399 by %c126_i32_199 dim 1 : vector<64x128xf32>, i32 -> vector<64x128xf32>
    %401 = tpu.iota {dimensions = array<i32: 1>} : vector<64x128xi32>
    %c126_i32_200 = arith.constant 126 : i32
    %402 = vector.broadcast %c126_i32_200 : i32 to vector<64x128xi32>
    %403 = arith.cmpi slt, %401, %402 : vector<64x128xi32>
    %cst_201 = arith.constant 0.000000e+00 : f32
    %404 = vector.broadcast %cst_201 : f32 to vector<64x128xf32>
    %405 = arith.select %403, %400, %404 : vector<64x128xi1>, vector<64x128xf32>
    %406 = arith.addf %396, %405 : vector<64x128xf32>
    %c2_202 = arith.constant 2 : index
    %407 = memref.load %arg4[%c2_202] : memref<3xf32, #tpu.memory_space<smem>>
    %408 = vector.broadcast %407 : f32 to vector<64x128xf32>
    %409 = arith.addf %406, %408 : vector<64x128xf32>
    %410 = math.absf %409 : vector<64x128xf32>
    %cst_203 = arith.constant 0.000000e+00 : f32
    %411 = vector.broadcast %cst_203 : f32 to vector<64x128xf32>
    %412 = arith.subf %411, %410 : vector<64x128xf32>
    %413 = math.exp %412 : vector<64x128xf32>
    %cst_204 = arith.constant 1.000000e+00 : f32
    %414 = vector.broadcast %cst_204 : f32 to vector<64x128xf32>
    %415 = arith.addf %414, %413 : vector<64x128xf32>
    %cst_205 = arith.constant 1.000000e+00 : f32
    %416 = vector.broadcast %cst_205 : f32 to vector<64x128xf32>
    %417 = arith.divf %416, %415 : vector<64x128xf32>
    %cst_206 = arith.constant 0.000000e+00 : f32
    %418 = vector.broadcast %cst_206 : f32 to vector<64x128xf32>
    %419 = arith.cmpf oge, %409, %418 : vector<64x128xf32>
    %cst_207 = arith.constant 1.000000e+00 : f32
    %420 = vector.broadcast %cst_207 : f32 to vector<64x128xf32>
    %421 = arith.subf %420, %417 : vector<64x128xf32>
    %422 = arith.select %419, %417, %421 : vector<64x128xi1>, vector<64x128xf32>
    %c0_208 = arith.constant 0 : index
    %c0_209 = arith.constant 0 : index
    %c0_210 = arith.constant 0 : index
    %423 = vector.load %arg11[%c0_208, %c0_209, %c0_210] : memref<1x64x128xf32, #tpu.memory_space<vmem>>, vector<1x64x128xf32>
    %424 = vector.shape_cast %423 : vector<1x64x128xf32> to vector<64x128xf32>
    %425 = vector.shape_cast %422 : vector<64x128xf32> to vector<1x64x128xf32>
    tpu.vector_store %arg11[%c0_208, %c0_209, %c0_210], %425 {strides = array<i32>} : memref<1x64x128xf32, #tpu.memory_space<vmem>>, vector<1x64x128xf32>,
    return
  }
  func.func @transform_0(%arg0: i32) -> i32 {
    %c0_i32 = arith.constant 0 : i32
    %c0_i32_0 = arith.constant 0 : i32
    return %c0_i32 : i32
  }
  func.func @transform_1(%arg0: i32) -> i32 {
    %c0_i32 = arith.constant 0 : i32
    %c0_i32_0 = arith.constant 0 : i32
    return %c0_i32 : i32
  }
  func.func @transform_2(%arg0: i32) -> i32 {
    %c0_i32 = arith.constant 0 : i32
    %c0_i32_0 = arith.constant 0 : i32
    return %c0_i32 : i32
  }
  func.func @transform_3(%arg0: i32) -> i32 {
    %c0_i32 = arith.constant 0 : i32
    %c0_i32_0 = arith.constant 0 : i32
    return %c0_i32 : i32
  }
  func.func @transform_4(%arg0: i32) -> i32 {
    %c0_i32 = arith.constant 0 : i32
    %c0_i32_0 = arith.constant 0 : i32
    return %c0_i32 : i32
  }
  func.func @transform_5(%arg0: i32) -> i32 {
    %c0_i32 = arith.constant 0 : i32
    %c0_i32_0 = arith.constant 0 : i32
    return %c0_i32 : i32
  }
  func.func @transform_6(%arg0: i32) -> i32 {
    %c0_i32 = arith.constant 0 : i32
    %c0_i32_0 = arith.constant 0 : i32
    return %c0_i32 : i32
  }
  func.func @transform_7(%arg0: i32) -> i32 {
    %c0_i32 = arith.constant 0 : i32
    %c0_i32_0 = arith.constant 0 : i32
    return %c0_i32 : i32
  }
  func.func @transform_8(%arg0: i32) -> (i32, i32, i32) {
    %c0_i32 = arith.constant 0 : i32
    %c0_i32_0 = arith.constant 0 : i32
    %c0_i32_1 = arith.constant 0 : i32
    %c0_i32_2 = arith.constant 0 : i32
    return %c0_i32, %c0_i32_0, %c0_i32_1 : i32, i32, i32
  }
  func.func @transform_9(%arg0: i32) -> (i32, i32) {
    %c0_i32 = arith.constant 0 : i32
    %c0_i32_0 = arith.constant 0 : i32
    %c0_i32_1 = arith.constant 0 : i32
    return %c0_i32, %c0_i32_0 : i32, i32
  }
  func.func @transform_10(%arg0: i32) -> (i32, i32, i32) {
    %c0_i32 = arith.constant 0 : i32
    %c0_i32_0 = arith.constant 0 : i32
    %c0_i32_1 = arith.constant 0 : i32
    return %arg0, %c0_i32, %c0_i32_0 : i32, i32, i32
  }
}

</mosaic_0001>

<bundles_post_ra>
// kernel: poly_forward.1
= control target key start
LH: loop header
LB: loop body
LE: loop exit
PB: predicated region body
PF: predicated region fallthrough
CT: control target
= control target key end

     0   :  { %s8719_s0 = inlined_call_operand.hbm [shape: f32[2], index: 0, kind: input, shape index: {}]   ;;  %s8720_s1 = inlined_call_operand.hbm [shape: f32[20], index: 1, kind: input, shape index: {}]   ;;  %s8721_s2 = inlined_call_operand.hbm [shape: f32[20], index: 2, kind: input, shape index: {}]   ;;  %s8722_s3 = inlined_call_operand.hbm [shape: f32[3], index: 3, kind: input, shape index: {}]   ;;  %s8723_s4 = inlined_call_operand.vmem [shape: f32[500], index: 4, kind: input, shape index: {}]   ;;  %s8724_s5 = inlined_call_operand.hbm [shape: f32[20], index: 5, kind: input, shape index: {}]   ;;  %s8725_s6 = inlined_call_operand.hbm [shape: f32[20], index: 6, kind: input, shape index: {}]   ;;  %s8726_s7 = inlined_call_operand.vmem [shape: f32[500], index: 7, kind: input, shape index: {}]   ;;  %s8727_s8 = inlined_call_operand.hbm [shape: f32[20,64,128], index: 8, kind: input, shape index: {}]   ;;  %s8728_s9 = inlined_call_operand.hbm [shape: f32[64,128], index: 9, kind: input, shape index: {}]   ;;  %s8729_s10 = inlined_call_operand.hbm [shape: f32[2,64,128], index: 10, kind: output, shape index: {}]  }
   0x1   :  { %8739 = sst [smem:[#allocation34_spill]] %s8719_s0 }
   0x2   :  { %8740 = sst [smem:[#allocation35_spill]] %s8720_s1 }
   0x3   :  { %8741 = sst [smem:[#allocation36_spill]] %s8721_s2 }
   0x4   :  { %8742 = sst [smem:[#allocation37_spill]] %s8722_s3 }
   0x5   :  { %8743 = sst [smem:[#allocation38_spill]] %s8723_s4 }
   0x6   :  { %15 = vsyncpa [#allocation7], 0 }
   0x7   :  { %16 = vsyncpa [#allocation10], 0 }
   0x8   :  { %17 = vsyncpa [#allocation13], 0 }
   0x9   :  { %18 = vsyncpa [#allocation8], 0 }
   0xa   :  { %19 = vsyncpa [#allocation17], 0 }
   0xb   :  { %20 = vsyncpa [#allocation19], 0 }
   0xc   :  { %21 = vsyncpa [#allocation5], 0 }
   0xd   :  { %22 = vsyncpa [#allocation22], 0 }
   0xe   :  { %23 = vsyncpa [#allocation6], 0 }
   0xf   :  { %25 = vsyncpa [#allocation6 + $0x1], 0  ;;  %s6109_s13 = smov 0   ;;  %s6111_s14 = smov 0  }
  0x10   :  { %s6113_s15 = smov 0   ;;  %s6115_s16 = smov 0  }
  0x11 LB: > { %s6130_s17 = sadd.s32 4294967295, %s5849_s16   ;;  %s4546_s18 = sadd.s32 4294967294, %s5849_s16   ;;  %s5849_s16 = sphi %s6115_s16, %s8844_s16   ;;  %s5845_s15 = sphi %s6113_s15, %s8843_s15   ;;  %s5841_s14 = sphi %s6111_s14, %s8842_s14   ;;  %s5837_s13 = sphi %s6109_s13, %s8841_s13  }
  0x12   : > { %s6134_s19 = sadd.s32 1, %s5849_s16   ;;  %s248_s20 = sadd.s32 1, %s5845_s15 }
  0x13   : > { %s245_s21 = ssub.s32 %s5849_s16, %s6134_s19  ;;  %p258_p0 = scmp.ne.s32.totalorder %s5845_s15, %s5841_s14 }
  0x14   : > { %p246_p1 = scmp.eq.s32.totalorder %s245_s21, 0  ;;  %p259_p2 = scmp.eq.s32.totalorder %s6130_s17, 1 }
  0x15   : > { %p264_p3 = scmp.ne.s32.totalorder %s5841_s14, %s5837_s13  ;;  %p265_p4 = scmp.eq.s32.totalorder %s4546_s18, 1 }
  0x16   : > { %s6145_s22 = scalar_select %p246_p1, %s5845_s15, %s248_s20  }
  0x17   : > { %p6147_p5 = por %p259_p2, %p258_p0  ;;  %p6151_p6 = por %p265_p4, %p264_p3 }
  0x18   : > { %p4547_p7 = scmp.ge.s32.totalorder %s5849_s16, 1  ;;  %p272_p8 = scmp.lt.s32.totalorder %s5849_s16, 3 }
  0x19   : > { %p4913_p9 = scmp.eq.s32.totalorder %s6130_s17, 0  ;;  %s8747_s1 = sld [smem:[#allocation35_spill]] }
  0x1a   : > { %p6158_p10 = pnand %p4547_p7, %p272_p8  ;;  %s8748_s3 = sld [smem:[#allocation37_spill]] }
  0x1b   : > { %s8750_s0 = sld [smem:[#allocation34_spill]]  ;;  %s6035_s30 = smov [#allocation9]  }
  0x1c   : > { %p4878_p11 = pneg %p6158_p10  ;;  %s8751_s2 = sld [smem:[#allocation36_spill]] }
  0x1d   : > { %s6038_s18 = smov [#allocation11]   ;;  %s8752_s4 = sld [smem:[#allocation38_spill]] }
  0x1e   : > { %p6172_p12 = pnand %p4913_p9, %p4878_p11  ;;  %s6041_s20 = smov [#allocation16]  }
  0x1f   : > { %s294_s28 = sshll.u32 %s8747_s1, 4  ;;  %s6036_s1 = smov [#allocation12]   ;;  %s295_s28 = int_to_ptr.hbm [resolvable:$true] %s294_s28 }
  0x20   : > { %s314_s11 = sshll.u32 %s8748_s3, 4  ;;  %s6037_s3 = smov [#allocation4]   ;;  %s315_s11 = int_to_ptr.hbm [resolvable:$true] %s314_s11 }
  0x21   : > { %s284_s21 = sshll.u32 %s8750_s0, 4  ;;  %s377_s0 = sshll.u32 %s8728_s9, 4  ;;  %s285_s21 = int_to_ptr.hbm [resolvable:$true] %s284_s21  ;;  %s378_s0 = int_to_ptr.hbm [resolvable:$true] %s377_s0 }
  0x22   : > { %s304_s29 = sshll.u32 %s8751_s2, 4  ;;  %s6042_s2 = smov [#allocation18]   ;;  %s305_s29 = int_to_ptr.hbm [resolvable:$true] %s304_s29 }
  0x23   : > { %4884 = dma.hbm_to_smem (!%p6172_p12), %s295_s28, 16, %s6035_s30, [#allocation10]  }
  0x24   : > { %4890 = dma.hbm_to_smem (!%p6172_p12), %s315_s11, 16, %s6036_s1, [#allocation13]  }
  0x25   : > { %4881 = dma.hbm_to_smem (!%p6172_p12), %s285_s21, 16, %s6037_s3, [#allocation7]  }
  0x26   : > { %4887 = dma.hbm_to_smem (!%p6172_p12), %s305_s29, 16, %s6038_s18, [#allocation10]  }
  0x27   : > { %s324_s26 = sshll.u32 %s8752_s4, 4  ;;  %s334_s28 = sshll.u32 %s8724_s5, 4  ;;  %s325_s26 = int_to_ptr.vmem [resolvable:$true] %s324_s26  ;;  %s335_s28 = int_to_ptr.hbm [resolvable:$true] %s334_s28 }
  0x28   : > { %s6039_s30 = smov [#allocation14]   ;;  %s6040_s1 = smov [#allocation15]  }
  0x29   : > { %4893 = dma.vmem_to_smem (!%p6172_p12), %s325_s26, 64, %s6039_s30, [#allocation8]  }
  0x2a   : > { %4896 = dma.hbm_to_smem (!%p6172_p12), %s335_s28, 16, %s6040_s1, [#allocation13]  }
  0x2b   : > { %s344_s21 = sshll.u32 %s8725_s6, 4  ;;  %s354_s18 = sshll.u32 %s8726_s7, 4  ;;  %s345_s21 = int_to_ptr.hbm [resolvable:$true] %s344_s21  ;;  %s355_s18 = int_to_ptr.vmem [resolvable:$true] %s354_s18 }
  0x2c   : > { %4899 = dma.hbm_to_smem (!%p6172_p12), %s345_s21, 16, %s6041_s20, [#allocation17]  }
  0x2d   : > { %4902 = dma.vmem_to_smem (!%p6172_p12), %s355_s18, 64, %s6042_s2, [#allocation19]  }
  0x2e   : > { %s363_s28 = sshll.u32 %s8727_s8, 4  ;;  %s6043_s30 = smov [#allocation20]   ;;  %s364_s28 = int_to_ptr.hbm [resolvable:$true] %s363_s28 }
  0x2f   : > { %s365_s1 = sshll.u32 %s6043_s30, 4  ;;  %s6044_s29 = smov 128   ;;  %s366_s1 = int_to_ptr.vmem [resolvable:$true] %s365_s1 }
  0x30   : > { %s6045_s4 = smov 8   ;;  %s6046_s21 = smov [#allocation21]  }
  0x31   : > { %4905 = dma.hbm_to_vmem [thread:$0]  (!%p6172_p12), %s364_s28, 20480, %s366_s1, [#allocation5], %s6044_s29, %s6044_s29, %s6045_s4  }
  0x32   : > { %s379_s20 = sshll.u32 %s6046_s21, 4  ;;  %395 = sbr.rel (%p6158_p10) target bundleno = 1441 (0x5a1), region = 60  ;;  %s380_s20 = int_to_ptr.vmem [resolvable:$true] %s379_s20 }
  0x33   : > { %4908 = dma.hbm_to_vmem [thread:$0]  (!%p6172_p12), %s378_s0, 1024, %s380_s20, [#allocation22], %s6044_s29, %s6044_s29, %s6045_s4  }
  0x37   : > { %5796 = dma.done.wait (%p4913_p9), [#allocation7], 16  }
  0x38   : > { %5798 = vsyncadd (%p4913_p9), [#allocation7], 4294967280 }
  0x39   : > { %5800 = dma.done.wait (%p4913_p9), [#allocation10], 32  }
  0x3a   : > { %5802 = vsyncadd (%p4913_p9), [#allocation10], 4294967264 }
  0x3b   : > { %5804 = dma.done.wait (%p4913_p9), [#allocation13], 16  }
  0x3c   : > { %5806 = vsyncadd (%p4913_p9), [#allocation13], 4294967280 }
  0x3d   : > { %5808 = dma.done.wait (%p4913_p9), [#allocation8], 64  }
  0x3e   : > { %5810 = vsyncadd (%p4913_p9), [#allocation8], 4294967232 }
  0x3f   : > { %5812 = dma.done.wait (%p4913_p9), [#allocation13], 16  }
  0x40   : > { %5814 = vsyncadd (%p4913_p9), [#allocation13], 4294967280 }
  0x41   : > { %5816 = dma.done.wait (%p4913_p9), [#allocation17], 16  }
  0x42   : > { %5818 = vsyncadd (%p4913_p9), [#allocation17], 4294967280 }
  0x43   : > { %5820 = dma.done.wait (%p4913_p9), [#allocation19], 64  }
  0x44   : > { %5822 = vsyncadd (%p4913_p9), [#allocation19], 4294967232 }
  0x45   : > { %5824 = dma.done.wait (%p4913_p9), [#allocation5], 20480  }
  0x46   : > { %5826 = vsyncadd (%p4913_p9), [#allocation5], 4294946816 }
  0x47   : > { %5828 = dma.done.wait (%p4913_p9), [#allocation22], 1024  }
  0x48   : > { %5830 = vsyncadd (%p4913_p9), [#allocation22], 4294966272 }
  0x49   : > { %447 = sfence }
  0x4a   : > { %s6259_s4 = sld [smem:[#allocation4 + %s6130_s17]]  ;;  %v541_v0 = vld [vmem:[#allocation20 + $0x10] sm:$0xff]  ;;  %v539_v1 = vld [vmem:[#allocation20] sm:$0xff]  ;;  %v542_v2 = vld [vmem:[#allocation20 + $0x18] sm:$0xff] }
  0x4b   : > { %s534_s25 = sld [smem:[#allocation9]]  ;;  %v588_v4 = vld [vmem:[#allocation20 + $0x50] sm:$0xff]  ;;  %v586_v5 = vld [vmem:[#allocation20 + $0x40] sm:$0xff]  ;;  %v589_v9 = vld [vmem:[#allocation20 + $0x58] sm:$0xff] }
  0x4c   : > { %s536_s12 = sld [smem:[#allocation11]]  ;;  %v635_v11 = vld [vmem:[#allocation20 + $0x90] sm:$0xff]  ;;  %v526_v18 = vld [vmem:[#allocation21] sm:$0xff]  ;;  %v529_v53 = vld [vmem:[#allocation21 + $0x18] sm:$0xff] }
  0x4d   : > { %s4570_s18 = sld [smem:[#allocation9 + $0x1]]  ;;  %v528_v12 = vld [vmem:[#allocation21 + $0x10] sm:$0xff]  ;;  %v633_v25 = vld [vmem:[#allocation20 + $0x80] sm:$0xff] }
  0x4e   : > { %s4571_s2 = sld [smem:[#allocation11 + $0x1]]  ;;  %v682_v17 = vld [vmem:[#allocation20 + $0xd0] sm:$0xff]  ;;  %v680_v30 = vld [vmem:[#allocation20 + $0xc0] sm:$0xff] }
  0x4f   : > { %s4572_s26 = sld [smem:[#allocation9 + $0x2]]  ;;  %v729_v34 = vld [vmem:[#allocation20 + $0x110] sm:$0xff]  ;;  %v727_v39 = vld [vmem:[#allocation20 + $0x100] sm:$0xff] }
  0x50   : > { %s4573_s27 = sld [smem:[#allocation11 + $0x2]]  ;;  %v776_v46 = vld [vmem:[#allocation20 + $0x150] sm:$0xff]  ;;  %v774_v52 = vld [vmem:[#allocation20 + $0x140] sm:$0xff] }
  0x51   : > { %s535_s28 = smul.f32 %s534_s25, %s6259_s4  ;;  %s6262_s30 = sld [smem:[#allocation9 + $0x3]] }
  0x52   : > { %s6264_s1 = sld [smem:[#allocation11 + $0x3]] }
  0x53   : > { %s537_s3 = sadd.f32 %s536_s12, %s535_s28  ;;  %s581_s11 = smul.f32 %s4570_s18, %s6259_s4 }
  0x54   : > { %s6267_s0 = sld [smem:[#allocation9 + $0x4]] }
  0x55   : > { %v6269_v3 = vstv %s537_s3  ;;  %s583_s29 = sadd.f32 %s4571_s2, %s581_s11  ;;  %s628_s21 = smul.f32 %s4572_s26, %s6259_s4 }
  0x56   : > { %v549_v6 = vmul.f32 %v541_v0, %v6269_v3  ;;  %s6273_s20 = sld [smem:[#allocation11 + $0x4]]  ;;  %v547_v7 = vmul.f32 %v539_v1, %v6269_v3  ;;  %v6277_v8 = vmul.f32 %v542_v2, %v6269_v3  ;;  %vm555_vm0 = vcmp.ge.f32.partialorder %v6269_v3, 0.0  ;;  %v823_v0 = vld [vmem:[#allocation20 + $0x190] sm:$0xff]  ;;  %v821_v2 = vld [vmem:[#allocation20 + $0x180] sm:$0xff] }
  0x57   : > { %v6280_v10 = vstv %s583_s29  ;;  %s630_s25 = sadd.f32 %s4573_s27, %s628_s21  ;;  %s675_s12 = smul.f32 %s6262_s30, %s6259_s4 }
  0x58   : > { %v558_v13 = vmul.f32 0.2, %v549_v6  ;;  %v596_v14 = vmul.f32 %v588_v4, %v6280_v10  ;;  %vm602_vm1 = vcmp.ge.f32.partialorder %v6280_v10, 0.0  ;;  %s6286_s18 = sld [smem:[#allocation9 + $0x5]]  ;;  %v594_v15 = vmul.f32 %v586_v5, %v6280_v10 }
  0x59   : > { %v6289_v16 = vstv %s630_s25  ;;  %s677_s2 = sadd.f32 %s6264_s1, %s675_s12  ;;  %v556_v19 = vmul.f32 0.2, %v547_v7  ;;  %v559_v20 = vmul.f32 0.2, %v6277_v8  ;;  %v6294_v21 = vmul.f32 %v589_v9, %v6280_v10 }
  0x5a   : > { %v566_v22 = vsel %vm555_vm0, %v549_v6, %v558_v13  ;;  %v605_v23 = vmul.f32 0.2, %v596_v14  ;;  %v643_v24 = vmul.f32 %v635_v11, %v6289_v16  ;;  %vm649_vm2 = vcmp.ge.f32.partialorder %v6289_v16, 0.0  ;;  %s722_s26 = smul.f32 %s6267_s0, %s6259_s4  ;;  %s6302_s27 = sld [smem:[#allocation11 + $0x5]] }
  0x5b   : > { %v574_v26 = vadd.f32 %v566_v22, %v528_v12  ;;  %v6304_v27 = vstv %s677_s2  ;;  %s6306_s28 = sld [smem:[#allocation9 + $0x6]]  ;;  %v564_v28 = vsel %vm555_vm0, %v547_v7, %v556_v19  ;;  %v603_v29 = vmul.f32 0.2, %v594_v15  ;;  %v868_v22 = vld [vmem:[#allocation20 + $0x1c0] sm:$0xff] }
  0x5c   : > { %v613_v31 = vsel %vm602_vm1, %v596_v14, %v605_v23  ;;  %v652_v32 = vmul.f32 0.2, %v643_v24  ;;  %v690_v33 = vmul.f32 %v682_v17, %v6304_v27  ;;  %vm8734_vm3 = vcmp.ge.f32.partialorder %v6304_v27, 0.0  ;;  %s724_s30 = sadd.f32 %s6273_s20, %s722_s26 }
  0x5d   : > { %v621_v35 = vadd.f32 %v613_v31, %v574_v26  ;;  %s6315_s1 = sld [smem:[#allocation11 + $0x6]]  ;;  %v572_v36 = vadd.f32 %v564_v28, %v526_v18  ;;  %v611_v37 = vsel %vm602_vm1, %v594_v15, %v603_v29  ;;  %v641_v38 = vmul.f32 %v633_v25, %v6289_v16  ;;  %v870_v15 = vld [vmem:[#allocation20 + $0x1d0] sm:$0xff] }
  0x5e   : > { %v660_v40 = vsel %vm649_vm2, %v643_v24, %v652_v32  ;;  %v699_v41 = vmul.f32 0.2, %v690_v33  ;;  %v6322_v42 = vstv %s724_s30  ;;  %s769_s3 = smul.f32 %s6286_s18, %s6259_s4  ;;  %s6326_s11 = sld [smem:[#allocation9 + $0x7]]  ;;  %v688_v43 = vmul.f32 %v680_v30, %v6304_v27  ;;  %v683_v24 = vld [vmem:[#allocation20 + $0xd8] sm:$0xff]  ;;  %v917_v31 = vld [vmem:[#allocation20 + $0x210] sm:$0xff] }
  0x5f   : > { %v668_v44 = vadd.f32 %v660_v40, %v621_v35  ;;  %v737_v45 = vmul.f32 %v729_v34, %v6322_v42  ;;  %vm8731_vm4 = vcmp.ge.f32.partialorder %v6322_v42, 0.0  ;;  %s6331_s0 = sld [smem:[#allocation11 + $0x7]]  ;;  %v619_v47 = vadd.f32 %v611_v37, %v572_v36  ;;  %v915_v36 = vld [vmem:[#allocation20 + $0x200] sm:$0xff] }
  0x60   : > { %v707_v48 = vsel %vm8734_vm3, %v690_v33, %v699_v41  ;;  %s771_s29 = sadd.f32 %s6302_s27, %s769_s3  ;;  %v650_v49 = vmul.f32 0.2, %v641_v38  ;;  %v697_v50 = vmul.f32 0.2, %v688_v43  ;;  %v735_v51 = vmul.f32 %v727_v39, %v6322_v42 }
  0x61   : > { %v715_v54 = vadd.f32 %v707_v48, %v668_v44  ;;  %v746_v55 = vmul.f32 0.2, %v737_v45  ;;  %s816_s21 = smul.f32 %s6306_s28, %s6259_s4  ;;  %s6339_s20 = sld [smem:[#allocation9 + $0x8]]  ;;  %v567_v56 = vsel %vm555_vm0, %v6277_v8, %v559_v20  ;;  %v606_v57 = vmul.f32 0.2, %v6294_v21  ;;  %v636_v8 = vld [vmem:[#allocation20 + $0x98] sm:$0xff] }
  0x62   : > { %v6345_v58 = vstv %s771_s29  ;;  %s6347_s25 = sld [smem:[#allocation11 + $0x8]]  ;;  %v658_v59 = vsel %vm649_vm2, %v641_v38, %v650_v49  ;;  %v705_v60 = vsel %vm8734_vm3, %v688_v43, %v697_v50  ;;  %v744_v61 = vmul.f32 0.2, %v735_v51  ;;  %v962_v50 = vld [vmem:[#allocation20 + $0x240] sm:$0xff] }
  0x63   : > { %v754_v62 = vsel %vm8731_vm4, %v737_v45, %v746_v55  ;;  %v784_v63 = vmul.f32 %v776_v46, %v6345_v58  ;;  %vm8730_vm5 = vcmp.ge.f32.partialorder %v6345_v58, 0.0  ;;  %s818_s12 = sadd.f32 %s6315_s1, %s816_s21  ;;  %v666_v1 = vadd.f32 %v658_v59, %v619_v47  ;;  %v964_v45 = vld [vmem:[#allocation20 + $0x250] sm:$0xff] }
  0x64   : > { %v762_v4 = vadd.f32 %v754_v62, %v715_v54  ;;  %s863_s18 = smul.f32 %s6326_s11, %s6259_s4  ;;  %s6360_s2 = sld [smem:[#allocation9 + $0x9]]  ;;  %v752_v5 = vsel %vm8731_vm4, %v735_v51, %v744_v61  ;;  %v782_v6 = vmul.f32 %v774_v52, %v6345_v58  ;;  %v575_v7 = vadd.f32 %v567_v56, %v529_v53  ;;  %v1011_v59 = vld [vmem:[#allocation20 + $0x290] sm:$0xff] }
  0x65   : > { %v793_v9 = vmul.f32 0.2, %v784_v63  ;;  %v6365_v11 = vstv %s818_s12  ;;  %s6367_s26 = sld [smem:[#allocation11 + $0x9]]  ;;  %v713_v12 = vadd.f32 %v705_v60, %v666_v1  ;;  %v614_v13 = vsel %vm602_vm1, %v6294_v21, %v606_v57 }
  0x66   : > { %v831_v14 = vmul.f32 %v823_v0, %v6365_v11  ;;  %vm8732_vm6 = vcmp.ge.f32.partialorder %v6365_v11, 0.0  ;;  %s865_s27 = sadd.f32 %s6331_s0, %s863_s18  ;;  %v791_v17 = vmul.f32 0.2, %v782_v6  ;;  %v829_v18 = vmul.f32 %v821_v2, %v6365_v11  ;;  %v1009_v0 = vld [vmem:[#allocation20 + $0x280] sm:$0xff] }
  0x67   : > { %v801_v19 = vsel %vm8730_vm5, %v784_v63, %v793_v9  ;;  %s910_s28 = smul.f32 %s6339_s20, %s6259_s4  ;;  %s6380_s30 = sld [smem:[#allocation9 + $0xa]]  ;;  %v760_v20 = vadd.f32 %v752_v5, %v713_v12  ;;  %v622_v21 = vadd.f32 %v614_v13, %v575_v7  ;;  %v644_v23 = vmul.f32 %v636_v8, %v6289_v16  ;;  %v1058_v12 = vld [vmem:[#allocation20 + $0x2d0] sm:$0xff] }
  0x68   : > { %v809_v25 = vadd.f32 %v801_v19, %v762_v4  ;;  %v840_v26 = vmul.f32 0.2, %v831_v14  ;;  %v6383_v28 = vstv %s865_s27  ;;  %s6385_s1 = sld [smem:[#allocation11 + $0xa]]  ;;  %v799_v29 = vsel %vm8730_vm5, %v782_v6, %v791_v17  ;;  %v730_v4 = vld [vmem:[#allocation20 + $0x118] sm:$0xff] }
  0x69   : > { %v878_v30 = vmul.f32 %v870_v15, %v6383_v28  ;;  %vm8733_vm7 = vcmp.ge.f32.partialorder %v6383_v28, 0.0  ;;  %s912_s3 = sadd.f32 %s6347_s25, %s910_s28  ;;  %v807_v32 = vadd.f32 %v799_v29, %v760_v20  ;;  %v838_v33 = vmul.f32 0.2, %v829_v18  ;;  %v1105_v29 = vld [vmem:[#allocation20 + $0x310] sm:$0xff] }
  0x6a   : > { %v848_v34 = vsel %vm8732_vm6, %v831_v14, %v840_v26  ;;  %s957_s11 = smul.f32 %s6360_s2, %s6259_s4  ;;  %s6396_s0 = sld [smem:[#allocation9 + $0xb]]  ;;  %v876_v35 = vmul.f32 %v868_v22, %v6383_v28  ;;  %v653_v37 = vmul.f32 0.2, %v644_v23  ;;  %v691_v38 = vmul.f32 %v683_v24, %v6304_v27  ;;  %v777_v22 = vld [vmem:[#allocation20 + $0x158] sm:$0xff] }
  0x6b   : > { %v856_v39 = vadd.f32 %v848_v34, %v809_v25  ;;  %v887_v40 = vmul.f32 0.2, %v878_v30  ;;  %v6400_v41 = vstv %s912_s3  ;;  %s6402_s29 = sld [smem:[#allocation11 + $0xb]]  ;;  %v846_v43 = vsel %vm8732_vm6, %v829_v18, %v838_v33  ;;  %v1056_v18 = vld [vmem:[#allocation20 + $0x2c0] sm:$0xff] }
  0x6c   : > { %v925_v44 = vmul.f32 %v917_v31, %v6400_v41  ;;  %vm931_vm8 = vcmp.ge.f32.partialorder %v6400_v41, 0.0  ;;  %s959_s21 = sadd.f32 %s6367_s26, %s957_s11  ;;  %v854_v46 = vadd.f32 %v846_v43, %v807_v32  ;;  %v885_v47 = vmul.f32 0.2, %v876_v35  ;;  %v1103_v34 = vld [vmem:[#allocation20 + $0x300] sm:$0xff] }
  0x6d   : > { %v895_v48 = vsel %vm8733_vm7, %v878_v30, %v887_v40  ;;  %s1004_s20 = smul.f32 %s6380_s30, %s6259_s4  ;;  %s6413_s25 = sld [smem:[#allocation9 + $0xc]]  ;;  %v923_v49 = vmul.f32 %v915_v36, %v6400_v41  ;;  %v661_v51 = vsel %vm649_vm2, %v644_v23, %v653_v37  ;;  %v700_v52 = vmul.f32 0.2, %v691_v38 }
  0x6e   : > { %v903_v53 = vadd.f32 %v895_v48, %v856_v39  ;;  %v934_v54 = vmul.f32 0.2, %v925_v44  ;;  %v6418_v55 = vstv %s959_s21  ;;  %s6420_s12 = sld [smem:[#allocation11 + $0xc]]  ;;  %v893_v56 = vsel %vm8733_vm7, %v876_v35, %v885_v47 }
  0x6f   : > { %v972_v57 = vmul.f32 %v964_v45, %v6418_v55  ;;  %vm978_vm9 = vcmp.ge.f32.partialorder %v6418_v55, 0.0  ;;  %s1006_s18 = sadd.f32 %s6385_s1, %s1004_s20  ;;  %v901_v60 = vadd.f32 %v893_v56, %v854_v46  ;;  %v932_v61 = vmul.f32 0.2, %v923_v49 }
  0x70   : > { %v942_v62 = vsel %vm931_vm8, %v925_v44, %v934_v54  ;;  %s1051_s2 = smul.f32 %s6396_s0, %s6259_s4  ;;  %s6431_s26 = sld [smem:[#allocation9 + $0xd]]  ;;  %v970_v63 = vmul.f32 %v962_v50, %v6418_v55  ;;  %v669_v1 = vadd.f32 %v661_v51, %v622_v21  ;;  %v708_v2 = vsel %vm8734_vm3, %v691_v38, %v700_v52  ;;  %v1152_v44 = vld [vmem:[#allocation20 + $0x350] sm:$0xff] }
  0x71   : > { %v950_v5 = vadd.f32 %v942_v62, %v903_v53  ;;  %v981_v6 = vmul.f32 0.2, %v972_v57  ;;  %v6436_v7 = vstv %s1006_s18  ;;  %s6438_s27 = sld [smem:[#allocation11 + $0xd]]  ;;  %v940_v8 = vsel %vm931_vm8, %v923_v49, %v932_v61  ;;  %v1150_v49 = vld [vmem:[#allocation20 + $0x340] sm:$0xff] }
  0x72   : > { %v1019_v9 = vmul.f32 %v1011_v59, %v6436_v7  ;;  %vm1025_vm10 = vcmp.ge.f32.partialorder %v6436_v7, 0.0  ;;  %s1053_s28 = sadd.f32 %s6402_s29, %s1051_s2  ;;  %v948_v13 = vadd.f32 %v940_v8, %v901_v60  ;;  %v979_v14 = vmul.f32 0.2, %v970_v63  ;;  %v1199_v59 = vld [vmem:[#allocation20 + $0x390] sm:$0xff] }
  0x73   : > { %v989_v15 = vsel %vm978_vm9, %v972_v57, %v981_v6  ;;  %s1098_s30 = smul.f32 %s6413_s25, %s6259_s4  ;;  %s6449_s1 = sld [smem:[#allocation9 + $0xe]]  ;;  %v1017_v17 = vmul.f32 %v1009_v0, %v6436_v7  ;;  %v716_v19 = vadd.f32 %v708_v2, %v669_v1  ;;  %v738_v20 = vmul.f32 %v730_v4, %v6322_v42  ;;  %v1197_v0 = vld [vmem:[#allocation20 + $0x380] sm:$0xff]  ;;  %v824_v4 = vld [vmem:[#allocation20 + $0x198] sm:$0xff] }
  0x74   : > { %v997_v21 = vadd.f32 %v989_v15, %v950_v5  ;;  %v1028_v23 = vmul.f32 0.2, %v1019_v9  ;;  %v6453_v24 = vstv %s1053_s28  ;;  %s6455_s3 = sld [smem:[#allocation11 + $0xe]]  ;;  %v987_v25 = vsel %vm978_vm9, %v970_v63, %v979_v14 }
  0x75   : > { %v1066_v26 = vmul.f32 %v1058_v12, %v6453_v24  ;;  %vm1072_vm11 = vcmp.ge.f32.partialorder %v6453_v24, 0.0  ;;  %s1100_s11 = sadd.f32 %s6420_s12, %s1098_s30  ;;  %v995_v30 = vadd.f32 %v987_v25, %v948_v13  ;;  %v1026_v31 = vmul.f32 0.2, %v1017_v17  ;;  %v1246_v13 = vld [vmem:[#allocation20 + $0x3d0] sm:$0xff] }
  0x76   : > { %v1036_v32 = vsel %vm1025_vm10, %v1019_v9, %v1028_v23  ;;  %s1145_s0 = smul.f32 %s6431_s26, %s6259_s4  ;;  %s6466_s29 = sld [smem:[#allocation9 + $0xf]]  ;;  %v1064_v33 = vmul.f32 %v1056_v18, %v6453_v24  ;;  %v747_v35 = vmul.f32 0.2, %v738_v20  ;;  %v785_v36 = vmul.f32 %v777_v22, %v6345_v58 }
  0x77   : > { %v1044_v37 = vadd.f32 %v1036_v32, %v997_v21  ;;  %v1075_v38 = vmul.f32 0.2, %v1066_v26  ;;  %v6470_v39 = vstv %s1100_s11  ;;  %s6472_s21 = sld [smem:[#allocation11 + $0xf]]  ;;  %v1034_v40 = vsel %vm1025_vm10, %v1017_v17, %v1026_v31  ;;  %v871_v21 = vld [vmem:[#allocation20 + $0x1d8] sm:$0xff]  ;;  %v1293_v31 = vld [vmem:[#allocation20 + $0x410] sm:$0xff] }
  0x78   : > { %v1113_v43 = vmul.f32 %v1105_v29, %v6470_v39  ;;  %vm1119_vm12 = vcmp.ge.f32.partialorder %v6470_v39, 0.0  ;;  %s1147_s20 = sadd.f32 %s6438_s27, %s1145_s0  ;;  %v1042_v45 = vadd.f32 %v1034_v40, %v995_v30  ;;  %v1073_v46 = vmul.f32 0.2, %v1064_v33 }
  0x79   : > { %v1083_v47 = vsel %vm1072_vm11, %v1066_v26, %v1075_v38  ;;  %s1192_s25 = smul.f32 %s6449_s1, %s6259_s4  ;;  %s6483_s12 = sld [smem:[#allocation9 + $0x10]]  ;;  %v1111_v48 = vmul.f32 %v1103_v34, %v6470_v39  ;;  %v755_v50 = vsel %vm8731_vm4, %v738_v20, %v747_v35  ;;  %v794_v51 = vmul.f32 0.2, %v785_v36 }
  0x7a   : > { %v1091_v52 = vadd.f32 %v1083_v47, %v1044_v37  ;;  %v1122_v53 = vmul.f32 0.2, %v1113_v43  ;;  %v6488_v54 = vstv %s1147_s20  ;;  %s6490_s18 = sld [smem:[#allocation11 + $0x10]]  ;;  %v1081_v56 = vsel %vm1072_vm11, %v1064_v33, %v1073_v46  ;;  %v1340_v47 = vld [vmem:[#allocation20 + $0x450] sm:$0xff] }
  0x7b   : > { %v1160_v57 = vmul.f32 %v1152_v44, %v6488_v54  ;;  %vm1166_vm13 = vcmp.ge.f32.partialorder %v6488_v54, 0.0  ;;  %s1194_s2 = sadd.f32 %s6455_s3, %s1192_s25  ;;  %v1089_v60 = vadd.f32 %v1081_v56, %v1042_v45  ;;  %v1120_v61 = vmul.f32 0.2, %v1111_v48 }
  0x7c   : > { %v1130_v62 = vsel %vm1119_vm12, %v1113_v43, %v1122_v53  ;;  %s1239_s26 = smul.f32 %s6466_s29, %s6259_s4  ;;  %s6501_s27 = sld [smem:[#allocation9 + $0x11]]  ;;  %v1158_v63 = vmul.f32 %v1150_v49, %v6488_v54  ;;  %v763_v1 = vadd.f32 %v755_v50, %v716_v19  ;;  %v802_v2 = vsel %vm8730_vm5, %v785_v36, %v794_v51  ;;  %v1244_v19 = vld [vmem:[#allocation20 + $0x3c0] sm:$0xff] }
  0x7d   : > { %v1138_v5 = vadd.f32 %v1130_v62, %v1091_v52  ;;  %v1169_v6 = vmul.f32 0.2, %v1160_v57  ;;  %v6506_v8 = vstv %s1194_s2  ;;  %s6508_s28 = sld [smem:[#allocation11 + $0x11]]  ;;  %v1128_v9 = vsel %vm1119_vm12, %v1111_v48, %v1120_v61  ;;  %v1291_v36 = vld [vmem:[#allocation20 + $0x400] sm:$0xff] }
  0x7e   : > { %v1207_v12 = vmul.f32 %v1199_v59, %v6506_v8  ;;  %vm1213_vm14 = vcmp.ge.f32.partialorder %v6506_v8, 0.0  ;;  %s1241_s30 = sadd.f32 %s6472_s21, %s1239_s26  ;;  %v1136_v14 = vadd.f32 %v1128_v9, %v1089_v60  ;;  %v1167_v15 = vmul.f32 0.2, %v1158_v63  ;;  %v1338_v52 = vld [vmem:[#allocation20 + $0x440] sm:$0xff] }
  0x7f   : > { %v1177_v17 = vsel %vm1166_vm13, %v1160_v57, %v1169_v6  ;;  %s1286_s1 = smul.f32 %s6483_s12, %s6259_s4  ;;  %s6519_s3 = sld [smem:[#allocation9 + $0x12]]  ;;  %v1205_v18 = vmul.f32 %v1197_v0, %v6506_v8  ;;  %v810_v20 = vadd.f32 %v802_v2, %v763_v1  ;;  %v832_v22 = vmul.f32 %v824_v4, %v6365_v11 }
  0x80   : > { %v1185_v23 = vadd.f32 %v1177_v17, %v1138_v5  ;;  %v1216_v25 = vmul.f32 0.2, %v1207_v12  ;;  %v6523_v26 = vstv %s1241_s30  ;;  %s6525_s11 = sld [smem:[#allocation11 + $0x12]]  ;;  %v1175_v29 = vsel %vm1166_vm13, %v1158_v63, %v1167_v15  ;;  %v1387_v63 = vld [vmem:[#allocation20 + $0x490] sm:$0xff]  ;;  %v1385_v5 = vld [vmem:[#allocation20 + $0x480] sm:$0xff]  ;;  %s6048_s30 = smov 1  }
  0x81   : > { %v1254_v30 = vmul.f32 %v1246_v13, %v6523_v26  ;;  %vm1260_vm15 = vcmp.ge.f32.partialorder %v6523_v26, 0.0  ;;  %s1288_s0 = sadd.f32 %s6490_s18, %s1286_s1  ;;  %v1183_v32 = vadd.f32 %v1175_v29, %v1136_v14  ;;  %v1214_v33 = vmul.f32 0.2, %v1205_v18  ;;  %s6049_s1 = smov 127  }
  0x82   : > { %v1224_v34 = vsel %vm1213_vm14, %v1207_v12, %v1216_v25  ;;  %s1333_s29 = smul.f32 %s6501_s27, %s6259_s4  ;;  %s6536_s21 = sld [smem:[#allocation9 + $0x13]]  ;;  %v1252_v35 = vmul.f32 %v1244_v19, %v6523_v26  ;;  %v841_v37 = vmul.f32 0.2, %v832_v22  ;;  %v879_v38 = vmul.f32 %v871_v21, %v6383_v28  ;;  %v1432_v25 = vld [vmem:[#allocation20 + $0x4c0] sm:$0xff] }
  0x83   : > { %v1232_v40 = vadd.f32 %v1224_v34, %v1185_v23  ;;  %v1263_v43 = vmul.f32 0.2, %v1254_v30  ;;  %v6540_v44 = vstv %s1288_s0  ;;  %s6542_s20 = sld [smem:[#allocation11 + $0x13]]  ;;  %v1222_v45 = vsel %vm1213_vm14, %v1205_v18, %v1214_v33  ;;  %v1434_v18 = vld [vmem:[#allocation20 + $0x4d0] sm:$0xff] }
  0x84   : > { %v1301_v46 = vmul.f32 %v1293_v31, %v6540_v44  ;;  %vm1307_vm5 = vcmp.ge.f32.partialorder %v6540_v44, 0.0  ;;  %s1335_s25 = sadd.f32 %s6508_s28, %s1333_s29  ;;  %v1230_v48 = vadd.f32 %v1222_v45, %v1183_v32  ;;  %v1261_v49 = vmul.f32 0.2, %v1252_v35  ;;  %s6047_s28 = smov 2  }
  0x85   : > { %v1271_v50 = vsel %vm1260_vm15, %v1254_v30, %v1263_v43  ;;  %s1380_s12 = smul.f32 %s6519_s3, %s6259_s4  ;;  %s6553_s18 = sld [smem:[#allocation12]]  ;;  %v1299_v51 = vmul.f32 %v1291_v36, %v6540_v44  ;;  %v849_v53 = vsel %vm8732_vm6, %v832_v22, %v841_v37  ;;  %v888_v56 = vmul.f32 0.2, %v879_v38  ;;  %v918_v30 = vld [vmem:[#allocation20 + $0x218] sm:$0xff] }
  0x86   : > { %v1279_v57 = vadd.f32 %v1271_v50, %v1232_v40  ;;  %v1310_v59 = vmul.f32 0.2, %v1301_v46  ;;  %v6558_v60 = vstv %s1335_s25  ;;  %s6560_s2 = sld [smem:[#allocation12 + $0x1]]  ;;  %v1269_v61 = vsel %vm1260_vm15, %v1252_v35, %v1261_v49  ;;  %v965_v35 = vld [vmem:[#allocation20 + $0x258] sm:$0xff]  ;;  %s6050_s3 = smov 126  }
  0x87   : > { %v1348_v62 = vmul.f32 %v1340_v47, %v6558_v60  ;;  %vm8737_vm4 = vcmp.ge.f32.partialorder %v6558_v60, 0.0  ;;  %s1382_s26 = sadd.f32 %s6525_s11, %s1380_s12  ;;  %v1277_v0 = vadd.f32 %v1269_v61, %v1230_v48  ;;  %v1308_v1 = vmul.f32 0.2, %v1299_v51  ;;  %v1012_v40 = vld [vmem:[#allocation20 + $0x298] sm:$0xff]  ;;  %s8738_s11 = sand.u32 1, %s5841_s14  }
  0x88   : > { %v1318_v2 = vsel %vm1307_vm5, %v1301_v46, %v1310_v59  ;;  %s1427_s27 = smul.f32 %s6536_s21, %s6259_s4  ;;  %v1346_v4 = vmul.f32 %v1338_v52, %v6558_v60  ;;  %v857_v6 = vadd.f32 %v849_v53, %v810_v20  ;;  %v896_v9 = vsel %vm8733_vm7, %v879_v38, %v888_v56  ;;  %v1059_v48 = vld [vmem:[#allocation20 + $0x2d8] sm:$0xff]  ;;  %s7072_s0 = sshll.u32 %s8738_s11, 6 }
  0x89   : > { %v1326_v12 = vadd.f32 %v1318_v2, %v1279_v57  ;;  %v1357_v13 = vmul.f32 0.2, %v1348_v62  ;;  %v6574_v14 = vstv %s1382_s26  ;;  %v1316_v15 = vsel %vm1307_vm5, %v1299_v51, %v1308_v1  ;;  %v1106_v49 = vld [vmem:[#allocation20 + $0x318] sm:$0xff]  ;;  %s7201_s29 = scalar_lea.vmem [#allocation23], %s7072_s0  ;;  %s7203_s21 = smov 0  }
  0x8a   : > { %v1395_v17 = vmul.f32 %v1387_v63, %v6574_v14  ;;  %vm8736_vm6 = vcmp.ge.f32.partialorder %v6574_v14, 0.0  ;;  %s1429_s4 = sadd.f32 %s6542_s20, %s1427_s27  ;;  %v1324_v19 = vadd.f32 %v1316_v15, %v1277_v0  ;;  %v1355_v22 = vmul.f32 0.2, %v1346_v4 }
  0x8b   : > { %v1365_v20 = vsel %vm8737_vm4, %v1348_v62, %v1357_v13  ;;  %v6584_v21 = vstv %s6553_s18  ;;  %v1393_v23 = vmul.f32 %v1385_v5, %v6574_v14  ;;  %v904_v29 = vadd.f32 %v896_v9, %v857_v6 }
  0x8c   : > { %v1373_v31 = vadd.f32 %v1365_v20, %v1326_v12  ;;  %v1404_v32 = vmul.f32 0.2, %v1395_v17  ;;  %v6587_v33 = vstv %s1429_s4  ;;  %v6590_v34 = vstv %s6560_s2 }
  0x8d   : > { %v1442_v36 = vmul.f32 %v1434_v18, %v6587_v33  ;;  %vm8735_vm7 = vcmp.ge.f32.partialorder %v6587_v33, 0.0  ;;  %v1363_v37 = vsel %vm8737_vm4, %v1346_v4, %v1355_v22  ;;  %v1402_v38 = vmul.f32 0.2, %v1393_v23  ;;  %v1200_v18 = vld [vmem:[#allocation20 + $0x398] sm:$0xff] }
  0x8e   : > { %v1412_v43 = vsel %vm8736_vm6, %v1395_v17, %v1404_v32  ;;  %v1371_v45 = vadd.f32 %v1363_v37, %v1324_v19  ;;  %v1440_v46 = vmul.f32 %v1432_v25, %v6587_v33  ;;  %v926_v47 = vmul.f32 %v918_v30, %v6400_v41  ;;  %v1153_v17 = vld [vmem:[#allocation20 + $0x358] sm:$0xff] }
  0x8f   : > { %v1420_v50 = vadd.f32 %v1412_v43, %v1373_v31  ;;  %v1451_v51 = vmul.f32 0.2, %v1442_v36  ;;  %v1410_v52 = vsel %vm8736_vm6, %v1393_v23, %v1402_v38  ;;  %v973_v53 = vmul.f32 %v965_v35, %v6418_v55  ;;  %v1247_v23 = vld [vmem:[#allocation20 + $0x3d8] sm:$0xff] }
  0x90   : > { %v1418_v56 = vadd.f32 %v1410_v52, %v1371_v45  ;;  %v1449_v57 = vmul.f32 0.2, %v1440_v46  ;;  %v935_v59 = vmul.f32 0.2, %v926_v47  ;;  %v1020_v61 = vmul.f32 %v1012_v40, %v6436_v7  ;;  %v1341_v38 = vld [vmem:[#allocation20 + $0x458] sm:$0xff] }
  0x91   : > { %v1459_v62 = vsel %vm8735_vm7, %v1442_v36, %v1451_v51  ;;  %v982_v63 = vmul.f32 0.2, %v973_v53  ;;  %v1067_v0 = vmul.f32 %v1059_v48, %v6453_v24  ;;  %v1114_v1 = vmul.f32 %v1106_v49, %v6470_v39  ;;  %v1388_v51 = vld [vmem:[#allocation20 + $0x498] sm:$0xff] }
  0x92   : > { %v1467_v2 = vadd.f32 %v1459_v62, %v1420_v50  ;;  %v1457_v4 = vsel %vm8735_vm7, %v1440_v46, %v1449_v57  ;;  %v943_v5 = vsel %vm931_vm8, %v926_v47, %v935_v59  ;;  %v1029_v6 = vmul.f32 0.2, %v1020_v61  ;;  %v540_v59 = vld [vmem:[#allocation20 + $0x8] sm:$0xff] }
  0x93   : > { %v1465_v9 = vadd.f32 %v1457_v4, %v1418_v56  ;;  %v951_v12 = vadd.f32 %v943_v5, %v904_v29  ;;  %v990_v13 = vsel %vm978_vm9, %v973_v53, %v982_v63  ;;  %v1076_v15 = vmul.f32 0.2, %v1067_v0  ;;  %v1294_v29 = vld [vmem:[#allocation20 + $0x418] sm:$0xff]  ;;  %v634_v5 = vld [vmem:[#allocation20 + $0x88] sm:$0xff] }
  0x94   : > { %vm1475_vm3 = vcmp.ge.f32.partialorder %v1467_v2, 0.0  ;;  %v1483_v19 = vmul.f32 0.2, %v1467_v2  ;;  %v1037_v22 = vsel %vm1025_vm10, %v1020_v61, %v1029_v6  ;;  %v1123_v20 = vmul.f32 0.2, %v1114_v1  ;;  %v681_v6 = vld [vmem:[#allocation20 + $0xc8] sm:$0xff] }
  0x95   : > { %vm1473_vm7 = vcmp.ge.f32.partialorder %v1465_v9, 0.0  ;;  %v1481_v25 = vmul.f32 0.2, %v1465_v9  ;;  %v998_v30 = vadd.f32 %v990_v13, %v951_v12  ;;  %v1084_v31 = vsel %vm1072_vm11, %v1067_v0, %v1076_v15  ;;  %v1435_v0 = vld [vmem:[#allocation20 + $0x4d8] sm:$0xff]  ;;  %v728_v15 = vld [vmem:[#allocation20 + $0x108] sm:$0xff] }
  0x96   : > { %v1491_v32 = vsel %vm1475_vm3, %v1467_v2, %v1483_v19  ;;  %v1131_v35 = vsel %vm1119_vm12, %v1114_v1, %v1123_v20  ;;  %v1161_v36 = vmul.f32 %v1153_v17, %v6488_v54  ;;  %v1208_v37 = vmul.f32 %v1200_v18, %v6506_v8  ;;  %v587_v1 = vld [vmem:[#allocation20 + $0x48] sm:$0xff] }
  0x97   : > { %v1501_v40 = vmul.f32 %v6584_v21, %v1491_v32  ;;  %v1489_v43 = vsel %vm1473_vm7, %v1465_v9, %v1481_v25  ;;  %v1045_v45 = vadd.f32 %v1037_v22, %v998_v30  ;;  %v1255_v46 = vmul.f32 %v1247_v23, %v6523_v26  ;;  %v527_v23 = vld [vmem:[#allocation21 + $0x8] sm:$0xff] }
  0x98   : > { %v1499_v47 = vmul.f32 %v6584_v21, %v1489_v43  ;;  %v1170_v48 = vmul.f32 0.2, %v1161_v36  ;;  %v1217_v49 = vmul.f32 0.2, %v1208_v37  ;;  %v1302_v50 = vmul.f32 %v1294_v29, %v6540_v44 }
  0x99   : > { %v6627_v52 = vadd.f32 %v6590_v34, %v1501_v40  ;;  %v1092_v53 = vadd.f32 %v1084_v31, %v1045_v45  ;;  %v1264_v56 = vmul.f32 0.2, %v1255_v46  ;;  %v1349_v57 = vmul.f32 %v1341_v38, %v6558_v60  ;;  %v822_v38 = vld [vmem:[#allocation20 + $0x188] sm:$0xff] }
  0x9a   : > { %v1509_v61 = vadd.f32 %v6590_v34, %v1499_v47  ;;  %v1178_v62 = vsel %vm1166_vm13, %v1161_v36, %v1170_v48  ;;  %v1311_v63 = vmul.f32 0.2, %v1302_v50  ;;  %v1396_v4 = vmul.f32 %v1388_v51, %v6574_v14  ;;  %v869_v47 = vld [vmem:[#allocation20 + $0x1c8] sm:$0xff] }
  0x9b   : > { %1521 = vrot.lane.b32.xlu1 %v6627_v52, %s6047_s28  ;;  %1589 = vst [vmem:[#allocation2 + $0xa2] sm:$0xff] %v6627_v52  ;;  %v1139_v2 = vadd.f32 %v1131_v35, %v1092_v53  ;;  %v1225_v9 = vsel %vm1213_vm14, %v1208_v37, %v1217_v49  ;;  %v1358_v12 = vmul.f32 0.2, %v1349_v57  ;;  %v548_v13 = vmul.f32 %v540_v59, %v6269_v3  ;;  %v775_v37 = vld [vmem:[#allocation20 + $0x148] sm:$0xff] }
  0x9c   : > { %1517 = vrot.lane.b32.xlu0 %v1509_v61, %s6047_s28  ;;  %1587 = vst [vmem:[#allocation2 + $0x92] sm:$0xff] %v1509_v61  ;;  %v1272_v18 = vsel %vm1260_vm15, %v1255_v46, %v1264_v56  ;;  %v1443_v19 = vmul.f32 %v1435_v0, %v6587_v33  ;;  %v595_v22 = vmul.f32 %v587_v1, %v6280_v10  ;;  %v1405_v32 = vmul.f32 0.2, %v1396_v4  ;;  %v916_v53 = vld [vmem:[#allocation20 + $0x208] sm:$0xff] }
  0x9d   : > { %v1186_v17 = vadd.f32 %v1178_v62, %v1139_v2  ;;  %v1319_v20 = vsel %vm1307_vm5, %v1302_v50, %v1311_v63  ;;  %v557_v25 = vmul.f32 0.2, %v548_v13  ;;  %v642_v30 = vmul.f32 %v634_v5, %v6289_v16  ;;  %v963_v62 = vld [vmem:[#allocation20 + $0x248] sm:$0xff] }
  0x9e   : > { %v689_v31 = vmul.f32 %v681_v6, %v6304_v27  ;;  %v604_v35 = vmul.f32 0.2, %v595_v22  ;;  %v736_v36 = vmul.f32 %v728_v15, %v6322_v42  ;;  %v1366_v40 = vsel %vm8737_vm4, %v1349_v57, %v1358_v12  ;;  %v1010_v5 = vld [vmem:[#allocation20 + $0x288] sm:$0xff] }
  0x9f   : > { %v1233_v29 = vadd.f32 %v1225_v9, %v1186_v17  ;;  %v565_v43 = vsel %vm555_vm0, %v548_v13, %v557_v25  ;;  %v651_v45 = vmul.f32 0.2, %v642_v30  ;;  %v1452_v49 = vmul.f32 0.2, %v1443_v19 }
  0xa0   : > { %v698_v46 = vmul.f32 0.2, %v689_v31  ;;  %v573_v50 = vadd.f32 %v565_v43, %v527_v23  ;;  %v612_v51 = vsel %vm602_vm1, %v595_v22, %v604_v35  ;;  %v745_v59 = vmul.f32 0.2, %v736_v36  ;;  %v1057_v22 = vld [vmem:[#allocation20 + $0x2c8] sm:$0xff] }
  0xa1   : > { %v1280_v48 = vadd.f32 %v1272_v18, %v1233_v29  ;;  %v659_v56 = vsel %vm649_vm2, %v642_v30, %v651_v45  ;;  %v783_v61 = vmul.f32 %v775_v37, %v6345_v58  ;;  %v830_v57 = vmul.f32 %v822_v38, %v6365_v11  ;;  %v1151_v30 = vld [vmem:[#allocation20 + $0x348] sm:$0xff] }
  0xa2   : > { %v1413_v0 = vsel %vm8736_vm6, %v1396_v4, %v1405_v32  ;;  %v620_v1 = vadd.f32 %v612_v51, %v573_v50  ;;  %v877_v2 = vmul.f32 %v869_v47, %v6383_v28  ;;  %vm8753_vm3 = vcmp.ge.f32.partialorder %v6304_v27, 0.0  ;;  %v1198_v37 = vld [vmem:[#allocation20 + $0x388] sm:$0xff] }
  0xa3   : > { %v1327_v63 = vadd.f32 %v1319_v20, %v1280_v48  ;;  %v706_v6 = vsel %vm8753_vm3, %v689_v31, %v698_v46  ;;  %v792_v9 = vmul.f32 0.2, %v783_v61  ;;  %v839_v12 = vmul.f32 0.2, %v830_v57  ;;  %v1104_v20 = vld [vmem:[#allocation20 + $0x308] sm:$0xff] }
  0xa4   : > { %v924_v13 = vmul.f32 %v916_v53, %v6400_v41  ;;  %v667_v17 = vadd.f32 %v659_v56, %v620_v1  ;;  %v971_v18 = vmul.f32 %v963_v62, %v6418_v55  ;;  %vm8754_vm7 = vcmp.ge.f32.partialorder %v6587_v33, 0.0  ;;  %v1245_v38 = vld [vmem:[#allocation20 + $0x3c8] sm:$0xff] }
  0xa5   : > { %v1374_v15 = vadd.f32 %v1366_v40, %v1327_v63  ;;  %v1460_v4 = vsel %vm8754_vm7, %v1443_v19, %v1452_v49  ;;  %vm8755_vm6 = vcmp.ge.f32.partialorder %v6322_v42, 0.0  ;;  %v1018_v25 = vmul.f32 %v1010_v5, %v6436_v7  ;;  %v1292_v56 = vld [vmem:[#allocation20 + $0x408] sm:$0xff] }
  0xa6   : > { %v753_v23 = vsel %vm8755_vm6, %v736_v36, %v745_v59  ;;  %v714_v29 = vadd.f32 %v706_v6, %v667_v17  ;;  %vm8756_vm3 = vcmp.ge.f32.partialorder %v6345_v58, 0.0  ;;  %v886_v35 = vmul.f32 0.2, %v877_v2 }
  0xa7   : > { %v1421_v31 = vadd.f32 %v1413_v0, %v1374_v15  ;;  %v800_v32 = vsel %vm8756_vm3, %v783_v61, %v792_v9  ;;  %vm8757_vm4 = vcmp.ge.f32.partialorder %v6365_v11, 0.0  ;;  %v933_v43 = vmul.f32 0.2, %v924_v13  ;;  %v593_v15 = vld [vmem:[#allocation20 + $0x78] sm:$0xff] }
  0xa8   : > { %v847_v40 = vsel %vm8757_vm4, %v830_v57, %v839_v12  ;;  %v1065_v19 = vmul.f32 %v1057_v22, %v6453_v24  ;;  %v1112_v45 = vmul.f32 %v1104_v20, %v6470_v39  ;;  %v761_v46 = vadd.f32 %v753_v23, %v714_v29  ;;  %v546_v12 = vld [vmem:[#allocation20 + $0x38] sm:$0xff] }
  0xa9   : > { %v1468_v36 = vadd.f32 %v1460_v4, %v1421_v31  ;;  %v980_v47 = vmul.f32 0.2, %v971_v18  ;;  %v1159_v48 = vmul.f32 %v1151_v30, %v6488_v54  ;;  %v1027_v49 = vmul.f32 0.2, %v1018_v25  ;;  %v1339_v31 = vld [vmem:[#allocation20 + $0x448] sm:$0xff]  ;;  %v640_v29 = vld [vmem:[#allocation20 + $0xb8] sm:$0xff] }
  0xaa   : > { %v1074_v50 = vmul.f32 0.2, %v1065_v19  ;;  %v1206_v51 = vmul.f32 %v1198_v37, %v6506_v8  ;;  %v1253_v53 = vmul.f32 %v1245_v38, %v6523_v26  ;;  %v808_v61 = vadd.f32 %v800_v32, %v761_v46  ;;  %v687_v38 = vld [vmem:[#allocation20 + $0xf8] sm:$0xff] }
  0xab   : > { %vm1476_vm6 = vcmp.ge.f32.partialorder %v1468_v36, 0.0  ;;  %v1484_v59 = vmul.f32 0.2, %v1468_v36  ;;  %v1121_v57 = vmul.f32 0.2, %v1112_v45  ;;  %vm8758_vm4 = vcmp.ge.f32.partialorder %v6383_v28, 0.0 }
  0xac   : > { %v894_v62 = vsel %vm8758_vm4, %v877_v2, %v886_v35  ;;  %v1168_v63 = vmul.f32 0.2, %v1159_v48  ;;  %v1215_v0 = vmul.f32 0.2, %v1206_v51  ;;  %v855_v5 = vadd.f32 %v847_v40, %v808_v61  ;;  %v1386_v35 = vld [vmem:[#allocation20 + $0x488] sm:$0xff]  ;;  %v734_v46 = vld [vmem:[#allocation20 + $0x138] sm:$0xff] }
  0xad   : > { %v1492_v1 = vsel %vm1476_vm6, %v1468_v36, %v1484_v59  ;;  %v1262_v6 = vmul.f32 0.2, %v1253_v53  ;;  %v1300_v9 = vmul.f32 %v1292_v56, %v6540_v44  ;;  %v941_v22 = vsel %vm931_vm8, %v924_v13, %v933_v43  ;;  %v533_v36 = vld [vmem:[#allocation21 + $0x38] sm:$0xff] }
  0xae   : > { %v1502_v17 = vmul.f32 %v6584_v21, %v1492_v1  ;;  %v988_v20 = vsel %vm978_vm9, %v971_v18, %v980_v47  ;;  %v902_v4 = vadd.f32 %v894_v62, %v855_v5  ;;  %v1035_v2 = vsel %vm1025_vm10, %v1018_v25, %v1027_v49  ;;  %v1433_v18 = vld [vmem:[#allocation20 + $0x4c8] sm:$0xff]  ;;  %v781_v56 = vld [vmem:[#allocation20 + $0x178] sm:$0xff] }
  0xaf   : > { %v1082_v23 = vsel %vm1072_vm11, %v1065_v19, %v1074_v50  ;;  %v1129_v30 = vsel %vm1119_vm12, %v1112_v45, %v1121_v57  ;;  %v1176_v13 = vsel %vm1166_vm13, %v1159_v48, %v1168_v63  ;;  %v554_v37 = vmul.f32 %v546_v12, %v6269_v3  ;;  %v828_v57 = vld [vmem:[#allocation20 + $0x1b8] sm:$0xff] }
  0xb0   : > { %v6696_v32 = vadd.f32 %v6590_v34, %v1502_v17  ;;  %v601_v25 = vmul.f32 %v593_v15, %v6280_v10  ;;  %v949_v40 = vadd.f32 %v941_v22, %v902_v4  ;;  %v1223_v43 = vsel %vm1213_vm14, %v1206_v51, %v1215_v0  ;;  %v875_v5 = vld [vmem:[#allocation20 + $0x1f8] sm:$0xff] }
  0xb1   : > { %v6706_v19 = vsel %vm1260_vm15, %v1253_v53, %v1262_v6  ;;  %v1309_v45 = vmul.f32 0.2, %v1300_v9  ;;  %v1347_v47 = vmul.f32 %v1339_v31, %v6558_v60  ;;  %v563_v48 = vmul.f32 0.2, %v554_v37 }
  0xb2   : > { %1590 = vst [vmem:[#allocation2 + $0xaa] sm:$0xff] %v6696_v32  ;;  %1523 = vrot.lane.b32.xlu1 %v6696_v32, %s6047_s28  ;;  %v610_v49 = vmul.f32 0.2, %v601_v25  ;;  %v648_v50 = vmul.f32 %v640_v29, %v6289_v16  ;;  %v996_v51 = vadd.f32 %v988_v20, %v949_v40  ;;  %v6714_v59 = vmul.f32 %v1386_v35, %v6574_v14  ;;  %v922_v29 = vld [vmem:[#allocation20 + $0x238] sm:$0xff] }
  0xb3   : > { %v6717_v53 = vmul.f32 %v1433_v18, %v6587_v33  ;;  %v695_v61 = vmul.f32 %v687_v38, %v6304_v27  ;;  %v571_v62 = vsel %vm555_vm0, %v554_v37, %v563_v48  ;;  %v742_v1 = vmul.f32 %v734_v46, %v6322_v42  ;;  %v969_v35 = vld [vmem:[#allocation20 + $0x278] sm:$0xff] }
  0xb4   : > { %v618_v63 = vsel %vm602_vm1, %v601_v25, %v610_v49  ;;  %v657_v0 = vmul.f32 0.2, %v648_v50  ;;  %v1043_v6 = vadd.f32 %v1035_v2, %v996_v51  ;;  %v579_v12 = vadd.f32 %v571_v62, %v533_v36  ;;  %v1016_v38 = vld [vmem:[#allocation20 + $0x2b8] sm:$0xff] }
  0xb5   : > { %v704_v15 = vmul.f32 0.2, %v695_v61  ;;  %v789_v17 = vmul.f32 %v781_v56, %v6345_v58  ;;  %v1356_v22 = vmul.f32 0.2, %v1347_v47  ;;  %v751_v4 = vmul.f32 0.2, %v742_v1 }
  0xb6   : > { %v665_v20 = vsel %vm649_vm2, %v648_v50, %v657_v0  ;;  %v836_v31 = vmul.f32 %v828_v57, %v6365_v11  ;;  %v1090_v18 = vadd.f32 %v1082_v23, %v1043_v6  ;;  %v1317_v37 = vsel %vm1307_vm5, %v1300_v9, %v1309_v45  ;;  %v1063_v40 = vld [vmem:[#allocation20 + $0x2f8] sm:$0xff] }
  0xb7   : > { %v626_v25 = vadd.f32 %v618_v63, %v579_v12  ;;  %v883_v2 = vmul.f32 %v875_v5, %v6383_v28  ;;  %v1403_v36 = vmul.f32 0.2, %v6714_v59  ;;  %vm8759_vm7 = vcmp.ge.f32.partialorder %v6304_v27, 0.0  ;;  %v1110_v57 = vld [vmem:[#allocation20 + $0x338] sm:$0xff] }
  0xb8   : > { %v712_v46 = vsel %vm8759_vm7, %v695_v61, %v704_v15  ;;  %v798_v48 = vmul.f32 0.2, %v789_v17  ;;  %v845_v49 = vmul.f32 0.2, %v836_v31  ;;  %v1137_v50 = vadd.f32 %v1129_v30, %v1090_v18  ;;  %v1157_v9 = vld [vmem:[#allocation20 + $0x378] sm:$0xff] }
  0xb9   : > { %v673_v56 = vadd.f32 %v665_v20, %v626_v25  ;;  %v930_v51 = vmul.f32 %v922_v29, %v6400_v41  ;;  %v977_v23 = vmul.f32 %v969_v35, %v6418_v55  ;;  %vm8760_vm3 = vcmp.ge.f32.partialorder %v6558_v60, 0.0  ;;  %v1204_v12 = vld [vmem:[#allocation20 + $0x3b8] sm:$0xff] }
  0xba   : > { %v1364_v45 = vsel %vm8760_vm3, %v1347_v47, %v1356_v22  ;;  %v1450_v62 = vmul.f32 0.2, %v6717_v53  ;;  %vm8761_vm6 = vcmp.ge.f32.partialorder %v6322_v42, 0.0  ;;  %v1024_v61 = vmul.f32 %v1016_v38, %v6436_v7  ;;  %v1251_v29 = vld [vmem:[#allocation20 + $0x3f8] sm:$0xff] }
  0xbb   : > { %v759_v63 = vsel %vm8761_vm6, %v742_v1, %v751_v4  ;;  %v1184_v0 = vadd.f32 %v1176_v13, %v1137_v50  ;;  %v720_v5 = vadd.f32 %v712_v46, %v673_v56  ;;  %v892_v30 = vmul.f32 0.2, %v883_v2  ;;  %v1298_v18 = vld [vmem:[#allocation20 + $0x438] sm:$0xff] }
  0xbc   : > { %v1071_v6 = vmul.f32 %v1063_v40, %v6453_v24  ;;  %vm8762_vm4 = vcmp.ge.f32.partialorder %v6345_v58, 0.0  ;;  %vm8763_vm7 = vcmp.ge.f32.partialorder %v6365_v11, 0.0  ;;  %v1118_v47 = vmul.f32 %v1110_v57, %v6470_v39 }
  0xbd   : > { %v806_v15 = vsel %vm8762_vm4, %v789_v17, %v798_v48  ;;  %v853_v20 = vsel %vm8763_vm7, %v836_v31, %v845_v49  ;;  %v1165_v22 = vmul.f32 %v1157_v9, %v6488_v54  ;;  %v1231_v1 = vadd.f32 %v1223_v43, %v1184_v0 }
  0xbe   : > { %v767_v4 = vadd.f32 %v759_v63, %v720_v5  ;;  %v939_v35 = vmul.f32 0.2, %v930_v51  ;;  %v986_v13 = vmul.f32 0.2, %v977_v23  ;;  %v1033_v25 = vmul.f32 0.2, %v1024_v61 }
  0xbf   : > { %v1080_v38 = vmul.f32 0.2, %v1071_v6  ;;  %v1127_v40 = vmul.f32 0.2, %v1118_v47  ;;  %v1212_v46 = vmul.f32 %v1204_v12, %v6506_v8  ;;  %v1278_v17 = vadd.f32 %v6706_v19, %v1231_v1  ;;  %v1345_v5 = vld [vmem:[#allocation20 + $0x478] sm:$0xff]  ;;  %v545_v12 = vld [vmem:[#allocation20 + $0x30] sm:$0xff] }
  0xc0   : > { %v814_v48 = vadd.f32 %v806_v15, %v767_v4  ;;  %v1174_v50 = vmul.f32 0.2, %v1165_v22  ;;  %v1259_v31 = vmul.f32 %v1251_v29, %v6523_v26  ;;  %vm8764_vm3 = vcmp.ge.f32.partialorder %v6574_v14, 0.0  ;;  %v592_v15 = vld [vmem:[#allocation20 + $0x70] sm:$0xff] }
  0xc1   : > { %v1411_v49 = vsel %vm8764_vm3, %v6714_v59, %v1403_v36  ;;  %vm8765_vm6 = vcmp.ge.f32.partialorder %v6383_v28, 0.0  ;;  %v1221_v56 = vmul.f32 0.2, %v1212_v46  ;;  %v6759_v57 = vmul.f32 %v1298_v18, %v6540_v44  ;;  %v639_v1 = vld [vmem:[#allocation20 + $0xb0] sm:$0xff] }
  0xc2   : > { %v900_v43 = vsel %vm8765_vm6, %v883_v2, %v892_v30  ;;  %v1325_v9 = vadd.f32 %v1317_v37, %v1278_v17  ;;  %vm8766_vm4 = vcmp.ge.f32.partialorder %v6587_v33, 0.0  ;;  %v861_v63 = vadd.f32 %v853_v20, %v814_v48  ;;  %v1392_v30 = vld [vmem:[#allocation20 + $0x4b8] sm:$0xff]  ;;  %v686_v4 = vld [vmem:[#allocation20 + $0xf0] sm:$0xff] }
  0xc3   : > { %v1458_v19 = vsel %vm8766_vm4, %v6717_v53, %v1450_v62  ;;  %v947_v0 = vsel %vm931_vm8, %v930_v51, %v939_v35  ;;  %v994_v59 = vsel %vm978_vm9, %v977_v23, %v986_v13  ;;  %v1041_v2 = vsel %vm1025_vm10, %v1024_v61, %v1033_v25  ;;  %v1439_v20 = vld [vmem:[#allocation20 + $0x4f8] sm:$0xff]  ;;  %v733_v18 = vld [vmem:[#allocation20 + $0x130] sm:$0xff] }
  0xc4   : > { %v1088_v36 = vsel %vm1072_vm11, %v1071_v6, %v1080_v38  ;;  %v1268_v37 = vmul.f32 0.2, %v1259_v31  ;;  %v1372_v29 = vadd.f32 %v1364_v45, %v1325_v9  ;;  %v908_v53 = vadd.f32 %v900_v43, %v861_v63  ;;  %v780_v25 = vld [vmem:[#allocation20 + $0x170] sm:$0xff] }
  0xc5   : > { %v1135_v62 = vsel %vm1119_vm12, %v1118_v47, %v1127_v40  ;;  %v1182_v51 = vsel %vm1166_vm13, %v1165_v22, %v1174_v50  ;;  %v6778_v23 = vsel %vm1213_vm14, %v1212_v46, %v1221_v56  ;;  %v1315_v61 = vmul.f32 0.2, %v6759_v57  ;;  %v532_v46 = vld [vmem:[#allocation21 + $0x30] sm:$0xff] }
  0xc6   : > { %v6782_v6 = vmul.f32 %v1345_v5, %v6558_v60  ;;  %v553_v45 = vmul.f32 %v545_v12, %v6269_v3  ;;  %v1419_v35 = vadd.f32 %v1411_v49, %v1372_v29  ;;  %v955_v13 = vadd.f32 %v947_v0, %v908_v53  ;;  %v874_v53 = vld [vmem:[#allocation20 + $0x1f0] sm:$0xff] }
  0xc7   : > { %v6786_v47 = vmul.f32 %v1392_v30, %v6574_v14  ;;  %v600_v22 = vmul.f32 %v592_v15, %v6280_v10  ;;  %v6791_v38 = vsel %vm1260_vm15, %v1259_v31, %v1268_v37  ;;  %v6794_v40 = vmul.f32 %v1439_v20, %v6587_v33  ;;  %v827_v30 = vld [vmem:[#allocation20 + $0x1b0] sm:$0xff] }
  0xc8   : > { %v562_v17 = vmul.f32 0.2, %v553_v45  ;;  %v647_v48 = vmul.f32 %v639_v1, %v6289_v16  ;;  %v1466_v50 = vadd.f32 %v1458_v19, %v1419_v35  ;;  %v1002_v49 = vadd.f32 %v994_v59, %v955_v13  ;;  %v921_v35 = vld [vmem:[#allocation20 + $0x230] sm:$0xff] }
  0xc9   : > { %v609_v43 = vmul.f32 0.2, %v600_v22  ;;  %v694_v56 = vmul.f32 %v686_v4, %v6304_v27  ;;  %v741_v0 = vmul.f32 %v733_v18, %v6322_v42  ;;  %v788_v31 = vmul.f32 %v780_v25, %v6345_v58  ;;  %v968_v13 = vld [vmem:[#allocation20 + $0x270] sm:$0xff] }
  0xca   : > { %v570_v9 = vsel %vm555_vm0, %v553_v45, %v562_v17  ;;  %v656_v63 = vmul.f32 0.2, %v647_v48  ;;  %vm1474_vm7 = vcmp.ge.f32.partialorder %v1466_v50, 0.0  ;;  %v1482_v5 = vmul.f32 0.2, %v1466_v50 }
  0xcb   : > { %v1049_v12 = vadd.f32 %v1041_v2, %v1002_v49  ;;  %v578_v37 = vadd.f32 %v570_v9, %v532_v46  ;;  %v617_v19 = vsel %vm602_vm1, %v600_v22, %v609_v43  ;;  %v703_v15 = vmul.f32 0.2, %v694_v56  ;;  %v1062_v49 = vld [vmem:[#allocation20 + $0x2f0] sm:$0xff] }
  0xcc   : > { %v664_v59 = vsel %vm649_vm2, %v647_v48, %v656_v63  ;;  %v750_v29 = vmul.f32 0.2, %v741_v0  ;;  %v1490_v20 = vsel %vm1474_vm7, %v1466_v50, %v1482_v5  ;;  %v1362_v45 = vmul.f32 0.2, %v6782_v6  ;;  %v1015_v50 = vld [vmem:[#allocation20 + $0x2b0] sm:$0xff] }
  0xcd   : > { %v1096_v1 = vadd.f32 %v1088_v36, %v1049_v12  ;;  %v625_v4 = vadd.f32 %v617_v19, %v578_v37  ;;  %v1500_v2 = vmul.f32 %v6584_v21, %v1490_v20  ;;  %vm8767_vm3 = vcmp.ge.f32.partialorder %v6304_v27, 0.0  ;;  %v1203_v20 = vld [vmem:[#allocation20 + $0x3b0] sm:$0xff] }
  0xce   : > { %v711_v18 = vsel %vm8767_vm3, %v694_v56, %v703_v15  ;;  %v797_v25 = vmul.f32 0.2, %v788_v31  ;;  %v835_v22 = vmul.f32 %v827_v30, %v6365_v11  ;;  %vm8768_vm6 = vcmp.ge.f32.partialorder %v6322_v42, 0.0  ;;  %v1156_v15 = vld [vmem:[#allocation20 + $0x370] sm:$0xff] }
  0xcf   : > { %v1143_v46 = vadd.f32 %v1135_v62, %v1096_v1  ;;  %v672_v17 = vadd.f32 %v664_v59, %v625_v4  ;;  %v758_v48 = vsel %vm8768_vm6, %v741_v0, %v750_v29  ;;  %v882_v36 = vmul.f32 %v874_v53, %v6383_v28  ;;  %v1109_v0 = vld [vmem:[#allocation20 + $0x330] sm:$0xff] }
  0xd0   : > { %v6815_v43 = vadd.f32 %v6590_v34, %v1500_v2  ;;  %v844_v9 = vmul.f32 0.2, %v835_v22  ;;  %v929_v63 = vmul.f32 %v921_v35, %v6400_v41  ;;  %v976_v56 = vmul.f32 %v968_v13, %v6418_v55  ;;  %v1250_v1 = vld [vmem:[#allocation20 + $0x3f0] sm:$0xff] }
  0xd1   : > { %v1190_v5 = vadd.f32 %v1182_v51, %v1143_v46  ;;  %v1323_v62 = vsel %vm1307_vm5, %v6759_v57, %v1315_v61  ;;  %v719_v12 = vadd.f32 %v711_v18, %v672_v17  ;;  %v891_v37 = vmul.f32 0.2, %v882_v36 }
  0xd2   : > { %1588 = vst [vmem:[#allocation2 + $0x9a] sm:$0xff] %v6815_v43  ;;  %1519 = vrot.lane.b32.xlu0 %v6815_v43, %s6047_s28  ;;  %v1409_v30 = vmul.f32 0.2, %v6786_v47  ;;  %vm8769_vm4 = vcmp.ge.f32.partialorder %v6345_v58, 0.0  ;;  %v1023_v59 = vmul.f32 %v1015_v50, %v6436_v7  ;;  %v1070_v51 = vmul.f32 %v1062_v49, %v6453_v24 }
  0xd3   : > { %v805_v19 = vsel %vm8769_vm4, %v788_v31, %v797_v25  ;;  %v1237_v57 = vadd.f32 %v6778_v23, %v1190_v5  ;;  %vm8770_vm7 = vcmp.ge.f32.partialorder %v6558_v60, 0.0  ;;  %v1456_v29 = vmul.f32 0.2, %v6794_v40 }
  0xd4   : > { %v1370_v61 = vsel %vm8770_vm7, %v6782_v6, %v1362_v45  ;;  %v766_v53 = vadd.f32 %v758_v48, %v719_v12  ;;  %vm8771_vm3 = vcmp.ge.f32.partialorder %v6365_v11, 0.0  ;;  %v938_v31 = vmul.f32 0.2, %v929_v63  ;;  %v1297_v45 = vld [vmem:[#allocation20 + $0x430] sm:$0xff] }
  0xd5   : > { %v852_v4 = vsel %vm8771_vm3, %v835_v22, %v844_v9  ;;  %v985_v35 = vmul.f32 0.2, %v976_v56  ;;  %v1117_v13 = vmul.f32 %v1109_v0, %v6470_v39  ;;  %v1284_v2 = vadd.f32 %v6791_v38, %v1237_v57  ;;  %v1344_v12 = vld [vmem:[#allocation20 + $0x470] sm:$0xff]  ;;  %v590_v57 = vld [vmem:[#allocation20 + $0x60] sm:$0xff] }
  0xd6   : > { %v813_v18 = vadd.f32 %v805_v19, %v766_v53  ;;  %vm8772_vm6 = vcmp.ge.f32.partialorder %v6383_v28, 0.0  ;;  %v1164_v6 = vmul.f32 %v1156_v15, %v6488_v54  ;;  %v1032_v25 = vmul.f32 0.2, %v1023_v59  ;;  %v543_v15 = vld [vmem:[#allocation20 + $0x20] sm:$0xff] }
  0xd7   : > { %v899_v23 = vsel %vm8772_vm6, %v882_v36, %v891_v37  ;;  %v1079_v46 = vmul.f32 0.2, %v1070_v51  ;;  %v1211_v17 = vmul.f32 %v1203_v20, %v6506_v8  ;;  %v1258_v48 = vmul.f32 %v1250_v1, %v6523_v26  ;;  %v637_v20 = vld [vmem:[#allocation20 + $0xa0] sm:$0xff] }
  0xd8   : > { %v1331_v22 = vadd.f32 %v1323_v62, %v1284_v2  ;;  %v860_v50 = vadd.f32 %v852_v4, %v813_v18  ;;  %v1126_v49 = vmul.f32 0.2, %v1117_v13  ;;  %vm8773_vm4 = vcmp.ge.f32.partialorder %v6574_v14, 0.0  ;;  %v684_v4 = vld [vmem:[#allocation20 + $0xe0] sm:$0xff] }
  0xd9   : > { %v1417_v38 = vsel %vm8773_vm4, %v6786_v47, %v1409_v30  ;;  %v946_v9 = vsel %vm931_vm8, %v929_v63, %v938_v31  ;;  %v1173_v36 = vmul.f32 0.2, %v1164_v6  ;;  %v6850_v5 = vmul.f32 %v1297_v45, %v6540_v44 }
  0xda   : > { %v1378_v37 = vadd.f32 %v1370_v61, %v1331_v22  ;;  %vm8774_vm7 = vcmp.ge.f32.partialorder %v6587_v33, 0.0  ;;  %v907_v62 = vadd.f32 %v899_v23, %v860_v50  ;;  %v1220_v19 = vmul.f32 0.2, %v1211_v17  ;;  %v530_v23 = vld [vmem:[#allocation21 + $0x20] sm:$0xff] }
  0xdb   : > { %v1464_v0 = vsel %vm8774_vm7, %v6794_v40, %v1456_v29  ;;  %v993_v47 = vsel %vm978_vm9, %v976_v56, %v985_v35  ;;  %v1040_v63 = vsel %vm1025_vm10, %v1023_v59, %v1032_v25  ;;  %v1087_v30 = vsel %vm1072_vm11, %v1070_v51, %v1079_v46  ;;  %v731_v22 = vld [vmem:[#allocation20 + $0x120] sm:$0xff] }
  0xdc   : > { %v1267_v53 = vmul.f32 0.2, %v1258_v48  ;;  %v1425_v61 = vadd.f32 %v1417_v38, %v1378_v37  ;;  %v954_v1 = vadd.f32 %v946_v9, %v907_v62  ;;  %v1134_v40 = vsel %vm1119_vm12, %v1117_v13, %v1126_v49  ;;  %v778_v50 = vld [vmem:[#allocation20 + $0x160] sm:$0xff] }
  0xdd   : > { %v1352_v29 = vmul.f32 %v1344_v12, %v6558_v60  ;;  %v1181_v31 = vsel %vm1166_vm13, %v1164_v6, %v1173_v36  ;;  %v1314_v56 = vmul.f32 0.2, %v6850_v5  ;;  %v551_v59 = vmul.f32 %v543_v15, %v6269_v3  ;;  %v1391_v36 = vld [vmem:[#allocation20 + $0x4b0] sm:$0xff] }
  0xde   : > { %v598_v35 = vmul.f32 %v590_v57, %v6280_v10  ;;  %v1472_v51 = vadd.f32 %v1464_v0, %v1425_v61  ;;  %v1001_v2 = vadd.f32 %v993_v47, %v954_v1  ;;  %v1228_v18 = vsel %vm1213_vm14, %v1211_v17, %v1220_v19  ;;  %v872_v47 = vld [vmem:[#allocation20 + $0x1e0] sm:$0xff] }
  0xdf   : > { %v645_v13 = vmul.f32 %v637_v20, %v6289_v16  ;;  %v1275_v45 = vsel %vm1260_vm15, %v1258_v48, %v1267_v53  ;;  %v560_v25 = vmul.f32 0.2, %v551_v59  ;;  %v692_v6 = vmul.f32 %v684_v4, %v6304_v27  ;;  %v825_v48 = vld [vmem:[#allocation20 + $0x1a0] sm:$0xff]  ;;  %v1438_v20 = vld [vmem:[#allocation20 + $0x4f0] sm:$0xff] }
  0xe0   : > { %v607_v46 = vmul.f32 0.2, %v598_v35  ;;  %vm1480_vm3 = vcmp.ge.f32.partialorder %v1472_v51, 0.0  ;;  %v1488_v49 = vmul.f32 0.2, %v1472_v51  ;;  %v1048_v38 = vadd.f32 %v1040_v63, %v1001_v2 }
  0xe1   : > { %v1361_v9 = vmul.f32 0.2, %v1352_v29  ;;  %v568_v17 = vsel %vm555_vm0, %v551_v59, %v560_v25  ;;  %v654_v37 = vmul.f32 0.2, %v645_v13  ;;  %v701_v0 = vmul.f32 0.2, %v692_v6 }
  0xe2   : > { %v615_v12 = vsel %vm602_vm1, %v598_v35, %v607_v46  ;;  %v1496_v62 = vsel %vm1480_vm3, %v1472_v51, %v1488_v49  ;;  %v1095_v19 = vadd.f32 %v1087_v30, %v1048_v38  ;;  %v576_v15 = vadd.f32 %v568_v17, %v530_v23  ;;  %v919_v30 = vld [vmem:[#allocation20 + $0x220] sm:$0xff] }
  0xe3   : > { %v739_v57 = vmul.f32 %v731_v22, %v6322_v42  ;;  %v1506_v53 = vmul.f32 %v6584_v21, %v1496_v62  ;;  %v1399_v63 = vmul.f32 %v1391_v36, %v6574_v14  ;;  %v662_v61 = vsel %vm649_vm2, %v645_v13, %v654_v37  ;;  %v966_v22 = vld [vmem:[#allocation20 + $0x260] sm:$0xff] }
  0xe4   : > { %v786_v1 = vmul.f32 %v778_v50, %v6345_v58  ;;  %v1142_v4 = vadd.f32 %v1134_v40, %v1095_v19  ;;  %v623_v59 = vadd.f32 %v615_v12, %v576_v15  ;;  %v833_v51 = vmul.f32 %v825_v48, %v6365_v11  ;;  %v1013_v38 = vld [vmem:[#allocation20 + $0x2a0] sm:$0xff] }
  0xe5   : > { %v748_v35 = vmul.f32 0.2, %v739_v57  ;;  %v6887_v2 = vadd.f32 %v6590_v34, %v1506_v53  ;;  %vm8775_vm6 = vcmp.ge.f32.partialorder %v6304_v27, 0.0  ;;  %v880_v46 = vmul.f32 %v872_v47, %v6383_v28  ;;  %v1060_v36 = vld [vmem:[#allocation20 + $0x2e0] sm:$0xff] }
  0xe6   : > { %v709_v23 = vsel %vm8775_vm6, %v692_v6, %v701_v0  ;;  %v795_v25 = vmul.f32 0.2, %v786_v1  ;;  %v1189_v49 = vadd.f32 %v1181_v31, %v1142_v4  ;;  %v1322_v40 = vsel %vm1307_vm5, %v6850_v5, %v1314_v56  ;;  %v1107_v5 = vld [vmem:[#allocation20 + $0x320] sm:$0xff] }
  0xe7   : > { %v1446_v13 = vmul.f32 %v1438_v20, %v6587_v33  ;;  %v670_v50 = vadd.f32 %v662_v61, %v623_v59  ;;  %1594 = vst [vmem:[#allocation2 + $0xca] sm:$0xff] %v6887_v2  ;;  %1531 = vrot.lane.b32.xlu1 %v6887_v2, %s6047_s28  ;;  %vm8776_vm4 = vcmp.ge.f32.partialorder %v6558_v60, 0.0  ;;  %vm8777_vm7 = vcmp.ge.f32.partialorder %v6322_v42, 0.0  ;;  %v1154_v62 = vld [vmem:[#allocation20 + $0x360] sm:$0xff] }
  0xe8   : > { %v1369_v6 = vsel %vm8776_vm4, %v1352_v29, %v1361_v9  ;;  %v756_v31 = vsel %vm8777_vm7, %v739_v57, %v748_v35  ;;  %v842_v17 = vmul.f32 0.2, %v833_v51  ;;  %v927_v12 = vmul.f32 %v919_v30, %v6400_v41  ;;  %v1201_v19 = vld [vmem:[#allocation20 + $0x3a0] sm:$0xff] }
  0xe9   : > { %v1236_v56 = vadd.f32 %v1228_v18, %v1189_v49  ;;  %v1408_v37 = vmul.f32 0.2, %v1399_v63  ;;  %v717_v0 = vadd.f32 %v709_v23, %v670_v50  ;;  %v974_v48 = vmul.f32 %v966_v22, %v6418_v55  ;;  %v1248_v22 = vld [vmem:[#allocation20 + $0x3e0] sm:$0xff] }
  0xea   : > { %vm8778_vm3 = vcmp.ge.f32.partialorder %v6345_v58, 0.0  ;;  %v889_v47 = vmul.f32 0.2, %v880_v46  ;;  %v1021_v29 = vmul.f32 %v1013_v38, %v6436_v7  ;;  %v1068_v9 = vmul.f32 %v1060_v36, %v6453_v24 }
  0xeb   : > { %v803_v15 = vsel %vm8778_vm3, %v786_v1, %v795_v25  ;;  %v1283_v57 = vadd.f32 %v1275_v45, %v1236_v56  ;;  %v1455_v53 = vmul.f32 0.2, %v1446_v13  ;;  %v764_v20 = vadd.f32 %v756_v31, %v717_v0  ;;  %v1295_v45 = vld [vmem:[#allocation20 + $0x420] sm:$0xff]  ;;  %v544_v56 = vld [vmem:[#allocation20 + $0x28] sm:$0xff] }
  0xec   : > { %v1115_v61 = vmul.f32 %v1107_v5, %v6470_v39  ;;  %vm8779_vm6 = vcmp.ge.f32.partialorder %v6365_v11, 0.0  ;;  %v936_v4 = vmul.f32 0.2, %v927_v12  ;;  %v1162_v59 = vmul.f32 %v1154_v62, %v6488_v54 }
  0xed   : > { %v850_v18 = vsel %vm8779_vm6, %v833_v51, %v842_v17  ;;  %v1209_v35 = vmul.f32 %v1201_v19, %v6506_v8  ;;  %v1330_v30 = vadd.f32 %v1322_v40, %v1283_v57  ;;  %vm8780_vm4 = vcmp.ge.f32.partialorder %v6574_v14, 0.0  ;;  %v1342_v19 = vld [vmem:[#allocation20 + $0x460] sm:$0xff] }
  0xee   : > { %v1416_v1 = vsel %vm8780_vm4, %v1399_v63, %v1408_v37  ;;  %v811_v23 = vadd.f32 %v803_v15, %v764_v20  ;;  %v983_v25 = vmul.f32 0.2, %v974_v48  ;;  %vm8781_vm7 = vcmp.ge.f32.partialorder %v6383_v28, 0.0 }
  0xef   : > { %v897_v49 = vsel %vm8781_vm7, %v880_v46, %v889_v47  ;;  %v1030_v50 = vmul.f32 0.2, %v1021_v29  ;;  %v1077_v38 = vmul.f32 0.2, %v1068_v9  ;;  %v1124_v36 = vmul.f32 0.2, %v1115_v61  ;;  %1556 = vrot.lane.b32.xlu1 %v6627_v52, %s6048_s30 }
  0xf0   : > { %v1377_v51 = vadd.f32 %v1369_v6, %v1330_v30  ;;  %v858_v31 = vadd.f32 %v850_v18, %v811_v23  ;;  %v1171_v17 = vmul.f32 0.2, %v1162_v59  ;;  %v1218_v5 = vmul.f32 0.2, %v1209_v35  ;;  %v1389_v18 = vld [vmem:[#allocation20 + $0x4a0] sm:$0xff]  ;;  %v685_v23 = vld [vmem:[#allocation20 + $0xe8] sm:$0xff] }
  0xf1   : > { %vm8782_vm3 = vcmp.ge.f32.partialorder %v6587_v33, 0.0  ;;  %v944_v63 = vsel %vm931_vm8, %v927_v12, %v936_v4  ;;  %v6925_v46 = vmul.f32 %v1248_v22, %v6523_v26  ;;  %v991_v6 = vsel %vm978_vm9, %v974_v48, %v983_v25  ;;  %v638_v4 = vld [vmem:[#allocation20 + $0xa8] sm:$0xff] }
  0xf2   : > { %v1463_v40 = vsel %vm8782_vm3, %v1446_v13, %v1455_v53  ;;  %v1424_v37 = vadd.f32 %v1416_v1, %v1377_v51  ;;  %v905_v0 = vadd.f32 %v897_v49, %v858_v31  ;;  %v6930_v62 = vmul.f32 %v1295_v45, %v6540_v44  ;;  %v591_v13 = vld [vmem:[#allocation20 + $0x68] sm:$0xff] }
  0xf3   : > { %v1038_v15 = vsel %vm1025_vm10, %v1021_v29, %v1030_v50  ;;  %v1085_v52 = vsel %vm1072_vm11, %v1068_v9, %v1077_v38  ;;  %v1132_v12 = vsel %vm1119_vm12, %v1115_v61, %v1124_v36  ;;  %v552_v47 = vmul.f32 %v544_v56, %v6269_v3  ;;  %v531_v9 = vld [vmem:[#allocation21 + $0x28] sm:$0xff] }
  0xf4   : > { %v1471_v57 = vadd.f32 %v1463_v40, %v1424_v37  ;;  %v952_v53 = vadd.f32 %v944_v63, %v905_v0  ;;  %v1179_v48 = vsel %vm1166_vm13, %v1162_v59, %v1171_v17  ;;  %v1226_v20 = vsel %vm1213_vm14, %v1209_v35, %v1218_v5  ;;  %v732_v45 = vld [vmem:[#allocation20 + $0x128] sm:$0xff] }
  0xf5   : > { %v1265_v29 = vmul.f32 0.2, %v6925_v46  ;;  %v6945_v30 = vmul.f32 %v1342_v19, %v6558_v60  ;;  %v561_v1 = vmul.f32 0.2, %v552_v47  ;;  %v599_v61 = vmul.f32 %v591_v13, %v6280_v10  ;;  %v779_v36 = vld [vmem:[#allocation20 + $0x168] sm:$0xff] }
  0xf6   : > { %vm1479_vm6 = vcmp.ge.f32.partialorder %v1471_v57, 0.0  ;;  %v1487_v25 = vmul.f32 0.2, %v1471_v57  ;;  %v999_v22 = vadd.f32 %v991_v6, %v952_v53  ;;  %v1312_v59 = vmul.f32 0.2, %v6930_v62  ;;  %v826_v56 = vld [vmem:[#allocation20 + $0x1a8] sm:$0xff] }
  0xf7   : > { %v6950_v35 = vmul.f32 %v1389_v18, %v6574_v14  ;;  %v569_v49 = vsel %vm555_vm0, %v552_v47, %v561_v1  ;;  %v608_v50 = vmul.f32 0.2, %v599_v61  ;;  %v646_v38 = vmul.f32 %v638_v4, %v6289_v16  ;;  %v873_v47 = vld [vmem:[#allocation20 + $0x1e8] sm:$0xff] }
  0xf8   : > { %v1495_v51 = vsel %vm1479_vm6, %v1471_v57, %v1487_v25  ;;  %v1046_v31 = vadd.f32 %v1038_v15, %v999_v22  ;;  %v577_v17 = vadd.f32 %v569_v49, %v531_v9  ;;  %v693_v5 = vmul.f32 %v685_v23, %v6304_v27  ;;  %v920_v57 = vld [vmem:[#allocation20 + $0x228] sm:$0xff]  ;;  %v1436_v9 = vld [vmem:[#allocation20 + $0x4e0] sm:$0xff] }
  0xf9   : > { %v1505_v40 = vmul.f32 %v6584_v21, %v1495_v51  ;;  %v616_v63 = vsel %vm602_vm1, %v599_v61, %v608_v50  ;;  %v655_v37 = vmul.f32 0.2, %v646_v38  ;;  %v740_v0 = vmul.f32 %v732_v45, %v6322_v42  ;;  %v967_v23 = vld [vmem:[#allocation20 + $0x268] sm:$0xff] }
  0xfa   : > { %v1093_v3 = vadd.f32 %v1085_v52, %v1046_v31  ;;  %v624_v6 = vadd.f32 %v616_v63, %v577_v17  ;;  %v702_v19 = vmul.f32 0.2, %v693_v5  ;;  %v787_v13 = vmul.f32 %v779_v36, %v6345_v58 }
  0xfb   : > { %v6962_v15 = vadd.f32 %v6590_v34, %v1505_v40  ;;  %v663_v53 = vsel %vm649_vm2, %v646_v38, %v655_v37  ;;  %v749_v18 = vmul.f32 0.2, %v740_v0  ;;  %v834_v10 = vmul.f32 %v826_v56, %v6365_v11  ;;  %v1014_v38 = vld [vmem:[#allocation20 + $0x2a8] sm:$0xff] }
  0xfc   : > { %v1140_v4 = vadd.f32 %v1132_v12, %v1093_v3  ;;  %v671_v1 = vadd.f32 %v663_v53, %v624_v6  ;;  %vm8783_vm0 = vcmp.ge.f32.partialorder %v6304_v27, 0.0  ;;  %v796_v61 = vmul.f32 0.2, %v787_v13  ;;  %v1061_v56 = vld [vmem:[#allocation20 + $0x2e8] sm:$0xff] }
  0xfd   : > { %v710_v52 = vsel %vm8783_vm0, %v693_v5, %v702_v19  ;;  %1593 = vst [vmem:[#allocation2 + $0xc2] sm:$0xff] %v6962_v15  ;;  %1529 = vrot.lane.b32.xlu0 %v6962_v15, %s6047_s28  ;;  %vm8784_vm1 = vcmp.ge.f32.partialorder %v6322_v42, 0.0  ;;  %v843_v25 = vmul.f32 0.2, %v834_v10  ;;  %v881_v22 = vmul.f32 %v873_v47, %v6383_v28 }
  0xfe   : > { %v757_v16 = vsel %vm8784_vm1, %v740_v0, %v749_v18  ;;  %v928_v12 = vmul.f32 %v920_v57, %v6400_v41  ;;  %v1187_v45 = vadd.f32 %v1179_v48, %v1140_v4  ;;  %v1273_v27 = vsel %vm1260_vm15, %v6925_v46, %v1265_v29  ;;  %v1108_v0 = vld [vmem:[#allocation20 + $0x328] sm:$0xff] }
  0xff   : > { %v1359_v49 = vmul.f32 0.2, %v6945_v30  ;;  %v718_v50 = vadd.f32 %v710_v52, %v671_v1  ;;  %v1444_v36 = vmul.f32 %v1436_v9, %v6587_v33  ;;  %vm8785_vm2 = vcmp.ge.f32.partialorder %v6345_v58, 0.0 }
 0x100   : > { %v804_v42 = vsel %vm8785_vm2, %v787_v13, %v796_v61  ;;  %v890_v51 = vmul.f32 0.2, %v881_v22  ;;  %v975_v31 = vmul.f32 %v967_v23, %v6418_v55  ;;  %v1234_v17 = vadd.f32 %v1226_v20, %v1187_v45  ;;  %v1155_v13 = vld [vmem:[#allocation20 + $0x368] sm:$0xff] }
 0x101   : > { %v1320_v48 = vsel %vm1307_vm5, %v6930_v62, %v1312_v59  ;;  %v765_v5 = vadd.f32 %v757_v16, %v718_v50  ;;  %v1406_v46 = vmul.f32 0.2, %v6950_v35  ;;  %vm8786_vm4 = vcmp.ge.f32.partialorder %v6365_v11, 0.0  ;;  %v1249_v23 = vld [vmem:[#allocation20 + $0x3e8] sm:$0xff] }
 0x102   : > { %v851_v29 = vsel %vm8786_vm4, %v834_v10, %v843_v25  ;;  %v937_v40 = vmul.f32 0.2, %v928_v12  ;;  %v1022_v63 = vmul.f32 %v1014_v38, %v6436_v7  ;;  %v1281_v58 = vadd.f32 %v1273_v27, %v1234_v17  ;;  %v1202_v10 = vld [vmem:[#allocation20 + $0x3a8] sm:$0xff] }
 0x103   : > { %vm8787_vm7 = vcmp.ge.f32.partialorder %v6558_v60, 0.0  ;;  %v812_v20 = vadd.f32 %v804_v42, %v765_v5  ;;  %v1453_v3 = vmul.f32 0.2, %v1444_v36  ;;  %vm8788_vm3 = vcmp.ge.f32.partialorder %v6383_v28, 0.0  ;;  %v1296_v45 = vld [vmem:[#allocation20 + $0x428] sm:$0xff] }
 0x104   : > { %v1367_v37 = vsel %vm8787_vm7, %v6945_v30, %v1359_v49  ;;  %v898_v62 = vsel %vm8788_vm3, %v881_v22, %v890_v51  ;;  %v984_v59 = vmul.f32 0.2, %v975_v31  ;;  %v1069_v6 = vmul.f32 %v1061_v56, %v6453_v24 }
 0x105   : > { %v1328_v19 = vadd.f32 %v1320_v48, %v1281_v58  ;;  %v859_v11 = vadd.f32 %v851_v29, %v812_v20  ;;  %1554 = vrot.lane.b32.xlu0 %v6815_v43, %s6048_s30  ;;  %vm8789_vm6 = vcmp.ge.f32.partialorder %v6574_v14, 0.0  ;;  %v945_v30 = vsel %vm931_vm8, %v928_v12, %v937_v40  ;;  %v1390_v48 = vld [vmem:[#allocation20 + $0x4a8] sm:$0xff] }
 0x106   : > { %v1414_v47 = vsel %vm8789_vm6, %v6950_v35, %v1406_v46  ;;  %v1031_v57 = vmul.f32 0.2, %v1022_v63  ;;  %v1116_v28 = vmul.f32 %v1108_v0, %v6470_v39  ;;  %vm8790_vm0 = vcmp.ge.f32.partialorder %v6587_v33, 0.0  ;;  %v1437_v40 = vld [vmem:[#allocation20 + $0x4e8] sm:$0xff] }
 0x107   : > { %v1375_v53 = vadd.f32 %v1367_v37, %v1328_v19  ;;  %v906_v18 = vadd.f32 %v898_v62, %v859_v11  ;;  %v1461_v4 = vsel %vm8790_vm0, %v1444_v36, %v1453_v3  ;;  %v992_v9 = vsel %vm978_vm9, %v975_v31, %v984_v59  ;;  %v1343_v36 = vld [vmem:[#allocation20 + $0x468] sm:$0xff]  ;;  %vm8791_vm9 = vmmov %vm8787_vm7 }
 0x108   : > { %v1078_v1 = vmul.f32 0.2, %v1069_v6  ;;  %v1163_v52 = vmul.f32 %v1155_v13, %v6488_v54  ;;  %v1039_v41 = vsel %vm1025_vm10, %v1022_v63, %v1031_v57  ;;  %v1125_v16 = vmul.f32 0.2, %v1116_v28  ;;  %vm8792_vm10 = vmmov %vm8789_vm6 }
 0x109   : > { %v1422_v61 = vadd.f32 %v1414_v47, %v1375_v53  ;;  %v953_v35 = vadd.f32 %v945_v30, %v906_v18  ;;  %v1210_v25 = vmul.f32 %v1202_v10, %v6506_v8  ;;  %v1257_v49 = vmul.f32 %v1249_v23, %v6523_v26  ;;  %v5353_v18 = vld [vmem:[#allocation2 + $0xa2] sm:$0xff] }
 0x10a   : > { %v1086_v27 = vsel %vm1072_vm11, %v1069_v6, %v1078_v1  ;;  %v1172_v55 = vmul.f32 0.2, %v1163_v52  ;;  %v1133_v7 = vsel %vm1119_vm12, %v1116_v28, %v1125_v16  ;;  %v1304_v51 = vmul.f32 %v1296_v45, %v6540_v44  ;;  %vm8793_vm11 = vmmov %vm8790_vm0 }
 0x10b   : > { %v1469_v22 = vadd.f32 %v1461_v4, %v1422_v61  ;;  %v1000_v12 = vadd.f32 %v992_v9, %v953_v35  ;;  %v1219_v42 = vmul.f32 0.2, %v1210_v25  ;;  %v1266_v56 = vmul.f32 0.2, %v1257_v49 }
 0x10c   : > { %v1180_v24 = vsel %vm1166_vm13, %v1163_v52, %v1172_v55  ;;  %v1351_v46 = vmul.f32 %v1343_v36, %v6558_v60  ;;  %v1313_v58 = vmul.f32 0.2, %v1304_v51  ;;  %v1398_v37 = vmul.f32 %v1390_v48, %v6574_v14 }
 0x10d   : > { %vm1477_vm8 = vcmp.ge.f32.partialorder %v1469_v22, 0.0  ;;  %v1485_v50 = vmul.f32 0.2, %v1469_v22  ;;  %v1047_v38 = vadd.f32 %v1039_v41, %v1000_v12  ;;  %v1227_v39 = vsel %vm1213_vm14, %v1210_v25, %v1219_v42 }
 0x10e   : > { %v1274_v54 = vsel %vm1260_vm15, %v1257_v49, %v1266_v56  ;;  %v1360_v0 = vmul.f32 0.2, %v1351_v46  ;;  %v1445_v3 = vmul.f32 %v1437_v40, %v6587_v33  ;;  %v1321_v8 = vsel %vm1307_vm5, %v1304_v51, %v1313_v58  ;;  %v5354_v33 = vld [vmem:[#allocation2 + $0x92] sm:$0xff]  ;;  %v1518_v10 = vpop.permute.xlu0 %1517 }
 0x10f   : > { %v1493_v31 = vsel %vm1477_vm8, %v1469_v22, %v1485_v50  ;;  %v1094_v17 = vadd.f32 %v1086_v27, %v1047_v38  ;;  %v1407_v59 = vmul.f32 0.2, %v1398_v37 }
 0x110   : > { %v1503_v5 = vmul.f32 %v6584_v21, %v1493_v31  ;;  %v1368_v19 = vsel %vm8791_vm9, %v1351_v46, %v1360_v0  ;;  %v1454_v11 = vmul.f32 0.2, %v1445_v3 }
 0x111   : > { %v1141_v29 = vadd.f32 %v1133_v7, %v1094_v17  ;;  %v1415_v26 = vsel %vm8792_vm10, %v1398_v37, %v1407_v59 }
 0x112   : > { %v1513_v63 = vadd.f32 %v6590_v34, %v1503_v5  ;;  %v1462_v30 = vsel %vm8793_vm11, %v1445_v3, %v1454_v11 }
 0x113   : > { %v1188_v20 = vadd.f32 %v1180_v24, %v1141_v29 }
 0x114   : > { %1525 = vrot.lane.b32.xlu2 %v1513_v63, %s6047_s28  ;;  %1591 = vst [vmem:[#allocation2 + $0xb2] sm:$0xff] %v1513_v63  ;;  %1560 = vrot.lane.b32.xlu0 %v1513_v63, %s6048_s30 }
 0x115   : > { %v1235_v62 = vadd.f32 %v1227_v39, %v1188_v20 }
 0x117   : > { %v1282_v6 = vadd.f32 %v1274_v54, %v1235_v62 }
 0x119   : > { %v1329_v13 = vadd.f32 %v1321_v8, %v1282_v6  ;;  %v6051_v6 = vmov 0.0  }
 0x11a   : > { %475 = vst [vmem:[#allocation2] sm:$0x3] %v6051_v6 }
 0x11b   : > { %v1376_v47 = vadd.f32 %v1368_v19, %v1329_v13  ;;  %476 = vst [vmem:[#allocation2 + $0x48] sm:$0x3] %v6051_v6 }
 0x11c   : > { %1566 = vrot.lane.b32.xlu0 %v6887_v2, %s6048_s30  ;;  %477 = vst [vmem:[#allocation2 + $0x90] sm:$0x3] %v6051_v6 }
 0x11d   : > { %v1423_v57 = vadd.f32 %v1415_v26, %v1376_v47  ;;  %478 = vst [vmem:[#allocation2 + $0xd8] sm:$0x3] %v6051_v6 }
 0x11e   : > { %479 = vst [vmem:[#allocation2 + $0x120] sm:$0x3] %v6051_v6 }
 0x11f   : > { %v1470_v44 = vadd.f32 %v1462_v30, %v1423_v57  ;;  %480 = vst [vmem:[#allocation2 + $0x42] sm:$0x3] %v6051_v6 }
 0x120   : > { %481 = vst [vmem:[#allocation2 + $0x8a] sm:$0x3] %v6051_v6 }
 0x121   : > { %vm1478_vm5 = vcmp.ge.f32.partialorder %v1470_v44, 0.0  ;;  %v1486_v28 = vmul.f32 0.2, %v1470_v44  ;;  %482 = vst [vmem:[#allocation2 + $0xd2] sm:$0x3] %v6051_v6 }
 0x122   : > { %483 = vst [vmem:[#allocation2 + $0x11a] sm:$0x3] %v6051_v6 }
 0x123   : > { %v1494_v53 = vsel %vm1478_vm5, %v1470_v44, %v1486_v28  ;;  %484 = vst [vmem:[#allocation2 + $0x162] sm:$0x3] %v6051_v6 }
 0x124   : > { %v1504_v60 = vmul.f32 %v6584_v21, %v1494_v53  ;;  %1599 = vrot.lane.b32.xlu0 %v5353_v18, %s6049_s1  ;;  %v1533_v21 = vlaneseq  ;;  %485 = vst [vmem:[#allocation3] sm:$0x3] %v6051_v6 }
 0x125   : > { %486 = vst [vmem:[#allocation3 + $0x48] sm:$0x3] %v6051_v6 }
 0x126   : > { %v1514_v14 = vadd.f32 %v6590_v34, %v1504_v60  ;;  %v1522_v34 = vpop.permute.xlu1 %1521  ;;  %v7067_v4 = vand.u32 127, %v1533_v21  ;;  %487 = vst [vmem:[#allocation3 + $0x90] sm:$0x3] %v6051_v6 }
 0x127   : > { %488 = vst [vmem:[#allocation3 + $0xd8] sm:$0x3] %v6051_v6 }
 0x128   : > { %1592 = vst [vmem:[#allocation2 + $0xba] sm:$0xff] %v1514_v14  ;;  %1562 = vrot.lane.b32.xlu1 %v1514_v14, %s6048_s30  ;;  %1527 = vrot.lane.b32.xlu2 %v1514_v14, %s6047_s28  ;;  %vm1535_vm12 = vcmp.ge.s32.totalorder %v7067_v4, 2  ;;  %vm1568_vm13 = vcmp.ge.s32.totalorder %v7067_v4, 1  ;;  %vm1611_vm14 = vcmp.lt.s32.totalorder %v7067_v4, 127  ;;  %vm1645_vm15 = vcmp.lt.s32.totalorder %v7067_v4, 126 }
 0x129   : > { %489 = vst [vmem:[#allocation3 + $0x120] sm:$0x3] %v6051_v6 }
 0x12a   : > { %490 = vst [vmem:[#allocation3 + $0x168] sm:$0x3] %v6051_v6 }
 0x12b   : > { %491 = vst [vmem:[#allocation3 + $0x1b0] sm:$0x3] %v6051_v6 }
 0x12c   : > { %1605 = vrot.lane.b32.xlu0 %v1514_v14, %s6049_s1  ;;  %492 = vst [vmem:[#allocation3 + $0x1f8] sm:$0x3] %v6051_v6 }
 0x12d   : > { %493 = vst [vmem:[#allocation3 + $0x240] sm:$0x3] %v6051_v6 }
 0x12e   : > { %494 = vst [vmem:[#allocation3 + $0x288] sm:$0x3] %v6051_v6 }
 0x12f   : > { %495 = vst [vmem:[#allocation3 + $0x2d0] sm:$0x3] %v6051_v6 }
 0x130   : > { %1595 = vrot.lane.b32.xlu1 %v5354_v33, %s6049_s1  ;;  %1552 = vrot.lane.b32.xlu2 %v5354_v33, %s6048_s30  ;;  %496 = vst [vmem:[#allocation3 + $0x318] sm:$0x3] %v6051_v6 }
 0x131   : > { %497 = vst [vmem:[#allocation3 + $0x360] sm:$0x3] %v6051_v6 }
 0x132   : > { %498 = vst [vmem:[#allocation3 + $0x3a8] sm:$0x3] %v6051_v6 }
 0x133   : > { %499 = vst [vmem:[#allocation3 + $0x3f0] sm:$0x3] %v6051_v6 }
 0x134   : > { %1629 = vrot.lane.b32.xlu0 %v5354_v33, %s6050_s3  ;;  %500 = vst [vmem:[#allocation3 + $0x438] sm:$0x3] %v6051_v6 }
 0x135   : > { %501 = vst [vmem:[#allocation3 + $0x480] sm:$0x3] %v6051_v6 }
 0x136   : > { %502 = vst [vmem:[#allocation3 + $0x4c8] sm:$0x3] %v6051_v6 }
 0x137   : > { %503 = vst [vmem:[#allocation3 + $0x510] sm:$0x3] %v6051_v6 }
 0x138   : > { %1601 = vrot.lane.b32.xlu1 %v6696_v32, %s6049_s1  ;;  %1558 = vrot.lane.b32.xlu2 %v6696_v32, %s6048_s30  ;;  %504 = vst [vmem:[#allocation3 + $0x558] sm:$0x3] %v6051_v6 }
 0x139   : > { %505 = vst [vmem:[#allocation3 + $0x42] sm:$0x3] %v6051_v6 }
 0x13a   : > { %506 = vst [vmem:[#allocation3 + $0x8a] sm:$0x3] %v6051_v6 }
 0x13b   : > { %507 = vst [vmem:[#allocation3 + $0xd2] sm:$0x3] %v6051_v6 }
 0x13c   : > { %1635 = vrot.lane.b32.xlu0 %v6696_v32, %s6050_s3  ;;  %v1538_v32 = vsel %vm1535_vm12, %v1522_v34, 0.0  ;;  %508 = vst [vmem:[#allocation3 + $0x11a] sm:$0x3] %v6051_v6 }
 0x13d   : > { %1546 = vst [vmem:[#allocation2 + $0x12] sm:$0xff] %v1538_v32 }
 0x13e   : > { %509 = vst [vmem:[#allocation3 + $0x162] sm:$0x3] %v6051_v6 }
 0x13f   : > { %510 = vst [vmem:[#allocation3 + $0x1aa] sm:$0x3] %v6051_v6 }
 0x140   : > { %1607 = vrot.lane.b32.xlu1 %v6962_v15, %s6049_s1  ;;  %1564 = vrot.lane.b32.xlu2 %v6962_v15, %s6048_s30  ;;  %511 = vst [vmem:[#allocation3 + $0x1f2] sm:$0x3] %v6051_v6 }
 0x141   : > { %512 = vst [vmem:[#allocation3 + $0x23a] sm:$0x3] %v6051_v6 }
 0x142   : > { %513 = vst [vmem:[#allocation3 + $0x282] sm:$0x3] %v6051_v6 }
 0x143   : > { %514 = vst [vmem:[#allocation3 + $0x2ca] sm:$0x3] %v6051_v6 }
 0x144   : > { %1641 = vrot.lane.b32.xlu0 %v6962_v15, %s6050_s3  ;;  %v1536_v15 = vsel %vm1535_vm12, %v1518_v10, 0.0  ;;  %v1520_v9 = vpop.permute.xlu0 %1519  ;;  %515 = vst [vmem:[#allocation3 + $0x312] sm:$0x3] %v6051_v6 }
 0x145   : > { %1544 = vst [vmem:[#allocation2 + $0x2] sm:$0xff] %v1536_v15  ;;  %v1537_v52 = vsel %vm1535_vm12, %v1520_v9, 0.0 }
 0x146   : > { %1545 = vst [vmem:[#allocation2 + $0xa] sm:$0xff] %v1537_v52 }
 0x147   : > { %516 = vst [vmem:[#allocation3 + $0x35a] sm:$0x3] %v6051_v6 }
 0x148   : > { %1631 = vrot.lane.b32.xlu1 %v6815_v43, %s6050_s3  ;;  %1597 = vrot.lane.b32.xlu2 %v6815_v43, %s6049_s1  ;;  %v1524_v43 = vpop.permute.xlu1 %1523  ;;  %517 = vst [vmem:[#allocation3 + $0x3a2] sm:$0x3] %v6051_v6 }
 0x149   : > { %v1539_v1 = vsel %vm1535_vm12, %v1524_v43, 0.0  ;;  %518 = vst [vmem:[#allocation3 + $0x3ea] sm:$0x3] %v6051_v6 }
 0x14a   : > { %1547 = vst [vmem:[#allocation2 + $0x1a] sm:$0xff] %v1539_v1 }
 0x14b   : > { %519 = vst [vmem:[#allocation3 + $0x432] sm:$0x3] %v6051_v6 }
 0x14c   : > { %520 = vst [vmem:[#allocation3 + $0x47a] sm:$0x3] %v6051_v6 }
 0x14d   : > { %521 = vst [vmem:[#allocation3 + $0x4c2] sm:$0x3] %v6051_v6 }
 0x14e   : > { %522 = vst [vmem:[#allocation3 + $0x50a] sm:$0x3] %v6051_v6 }
 0x14f   : > { %523 = vst [vmem:[#allocation3 + $0x552] sm:$0x3] %v6051_v6 }
 0x150   : > { %1637 = vrot.lane.b32.xlu1 %v1513_v63, %s6050_s3  ;;  %1603 = vrot.lane.b32.xlu2 %v1513_v63, %s6049_s1  ;;  %524 = vst [vmem:[#allocation3 + $0x59a] sm:$0x3] %v6051_v6 }
 0x158   : > { %1643 = vrot.lane.b32.xlu1 %v6887_v2, %s6050_s3  ;;  %1609 = vrot.lane.b32.xlu2 %v6887_v2, %s6049_s1 }
 0x159   : > { %v1532_v61 = vpop.permute.xlu1 %1531 }
 0x15a   : > { %v1543_v35 = vsel %vm1535_vm12, %v1532_v61, 0.0 }
 0x15b   : > { %1551 = vst [vmem:[#allocation2 + $0x3a] sm:$0xff] %v1543_v35 }
 0x160   : > { %1633 = vrot.lane.b32.xlu2 %v5353_v18, %s6050_s3 }
 0x161   : > { %v1557_v23 = vpop.permute.xlu1 %1556 }
 0x162   : > { %v1571_v41 = vsel %vm1568_vm13, %v1557_v23, 0.0 }
 0x163   : > { %1580 = vst [vmem:[#allocation2 + $0x5a] sm:$0xff] %v1571_v41 }
 0x168   : > { %1639 = vrot.lane.b32.xlu2 %v1514_v14, %s6050_s3 }
 0x16e   : > { %v1526_v16 = vpop.permute.xlu2 %1525 }
 0x16f   : > { %v1540_v2 = vsel %vm1535_vm12, %v1526_v16, 0.0  ;;  %v1530_v25 = vpop.permute.xlu0 %1529 }
 0x170   : > { %1548 = vst [vmem:[#allocation2 + $0x22] sm:$0xff] %v1540_v2  ;;  %v1542_v22 = vsel %vm1535_vm12, %v1530_v25, 0.0 }
 0x171   : > { %1550 = vst [vmem:[#allocation2 + $0x32] sm:$0xff] %v1542_v22 }
 0x177   : > { %v1555_v12 = vpop.permute.xlu0 %1554 }
 0x178   : > { %v1570_v45 = vsel %vm1568_vm13, %v1555_v12, 0.0 }
 0x179   : > { %1579 = vst [vmem:[#allocation2 + $0x52] sm:$0xff] %v1570_v45 }
 0x182   : > { %v1528_v27 = vpop.permute.xlu2 %1527 }
 0x183   : > { %v1541_v55 = vsel %vm1535_vm12, %v1528_v27, 0.0 }
 0x184   : > { %1549 = vst [vmem:[#allocation2 + $0x2a] sm:$0xff] %v1541_v55 }
 0x186   : > { %v1561_v49 = vpop.permute.xlu0 %1560 }
 0x187   : > { %v1573_v50 = vsel %vm1568_vm13, %v1561_v49, 0.0 }
 0x188   : > { %1582 = vst [vmem:[#allocation2 + $0x6a] sm:$0xff] %v1573_v50 }
 0x18a   : > { %v1553_v38 = vpop.permute.xlu2 %1552 }
 0x18b   : > { %v1569_v36 = vsel %vm1568_vm13, %v1553_v38, 0.0 }
 0x18c   : > { %1578 = vst [vmem:[#allocation2 + $0x4a] sm:$0xff] %v1569_v36 }
 0x18e   : > { %v1567_v7 = vpop.permute.xlu0 %1566 }
 0x18f   : > { %v1576_v42 = vsel %vm1568_vm13, %v1567_v7, 0.0 }
 0x190   : > { %1585 = vst [vmem:[#allocation2 + $0x82] sm:$0xff] %v1576_v42 }
 0x192   : > { %v1559_v51 = vpop.permute.xlu2 %1558 }
 0x193   : > { %v1572_v31 = vsel %vm1568_vm13, %v1559_v51, 0.0 }
 0x194   : > { %1581 = vst [vmem:[#allocation2 + $0x62] sm:$0xff] %v1572_v31 }
 0x196   : > { %v1600_v17 = vpop.permute.xlu0 %1599 }
 0x197   : > { %v1614_v48 = vsel %vm1611_vm14, %v1600_v17, 0.0 }
 0x198   : > { %1623 = vst [vmem:[#allocation2 + $0xea] sm:$0xff] %v1614_v48 }
 0x19a   : > { %v1563_v5 = vpop.permute.xlu1 %1562  ;;  %v1565_v24 = vpop.permute.xlu2 %1564 }
 0x19b   : > { %v1574_v56 = vsel %vm1568_vm13, %v1563_v5, 0.0  ;;  %v1575_v46 = vsel %vm1568_vm13, %v1565_v24, 0.0 }
 0x19c   : > { %1583 = vst [vmem:[#allocation2 + $0x72] sm:$0xff] %v1574_v56 }
 0x19d   : > { %1584 = vst [vmem:[#allocation2 + $0x7a] sm:$0xff] %v1575_v46 }
 0x19e   : > { %v1606_v29 = vpop.permute.xlu0 %1605 }
 0x19f   : > { %v1617_v40 = vsel %vm1611_vm14, %v1606_v29, 0.0 }
 0x1a0   : > { %1626 = vst [vmem:[#allocation2 + $0x102] sm:$0xff] %v1617_v40 }
 0x1a2   : > { %v1596_v63 = vpop.permute.xlu1 %1595  ;;  %v1598_v39 = vpop.permute.xlu2 %1597 }
 0x1a3   : > { %v1612_v58 = vsel %vm1611_vm14, %v1596_v63, 0.0  ;;  %v1613_v37 = vsel %vm1611_vm14, %v1598_v39, 0.0 }
 0x1a4   : > { %1621 = vst [vmem:[#allocation2 + $0xda] sm:$0xff] %v1612_v58 }
 0x1a5   : > { %1622 = vst [vmem:[#allocation2 + $0xe2] sm:$0xff] %v1613_v37 }
 0x1a6   : > { %v1630_v20 = vpop.permute.xlu0 %1629 }
 0x1a7   : > { %v1646_v54 = vsel %vm1645_vm15, %v1630_v20, 0.0 }
 0x1a8   : > { %1655 = vst [vmem:[#allocation2 + $0x122] sm:$0xff] %v1646_v54 }
 0x1aa   : > { %v1602_v0 = vpop.permute.xlu1 %1601  ;;  %v1604_v3 = vpop.permute.xlu2 %1603 }
 0x1ab   : > { %v1615_v62 = vsel %vm1611_vm14, %v1602_v0, 0.0  ;;  %v1616_v8 = vsel %vm1611_vm14, %v1604_v3, 0.0 }
 0x1ac   : > { %1624 = vst [vmem:[#allocation2 + $0xf2] sm:$0xff] %v1615_v62 }
 0x1ad   : > { %1625 = vst [vmem:[#allocation2 + $0xfa] sm:$0xff] %v1616_v8 }
 0x1ae   : > { %v1636_v59 = vpop.permute.xlu0 %1635 }
 0x1af   : > { %v1649_v19 = vsel %vm1645_vm15, %v1636_v59, 0.0 }
 0x1b0   : > { %1658 = vst [vmem:[#allocation2 + $0x13a] sm:$0xff] %v1649_v19 }
 0x1b2   : > { %v1608_v11 = vpop.permute.xlu1 %1607  ;;  %v1610_v13 = vpop.permute.xlu2 %1609 }
 0x1b3   : > { %v1618_v26 = vsel %vm1611_vm14, %v1608_v11, 0.0  ;;  %v1619_v47 = vsel %vm1611_vm14, %v1610_v13, 0.0 }
 0x1b4   : > { %1627 = vst [vmem:[#allocation2 + $0x10a] sm:$0xff] %v1618_v26 }
 0x1b5   : > { %1628 = vst [vmem:[#allocation2 + $0x112] sm:$0xff] %v1619_v47 }
 0x1b6   : > { %v1642_v30 = vpop.permute.xlu0 %1641 }
 0x1b7   : > { %v1652_v57 = vsel %vm1645_vm15, %v1642_v30, 0.0 }
 0x1b8   : > { %1661 = vst [vmem:[#allocation2 + $0x152] sm:$0xff] %v1652_v57 }
 0x1ba   : > { %v1632_v44 = vpop.permute.xlu1 %1631  ;;  %v1634_v28 = vpop.permute.xlu2 %1633 }
 0x1bb   : > { %v1647_v53 = vsel %vm1645_vm15, %v1632_v44, 0.0  ;;  %v1648_v60 = vsel %vm1645_vm15, %v1634_v28, 0.0 }
 0x1bc   : > { %1656 = vst [vmem:[#allocation2 + $0x12a] sm:$0xff] %v1647_v53 }
 0x1bd   : > { %1657 = vst [vmem:[#allocation2 + $0x132] sm:$0xff] %v1648_v60 }
 0x1c2   : > { %v1638_v18 = vpop.permute.xlu1 %1637  ;;  %v1640_v14 = vpop.permute.xlu2 %1639 }
 0x1c3   : > { %v1650_v33 = vsel %vm1645_vm15, %v1638_v18, 0.0  ;;  %v1651_v21 = vsel %vm1645_vm15, %v1640_v14, 0.0 }
 0x1c4   : > { %1659 = vst [vmem:[#allocation2 + $0x142] sm:$0xff] %v1650_v33 }
 0x1c5   : > { %1660 = vst [vmem:[#allocation2 + $0x14a] sm:$0xff] %v1651_v21 }
 0x1ca   : > { %v1644_v34 = vpop.permute.xlu1 %1643 }
 0x1cb   : > { %v1653_v10 = vsel %vm1645_vm15, %v1644_v34, 0.0 }
 0x1cc   : > { %1662 = vst [vmem:[#allocation2 + $0x15a] sm:$0xff] %v1653_v10 }
 0x1cd LB: >> { %s7209_s20 = smul.u32 25, %s5853_s21  ;;  %v1671_v32 = vld [vmem:[#allocation2] sm:$0xff]  ;;  %v1672_v15 = vld [vmem:[#allocation2 + $0x8] sm:$0xff]  ;;  %v1673_v43 = vld [vmem:[#allocation2 + $0x10] sm:$0xff]  ;;  %s5853_s21 = sphi %s7203_s21, %s1668_s21  }
 0x1ce   : >> { %v1674_v9 = vld [vmem:[#allocation2 + $0x18] sm:$0xff]  ;;  %v1675_v1 = vld [vmem:[#allocation2 + $0x20] sm:$0xff]  ;;  %v1676_v52 = vld [vmem:[#allocation2 + $0x28] sm:$0xff] }
 0x1cf   : >> { %s1670_s25 = sld [smem:[#allocation14 + %s7209_s20]]  ;;  %s1696_s12 = sadd.s32 1, %s7209_s20  ;;  %v1677_v61 = vld [vmem:[#allocation2 + $0x30] sm:$0xff]  ;;  %v1678_v35 = vld [vmem:[#allocation2 + $0x38] sm:$0xff]  ;;  %v1698_v41 = vld [vmem:[#allocation2 + $0x48] sm:$0xff] }
 0x1d0   : >> { %s7213_s18 = sld [smem:[#allocation14 + %s1696_s12]]  ;;  %s1723_s2 = sadd.s32 2, %s7209_s20  ;;  %v1699_v16 = vld [vmem:[#allocation2 + $0x50] sm:$0xff]  ;;  %v1700_v12 = vld [vmem:[#allocation2 + $0x58] sm:$0xff]  ;;  %v1701_v45 = vld [vmem:[#allocation2 + $0x60] sm:$0xff] }
 0x1d1   : >> { %s7216_s26 = sld [smem:[#allocation14 + %s1723_s2]]  ;;  %s1750_s27 = sadd.s32 3, %s7209_s20  ;;  %v1702_v27 = vld [vmem:[#allocation2 + $0x68] sm:$0xff]  ;;  %v1703_v36 = vld [vmem:[#allocation2 + $0x70] sm:$0xff]  ;;  %v1704_v7 = vld [vmem:[#allocation2 + $0x78] sm:$0xff] }
 0x1d2   : >> { %s1751_s4 = sld [smem:[#allocation14 + %s1750_s27]]  ;;  %v1705_v42 = vld [vmem:[#allocation2 + $0x80] sm:$0xff]  ;;  %s1777_s0 = sadd.s32 4, %s7209_s20  ;;  %v1725_v29 = vld [vmem:[#allocation2 + $0x90] sm:$0xff]  ;;  %v1726_v40 = vld [vmem:[#allocation2 + $0x98] sm:$0xff] }
 0x1d3   : >> { %s1831_s12 = sadd.s32 6, %s7209_s20  ;;  %v1727_v20 = vld [vmem:[#allocation2 + $0xa0] sm:$0xff]  ;;  %v1728_v54 = vld [vmem:[#allocation2 + $0xa8] sm:$0xff]  ;;  %v1729_v0 = vld [vmem:[#allocation2 + $0xb0] sm:$0xff]  ;;  %s1858_s2 = sadd.s32 7, %s7209_s20 }
 0x1d4   : >> { %v1730_v6 = vld [vmem:[#allocation2 + $0xb8] sm:$0xff]  ;;  %v1731_v19 = vld [vmem:[#allocation2 + $0xc0] sm:$0xff]  ;;  %v1732_v11 = vld [vmem:[#allocation2 + $0xc8] sm:$0xff]  ;;  %s7231_s27 = sld [smem:[#allocation14 + %s1831_s12]]  ;;  %s1939_s12 = sadd.s32 10, %s7209_s20 }
 0x1d5   : >> { %v1679_v23 = vstv %s1670_s25  ;;  %s1804_s25 = sadd.s32 5, %s7209_s20  ;;  %v1752_v60 = vld [vmem:[#allocation2 + $0xd8] sm:$0xff]  ;;  %v1753_v18 = vld [vmem:[#allocation2 + $0xe0] sm:$0xff]  ;;  %v1754_v10 = vld [vmem:[#allocation2 + $0xe8] sm:$0xff] }
 0x1d6   : >> { %v1680_v2 = vmul.f32 %v1679_v23, %v1671_v32  ;;  %v1681_v25 = vmul.f32 %v1679_v23, %v1672_v15  ;;  %v1682_v22 = vmul.f32 %v1679_v23, %v1673_v43  ;;  %v1683_v55 = vmul.f32 %v1679_v23, %v1674_v9  ;;  %v1755_v32 = vld [vmem:[#allocation2 + $0xf0] sm:$0xff]  ;;  %v1756_v15 = vld [vmem:[#allocation2 + $0xf8] sm:$0xff] }
 0x1d7   : >> { %v1684_v49 = vmul.f32 %v1679_v23, %v1675_v1  ;;  %v1685_v50 = vmul.f32 %v1679_v23, %v1676_v52  ;;  %v1686_v38 = vmul.f32 %v1679_v23, %v1677_v61  ;;  %v1687_v51 = vmul.f32 %v1679_v23, %v1678_v35  ;;  %v1757_v61 = vld [vmem:[#allocation2 + $0x100] sm:$0xff]  ;;  %v1758_v35 = vld [vmem:[#allocation2 + $0x108] sm:$0xff]  ;;  %v1759_v23 = vld [vmem:[#allocation2 + $0x110] sm:$0xff] }
 0x1d8   : >> { %v1706_v31 = vstv %s7213_s18  ;;  %v1733_v17 = vstv %s7216_s26  ;;  %v7222_v48 = vstv %s1751_s4  ;;  %s7226_s18 = sld [smem:[#allocation14 + %s1777_s0]]  ;;  %s1885_s0 = sadd.s32 8, %s7209_s20 }
 0x1d9   : >> { %v1707_v5 = vmul.f32 %v1706_v31, %v1698_v41  ;;  %v1708_v24 = vmul.f32 %v1706_v31, %v1699_v16  ;;  %v1709_v56 = vmul.f32 %v1706_v31, %v1700_v12  ;;  %v1710_v46 = vmul.f32 %v1706_v31, %v1701_v45  ;;  %s7229_s26 = sld [smem:[#allocation14 + %s1804_s25]]  ;;  %s1912_s25 = sadd.s32 9, %s7209_s20 }
 0x1da   : >> { %v1711_v63 = vmul.f32 %v1706_v31, %v1702_v27  ;;  %v1712_v39 = vmul.f32 %v1706_v31, %v1703_v36  ;;  %v1713_v58 = vmul.f32 %v1706_v31, %v1704_v7  ;;  %v1714_v37 = vmul.f32 %v1706_v31, %v1705_v42  ;;  %s7233_s4 = sld [smem:[#allocation14 + %s1858_s2]]  ;;  %v1779_v36 = vld [vmem:[#allocation2 + $0x120] sm:$0xff]  ;;  %v1780_v7 = vld [vmem:[#allocation2 + $0x128] sm:$0xff]  ;;  %s1966_s2 = sadd.s32 11, %s7209_s20 }
 0x1db   : >> { %v1715_v3 = vadd.f32 %v1707_v5, %v1680_v2  ;;  %v1716_v62 = vadd.f32 %v1708_v24, %v1681_v25  ;;  %v1717_v8 = vadd.f32 %v1709_v56, %v1682_v22  ;;  %v1718_v59 = vadd.f32 %v1710_v46, %v1683_v55  ;;  %v1781_v5 = vld [vmem:[#allocation2 + $0x130] sm:$0xff]  ;;  %v1782_v24 = vld [vmem:[#allocation2 + $0x138] sm:$0xff]  ;;  %v1783_v56 = vld [vmem:[#allocation2 + $0x140] sm:$0xff] }
 0x1dc   : >> { %v1719_v13 = vadd.f32 %v1711_v63, %v1684_v49  ;;  %v1720_v26 = vadd.f32 %v1712_v39, %v1685_v50  ;;  %v1721_v47 = vadd.f32 %v1713_v58, %v1686_v38  ;;  %v1722_v30 = vadd.f32 %v1714_v37, %v1687_v51  ;;  %v1784_v39 = vld [vmem:[#allocation2 + $0x148] sm:$0xff]  ;;  %v1785_v58 = vld [vmem:[#allocation2 + $0x150] sm:$0xff] }
 0x1dd   : >> { %v1734_v57 = vmul.f32 %v1733_v17, %v1725_v29  ;;  %v1735_v44 = vmul.f32 %v1733_v17, %v1726_v40  ;;  %v1736_v28 = vmul.f32 %v1733_v17, %v1727_v20  ;;  %v1737_v53 = vmul.f32 %v1733_v17, %v1728_v54 }
 0x1de   : >> { %v1738_v14 = vmul.f32 %v1733_v17, %v1729_v0  ;;  %v1739_v33 = vmul.f32 %v1733_v17, %v1730_v6  ;;  %v1740_v21 = vmul.f32 %v1733_v17, %v1731_v19  ;;  %v1741_v34 = vmul.f32 %v1733_v17, %v1732_v11  ;;  %v1806_v6 = vld [vmem:[#allocation2 + $0x1] sm:$0xff]  ;;  %v1807_v19 = vld [vmem:[#allocation2 + $0x9] sm:$0xff] }
 0x1df   : >> { %v1742_v43 = vadd.f32 %v1734_v57, %v1715_v3  ;;  %v1743_v9 = vadd.f32 %v1735_v44, %v1716_v62  ;;  %v1744_v1 = vadd.f32 %v1736_v28, %v1717_v8  ;;  %v1745_v52 = vadd.f32 %v1737_v53, %v1718_v59  ;;  %v1809_v57 = vld [vmem:[#allocation2 + $0x19] sm:$0xff]  ;;  %v1810_v44 = vld [vmem:[#allocation2 + $0x21] sm:$0xff] }
 0x1e0   : >> { %v1746_v41 = vadd.f32 %v1738_v14, %v1719_v13  ;;  %v1747_v16 = vadd.f32 %v1739_v33, %v1720_v26  ;;  %v1748_v2 = vadd.f32 %v1740_v21, %v1721_v47  ;;  %v1749_v25 = vadd.f32 %v1741_v34, %v1722_v30  ;;  %v1808_v30 = vld [vmem:[#allocation2 + $0x11] sm:$0xff]  ;;  %v1811_v14 = vld [vmem:[#allocation2 + $0x29] sm:$0xff]  ;;  %v1813_v21 = vld [vmem:[#allocation2 + $0x39] sm:$0xff] }
 0x1e1   : >> { %v1761_v22 = vmul.f32 %v7222_v48, %v1752_v60  ;;  %v1762_v12 = vmul.f32 %v7222_v48, %v1753_v18  ;;  %v1763_v45 = vmul.f32 %v7222_v48, %v1754_v10  ;;  %v1764_v27 = vmul.f32 %v7222_v48, %v1755_v32  ;;  %v1812_v33 = vld [vmem:[#allocation2 + $0x31] sm:$0xff] }
 0x1e2   : >> { %v1765_v55 = vmul.f32 %v7222_v48, %v1756_v15  ;;  %v1766_v49 = vmul.f32 %v7222_v48, %v1757_v61  ;;  %v1767_v50 = vmul.f32 %v7222_v48, %v1758_v35  ;;  %v1768_v38 = vmul.f32 %v7222_v48, %v1759_v23  ;;  %v1786_v48 = vld [vmem:[#allocation2 + $0x158] sm:$0xff]  ;;  %v1833_v61 = vld [vmem:[#allocation2 + $0x49] sm:$0xff] }
 0x1e3   : >> { %v1769_v42 = vadd.f32 %v1761_v22, %v1742_v43  ;;  %v1770_v51 = vadd.f32 %v1762_v12, %v1743_v9  ;;  %v1771_v31 = vadd.f32 %v1763_v45, %v1744_v1  ;;  %v1772_v17 = vadd.f32 %v1764_v27, %v1745_v52  ;;  %v1834_v35 = vld [vmem:[#allocation2 + $0x51] sm:$0xff]  ;;  %v1836_v22 = vld [vmem:[#allocation2 + $0x61] sm:$0xff]  ;;  %v1837_v12 = vld [vmem:[#allocation2 + $0x69] sm:$0xff] }
 0x1e4   : >> { %v1773_v46 = vadd.f32 %v1765_v55, %v1746_v41  ;;  %v1774_v29 = vadd.f32 %v1766_v49, %v1747_v16  ;;  %v1775_v40 = vadd.f32 %v1767_v50, %v1748_v2  ;;  %v1776_v63 = vadd.f32 %v1768_v38, %v1749_v25  ;;  %v1835_v25 = vld [vmem:[#allocation2 + $0x59] sm:$0xff]  ;;  %v1838_v50 = vld [vmem:[#allocation2 + $0x71] sm:$0xff] }
 0x1e5   : >> { %v1787_v37 = vstv %s7226_s18  ;;  %v1814_v20 = vstv %s7229_s26  ;;  %v7246_v54 = vstv %s7231_s27  ;;  %v7249_v0 = vstv %s7233_s4  ;;  %s7254_s18 = sld [smem:[#allocation14 + %s1885_s0]]  ;;  %v1839_v38 = vld [vmem:[#allocation2 + $0x79] sm:$0xff]  ;;  %s1993_s0 = sadd.s32 12, %s7209_s20 }
 0x1e6   : >> { %v1788_v3 = vmul.f32 %v1787_v37, %v1779_v36  ;;  %v1789_v62 = vmul.f32 %v1787_v37, %v1780_v7  ;;  %v1790_v8 = vmul.f32 %v1787_v37, %v1781_v5  ;;  %v1791_v59 = vmul.f32 %v1787_v37, %v1782_v24  ;;  %v1840_v36 = vld [vmem:[#allocation2 + $0x81] sm:$0xff]  ;;  %s7257_s26 = sld [smem:[#allocation14 + %s1912_s25]]  ;;  %s2020_s25 = sadd.s32 13, %s7209_s20 }
 0x1e7   : >> { %v1792_v11 = vmul.f32 %v1787_v37, %v1783_v56  ;;  %v1793_v13 = vmul.f32 %v1787_v37, %v1784_v39  ;;  %v1794_v26 = vmul.f32 %v1787_v37, %v1785_v58  ;;  %v1795_v47 = vmul.f32 %v1787_v37, %v1786_v48  ;;  %s7259_s27 = sld [smem:[#allocation14 + %s1939_s12]]  ;;  %v1862_v48 = vld [vmem:[#allocation2 + $0xa1] sm:$0xff]  ;;  %v1863_v37 = vld [vmem:[#allocation2 + $0xa9] sm:$0xff]  ;;  %s2047_s12 = sadd.s32 14, %s7209_s20 }
 0x1e8   : >> { %v1796_v28 = vadd.f32 %v1788_v3, %v1769_v42  ;;  %v1797_v53 = vadd.f32 %v1789_v62, %v1770_v51  ;;  %v1798_v60 = vadd.f32 %v1790_v8, %v1771_v31  ;;  %v1799_v18 = vadd.f32 %v1791_v59, %v1772_v17  ;;  %s7265_s4 = sld [smem:[#allocation14 + %s1966_s2]]  ;;  %s2074_s2 = sadd.s32 15, %s7209_s20 }
 0x1e9   : >> { %v1800_v34 = vadd.f32 %v1792_v11, %v1773_v46  ;;  %v1801_v10 = vadd.f32 %v1793_v13, %v1774_v29  ;;  %v1802_v32 = vadd.f32 %v1794_v26, %v1775_v40  ;;  %v1803_v15 = vadd.f32 %v1795_v47, %v1776_v63  ;;  %v1860_v46 = vld [vmem:[#allocation2 + $0x91] sm:$0xff]  ;;  %v1861_v29 = vld [vmem:[#allocation2 + $0x99] sm:$0xff]  ;;  %v1867_v11 = vld [vmem:[#allocation2 + $0xc9] sm:$0xff] }
 0x1ea   : >> { %v1815_v43 = vmul.f32 %v1814_v20, %v1806_v6  ;;  %v1816_v9 = vmul.f32 %v1814_v20, %v1807_v19  ;;  %v1817_v1 = vmul.f32 %v1814_v20, %v1808_v30  ;;  %v1818_v52 = vmul.f32 %v1814_v20, %v1809_v57  ;;  %v1865_v6 = vld [vmem:[#allocation2 + $0xb9] sm:$0xff]  ;;  %v1866_v19 = vld [vmem:[#allocation2 + $0xc1] sm:$0xff] }
 0x1eb   : >> { %v1819_v23 = vmul.f32 %v1814_v20, %v1810_v44  ;;  %v1820_v41 = vmul.f32 %v1814_v20, %v1811_v14  ;;  %v1821_v16 = vmul.f32 %v1814_v20, %v1812_v33  ;;  %v1822_v2 = vmul.f32 %v1814_v20, %v1813_v21  ;;  %v1864_v20 = vld [vmem:[#allocation2 + $0xb1] sm:$0xff]  ;;  %v1887_v33 = vld [vmem:[#allocation2 + $0xd9] sm:$0xff]  ;;  %v1888_v21 = vld [vmem:[#allocation2 + $0xe1] sm:$0xff] }
 0x1ec   : >> { %v1823_v45 = vadd.f32 %v1815_v43, %v1796_v28  ;;  %v1824_v27 = vadd.f32 %v1816_v9, %v1797_v53  ;;  %v1825_v55 = vadd.f32 %v1817_v1, %v1798_v60  ;;  %v1826_v49 = vadd.f32 %v1818_v52, %v1799_v18  ;;  %v1889_v43 = vld [vmem:[#allocation2 + $0xe9] sm:$0xff]  ;;  %v1890_v9 = vld [vmem:[#allocation2 + $0xf1] sm:$0xff]  ;;  %v1891_v1 = vld [vmem:[#allocation2 + $0xf9] sm:$0xff] }
 0x1ed   : >> { %v1827_v7 = vadd.f32 %v1819_v23, %v1800_v34  ;;  %v1828_v42 = vadd.f32 %v1820_v41, %v1801_v10  ;;  %v1829_v51 = vadd.f32 %v1821_v16, %v1802_v32  ;;  %v1830_v31 = vadd.f32 %v1822_v2, %v1803_v15  ;;  %v1892_v41 = vld [vmem:[#allocation2 + $0x101] sm:$0xff]  ;;  %v1893_v16 = vld [vmem:[#allocation2 + $0x109] sm:$0xff] }
 0x1ee   : >> { %v1842_v17 = vmul.f32 %v7246_v54, %v1833_v61  ;;  %v1843_v5 = vmul.f32 %v7246_v54, %v1834_v35  ;;  %v1844_v24 = vmul.f32 %v7246_v54, %v1835_v25  ;;  %v1845_v56 = vmul.f32 %v7246_v54, %v1836_v22 }
 0x1ef   : >> { %v1846_v40 = vmul.f32 %v7246_v54, %v1837_v12  ;;  %v1847_v63 = vmul.f32 %v7246_v54, %v1838_v50  ;;  %v1848_v39 = vmul.f32 %v7246_v54, %v1839_v38  ;;  %v1849_v58 = vmul.f32 %v7246_v54, %v1840_v36  ;;  %v1914_v50 = vld [vmem:[#allocation2 + $0x121] sm:$0xff]  ;;  %v1915_v38 = vld [vmem:[#allocation2 + $0x129] sm:$0xff] }
 0x1f0   : >> { %v1850_v3 = vadd.f32 %v1842_v17, %v1823_v45  ;;  %v1851_v62 = vadd.f32 %v1843_v5, %v1824_v27  ;;  %v1852_v8 = vadd.f32 %v1844_v24, %v1825_v55  ;;  %v1853_v59 = vadd.f32 %v1845_v56, %v1826_v49  ;;  %v1917_v17 = vld [vmem:[#allocation2 + $0x139] sm:$0xff]  ;;  %v1918_v5 = vld [vmem:[#allocation2 + $0x141] sm:$0xff] }
 0x1f1   : >> { %v1854_v13 = vadd.f32 %v1846_v40, %v1827_v7  ;;  %v1855_v26 = vadd.f32 %v1847_v63, %v1828_v42  ;;  %v1856_v47 = vadd.f32 %v1848_v39, %v1829_v51  ;;  %v1857_v30 = vadd.f32 %v1849_v58, %v1830_v31  ;;  %v1916_v31 = vld [vmem:[#allocation2 + $0x131] sm:$0xff]  ;;  %v1919_v40 = vld [vmem:[#allocation2 + $0x149] sm:$0xff]  ;;  %v1921_v39 = vld [vmem:[#allocation2 + $0x159] sm:$0xff] }
 0x1f2   : >> { %v1869_v57 = vmul.f32 %v7249_v0, %v1860_v46  ;;  %v1870_v44 = vmul.f32 %v7249_v0, %v1861_v29  ;;  %v1871_v54 = vmul.f32 %v7249_v0, %v1862_v48  ;;  %v1872_v28 = vmul.f32 %v7249_v0, %v1863_v37  ;;  %v1920_v63 = vld [vmem:[#allocation2 + $0x151] sm:$0xff] }
 0x1f3   : >> { %v1873_v53 = vmul.f32 %v7249_v0, %v1864_v20  ;;  %v1874_v60 = vmul.f32 %v7249_v0, %v1865_v6  ;;  %v1875_v18 = vmul.f32 %v7249_v0, %v1866_v19  ;;  %v1876_v14 = vmul.f32 %v7249_v0, %v1867_v11  ;;  %v1894_v0 = vld [vmem:[#allocation2 + $0x111] sm:$0xff]  ;;  %v1941_v6 = vld [vmem:[#allocation2 + $0x2] sm:$0xff] }
 0x1f4   : >> { %v1877_v34 = vadd.f32 %v1869_v57, %v1850_v3  ;;  %v1878_v10 = vadd.f32 %v1870_v44, %v1851_v62  ;;  %v1879_v32 = vadd.f32 %v1871_v54, %v1852_v8  ;;  %v1880_v15 = vadd.f32 %v1872_v28, %v1853_v59  ;;  %v1942_v19 = vld [vmem:[#allocation2 + $0xa] sm:$0xff]  ;;  %v1944_v57 = vld [vmem:[#allocation2 + $0x1a] sm:$0xff]  ;;  %v1945_v44 = vld [vmem:[#allocation2 + $0x22] sm:$0xff] }
 0x1f5   : >> { %v1881_v52 = vadd.f32 %v1873_v53, %v1854_v13  ;;  %v1882_v61 = vadd.f32 %v1874_v60, %v1855_v26  ;;  %v1883_v35 = vadd.f32 %v1875_v18, %v1856_v47  ;;  %v1884_v23 = vadd.f32 %v1876_v14, %v1857_v30  ;;  %v1943_v30 = vld [vmem:[#allocation2 + $0x12] sm:$0xff]  ;;  %v1946_v18 = vld [vmem:[#allocation2 + $0x2a] sm:$0xff] }
 0x1f6   : >> { %v1895_v2 = vstv %s7254_s18  ;;  %v1922_v25 = vstv %s7257_s26  ;;  %v7282_v22 = vstv %s7259_s27  ;;  %v7285_v12 = vstv %s7265_s4  ;;  %s7290_s18 = sld [smem:[#allocation14 + %s1993_s0]]  ;;  %v1947_v14 = vld [vmem:[#allocation2 + $0x32] sm:$0xff]  ;;  %s2101_s0 = sadd.s32 16, %s7209_s20 }
 0x1f7   : >> { %v1896_v45 = vmul.f32 %v1895_v2, %v1887_v33  ;;  %v1897_v27 = vmul.f32 %v1895_v2, %v1888_v21  ;;  %v1898_v55 = vmul.f32 %v1895_v2, %v1889_v43  ;;  %v1899_v49 = vmul.f32 %v1895_v2, %v1890_v9  ;;  %v1948_v33 = vld [vmem:[#allocation2 + $0x3a] sm:$0xff]  ;;  %s7293_s26 = sld [smem:[#allocation14 + %s2020_s25]]  ;;  %s2128_s25 = sadd.s32 17, %s7209_s20 }
 0x1f8   : >> { %v1900_v36 = vmul.f32 %v1895_v2, %v1891_v1  ;;  %v1901_v7 = vmul.f32 %v1895_v2, %v1892_v41  ;;  %v1902_v42 = vmul.f32 %v1895_v2, %v1893_v16  ;;  %v1903_v51 = vmul.f32 %v1895_v2, %v1894_v0  ;;  %s7295_s27 = sld [smem:[#allocation14 + %s2047_s12]]  ;;  %v1970_v0 = vld [vmem:[#allocation2 + $0x5a] sm:$0xff]  ;;  %v1971_v2 = vld [vmem:[#allocation2 + $0x62] sm:$0xff]  ;;  %s2155_s12 = sadd.s32 18, %s7209_s20 }
 0x1f9   : >> { %v1904_v24 = vadd.f32 %v1896_v45, %v1877_v34  ;;  %v1905_v56 = vadd.f32 %v1897_v27, %v1878_v10  ;;  %v1906_v46 = vadd.f32 %v1898_v55, %v1879_v32  ;;  %v1907_v29 = vadd.f32 %v1899_v49, %v1880_v15  ;;  %s7301_s4 = sld [smem:[#allocation14 + %s2074_s2]]  ;;  %s2182_s2 = sadd.s32 19, %s7209_s20 }
 0x1fa   : >> { %v1908_v58 = vadd.f32 %v1900_v36, %v1881_v52  ;;  %v1909_v48 = vadd.f32 %v1901_v7, %v1882_v61  ;;  %v1910_v37 = vadd.f32 %v1902_v42, %v1883_v35  ;;  %v1911_v20 = vadd.f32 %v1903_v51, %v1884_v23  ;;  %v1968_v52 = vld [vmem:[#allocation2 + $0x4a] sm:$0xff]  ;;  %v1969_v61 = vld [vmem:[#allocation2 + $0x52] sm:$0xff]  ;;  %v1975_v36 = vld [vmem:[#allocation2 + $0x82] sm:$0xff] }
 0x1fb   : >> { %v1923_v3 = vmul.f32 %v1922_v25, %v1914_v50  ;;  %v1924_v62 = vmul.f32 %v1922_v25, %v1915_v38  ;;  %v1925_v8 = vmul.f32 %v1922_v25, %v1916_v31  ;;  %v1926_v59 = vmul.f32 %v1922_v25, %v1917_v17  ;;  %v1973_v50 = vld [vmem:[#allocation2 + $0x72] sm:$0xff]  ;;  %v1974_v38 = vld [vmem:[#allocation2 + $0x7a] sm:$0xff] }
 0x1fc   : >> { %v1927_v11 = vmul.f32 %v1922_v25, %v1918_v5  ;;  %v1928_v13 = vmul.f32 %v1922_v25, %v1919_v40  ;;  %v1929_v26 = vmul.f32 %v1922_v25, %v1920_v63  ;;  %v1930_v47 = vmul.f32 %v1922_v25, %v1921_v39  ;;  %v1972_v25 = vld [vmem:[#allocation2 + $0x6a] sm:$0xff]  ;;  %v1995_v63 = vld [vmem:[#allocation2 + $0x92] sm:$0xff]  ;;  %v1996_v39 = vld [vmem:[#allocation2 + $0x9a] sm:$0xff] }
 0x1fd   : >> { %v1931_v54 = vadd.f32 %v1923_v3, %v1904_v24  ;;  %v1932_v28 = vadd.f32 %v1924_v62, %v1905_v56  ;;  %v1933_v53 = vadd.f32 %v1925_v8, %v1906_v46  ;;  %v1934_v60 = vadd.f32 %v1926_v59, %v1907_v29  ;;  %v1997_v3 = vld [vmem:[#allocation2 + $0xa2] sm:$0xff]  ;;  %v1998_v62 = vld [vmem:[#allocation2 + $0xaa] sm:$0xff]  ;;  %v1999_v8 = vld [vmem:[#allocation2 + $0xb2] sm:$0xff] }
 0x1fe   : >> { %v1935_v21 = vadd.f32 %v1927_v11, %v1908_v58  ;;  %v1936_v34 = vadd.f32 %v1928_v13, %v1909_v48  ;;  %v1937_v10 = vadd.f32 %v1929_v26, %v1910_v37  ;;  %v1938_v32 = vadd.f32 %v1930_v47, %v1911_v20  ;;  %v2000_v13 = vld [vmem:[#allocation2 + $0xba] sm:$0xff]  ;;  %v2001_v26 = vld [vmem:[#allocation2 + $0xc2] sm:$0xff] }
 0x1ff   : >> { %v1950_v15 = vmul.f32 %v7282_v22, %v1941_v6  ;;  %v1951_v43 = vmul.f32 %v7282_v22, %v1942_v19  ;;  %v1952_v9 = vmul.f32 %v7282_v22, %v1943_v30  ;;  %v1953_v1 = vmul.f32 %v7282_v22, %v1944_v57 }
 0x200   : >> { %v1954_v35 = vmul.f32 %v7282_v22, %v1945_v44  ;;  %v1955_v23 = vmul.f32 %v7282_v22, %v1946_v18  ;;  %v1956_v41 = vmul.f32 %v7282_v22, %v1947_v14  ;;  %v1957_v16 = vmul.f32 %v7282_v22, %v1948_v33  ;;  %v2022_v18 = vld [vmem:[#allocation2 + $0xda] sm:$0xff]  ;;  %v2023_v14 = vld [vmem:[#allocation2 + $0xe2] sm:$0xff] }
 0x201   : >> { %v1958_v45 = vadd.f32 %v1950_v15, %v1931_v54  ;;  %v1959_v27 = vadd.f32 %v1951_v43, %v1932_v28  ;;  %v1960_v55 = vadd.f32 %v1952_v9, %v1933_v53  ;;  %v1961_v49 = vadd.f32 %v1953_v1, %v1934_v60  ;;  %v2025_v15 = vld [vmem:[#allocation2 + $0xf2] sm:$0xff]  ;;  %v2026_v43 = vld [vmem:[#allocation2 + $0xfa] sm:$0xff] }
 0x202   : >> { %v1962_v7 = vadd.f32 %v1954_v35, %v1935_v21  ;;  %v1963_v42 = vadd.f32 %v1955_v23, %v1936_v34  ;;  %v1964_v51 = vadd.f32 %v1956_v41, %v1937_v10  ;;  %v1965_v31 = vadd.f32 %v1957_v16, %v1938_v32  ;;  %v2024_v32 = vld [vmem:[#allocation2 + $0xea] sm:$0xff]  ;;  %v2027_v35 = vld [vmem:[#allocation2 + $0x102] sm:$0xff]  ;;  %v2029_v41 = vld [vmem:[#allocation2 + $0x112] sm:$0xff] }
 0x203   : >> { %v1977_v17 = vmul.f32 %v7285_v12, %v1968_v52  ;;  %v1978_v5 = vmul.f32 %v7285_v12, %v1969_v61  ;;  %v1979_v22 = vmul.f32 %v7285_v12, %v1970_v0  ;;  %v1980_v24 = vmul.f32 %v7285_v12, %v1971_v2  ;;  %v2028_v23 = vld [vmem:[#allocation2 + $0x10a] sm:$0xff] }
 0x204   : >> { %v1981_v56 = vmul.f32 %v7285_v12, %v1972_v25  ;;  %v1982_v46 = vmul.f32 %v7285_v12, %v1973_v50  ;;  %v1983_v29 = vmul.f32 %v7285_v12, %v1974_v38  ;;  %v1984_v40 = vmul.f32 %v7285_v12, %v1975_v36  ;;  %v2002_v12 = vld [vmem:[#allocation2 + $0xca] sm:$0xff]  ;;  %v2049_v50 = vld [vmem:[#allocation2 + $0x122] sm:$0xff] }
 0x205   : >> { %v1985_v58 = vadd.f32 %v1977_v17, %v1958_v45  ;;  %v1986_v48 = vadd.f32 %v1978_v5, %v1959_v27  ;;  %v1987_v37 = vadd.f32 %v1979_v22, %v1960_v55  ;;  %v1988_v20 = vadd.f32 %v1980_v24, %v1961_v49  ;;  %v2050_v38 = vld [vmem:[#allocation2 + $0x12a] sm:$0xff]  ;;  %v2052_v17 = vld [vmem:[#allocation2 + $0x13a] sm:$0xff]  ;;  %v2053_v5 = vld [vmem:[#allocation2 + $0x142] sm:$0xff] }
 0x206   : >> { %v1989_v59 = vadd.f32 %v1981_v56, %v1962_v7  ;;  %v1990_v6 = vadd.f32 %v1982_v46, %v1963_v42  ;;  %v1991_v19 = vadd.f32 %v1983_v29, %v1964_v51  ;;  %v1992_v11 = vadd.f32 %v1984_v40, %v1965_v31  ;;  %v2051_v31 = vld [vmem:[#allocation2 + $0x132] sm:$0xff]  ;;  %v2054_v29 = vld [vmem:[#allocation2 + $0x14a] sm:$0xff] }
 0x207   : >> { %v2003_v47 = vstv %s7290_s18  ;;  %v2030_v30 = vstv %s7293_s26  ;;  %v7318_v57 = vstv %s7295_s27  ;;  %v7321_v44 = vstv %s7301_s4  ;;  %s7326_s18 = sld [smem:[#allocation14 + %s2101_s0]]  ;;  %v2055_v40 = vld [vmem:[#allocation2 + $0x152] sm:$0xff]  ;;  %s2209_s0 = sadd.s32 20, %s7209_s20 }
 0x208   : >> { %v2004_v54 = vmul.f32 %v2003_v47, %v1995_v63  ;;  %v2005_v28 = vmul.f32 %v2003_v47, %v1996_v39  ;;  %v2006_v53 = vmul.f32 %v2003_v47, %v1997_v3  ;;  %v2007_v60 = vmul.f32 %v2003_v47, %v1998_v62  ;;  %v2056_v63 = vld [vmem:[#allocation2 + $0x15a] sm:$0xff]  ;;  %s7329_s26 = sld [smem:[#allocation14 + %s2128_s25]]  ;;  %s2236_s25 = sadd.s32 21, %s7209_s20 }
 0x209   : >> { %v2008_v33 = vmul.f32 %v2003_v47, %v1999_v8  ;;  %v2009_v21 = vmul.f32 %v2003_v47, %v2000_v13  ;;  %v2010_v34 = vmul.f32 %v2003_v47, %v2001_v26  ;;  %v2011_v10 = vmul.f32 %v2003_v47, %v2002_v12  ;;  %s7331_s27 = sld [smem:[#allocation14 + %s2155_s12]]  ;;  %v2078_v12 = vld [vmem:[#allocation2 + $0x13] sm:$0xff]  ;;  %v2079_v47 = vld [vmem:[#allocation2 + $0x1b] sm:$0xff]  ;;  %s2263_s12 = sadd.s32 22, %s7209_s20 }
 0x20a   : >> { %v2012_v9 = vadd.f32 %v2004_v54, %v1985_v58  ;;  %v2013_v1 = vadd.f32 %v2005_v28, %v1986_v48  ;;  %v2014_v52 = vadd.f32 %v2006_v53, %v1987_v37  ;;  %v2015_v61 = vadd.f32 %v2007_v60, %v1988_v20  ;;  %s7337_s4 = sld [smem:[#allocation14 + %s2182_s2]]  ;;  %s2290_s2 = sadd.s32 23, %s7209_s20 }
 0x20b   : >> { %v2016_v16 = vadd.f32 %v2008_v33, %v1989_v59  ;;  %v2017_v0 = vadd.f32 %v2009_v21, %v1990_v6  ;;  %v2018_v2 = vadd.f32 %v2010_v34, %v1991_v19  ;;  %v2019_v25 = vadd.f32 %v2011_v10, %v1992_v11  ;;  %v2076_v59 = vld [vmem:[#allocation2 + $0x3] sm:$0xff]  ;;  %v2077_v6 = vld [vmem:[#allocation2 + $0xb] sm:$0xff]  ;;  %v2083_v33 = vld [vmem:[#allocation2 + $0x3b] sm:$0xff] }
 0x20c   : >> { %v2031_v45 = vmul.f32 %v2030_v30, %v2022_v18  ;;  %v2032_v27 = vmul.f32 %v2030_v30, %v2023_v14  ;;  %v2033_v55 = vmul.f32 %v2030_v30, %v2024_v32  ;;  %v2034_v49 = vmul.f32 %v2030_v30, %v2025_v15  ;;  %v2081_v18 = vld [vmem:[#allocation2 + $0x2b] sm:$0xff]  ;;  %v2082_v14 = vld [vmem:[#allocation2 + $0x33] sm:$0xff] }
 0x20d   : >> { %v2035_v36 = vmul.f32 %v2030_v30, %v2026_v43  ;;  %v2036_v7 = vmul.f32 %v2030_v30, %v2027_v35  ;;  %v2037_v42 = vmul.f32 %v2030_v30, %v2028_v23  ;;  %v2038_v51 = vmul.f32 %v2030_v30, %v2029_v41  ;;  %v2080_v30 = vld [vmem:[#allocation2 + $0x23] sm:$0xff]  ;;  %v2103_v23 = vld [vmem:[#allocation2 + $0x4b] sm:$0xff]  ;;  %v2104_v41 = vld [vmem:[#allocation2 + $0x53] sm:$0xff] }
 0x20e   : >> { %v2039_v22 = vadd.f32 %v2031_v45, %v2012_v9  ;;  %v2040_v24 = vadd.f32 %v2032_v27, %v2013_v1  ;;  %v2041_v56 = vadd.f32 %v2033_v55, %v2014_v52  ;;  %v2042_v46 = vadd.f32 %v2034_v49, %v2015_v61  ;;  %v2105_v45 = vld [vmem:[#allocation2 + $0x5b] sm:$0xff]  ;;  %v2106_v27 = vld [vmem:[#allocation2 + $0x63] sm:$0xff]  ;;  %v2107_v55 = vld [vmem:[#allocation2 + $0x6b] sm:$0xff] }
 0x20f   : >> { %v2043_v39 = vadd.f32 %v2035_v36, %v2016_v16  ;;  %v2044_v58 = vadd.f32 %v2036_v7, %v2017_v0  ;;  %v2045_v48 = vadd.f32 %v2037_v42, %v2018_v2  ;;  %v2046_v37 = vadd.f32 %v2038_v51, %v2019_v25  ;;  %v2108_v7 = vld [vmem:[#allocation2 + $0x73] sm:$0xff]  ;;  %v2109_v42 = vld [vmem:[#allocation2 + $0x7b] sm:$0xff] }
 0x210   : >> { %v2058_v20 = vmul.f32 %v7318_v57, %v2049_v50  ;;  %v2059_v3 = vmul.f32 %v7318_v57, %v2050_v38  ;;  %v2060_v62 = vmul.f32 %v7318_v57, %v2051_v31  ;;  %v2061_v8 = vmul.f32 %v7318_v57, %v2052_v17 }
 0x211   : >> { %v2062_v19 = vmul.f32 %v7318_v57, %v2053_v5  ;;  %v2063_v11 = vmul.f32 %v7318_v57, %v2054_v29  ;;  %v2064_v13 = vmul.f32 %v7318_v57, %v2055_v40  ;;  %v2065_v26 = vmul.f32 %v7318_v57, %v2056_v63  ;;  %v2130_v29 = vld [vmem:[#allocation2 + $0x93] sm:$0xff]  ;;  %v2131_v40 = vld [vmem:[#allocation2 + $0x9b] sm:$0xff] }
 0x212   : >> { %v2066_v54 = vadd.f32 %v2058_v20, %v2039_v22  ;;  %v2067_v28 = vadd.f32 %v2059_v3, %v2040_v24  ;;  %v2068_v53 = vadd.f32 %v2060_v62, %v2041_v56  ;;  %v2069_v60 = vadd.f32 %v2061_v8, %v2042_v46  ;;  %v2133_v20 = vld [vmem:[#allocation2 + $0xab] sm:$0xff]  ;;  %v2134_v3 = vld [vmem:[#allocation2 + $0xb3] sm:$0xff] }
 0x213   : >> { %v2070_v21 = vadd.f32 %v2062_v19, %v2043_v39  ;;  %v2071_v34 = vadd.f32 %v2063_v11, %v2044_v58  ;;  %v2072_v10 = vadd.f32 %v2064_v13, %v2045_v48  ;;  %v2073_v32 = vadd.f32 %v2065_v26, %v2046_v37  ;;  %v2132_v37 = vld [vmem:[#allocation2 + $0xa3] sm:$0xff]  ;;  %v2135_v19 = vld [vmem:[#allocation2 + $0xbb] sm:$0xff]  ;;  %v2137_v13 = vld [vmem:[#allocation2 + $0xcb] sm:$0xff] }
 0x214   : >> { %v2085_v15 = vmul.f32 %v7321_v44, %v2076_v59  ;;  %v2086_v43 = vmul.f32 %v7321_v44, %v2077_v6  ;;  %v2087_v57 = vmul.f32 %v7321_v44, %v2078_v12  ;;  %v2088_v9 = vmul.f32 %v7321_v44, %v2079_v47  ;;  %v2136_v11 = vld [vmem:[#allocation2 + $0xc3] sm:$0xff] }
 0x215   : >> { %v2089_v1 = vmul.f32 %v7321_v44, %v2080_v30  ;;  %v2090_v52 = vmul.f32 %v7321_v44, %v2081_v18  ;;  %v2091_v61 = vmul.f32 %v7321_v44, %v2082_v14  ;;  %v2092_v35 = vmul.f32 %v7321_v44, %v2083_v33  ;;  %v2110_v44 = vld [vmem:[#allocation2 + $0x83] sm:$0xff]  ;;  %v2157_v18 = vld [vmem:[#allocation2 + $0xdb] sm:$0xff] }
 0x216   : >> { %v2093_v16 = vadd.f32 %v2085_v15, %v2066_v54  ;;  %v2094_v0 = vadd.f32 %v2086_v43, %v2067_v28  ;;  %v2095_v2 = vadd.f32 %v2087_v57, %v2068_v53  ;;  %v2096_v25 = vadd.f32 %v2088_v9, %v2069_v60  ;;  %v2158_v14 = vld [vmem:[#allocation2 + $0xe3] sm:$0xff]  ;;  %v2160_v15 = vld [vmem:[#allocation2 + $0xf3] sm:$0xff]  ;;  %v2161_v43 = vld [vmem:[#allocation2 + $0xfb] sm:$0xff] }
 0x217   : >> { %v2097_v49 = vadd.f32 %v2089_v1, %v2070_v21  ;;  %v2098_v50 = vadd.f32 %v2090_v52, %v2071_v34  ;;  %v2099_v38 = vadd.f32 %v2091_v61, %v2072_v10  ;;  %v2100_v36 = vadd.f32 %v2092_v35, %v2073_v32  ;;  %v2159_v32 = vld [vmem:[#allocation2 + $0xeb] sm:$0xff]  ;;  %v2162_v61 = vld [vmem:[#allocation2 + $0x103] sm:$0xff] }
 0x218   : >> { %v2111_v51 = vstv %s7326_s18  ;;  %v2138_v31 = vstv %s7329_s26  ;;  %v7354_v17 = vstv %s7331_s27  ;;  %v7357_v5 = vstv %s7337_s4  ;;  %s7362_s18 = sld [smem:[#allocation14 + %s2209_s0]]  ;;  %v2163_v35 = vld [vmem:[#allocation2 + $0x10b] sm:$0xff]  ;;  %s2317_s0 = sadd.s32 24, %s7209_s20 }
 0x219   : >> { %v2112_v22 = vmul.f32 %v2111_v51, %v2103_v23  ;;  %v2113_v24 = vmul.f32 %v2111_v51, %v2104_v41  ;;  %v2114_v56 = vmul.f32 %v2111_v51, %v2105_v45  ;;  %v2115_v46 = vmul.f32 %v2111_v51, %v2106_v27  ;;  %v2164_v23 = vld [vmem:[#allocation2 + $0x113] sm:$0xff]  ;;  %s7365_s26 = sld [smem:[#allocation14 + %s2236_s25]] }
 0x21a   : >> { %v2116_v63 = vmul.f32 %v2111_v51, %v2107_v55  ;;  %v2117_v39 = vmul.f32 %v2111_v51, %v2108_v7  ;;  %v2118_v58 = vmul.f32 %v2111_v51, %v2109_v42  ;;  %v2119_v48 = vmul.f32 %v2111_v51, %v2110_v44  ;;  %s7367_s27 = sld [smem:[#allocation14 + %s2263_s12]]  ;;  %v2186_v44 = vld [vmem:[#allocation2 + $0x133] sm:$0xff]  ;;  %v2187_v51 = vld [vmem:[#allocation2 + $0x13b] sm:$0xff] }
 0x21b   : >> { %v2120_v62 = vadd.f32 %v2112_v22, %v2093_v16  ;;  %v2121_v8 = vadd.f32 %v2113_v24, %v2094_v0  ;;  %v2122_v59 = vadd.f32 %v2114_v56, %v2095_v2  ;;  %v2123_v6 = vadd.f32 %v2115_v46, %v2096_v25  ;;  %s7373_s4 = sld [smem:[#allocation14 + %s2290_s2]] }
 0x21c   : >> { %v2124_v26 = vadd.f32 %v2116_v63, %v2097_v49  ;;  %v2125_v12 = vadd.f32 %v2117_v39, %v2098_v50  ;;  %v2126_v47 = vadd.f32 %v2118_v58, %v2099_v38  ;;  %v2127_v30 = vadd.f32 %v2119_v48, %v2100_v36  ;;  %v2184_v49 = vld [vmem:[#allocation2 + $0x123] sm:$0xff]  ;;  %v2185_v50 = vld [vmem:[#allocation2 + $0x12b] sm:$0xff]  ;;  %v2191_v63 = vld [vmem:[#allocation2 + $0x15b] sm:$0xff]  ;;  %s7395_s25 = sld [smem:[#allocation15 + %s5853_s21]] }
 0x21d   : >> { %v2139_v54 = vmul.f32 %v2138_v31, %v2130_v29  ;;  %v2140_v28 = vmul.f32 %v2138_v31, %v2131_v40  ;;  %v2141_v53 = vmul.f32 %v2138_v31, %v2132_v37  ;;  %v2142_v60 = vmul.f32 %v2138_v31, %v2133_v20  ;;  %v2189_v29 = vld [vmem:[#allocation2 + $0x14b] sm:$0xff]  ;;  %v2190_v40 = vld [vmem:[#allocation2 + $0x153] sm:$0xff]  ;;  %s7397_s20 = sld [smem:[#allocation14 + %s2317_s0]] }
 0x21e   : >> { %v2143_v33 = vmul.f32 %v2138_v31, %v2134_v3  ;;  %v2144_v21 = vmul.f32 %v2138_v31, %v2135_v19  ;;  %v2145_v34 = vmul.f32 %v2138_v31, %v2136_v11  ;;  %v2146_v10 = vmul.f32 %v2138_v31, %v2137_v13  ;;  %v2188_v31 = vld [vmem:[#allocation2 + $0x143] sm:$0xff]  ;;  %v2212_v13 = vld [vmem:[#allocation2 + $0xc] sm:$0xff]  ;;  %s7410_s12 = sld [smem:[#allocation16 + %s5853_s21]] }
 0x21f   : >> { %v2147_v57 = vadd.f32 %v2139_v54, %v2120_v62  ;;  %v2148_v9 = vadd.f32 %v2140_v28, %v2121_v8  ;;  %v2149_v1 = vadd.f32 %v2141_v53, %v2122_v59  ;;  %v2150_v52 = vadd.f32 %v2142_v60, %v2123_v6  ;;  %v2211_v11 = vld [vmem:[#allocation2 + $0x4] sm:$0xff]  ;;  %v2213_v54 = vld [vmem:[#allocation2 + $0x14] sm:$0xff]  ;;  %v2214_v28 = vld [vmem:[#allocation2 + $0x1c] sm:$0xff] }
 0x220   : >> { %v2151_v41 = vadd.f32 %v2143_v33, %v2124_v26  ;;  %v2152_v16 = vadd.f32 %v2144_v21, %v2125_v12  ;;  %v2153_v0 = vadd.f32 %v2145_v34, %v2126_v47  ;;  %v2154_v2 = vadd.f32 %v2146_v10, %v2127_v30  ;;  %v2215_v53 = vld [vmem:[#allocation2 + $0x24] sm:$0xff]  ;;  %v2216_v21 = vld [vmem:[#allocation2 + $0x2c] sm:$0xff]  ;;  %v2217_v34 = vld [vmem:[#allocation2 + $0x34] sm:$0xff] }
 0x221   : >> { %v2166_v25 = vmul.f32 %v7354_v17, %v2157_v18  ;;  %v2167_v45 = vmul.f32 %v7354_v17, %v2158_v14  ;;  %v2168_v27 = vmul.f32 %v7354_v17, %v2159_v32  ;;  %v2169_v55 = vmul.f32 %v7354_v17, %v2160_v15 }
 0x222   : >> { %v2170_v38 = vmul.f32 %v7354_v17, %v2161_v43  ;;  %v2171_v36 = vmul.f32 %v7354_v17, %v2162_v61  ;;  %v2172_v7 = vmul.f32 %v7354_v17, %v2163_v35  ;;  %v2173_v42 = vmul.f32 %v7354_v17, %v2164_v23  ;;  %v2238_v61 = vld [vmem:[#allocation2 + $0x4c] sm:$0xff]  ;;  %v2239_v35 = vld [vmem:[#allocation2 + $0x54] sm:$0xff] }
 0x223   : >> { %v2174_v22 = vadd.f32 %v2166_v25, %v2147_v57  ;;  %v2175_v24 = vadd.f32 %v2167_v45, %v2148_v9  ;;  %v2176_v56 = vadd.f32 %v2168_v27, %v2149_v1  ;;  %v2177_v46 = vadd.f32 %v2169_v55, %v2150_v52  ;;  %v2241_v25 = vld [vmem:[#allocation2 + $0x64] sm:$0xff]  ;;  %v2242_v45 = vld [vmem:[#allocation2 + $0x6c] sm:$0xff] }
 0x224   : >> { %v2178_v39 = vadd.f32 %v2170_v38, %v2151_v41  ;;  %v2179_v58 = vadd.f32 %v2171_v36, %v2152_v16  ;;  %v2180_v48 = vadd.f32 %v2172_v7, %v2153_v0  ;;  %v2181_v37 = vadd.f32 %v2173_v42, %v2154_v2  ;;  %v2240_v2 = vld [vmem:[#allocation2 + $0x5c] sm:$0xff]  ;;  %v2243_v38 = vld [vmem:[#allocation2 + $0x74] sm:$0xff]  ;;  %v2245_v7 = vld [vmem:[#allocation2 + $0x84] sm:$0xff] }
 0x225   : >> { %v2193_v20 = vmul.f32 %v7357_v5, %v2184_v49  ;;  %v2194_v3 = vmul.f32 %v7357_v5, %v2185_v50  ;;  %v2195_v17 = vmul.f32 %v7357_v5, %v2186_v44  ;;  %v2196_v62 = vmul.f32 %v7357_v5, %v2187_v51  ;;  %v2244_v36 = vld [vmem:[#allocation2 + $0x7c] sm:$0xff] }
 0x226   : >> { %v2197_v8 = vmul.f32 %v7357_v5, %v2188_v31  ;;  %v2198_v59 = vmul.f32 %v7357_v5, %v2189_v29  ;;  %v2199_v6 = vmul.f32 %v7357_v5, %v2190_v40  ;;  %v2200_v19 = vmul.f32 %v7357_v5, %v2191_v63  ;;  %v2218_v5 = vld [vmem:[#allocation2 + $0x3c] sm:$0xff]  ;;  %v2265_v29 = vld [vmem:[#allocation2 + $0x94] sm:$0xff] }
 0x227   : >> { %v2201_v26 = vadd.f32 %v2193_v20, %v2174_v22  ;;  %v2202_v12 = vadd.f32 %v2194_v3, %v2175_v24  ;;  %v2203_v47 = vadd.f32 %v2195_v17, %v2176_v56  ;;  %v2204_v30 = vadd.f32 %v2196_v62, %v2177_v46  ;;  %v2266_v40 = vld [vmem:[#allocation2 + $0x9c] sm:$0xff]  ;;  %v2268_v20 = vld [vmem:[#allocation2 + $0xac] sm:$0xff]  ;;  %v2269_v3 = vld [vmem:[#allocation2 + $0xb4] sm:$0xff] }
 0x228   : >> { %v2205_v60 = vadd.f32 %v2197_v8, %v2178_v39  ;;  %v2206_v18 = vadd.f32 %v2198_v59, %v2179_v58  ;;  %v2207_v14 = vadd.f32 %v2199_v6, %v2180_v48  ;;  %v2208_v33 = vadd.f32 %v2200_v19, %v2181_v37  ;;  %v2267_v37 = vld [vmem:[#allocation2 + $0xa4] sm:$0xff]  ;;  %v2270_v6 = vld [vmem:[#allocation2 + $0xbc] sm:$0xff] }
 0x229   : >> { %v2219_v10 = vstv %s7362_s18  ;;  %v2246_v32 = vstv %s7365_s26  ;;  %v2273_v15 = vstv %s7367_s27  ;;  %v7391_v43 = vstv %s7373_s4  ;;  %v2271_v19 = vld [vmem:[#allocation2 + $0xc4] sm:$0xff]  ;;  %s2388_s18 = smul.u32 72, %s5853_s21  ;;  %s1668_s21 = sadd.s32 1, %s5853_s21  }
 0x22a   : >> { %v2220_v57 = vmul.f32 %v2219_v10, %v2211_v11  ;;  %v2221_v9 = vmul.f32 %v2219_v10, %v2212_v13  ;;  %v2222_v1 = vmul.f32 %v2219_v10, %v2213_v54  ;;  %v2223_v52 = vmul.f32 %v2219_v10, %v2214_v28  ;;  %v2272_v11 = vld [vmem:[#allocation2 + $0xcc] sm:$0xff]  ;;  %p1665_p13 = scmp.ge.s32.totalorder %s1668_s21, 20  }
 0x22b   : >> { %v2224_v23 = vmul.f32 %v2219_v10, %v2215_v53  ;;  %v2225_v41 = vmul.f32 %v2219_v10, %v2216_v21  ;;  %v2226_v16 = vmul.f32 %v2219_v10, %v2217_v34  ;;  %v2227_v0 = vmul.f32 %v2219_v10, %v2218_v5  ;;  %v2294_v5 = vld [vmem:[#allocation2 + $0xec] sm:$0xff]  ;;  %v2295_v10 = vld [vmem:[#allocation2 + $0xf4] sm:$0xff]  ;;  %s2389_s2 = scalar_lea.vmem [#allocation3], %s2388_s18  ;;  %s7440_s26 = smov (%p1665_p13), 0  }
 0x22c   : >> { %v2228_v27 = vadd.f32 %v2220_v57, %v2201_v26  ;;  %v2229_v55 = vadd.f32 %v2221_v9, %v2202_v12  ;;  %v2230_v49 = vadd.f32 %v2222_v1, %v2203_v47  ;;  %v2231_v50 = vadd.f32 %v2223_v52, %v2204_v30 }
 0x22d   : >> { %v2232_v42 = vadd.f32 %v2224_v23, %v2205_v60  ;;  %v2233_v44 = vadd.f32 %v2225_v41, %v2206_v18  ;;  %v2234_v51 = vadd.f32 %v2226_v16, %v2207_v14  ;;  %v2235_v31 = vadd.f32 %v2227_v0, %v2208_v33  ;;  %v2292_v60 = vld [vmem:[#allocation2 + $0xdc] sm:$0xff]  ;;  %v2293_v18 = vld [vmem:[#allocation2 + $0xe4] sm:$0xff]  ;;  %v2299_v23 = vld [vmem:[#allocation2 + $0x114] sm:$0xff] }
 0x22e   : >> { %v2247_v22 = vmul.f32 %v2246_v32, %v2238_v61  ;;  %v2248_v24 = vmul.f32 %v2246_v32, %v2239_v35  ;;  %v2249_v56 = vmul.f32 %v2246_v32, %v2240_v2  ;;  %v2250_v46 = vmul.f32 %v2246_v32, %v2241_v25  ;;  %v2297_v61 = vld [vmem:[#allocation2 + $0x104] sm:$0xff]  ;;  %v2298_v35 = vld [vmem:[#allocation2 + $0x10c] sm:$0xff] }
 0x22f   : >> { %v2251_v63 = vmul.f32 %v2246_v32, %v2242_v45  ;;  %v2252_v39 = vmul.f32 %v2246_v32, %v2243_v38  ;;  %v2253_v58 = vmul.f32 %v2246_v32, %v2244_v36  ;;  %v2254_v48 = vmul.f32 %v2246_v32, %v2245_v7  ;;  %v2296_v32 = vld [vmem:[#allocation2 + $0xfc] sm:$0xff]  ;;  %v2319_v36 = vld [vmem:[#allocation2 + $0x124] sm:$0xff]  ;;  %v2320_v7 = vld [vmem:[#allocation2 + $0x12c] sm:$0xff] }
 0x230   : >> { %v2255_v17 = vadd.f32 %v2247_v22, %v2228_v27  ;;  %v2256_v62 = vadd.f32 %v2248_v24, %v2229_v55  ;;  %v2257_v8 = vadd.f32 %v2249_v56, %v2230_v49  ;;  %v2258_v59 = vadd.f32 %v2250_v46, %v2231_v50  ;;  %v2323_v22 = vld [vmem:[#allocation2 + $0x144] sm:$0xff] }
 0x231   : >> { %v2259_v13 = vadd.f32 %v2251_v63, %v2232_v42  ;;  %v2260_v26 = vadd.f32 %v2252_v39, %v2233_v44  ;;  %v2261_v12 = vadd.f32 %v2253_v58, %v2234_v51  ;;  %v2262_v47 = vadd.f32 %v2254_v48, %v2235_v31  ;;  %v2321_v51 = vld [vmem:[#allocation2 + $0x134] sm:$0xff]  ;;  %v2322_v31 = vld [vmem:[#allocation2 + $0x13c] sm:$0xff] }
 0x232   : >> { %v2274_v30 = vmul.f32 %v2273_v15, %v2265_v29  ;;  %v2275_v54 = vmul.f32 %v2273_v15, %v2266_v40  ;;  %v2276_v28 = vmul.f32 %v2273_v15, %v2267_v37  ;;  %v2277_v53 = vmul.f32 %v2273_v15, %v2268_v20  ;;  %v2324_v40 = vld [vmem:[#allocation2 + $0x14c] sm:$0xff]  ;;  %v2325_v63 = vld [vmem:[#allocation2 + $0x154] sm:$0xff]  ;;  %v2326_v39 = vld [vmem:[#allocation2 + $0x15c] sm:$0xff] }
 0x233   : >> { %v2278_v14 = vmul.f32 %v2273_v15, %v2269_v3  ;;  %v2279_v33 = vmul.f32 %v2273_v15, %v2270_v6  ;;  %v2280_v21 = vmul.f32 %v2273_v15, %v2271_v19  ;;  %v2281_v34 = vmul.f32 %v2273_v15, %v2272_v11 }
 0x234   : >> { %v2282_v57 = vadd.f32 %v2274_v30, %v2255_v17  ;;  %v2283_v9 = vadd.f32 %v2275_v54, %v2256_v62  ;;  %v2284_v1 = vadd.f32 %v2276_v28, %v2257_v8  ;;  %v2285_v52 = vadd.f32 %v2277_v53, %v2258_v59 }
 0x235   : >> { %v2286_v41 = vadd.f32 %v2278_v14, %v2259_v13  ;;  %v2287_v16 = vadd.f32 %v2279_v33, %v2260_v26  ;;  %v2288_v0 = vadd.f32 %v2280_v21, %v2261_v12  ;;  %v2289_v2 = vadd.f32 %v2281_v34, %v2262_v47 }
 0x236   : >> { %v2301_v25 = vmul.f32 %v7391_v43, %v2292_v60  ;;  %v2302_v45 = vmul.f32 %v7391_v43, %v2293_v18  ;;  %v2303_v15 = vmul.f32 %v7391_v43, %v2294_v5  ;;  %v2304_v27 = vmul.f32 %v7391_v43, %v2295_v10 }
 0x237   : >> { %v2305_v55 = vmul.f32 %v7391_v43, %v2296_v32  ;;  %v2306_v49 = vmul.f32 %v7391_v43, %v2297_v61  ;;  %v2307_v50 = vmul.f32 %v7391_v43, %v2298_v35  ;;  %v2308_v38 = vmul.f32 %v7391_v43, %v2299_v23 }
 0x238   : >> { %v2309_v42 = vadd.f32 %v2301_v25, %v2282_v57  ;;  %v2310_v44 = vadd.f32 %v2302_v45, %v2283_v9  ;;  %v2311_v24 = vadd.f32 %v2303_v15, %v2284_v1  ;;  %v2312_v56 = vadd.f32 %v2304_v27, %v2285_v52 }
 0x239   : >> { %v2313_v46 = vadd.f32 %v2305_v55, %v2286_v41  ;;  %v2314_v29 = vadd.f32 %v2306_v49, %v2287_v16  ;;  %v2315_v58 = vadd.f32 %v2307_v50, %v2288_v0  ;;  %v2316_v48 = vadd.f32 %v2308_v38, %v2289_v2 }
 0x23a   : >> { %v2327_v43 = vstv %s7397_s20  ;;  %v2345_v37 = vstv %s7395_s25  ;;  %v2379_v61 = vstv %s7410_s12 }
 0x23b   : >> { %v2328_v20 = vmul.f32 %v2327_v43, %v2319_v36  ;;  %v2329_v3 = vmul.f32 %v2327_v43, %v2320_v7  ;;  %v2330_v17 = vmul.f32 %v2327_v43, %v2321_v51  ;;  %v2331_v62 = vmul.f32 %v2327_v43, %v2322_v31 }
 0x23c   : >> { %v2332_v8 = vmul.f32 %v2327_v43, %v2323_v22  ;;  %v2333_v59 = vmul.f32 %v2327_v43, %v2324_v40  ;;  %v2334_v6 = vmul.f32 %v2327_v43, %v2325_v63  ;;  %v2335_v19 = vmul.f32 %v2327_v43, %v2326_v39 }
 0x23d   : >> { %v2336_v11 = vadd.f32 %v2328_v20, %v2309_v42  ;;  %v2337_v13 = vadd.f32 %v2329_v3, %v2310_v44  ;;  %v2338_v26 = vadd.f32 %v2330_v17, %v2311_v24  ;;  %v2339_v12 = vadd.f32 %v2331_v62, %v2312_v56 }
 0x23e   : >> { %v2340_v47 = vadd.f32 %v2332_v8, %v2313_v46  ;;  %v2341_v30 = vadd.f32 %v2333_v59, %v2314_v29  ;;  %v2342_v54 = vadd.f32 %v2334_v6, %v2315_v58  ;;  %v2343_v28 = vadd.f32 %v2335_v19, %v2316_v48 }
 0x23f   : >> { %v2346_v53 = vadd.f32 %v2345_v37, %v2336_v11  ;;  %v2347_v60 = vadd.f32 %v2345_v37, %v2337_v13  ;;  %v2348_v18 = vadd.f32 %v2345_v37, %v2338_v26  ;;  %v2349_v14 = vadd.f32 %v2345_v37, %v2339_v12 }
 0x240   : >> { %v2350_v33 = vadd.f32 %v2345_v37, %v2340_v47  ;;  %v2351_v21 = vadd.f32 %v2345_v37, %v2341_v30  ;;  %v2352_v34 = vadd.f32 %v2345_v37, %v2342_v54  ;;  %v2353_v5 = vadd.f32 %v2345_v37, %v2343_v28 }
 0x241   : >> { %vm2354_vm1 = vcmp.ge.f32.partialorder %v2346_v53, 0.0  ;;  %vm2355_vm2 = vcmp.ge.f32.partialorder %v2347_v60, 0.0  ;;  %vm2356_vm4 = vcmp.ge.f32.partialorder %v2348_v18, 0.0  ;;  %vm2357_vm7 = vcmp.ge.f32.partialorder %v2349_v14, 0.0 }
 0x242   : >> { %vm2358_vm3 = vcmp.ge.f32.partialorder %v2350_v33, 0.0  ;;  %vm2359_vm6 = vcmp.ge.f32.partialorder %v2351_v21, 0.0  ;;  %vm2360_vm0 = vcmp.ge.f32.partialorder %v2352_v34, 0.0  ;;  %v2362_v10 = vmul.f32 0.2, %v2346_v53 }
 0x243   : >> { %v2363_v32 = vmul.f32 0.2, %v2347_v60  ;;  %v2364_v57 = vmul.f32 0.2, %v2348_v18  ;;  %v2365_v9 = vmul.f32 0.2, %v2349_v14 }
 0x244   : >> { %v2366_v1 = vmul.f32 0.2, %v2350_v33  ;;  %v2367_v52 = vmul.f32 0.2, %v2351_v21  ;;  %v2368_v35 = vmul.f32 0.2, %v2352_v34  ;;  %v2370_v41 = vsel %vm2354_vm1, %v2346_v53, %v2362_v10 }
 0x245   : >> { %v2369_v23 = vmul.f32 0.2, %v2353_v5  ;;  %v2371_v16 = vsel %vm2355_vm2, %v2347_v60, %v2363_v32  ;;  %vm2361_vm8 = vcmp.ge.f32.partialorder %v2353_v5, 0.0  ;;  %v2372_v0 = vsel %vm2356_vm4, %v2348_v18, %v2364_v57 }
 0x246   : >> { %v2373_v2 = vsel %vm2357_vm7, %v2349_v14, %v2365_v9  ;;  %v2374_v25 = vsel %vm2358_vm3, %v2350_v33, %v2366_v1  ;;  %v2375_v45 = vsel %vm2359_vm6, %v2351_v21, %v2367_v52  ;;  %v2380_v15 = vadd.f32 %v2379_v61, %v2370_v41 }
 0x247   : >> { %v2381_v27 = vadd.f32 %v2379_v61, %v2371_v16  ;;  %v2376_v55 = vsel %vm2360_vm0, %v2352_v34, %v2368_v35  ;;  %v2382_v49 = vadd.f32 %v2379_v61, %v2372_v0  ;;  %v2383_v50 = vadd.f32 %v2379_v61, %v2373_v2 }
 0x248   : >> { %v2377_v38 = vsel %vm2361_vm8, %v2353_v5, %v2369_v23  ;;  %v2384_v36 = vadd.f32 %v2379_v61, %v2374_v25  ;;  %2390 = vst [vmem:[%s2389_s2 + $0x2] sm:$0xff] %v2380_v15  ;;  %v2385_v7 = vadd.f32 %v2379_v61, %v2375_v45  ;;  %v2386_v42 = vadd.f32 %v2379_v61, %v2376_v55 }
 0x249   : >> { %2391 = vst [vmem:[%s2389_s2 + $0xa] sm:$0xff] %v2381_v27  ;;  %v2387_v44 = vadd.f32 %v2379_v61, %v2377_v38  ;;  %v7424_v51 = vmov (%p1665_p13), 0.0   ;;  %v7426_v31 = vmov (%p1665_p13), 0.0   ;;  %v7428_v22 = vmov (%p1665_p13), 0.0  }
 0x24a   : >> { %2392 = vst [vmem:[%s2389_s2 + $0x12] sm:$0xff] %v2382_v49  ;;  %v7430_v24 = vmov (%p1665_p13), 0.0   ;;  %v7432_v56 = vmov (%p1665_p13), 0.0   ;;  %v7434_v46 = vmov (%p1665_p13), 0.0   ;;  %v7436_v29 = vmov (%p1665_p13), 0.0  }
 0x24b   : >> { %2393 = vst [vmem:[%s2389_s2 + $0x1a] sm:$0xff] %v2383_v50  ;;  %1667 = sbr.rel (!%p1665_p13) target bundleno = 461 (0x1cd), region = 211  ;;  %v7438_v40 = vmov (%p1665_p13), 0.0  }
 0x24c   : >> { %2394 = vst [vmem:[%s2389_s2 + $0x22] sm:$0xff] %v2384_v36 }
 0x24d   : >> { %2395 = vst [vmem:[%s2389_s2 + $0x2a] sm:$0xff] %v2385_v7 }
 0x24e   : >> { %2396 = vst [vmem:[%s2389_s2 + $0x32] sm:$0xff] %v2386_v42 }
 0x24f   : >> { %2397 = vst [vmem:[%s2389_s2 + $0x3a] sm:$0xff] %v2387_v44 }
 0x250 LB: >> { %s7454_s21 = smul.u32 50, %s5889_s26  ;;  %s4609_s25 = sshll.u32 %s5889_s26, 1  ;;  %s5889_s26 = sphi %s7440_s26, %s2403_s26   ;;  %v5885_v40 = vphi %v7438_v40, %v8801_v40   ;;  %v5881_v29 = vphi %v7436_v29, %v8800_v29   ;;  %v5877_v46 = vphi %v7434_v46, %v8799_v46   ;;  %v5873_v56 = vphi %v7432_v56, %v8798_v56   ;;  %v5869_v24 = vphi %v7430_v24, %v8797_v24   ;;  %v5865_v22 = vphi %v7428_v22, %v8796_v22   ;;  %v5861_v31 = vphi %v7426_v31, %v8795_v31   ;;  %v5857_v51 = vphi %v7424_v51, %v8794_v51  }
 0x251   : >> { %s4610_s27 = smul.u32 144, %s5889_s26  ;;  %s2403_s26 = sadd.s32 1, %s5889_s26  }
 0x252   : >> { %s2414_s4 = sld [smem:[#allocation18 + %s7454_s21]]  ;;  %s2442_s0 = sadd.s32 5, %s7454_s21 }
 0x253   : >> { %s7460_s20 = sld [smem:[#allocation18 + %s2442_s0]]  ;;  %s2469_s12 = sadd.s32 10, %s7454_s21 }
 0x254   : >> { %s7463_s18 = scalar_lea.vmem [#allocation3], %s4610_s27  ;;  %s7467_s2 = sld [smem:[#allocation18 + %s2469_s12]] }
 0x255   : >> { %s2550_s27 = sadd.s32 1, %s4609_s25  ;;  %s2496_s0 = sadd.s32 15, %s7454_s21 }
 0x256   : >> { %v2417_v63 = vld [vmem:[%s7463_s18] sm:$0xff]  ;;  %v2418_v39 = vld [vmem:[%s7463_s18 + $0x8] sm:$0xff]  ;;  %v2419_v58 = vld [vmem:[%s7463_s18 + $0x10] sm:$0xff]  ;;  %s2523_s12 = sadd.s32 20, %s7454_s21  ;;  %s7479_s25 = smul.u32 25, %s2550_s27 }
 0x257   : >> { %v2420_v48 = vld [vmem:[%s7463_s18 + $0x18] sm:$0xff]  ;;  %v2421_v43 = vld [vmem:[%s7463_s18 + $0x20] sm:$0xff]  ;;  %v2422_v37 = vld [vmem:[%s7463_s18 + $0x28] sm:$0xff]  ;;  %s7487_s21 = sld [smem:[#allocation18 + %s2496_s0]]  ;;  %p2400_p0 = scmp.ge.s32.totalorder %s2403_s26, 10  }
 0x258   : >> { %v2423_v20 = vld [vmem:[%s7463_s18 + $0x30] sm:$0xff]  ;;  %v2424_v3 = vld [vmem:[%s7463_s18 + $0x38] sm:$0xff]  ;;  %v2425_v17 = vstv %s2414_s4  ;;  %v2444_v12 = vld [vmem:[%s7463_s18 + $0x1] sm:$0xff]  ;;  %s7491_s4 = sld [smem:[#allocation18 + %s2523_s12]]  ;;  %s2634_s0 = sadd.s32 15, %s7479_s25 }
 0x259   : >> { %v2426_v62 = vmul.f32 %v2425_v17, %v2417_v63  ;;  %v2427_v8 = vmul.f32 %v2425_v17, %v2418_v39  ;;  %v2428_v59 = vmul.f32 %v2425_v17, %v2419_v58  ;;  %v2429_v6 = vmul.f32 %v2425_v17, %v2420_v48  ;;  %v2445_v47 = vld [vmem:[%s7463_s18 + $0x9] sm:$0xff]  ;;  %v2446_v28 = vld [vmem:[%s7463_s18 + $0x11] sm:$0xff]  ;;  %v2447_v53 = vld [vmem:[%s7463_s18 + $0x19] sm:$0xff]  ;;  %s7496_s27 = sld [smem:[#allocation18 + %s7479_s25]] }
 0x25a   : >> { %v2430_v19 = vmul.f32 %v2425_v17, %v2421_v43  ;;  %v2431_v11 = vmul.f32 %v2425_v17, %v2422_v37  ;;  %v2432_v13 = vmul.f32 %v2425_v17, %v2423_v20  ;;  %v2433_v26 = vmul.f32 %v2425_v17, %v2424_v3  ;;  %v2448_v60 = vld [vmem:[%s7463_s18 + $0x21] sm:$0xff]  ;;  %v2449_v34 = vld [vmem:[%s7463_s18 + $0x29] sm:$0xff]  ;;  %v2450_v5 = vld [vmem:[%s7463_s18 + $0x31] sm:$0xff] }
 0x25b   : >> { %v2434_v30 = vadd.f32 %v5885_v40, %v2426_v62  ;;  %v2435_v54 = vadd.f32 %v5881_v29, %v2427_v8  ;;  %v2436_v18 = vadd.f32 %v5877_v46, %v2428_v59  ;;  %v2437_v14 = vadd.f32 %v5873_v56, %v2429_v6  ;;  %v2451_v10 = vld [vmem:[%s7463_s18 + $0x39] sm:$0xff]  ;;  %v2471_v41 = vld [vmem:[%s7463_s18 + $0x2] sm:$0xff]  ;;  %v2472_v16 = vld [vmem:[%s7463_s18 + $0xa] sm:$0xff] }
 0x25c   : >> { %v2438_v33 = vadd.f32 %v5869_v24, %v2430_v19  ;;  %v2439_v21 = vadd.f32 %v5865_v22, %v2431_v11  ;;  %v2440_v32 = vadd.f32 %v5861_v31, %v2432_v13  ;;  %v2441_v57 = vadd.f32 %v5857_v51, %v2433_v26  ;;  %v2473_v15 = vld [vmem:[%s7463_s18 + $0x12] sm:$0xff]  ;;  %v2474_v27 = vld [vmem:[%s7463_s18 + $0x1a] sm:$0xff]  ;;  %v2475_v55 = vld [vmem:[%s7463_s18 + $0x22] sm:$0xff] }
 0x25d   : >> { %v2452_v9 = vstv %s7460_s20  ;;  %v2479_v1 = vstv %s7467_s2  ;;  %v2476_v7 = vld [vmem:[%s7463_s18 + $0x2a] sm:$0xff]  ;;  %v2477_v42 = vld [vmem:[%s7463_s18 + $0x32] sm:$0xff]  ;;  %s2580_s20 = sadd.s32 5, %s7479_s25  ;;  %s2607_s2 = sadd.s32 10, %s7479_s25 }
 0x25e   : >> { %v2453_v52 = vmul.f32 %v2452_v9, %v2444_v12  ;;  %v2454_v61 = vmul.f32 %v2452_v9, %v2445_v47  ;;  %v2455_v35 = vmul.f32 %v2452_v9, %v2446_v28  ;;  %v2456_v23 = vmul.f32 %v2452_v9, %v2447_v53  ;;  %v2478_v44 = vld [vmem:[%s7463_s18 + $0x3a] sm:$0xff]  ;;  %v2498_v43 = vld [vmem:[%s7463_s18 + $0x3] sm:$0xff]  ;;  %v2499_v37 = vld [vmem:[%s7463_s18 + $0xb] sm:$0xff]  ;;  %s7525_s12 = sld [smem:[#allocation18 + %s2580_s20]] }
 0x25f   : >> { %v2457_v0 = vmul.f32 %v2452_v9, %v2448_v60  ;;  %v2458_v2 = vmul.f32 %v2452_v9, %v2449_v34  ;;  %v2459_v25 = vmul.f32 %v2452_v9, %v2450_v5  ;;  %v2460_v45 = vmul.f32 %v2452_v9, %v2451_v10  ;;  %v2500_v62 = vld [vmem:[%s7463_s18 + $0x13] sm:$0xff]  ;;  %v2501_v8 = vld [vmem:[%s7463_s18 + $0x1b] sm:$0xff]  ;;  %v2502_v59 = vld [vmem:[%s7463_s18 + $0x23] sm:$0xff] }
 0x260   : >> { %v2461_v49 = vadd.f32 %v2453_v52, %v2434_v30  ;;  %v2462_v50 = vadd.f32 %v2454_v61, %v2435_v54  ;;  %v2463_v38 = vadd.f32 %v2455_v35, %v2436_v18  ;;  %v2464_v36 = vadd.f32 %v2456_v23, %v2437_v14  ;;  %v2503_v26 = vld [vmem:[%s7463_s18 + $0x2b] sm:$0xff]  ;;  %v2504_v12 = vld [vmem:[%s7463_s18 + $0x33] sm:$0xff]  ;;  %v2505_v47 = vld [vmem:[%s7463_s18 + $0x3b] sm:$0xff] }
 0x261   : >> { %v2465_v51 = vadd.f32 %v2457_v0, %v2438_v33  ;;  %v2466_v31 = vadd.f32 %v2458_v2, %v2439_v21  ;;  %v2467_v22 = vadd.f32 %v2459_v25, %v2440_v32  ;;  %v2468_v24 = vadd.f32 %v2460_v45, %v2441_v57  ;;  %v2525_v21 = vld [vmem:[%s7463_s18 + $0x4] sm:$0xff]  ;;  %v2526_v34 = vld [vmem:[%s7463_s18 + $0xc] sm:$0xff]  ;;  %v2527_v9 = vld [vmem:[%s7463_s18 + $0x14] sm:$0xff] }
 0x262   : >> { %v2480_v56 = vmul.f32 %v2479_v1, %v2471_v41  ;;  %v2481_v46 = vmul.f32 %v2479_v1, %v2472_v16  ;;  %v2482_v29 = vmul.f32 %v2479_v1, %v2473_v15  ;;  %v2483_v40 = vmul.f32 %v2479_v1, %v2474_v27  ;;  %v2529_v52 = vld [vmem:[%s7463_s18 + $0x24] sm:$0xff]  ;;  %v2530_v16 = vld [vmem:[%s7463_s18 + $0x2c] sm:$0xff]  ;;  %v2531_v0 = vld [vmem:[%s7463_s18 + $0x34] sm:$0xff] }
 0x263   : >> { %v2484_v63 = vmul.f32 %v2479_v1, %v2475_v55  ;;  %v2485_v39 = vmul.f32 %v2479_v1, %v2476_v7  ;;  %v2486_v58 = vmul.f32 %v2479_v1, %v2477_v42  ;;  %v2487_v48 = vmul.f32 %v2479_v1, %v2478_v44  ;;  %v2528_v1 = vld [vmem:[%s7463_s18 + $0x1c] sm:$0xff]  ;;  %v4614_v7 = vld [vmem:[%s7463_s18 + $0x50] sm:$0xff] }
 0x264   : >> { %v2488_v20 = vadd.f32 %v2480_v56, %v2461_v49  ;;  %v2489_v3 = vadd.f32 %v2481_v46, %v2462_v50  ;;  %v2490_v17 = vadd.f32 %v2482_v29, %v2463_v38  ;;  %v2491_v6 = vadd.f32 %v2483_v40, %v2464_v36  ;;  %v2532_v2 = vld [vmem:[%s7463_s18 + $0x3c] sm:$0xff]  ;;  %v4613_v36 = vld [vmem:[%s7463_s18 + $0x48] sm:$0xff] }
 0x265   : >> { %v2492_v19 = vadd.f32 %v2484_v63, %v2465_v51  ;;  %v2493_v11 = vadd.f32 %v2485_v39, %v2466_v31  ;;  %v2494_v13 = vadd.f32 %v2486_v58, %v2467_v22  ;;  %v2495_v30 = vadd.f32 %v2487_v48, %v2468_v24  ;;  %v4615_v22 = vld [vmem:[%s7463_s18 + $0x58] sm:$0xff]  ;;  %v4616_v24 = vld [vmem:[%s7463_s18 + $0x60] sm:$0xff]  ;;  %v4617_v56 = vld [vmem:[%s7463_s18 + $0x68] sm:$0xff] }
 0x266   : >> { %v2506_v54 = vstv %s7487_s21  ;;  %v2533_v28 = vstv %s7491_s4  ;;  %v7516_v53 = vstv %s7496_s27  ;;  %s2661_s21 = sadd.s32 20, %s7479_s25  ;;  %s7531_s4 = sld [smem:[#allocation18 + %s2607_s2]]  ;;  %v4618_v39 = vld [vmem:[%s7463_s18 + $0x70] sm:$0xff] }
 0x267   : >> { %v2507_v60 = vmul.f32 %v2506_v54, %v2498_v43  ;;  %v2508_v18 = vmul.f32 %v2506_v54, %v2499_v37  ;;  %v2509_v14 = vmul.f32 %v2506_v54, %v2500_v62  ;;  %v2510_v33 = vmul.f32 %v2506_v54, %v2501_v8  ;;  %s7533_s27 = sld [smem:[#allocation18 + %s2634_s0]]  ;;  %v4619_v58 = vld [vmem:[%s7463_s18 + $0x78] sm:$0xff]  ;;  %v4620_v48 = vld [vmem:[%s7463_s18 + $0x80] sm:$0xff] }
 0x268   : >> { %v2511_v5 = vmul.f32 %v2506_v54, %v2502_v59  ;;  %v2512_v10 = vmul.f32 %v2506_v54, %v2503_v26  ;;  %v2513_v32 = vmul.f32 %v2506_v54, %v2504_v12  ;;  %v2514_v57 = vmul.f32 %v2506_v54, %v2505_v47  ;;  %s7537_s25 = sld [smem:[#allocation18 + %s2661_s21]]  ;;  %v4621_v26 = vld [vmem:[%s7463_s18 + $0x49] sm:$0xff]  ;;  %v4622_v12 = vld [vmem:[%s7463_s18 + $0x51] sm:$0xff] }
 0x269   : >> { %v2515_v61 = vadd.f32 %v2507_v60, %v2488_v20  ;;  %v2516_v35 = vadd.f32 %v2508_v18, %v2489_v3  ;;  %v2517_v23 = vadd.f32 %v2509_v14, %v2490_v17  ;;  %v2518_v41 = vadd.f32 %v2510_v33, %v2491_v6  ;;  %v4623_v60 = vld [vmem:[%s7463_s18 + $0x59] sm:$0xff]  ;;  %v4624_v18 = vld [vmem:[%s7463_s18 + $0x61] sm:$0xff]  ;;  %v4625_v14 = vld [vmem:[%s7463_s18 + $0x69] sm:$0xff] }
 0x26a   : >> { %v2519_v25 = vadd.f32 %v2511_v5, %v2492_v19  ;;  %v2520_v45 = vadd.f32 %v2512_v10, %v2493_v11  ;;  %v2521_v15 = vadd.f32 %v2513_v32, %v2494_v13  ;;  %v2522_v27 = vadd.f32 %v2514_v57, %v2495_v30  ;;  %v4626_v5 = vld [vmem:[%s7463_s18 + $0x71] sm:$0xff]  ;;  %v4627_v10 = vld [vmem:[%s7463_s18 + $0x79] sm:$0xff]  ;;  %v4628_v32 = vld [vmem:[%s7463_s18 + $0x81] sm:$0xff] }
 0x26b   : >> { %v2534_v55 = vmul.f32 %v2533_v28, %v2525_v21  ;;  %v2535_v49 = vmul.f32 %v2533_v28, %v2526_v34  ;;  %v2536_v50 = vmul.f32 %v2533_v28, %v2527_v9  ;;  %v2537_v38 = vmul.f32 %v2533_v28, %v2528_v1 }
 0x26c   : >> { %v2538_v42 = vmul.f32 %v2533_v28, %v2529_v52  ;;  %v2539_v44 = vmul.f32 %v2533_v28, %v2530_v16  ;;  %v2540_v51 = vmul.f32 %v2533_v28, %v2531_v0  ;;  %v2541_v31 = vmul.f32 %v2533_v28, %v2532_v2  ;;  %v4629_v16 = vld [vmem:[%s7463_s18 + $0x4a] sm:$0xff]  ;;  %v4630_v0 = vld [vmem:[%s7463_s18 + $0x52] sm:$0xff] }
 0x26d   : >> { %v2542_v46 = vadd.f32 %v2534_v55, %v2515_v61  ;;  %v2543_v29 = vadd.f32 %v2535_v49, %v2516_v35  ;;  %v2544_v40 = vadd.f32 %v2536_v50, %v2517_v23  ;;  %v2545_v63 = vadd.f32 %v2537_v38, %v2518_v41  ;;  %v4632_v55 = vld [vmem:[%s7463_s18 + $0x62] sm:$0xff]  ;;  %v4633_v49 = vld [vmem:[%s7463_s18 + $0x6a] sm:$0xff] }
 0x26e   : >> { %v2546_v43 = vadd.f32 %v2538_v42, %v2519_v25  ;;  %v2547_v37 = vadd.f32 %v2539_v44, %v2520_v45  ;;  %v2548_v20 = vadd.f32 %v2540_v51, %v2521_v15  ;;  %v2549_v3 = vadd.f32 %v2541_v31, %v2522_v27  ;;  %v4631_v27 = vld [vmem:[%s7463_s18 + $0x5a] sm:$0xff]  ;;  %v4634_v42 = vld [vmem:[%s7463_s18 + $0x72] sm:$0xff]  ;;  %v4636_v51 = vld [vmem:[%s7463_s18 + $0x82] sm:$0xff] }
 0x26f   : >> { %v2564_v17 = vmul.f32 %v4613_v36, %v7516_v53  ;;  %v2565_v62 = vmul.f32 %v4614_v7, %v7516_v53  ;;  %v2566_v8 = vmul.f32 %v4615_v22, %v7516_v53  ;;  %v2567_v59 = vmul.f32 %v4616_v24, %v7516_v53  ;;  %v4635_v44 = vld [vmem:[%s7463_s18 + $0x7a] sm:$0xff] }
 0x270   : >> { %v2568_v6 = vmul.f32 %v4617_v56, %v7516_v53  ;;  %v2569_v19 = vmul.f32 %v4618_v39, %v7516_v53  ;;  %v2570_v11 = vmul.f32 %v4619_v58, %v7516_v53  ;;  %v2571_v13 = vmul.f32 %v4620_v48, %v7516_v53  ;;  %v4637_v39 = vld [vmem:[%s7463_s18 + $0x4b] sm:$0xff]  ;;  %v4638_v58 = vld [vmem:[%s7463_s18 + $0x53] sm:$0xff] }
 0x271   : >> { %v2572_v47 = vadd.f32 %v2564_v17, %v2542_v46  ;;  %v2573_v30 = vadd.f32 %v2565_v62, %v2543_v29  ;;  %v2574_v54 = vadd.f32 %v2566_v8, %v2544_v40  ;;  %v2575_v28 = vadd.f32 %v2567_v59, %v2545_v63  ;;  %v4640_v17 = vld [vmem:[%s7463_s18 + $0x63] sm:$0xff]  ;;  %v4641_v62 = vld [vmem:[%s7463_s18 + $0x6b] sm:$0xff] }
 0x272   : >> { %v2576_v33 = vadd.f32 %v2568_v6, %v2546_v43  ;;  %v2577_v21 = vadd.f32 %v2569_v19, %v2547_v37  ;;  %v2578_v34 = vadd.f32 %v2570_v11, %v2548_v20  ;;  %v2579_v53 = vadd.f32 %v2571_v13, %v2549_v3  ;;  %v4639_v3 = vld [vmem:[%s7463_s18 + $0x5b] sm:$0xff]  ;;  %v4642_v11 = vld [vmem:[%s7463_s18 + $0x73] sm:$0xff] }
 0x273   : >> { %v2590_v57 = vstv %s7525_s12  ;;  %v2617_v9 = vstv %s7531_s4  ;;  %v2644_v1 = vstv %s7533_s27  ;;  %v7565_v52 = vstv %s7537_s25 }
 0x274   : >> { %v2591_v61 = vmul.f32 %v4621_v26, %v2590_v57  ;;  %v2592_v35 = vmul.f32 %v4622_v12, %v2590_v57  ;;  %v2593_v23 = vmul.f32 %v4623_v60, %v2590_v57  ;;  %v2594_v41 = vmul.f32 %v4624_v18, %v2590_v57  ;;  %v4643_v13 = vld [vmem:[%s7463_s18 + $0x7b] sm:$0xff]  ;;  %v4644_v26 = vld [vmem:[%s7463_s18 + $0x83] sm:$0xff] }
 0x275   : >> { %v2595_v2 = vmul.f32 %v4625_v14, %v2590_v57  ;;  %v2596_v25 = vmul.f32 %v4626_v5, %v2590_v57  ;;  %v2597_v45 = vmul.f32 %v4627_v10, %v2590_v57  ;;  %v2598_v15 = vmul.f32 %v4628_v32, %v2590_v57  ;;  %v4647_v32 = vld [vmem:[%s7463_s18 + $0x5c] sm:$0xff]  ;;  %v4648_v57 = vld [vmem:[%s7463_s18 + $0x64] sm:$0xff] }
 0x276   : >> { %v2599_v50 = vadd.f32 %v2591_v61, %v2572_v47  ;;  %v2600_v38 = vadd.f32 %v2592_v35, %v2573_v30  ;;  %v2601_v36 = vadd.f32 %v2593_v23, %v2574_v54  ;;  %v2602_v7 = vadd.f32 %v2594_v41, %v2575_v28 }
 0x277   : >> { %v2603_v31 = vadd.f32 %v2595_v2, %v2576_v33  ;;  %v2604_v22 = vadd.f32 %v2596_v25, %v2577_v21  ;;  %v2605_v24 = vadd.f32 %v2597_v45, %v2578_v34  ;;  %v2606_v56 = vadd.f32 %v2598_v15, %v2579_v53  ;;  %v4645_v33 = vld [vmem:[%s7463_s18 + $0x4c] sm:$0xff]  ;;  %v4646_v21 = vld [vmem:[%s7463_s18 + $0x54] sm:$0xff]  ;;  %v4652_v2 = vld [vmem:[%s7463_s18 + $0x84] sm:$0xff] }
 0x278   : >> { %v2618_v46 = vmul.f32 %v4629_v16, %v2617_v9  ;;  %v2619_v29 = vmul.f32 %v4630_v0, %v2617_v9  ;;  %v2620_v40 = vmul.f32 %v4631_v27, %v2617_v9  ;;  %v2621_v63 = vmul.f32 %v4632_v55, %v2617_v9  ;;  %v4650_v16 = vld [vmem:[%s7463_s18 + $0x74] sm:$0xff]  ;;  %v4651_v0 = vld [vmem:[%s7463_s18 + $0x7c] sm:$0xff] }
 0x279   : >> { %v2622_v48 = vmul.f32 %v4633_v49, %v2617_v9  ;;  %v2623_v43 = vmul.f32 %v4634_v42, %v2617_v9  ;;  %v2624_v37 = vmul.f32 %v4635_v44, %v2617_v9  ;;  %v2625_v20 = vmul.f32 %v4636_v51, %v2617_v9  ;;  %v4649_v9 = vld [vmem:[%s7463_s18 + $0x6c] sm:$0xff] }
 0x27a   : >> { %v2626_v8 = vadd.f32 %v2618_v46, %v2599_v50  ;;  %v2627_v59 = vadd.f32 %v2619_v29, %v2600_v38  ;;  %v2628_v6 = vadd.f32 %v2620_v40, %v2601_v36  ;;  %v2629_v19 = vadd.f32 %v2621_v63, %v2602_v7 }
 0x27b   : >> { %v2630_v12 = vadd.f32 %v2622_v48, %v2603_v31  ;;  %v2631_v47 = vadd.f32 %v2623_v43, %v2604_v22  ;;  %v2632_v30 = vadd.f32 %v2624_v37, %v2605_v24  ;;  %v2633_v54 = vadd.f32 %v2625_v20, %v2606_v56 }
 0x27c   : >> { %v2645_v28 = vmul.f32 %v4637_v39, %v2644_v1  ;;  %v2646_v60 = vmul.f32 %v4638_v58, %v2644_v1  ;;  %v2647_v18 = vmul.f32 %v4639_v3, %v2644_v1  ;;  %v2648_v14 = vmul.f32 %v4640_v17, %v2644_v1 }
 0x27d   : >> { %v2649_v34 = vmul.f32 %v4641_v62, %v2644_v1  ;;  %v2650_v53 = vmul.f32 %v4642_v11, %v2644_v1  ;;  %v2651_v5 = vmul.f32 %v4643_v13, %v2644_v1  ;;  %v2652_v10 = vmul.f32 %v4644_v26, %v2644_v1 }
 0x27e   : >> { %v2653_v61 = vadd.f32 %v2645_v28, %v2626_v8  ;;  %v2654_v35 = vadd.f32 %v2646_v60, %v2627_v59  ;;  %v2655_v23 = vadd.f32 %v2647_v18, %v2628_v6  ;;  %v2656_v41 = vadd.f32 %v2648_v14, %v2629_v19 }
 0x27f   : >> { %v2657_v25 = vadd.f32 %v2649_v34, %v2630_v12  ;;  %v2658_v45 = vadd.f32 %v2650_v53, %v2631_v47  ;;  %v2659_v15 = vadd.f32 %v2651_v5, %v2632_v30  ;;  %v2660_v27 = vadd.f32 %v2652_v10, %v2633_v54 }
 0x280   : >> { %v2672_v55 = vmul.f32 %v4645_v33, %v7565_v52  ;;  %v2673_v49 = vmul.f32 %v4646_v21, %v7565_v52  ;;  %v2674_v1 = vmul.f32 %v4647_v32, %v7565_v52  ;;  %v2675_v50 = vmul.f32 %v4648_v57, %v7565_v52 }
 0x281   : >> { %v2676_v38 = vmul.f32 %v4649_v9, %v7565_v52  ;;  %v2677_v36 = vmul.f32 %v4650_v16, %v7565_v52  ;;  %v2678_v7 = vmul.f32 %v4651_v0, %v7565_v52  ;;  %v2679_v42 = vmul.f32 %v4652_v2, %v7565_v52  ;;  %2402 = sbr.rel (!%p2400_p0) target bundleno = 592 (0x250), region = 222 }
 0x282   : >> { %v2680_v44 = vadd.f32 %v2672_v55, %v2653_v61   ;;  %v2681_v63 = vadd.f32 %v2673_v49, %v2654_v35   ;;  %v2682_v39 = vadd.f32 %v2674_v1, %v2655_v23   ;;  %v2683_v58 = vadd.f32 %v2675_v50, %v2656_v41  }
 0x283   : >> { %v2684_v48 = vadd.f32 %v2676_v38, %v2657_v25   ;;  %v2685_v43 = vadd.f32 %v2677_v36, %v2658_v45   ;;  %v2686_v37 = vadd.f32 %v2678_v7, %v2659_v15   ;;  %v2687_v20 = vadd.f32 %v2679_v42, %v2660_v27  }
 0x284   : >> { %v8798_v56 = vmov %v2683_v58  ;;  %v8799_v46 = vmov %v2682_v39  ;;  %v8800_v29 = vmov %v2681_v63  ;;  %v8801_v40 = vmov %v2680_v44  ;;  %2692 = vrot.lane.b32.xlu1 (%p2400_p0), %v2682_v39, %s6047_s28  ;;  %2688 = vrot.lane.b32.xlu0 (%p2400_p0), %v2680_v44, %s6047_s28 }
 0x285   : >> { %v8794_v51 = vmov %v2687_v20  ;;  %v8795_v31 = vmov %v2686_v37  ;;  %v8796_v22 = vmov %v2685_v43  ;;  %v8797_v24 = vmov %v2684_v48  ;;  %2696 = vrot.lane.b32.xlu2 (%p2400_p0), %v2684_v48, %s6047_s28 }
 0x286   : > { %v7658_v11 = vmov 0.0   ;;  %v7660_v13 = vmov 0.0   ;;  %v7662_v26 = vmov 0.0   ;;  %v7664_v12 = vmov 0.0  }
 0x287   : > { %v7666_v47 = vmov 0.0   ;;  %v7668_v30 = vmov 0.0   ;;  %v7670_v54 = vmov 0.0   ;;  %v7672_v28 = vmov 0.0  }
 0x28c   : > { %2694 = vrot.lane.b32.xlu1 %v2683_v58, %s6047_s28  ;;  %2690 = vrot.lane.b32.xlu0 %v2681_v63, %s6047_s28 }
 0x28d   : > { %2698 = vrot.lane.b32.xlu2 %v2685_v43, %s6047_s28 }
 0x294   : > { %2702 = vrot.lane.b32.xlu1 %v2687_v20, %s6047_s28  ;;  %2700 = vrot.lane.b32.xlu0 %v2686_v37, %s6047_s28  ;;  %s7674_s28 = smov 0  }
 0x2df   : > { %v2697_v52 = vpop.permute.xlu2 %2696 }
 0x2e0   : > { %v7628_v40 = vsel %vm1535_vm12, %v2697_v52, 0.0 }
 0x2e7   : > { %v2699_v51 = vpop.permute.xlu2 %2698 }
 0x2e8   : > { %v7632_v31 = vsel %vm1535_vm12, %v2699_v51, 0.0 }
 0x2f6   : > { %v2693_v22 = vpop.permute.xlu1 %2692  ;;  %v2689_v24 = vpop.permute.xlu0 %2688 }
 0x2f7   : > { %v7636_v56 = vsel %vm1535_vm12, %v2693_v22, 0.0  ;;  %v7640_v46 = vsel %vm1535_vm12, %v2689_v24, 0.0 }
 0x2fe   : > { %v2695_v29 = vpop.permute.xlu1 %2694  ;;  %v2691_v3 = vpop.permute.xlu0 %2690 }
 0x2ff   : > { %v7644_v17 = vsel %vm1535_vm12, %v2695_v29, 0.0  ;;  %v7648_v62 = vsel %vm1535_vm12, %v2691_v3, 0.0 }
 0x306   : > { %v2703_v8 = vpop.permute.xlu1 %2702  ;;  %v2701_v59 = vpop.permute.xlu0 %2700 }
 0x307   : > { %v7652_v6 = vsel %vm1535_vm12, %v2703_v8, 0.0  ;;  %v7656_v19 = vsel %vm1535_vm12, %v2701_v59, 0.0 }
 0x308 LB: >> { %s7688_s26 = smul.u32 50, %s5925_s28  ;;  %s4653_s18 = sshll.u32 %s5925_s28, 1  ;;  %s5925_s28 = sphi %s7674_s28, %s2725_s28   ;;  %v5921_v28 = vphi %v7672_v28, %v8809_v28   ;;  %v5917_v54 = vphi %v7670_v54, %v8808_v54   ;;  %v5913_v30 = vphi %v7668_v30, %v8807_v30   ;;  %v5909_v47 = vphi %v7666_v47, %v8806_v47   ;;  %v5905_v12 = vphi %v7664_v12, %v8805_v12   ;;  %v5901_v26 = vphi %v7662_v26, %v8804_v26   ;;  %v5897_v13 = vphi %v7660_v13, %v8803_v13   ;;  %v5893_v11 = vphi %v7658_v11, %v8802_v11  }
 0x309   : >> { %s4654_s20 = smul.u32 144, %s5925_s28  ;;  %s2873_s4 = sadd.s32 1, %s4653_s18 }
 0x30a   : >> { %s2736_s2 = sadd.s32 1, %s7688_s26  ;;  %s2765_s0 = sadd.s32 6, %s7688_s26 }
 0x30b   : >> { %s2737_s12 = sld [smem:[#allocation18 + %s2736_s2]]  ;;  %s2792_s21 = sadd.s32 11, %s7688_s26 }
 0x30c   : >> { %s7695_s27 = sld [smem:[#allocation18 + %s2765_s0]]  ;;  %s7697_s25 = scalar_lea.vmem [#allocation3], %s4654_s20 }
 0x30d   : >> { %v2740_v60 = vld [vmem:[%s7697_s25] sm:$0xff]  ;;  %v2741_v18 = vld [vmem:[%s7697_s25 + $0x8] sm:$0xff]  ;;  %s7701_s11 = sld [smem:[#allocation18 + %s2792_s21]]  ;;  %v2742_v14 = vld [vmem:[%s7697_s25 + $0x10] sm:$0xff]  ;;  %s7706_s18 = smul.u32 25, %s2873_s4 }
 0x30e   : >> { %v2743_v33 = vld [vmem:[%s7697_s25 + $0x18] sm:$0xff]  ;;  %v2744_v21 = vld [vmem:[%s7697_s25 + $0x20] sm:$0xff]  ;;  %v2745_v34 = vld [vmem:[%s7697_s25 + $0x28] sm:$0xff]  ;;  %s2819_s20 = sadd.s32 16, %s7688_s26  ;;  %s2846_s2 = sadd.s32 21, %s7688_s26 }
 0x30f   : >> { %v2746_v53 = vld [vmem:[%s7697_s25 + $0x30] sm:$0xff]  ;;  %v2747_v5 = vld [vmem:[%s7697_s25 + $0x38] sm:$0xff]  ;;  %v2767_v0 = vld [vmem:[%s7697_s25 + $0x1] sm:$0xff]  ;;  %s2875_s0 = sadd.s32 1, %s7706_s18  ;;  %s2904_s26 = sadd.s32 6, %s7706_s18 }
 0x310   : >> { %v2768_v2 = vld [vmem:[%s7697_s25 + $0x9] sm:$0xff]  ;;  %v2769_v15 = vld [vmem:[%s7697_s25 + $0x11] sm:$0xff]  ;;  %v2770_v27 = vld [vmem:[%s7697_s25 + $0x19] sm:$0xff]  ;;  %s7725_s21 = sld [smem:[#allocation18 + %s2846_s2]]  ;;  %s2985_s2 = sadd.s32 21, %s7706_s18 }
 0x311   : >> { %v2748_v10 = vstv %s2737_s12  ;;  %v2771_v55 = vld [vmem:[%s7697_s25 + $0x21] sm:$0xff]  ;;  %s7719_s12 = sld [smem:[#allocation18 + %s2819_s20]]  ;;  %v2772_v36 = vld [vmem:[%s7697_s25 + $0x29] sm:$0xff]  ;;  %v2773_v7 = vld [vmem:[%s7697_s25 + $0x31] sm:$0xff]  ;;  %s2725_s28 = sadd.s32 1, %s5925_s28  }
 0x312   : >> { %v2749_v32 = vmul.f32 %v2748_v10, %v2740_v60  ;;  %v2750_v57 = vmul.f32 %v2748_v10, %v2741_v18  ;;  %v2751_v9 = vmul.f32 %v2748_v10, %v2742_v14  ;;  %v2752_v61 = vmul.f32 %v2748_v10, %v2743_v33  ;;  %v2774_v42 = vld [vmem:[%s7697_s25 + $0x39] sm:$0xff]  ;;  %s7729_s4 = sld [smem:[#allocation18 + %s2875_s0]]  ;;  %v2794_v52 = vld [vmem:[%s7697_s25 + $0x2] sm:$0xff]  ;;  %v2795_v51 = vld [vmem:[%s7697_s25 + $0xa] sm:$0xff]  ;;  %p2722_p1 = scmp.ge.s32.totalorder %s2725_s28, 10  }
 0x313   : >> { %v2753_v35 = vmul.f32 %v2748_v10, %v2744_v21  ;;  %v2754_v23 = vmul.f32 %v2748_v10, %v2745_v34  ;;  %v2755_v41 = vmul.f32 %v2748_v10, %v2746_v53  ;;  %v2756_v16 = vmul.f32 %v2748_v10, %v2747_v5  ;;  %s7733_s20 = sld [smem:[#allocation18 + %s2904_s26]]  ;;  %v2796_v8 = vld [vmem:[%s7697_s25 + $0x12] sm:$0xff]  ;;  %v2797_v59 = vld [vmem:[%s7697_s25 + $0x1a] sm:$0xff] }
 0x314   : >> { %v2757_v25 = vadd.f32 %v5921_v28, %v2749_v32  ;;  %v2758_v45 = vadd.f32 %v5917_v54, %v2750_v57  ;;  %v2759_v49 = vadd.f32 %v5913_v30, %v2751_v9  ;;  %v2760_v1 = vadd.f32 %v5909_v47, %v2752_v61  ;;  %v2799_v30 = vld [vmem:[%s7697_s25 + $0x2a] sm:$0xff]  ;;  %v2800_v54 = vld [vmem:[%s7697_s25 + $0x32] sm:$0xff]  ;;  %v2801_v28 = vld [vmem:[%s7697_s25 + $0x3a] sm:$0xff] }
 0x315   : >> { %v2761_v50 = vadd.f32 %v5905_v12, %v2753_v35  ;;  %v2762_v38 = vadd.f32 %v5901_v26, %v2754_v23  ;;  %v2763_v44 = vadd.f32 %v5897_v13, %v2755_v41  ;;  %v2764_v63 = vadd.f32 %v5893_v11, %v2756_v16  ;;  %v2798_v11 = vld [vmem:[%s7697_s25 + $0x22] sm:$0xff]  ;;  %v2822_v35 = vld [vmem:[%s7697_s25 + $0xb] sm:$0xff] }
 0x316   : >> { %v2775_v39 = vstv %s7695_s27  ;;  %v2802_v58 = vstv %s7701_s11  ;;  %v2821_v61 = vld [vmem:[%s7697_s25 + $0x3] sm:$0xff]  ;;  %s2931_s11 = sadd.s32 11, %s7706_s18  ;;  %s2958_s27 = sadd.s32 16, %s7706_s18 }
 0x317   : >> { %v2776_v48 = vmul.f32 %v2775_v39, %v2767_v0  ;;  %v2777_v43 = vmul.f32 %v2775_v39, %v2768_v2  ;;  %v2778_v37 = vmul.f32 %v2775_v39, %v2769_v15  ;;  %v2779_v20 = vmul.f32 %v2775_v39, %v2770_v27  ;;  %v2823_v2 = vld [vmem:[%s7697_s25 + $0x13] sm:$0xff]  ;;  %s7776_s0 = sld [smem:[#allocation18 + %s2931_s11]] }
 0x318   : >> { %v2780_v22 = vmul.f32 %v2775_v39, %v2771_v55  ;;  %v2781_v24 = vmul.f32 %v2775_v39, %v2772_v36  ;;  %v2782_v29 = vmul.f32 %v2775_v39, %v2773_v7  ;;  %v2783_v3 = vmul.f32 %v2775_v39, %v2774_v42  ;;  %s7786_s18 = sld [smem:[#allocation18 + %s2985_s2]] }
 0x319   : >> { %v2784_v13 = vadd.f32 %v2776_v48, %v2757_v25  ;;  %v2785_v26 = vadd.f32 %v2777_v43, %v2758_v45  ;;  %v2786_v12 = vadd.f32 %v2778_v37, %v2759_v49  ;;  %v2787_v47 = vadd.f32 %v2779_v20, %v2760_v1  ;;  %v2824_v25 = vld [vmem:[%s7697_s25 + $0x1b] sm:$0xff]  ;;  %v2825_v45 = vld [vmem:[%s7697_s25 + $0x23] sm:$0xff]  ;;  %v2826_v1 = vld [vmem:[%s7697_s25 + $0x2b] sm:$0xff] }
 0x31a   : >> { %v2788_v60 = vadd.f32 %v2780_v22, %v2761_v50  ;;  %v2789_v18 = vadd.f32 %v2781_v24, %v2762_v38  ;;  %v2790_v14 = vadd.f32 %v2782_v29, %v2763_v44  ;;  %v2791_v33 = vadd.f32 %v2783_v3, %v2764_v63  ;;  %v2827_v50 = vld [vmem:[%s7697_s25 + $0x33] sm:$0xff]  ;;  %v2828_v38 = vld [vmem:[%s7697_s25 + $0x3b] sm:$0xff]  ;;  %v2848_v43 = vld [vmem:[%s7697_s25 + $0x4] sm:$0xff] }
 0x31b   : >> { %v2803_v21 = vmul.f32 %v2802_v58, %v2794_v52  ;;  %v2804_v34 = vmul.f32 %v2802_v58, %v2795_v51  ;;  %v2805_v53 = vmul.f32 %v2802_v58, %v2796_v8  ;;  %v2806_v5 = vmul.f32 %v2802_v58, %v2797_v59  ;;  %v2849_v37 = vld [vmem:[%s7697_s25 + $0xc] sm:$0xff]  ;;  %v2850_v24 = vld [vmem:[%s7697_s25 + $0x14] sm:$0xff]  ;;  %v2851_v29 = vld [vmem:[%s7697_s25 + $0x1c] sm:$0xff] }
 0x31c   : >> { %v2807_v10 = vmul.f32 %v2802_v58, %v2798_v11  ;;  %v2808_v32 = vmul.f32 %v2802_v58, %v2799_v30  ;;  %v2809_v57 = vmul.f32 %v2802_v58, %v2800_v54  ;;  %v2810_v9 = vmul.f32 %v2802_v58, %v2801_v28  ;;  %v2852_v3 = vld [vmem:[%s7697_s25 + $0x24] sm:$0xff] }
 0x31d   : >> { %v2811_v23 = vadd.f32 %v2803_v21, %v2784_v13  ;;  %v2812_v41 = vadd.f32 %v2804_v34, %v2785_v26  ;;  %v2813_v16 = vadd.f32 %v2805_v53, %v2786_v12  ;;  %v2814_v0 = vadd.f32 %v2806_v5, %v2787_v47  ;;  %v2853_v26 = vld [vmem:[%s7697_s25 + $0x2c] sm:$0xff]  ;;  %v2854_v12 = vld [vmem:[%s7697_s25 + $0x34] sm:$0xff]  ;;  %v2855_v47 = vld [vmem:[%s7697_s25 + $0x3c] sm:$0xff] }
 0x31e   : >> { %v2815_v15 = vadd.f32 %v2807_v10, %v2788_v60  ;;  %v2816_v27 = vadd.f32 %v2808_v32, %v2789_v18  ;;  %v2817_v55 = vadd.f32 %v2809_v57, %v2790_v14  ;;  %v2818_v49 = vadd.f32 %v2810_v9, %v2791_v33  ;;  %v4657_v34 = vld [vmem:[%s7697_s25 + $0x48] sm:$0xff]  ;;  %v4658_v53 = vld [vmem:[%s7697_s25 + $0x50] sm:$0xff]  ;;  %v4659_v9 = vld [vmem:[%s7697_s25 + $0x58] sm:$0xff] }
 0x31f   : >> { %v2829_v36 = vstv %s7719_s12  ;;  %v2856_v7 = vstv %s7725_s21  ;;  %v7752_v42 = vstv %s7729_s4  ;;  %v7755_v44 = vstv %s7733_s20  ;;  %s7778_s12 = sld [smem:[#allocation18 + %s2958_s27]] }
 0x320   : >> { %v2830_v63 = vmul.f32 %v2829_v36, %v2821_v61  ;;  %v2831_v39 = vmul.f32 %v2829_v36, %v2822_v35  ;;  %v2832_v58 = vmul.f32 %v2829_v36, %v2823_v2  ;;  %v2833_v48 = vmul.f32 %v2829_v36, %v2824_v25  ;;  %v4660_v61 = vld [vmem:[%s7697_s25 + $0x60] sm:$0xff]  ;;  %v4661_v35 = vld [vmem:[%s7697_s25 + $0x68] sm:$0xff]  ;;  %v4662_v2 = vld [vmem:[%s7697_s25 + $0x70] sm:$0xff] }
 0x321   : >> { %v2834_v20 = vmul.f32 %v2829_v36, %v2825_v45  ;;  %v2835_v52 = vmul.f32 %v2829_v36, %v2826_v1  ;;  %v2836_v51 = vmul.f32 %v2829_v36, %v2827_v50  ;;  %v2837_v22 = vmul.f32 %v2829_v36, %v2828_v38  ;;  %v4663_v25 = vld [vmem:[%s7697_s25 + $0x78] sm:$0xff]  ;;  %v4664_v45 = vld [vmem:[%s7697_s25 + $0x80] sm:$0xff] }
 0x322   : >> { %v2838_v8 = vadd.f32 %v2830_v63, %v2811_v23  ;;  %v2839_v59 = vadd.f32 %v2831_v39, %v2812_v41  ;;  %v2840_v11 = vadd.f32 %v2832_v58, %v2813_v16  ;;  %v2841_v13 = vadd.f32 %v2833_v48, %v2814_v0  ;;  %v4666_v63 = vld [vmem:[%s7697_s25 + $0x51] sm:$0xff] }
 0x323   : >> { %v2842_v30 = vadd.f32 %v2834_v20, %v2815_v15  ;;  %v2843_v54 = vadd.f32 %v2835_v52, %v2816_v27  ;;  %v2844_v28 = vadd.f32 %v2836_v51, %v2817_v55  ;;  %v2845_v60 = vadd.f32 %v2837_v22, %v2818_v49  ;;  %v4668_v20 = vld [vmem:[%s7697_s25 + $0x61] sm:$0xff]  ;;  %v4669_v52 = vld [vmem:[%s7697_s25 + $0x69] sm:$0xff] }
 0x324   : >> { %v2857_v18 = vmul.f32 %v2856_v7, %v2848_v43  ;;  %v2858_v14 = vmul.f32 %v2856_v7, %v2849_v37  ;;  %v2859_v33 = vmul.f32 %v2856_v7, %v2850_v24  ;;  %v2860_v21 = vmul.f32 %v2856_v7, %v2851_v29  ;;  %v4667_v37 = vld [vmem:[%s7697_s25 + $0x59] sm:$0xff] }
 0x325   : >> { %v2861_v5 = vmul.f32 %v2856_v7, %v2852_v3  ;;  %v2862_v10 = vmul.f32 %v2856_v7, %v2853_v26  ;;  %v2863_v32 = vmul.f32 %v2856_v7, %v2854_v12  ;;  %v2864_v57 = vmul.f32 %v2856_v7, %v2855_v47  ;;  %v4665_v7 = vld [vmem:[%s7697_s25 + $0x49] sm:$0xff]  ;;  %v4670_v3 = vld [vmem:[%s7697_s25 + $0x71] sm:$0xff] }
 0x326   : >> { %v2865_v23 = vadd.f32 %v2857_v18, %v2838_v8  ;;  %v2866_v41 = vadd.f32 %v2858_v14, %v2839_v59  ;;  %v2867_v16 = vadd.f32 %v2859_v33, %v2840_v11  ;;  %v2868_v0 = vadd.f32 %v2860_v21, %v2841_v13  ;;  %v4671_v8 = vld [vmem:[%s7697_s25 + $0x79] sm:$0xff]  ;;  %v4672_v59 = vld [vmem:[%s7697_s25 + $0x81] sm:$0xff]  ;;  %v4673_v33 = vld [vmem:[%s7697_s25 + $0x4a] sm:$0xff] }
 0x327   : >> { %v2869_v15 = vadd.f32 %v2861_v5, %v2842_v30  ;;  %v2870_v27 = vadd.f32 %v2862_v10, %v2843_v54  ;;  %v2871_v55 = vadd.f32 %v2863_v32, %v2844_v28  ;;  %v2872_v49 = vadd.f32 %v2864_v57, %v2845_v60  ;;  %v4674_v21 = vld [vmem:[%s7697_s25 + $0x52] sm:$0xff]  ;;  %v4675_v10 = vld [vmem:[%s7697_s25 + $0x5a] sm:$0xff]  ;;  %v4676_v32 = vld [vmem:[%s7697_s25 + $0x62] sm:$0xff] }
 0x328   : >> { %v2888_v1 = vmul.f32 %v4657_v34, %v7752_v42  ;;  %v2889_v50 = vmul.f32 %v4658_v53, %v7752_v42  ;;  %v2890_v38 = vmul.f32 %v4659_v9, %v7752_v42  ;;  %v2891_v36 = vmul.f32 %v4660_v61, %v7752_v42  ;;  %v4677_v57 = vld [vmem:[%s7697_s25 + $0x6a] sm:$0xff] }
 0x329   : >> { %v2892_v39 = vmul.f32 %v4661_v35, %v7752_v42  ;;  %v2893_v58 = vmul.f32 %v4662_v2, %v7752_v42  ;;  %v2894_v48 = vmul.f32 %v4663_v25, %v7752_v42  ;;  %v2895_v43 = vmul.f32 %v4664_v45, %v7752_v42 }
 0x32a   : >> { %v2896_v51 = vadd.f32 %v2888_v1, %v2865_v23  ;;  %v2897_v22 = vadd.f32 %v2889_v50, %v2866_v41  ;;  %v2898_v24 = vadd.f32 %v2890_v38, %v2867_v16  ;;  %v2899_v29 = vadd.f32 %v2891_v36, %v2868_v0  ;;  %v4678_v41 = vld [vmem:[%s7697_s25 + $0x72] sm:$0xff]  ;;  %v4679_v16 = vld [vmem:[%s7697_s25 + $0x7a] sm:$0xff] }
 0x32b   : >> { %v2900_v11 = vadd.f32 %v2892_v39, %v2869_v15  ;;  %v2901_v13 = vadd.f32 %v2893_v58, %v2870_v27  ;;  %v2902_v26 = vadd.f32 %v2894_v48, %v2871_v55  ;;  %v2903_v12 = vadd.f32 %v2895_v43, %v2872_v49  ;;  %v4681_v1 = vld [vmem:[%s7697_s25 + $0x4b] sm:$0xff]  ;;  %v4682_v50 = vld [vmem:[%s7697_s25 + $0x53] sm:$0xff]  ;;  %v4683_v39 = vld [vmem:[%s7697_s25 + $0x5b] sm:$0xff] }
 0x32c   : >> { %v2915_v42 = vmul.f32 %v4665_v7, %v7755_v44  ;;  %v2916_v47 = vmul.f32 %v4666_v63, %v7755_v44  ;;  %v2917_v30 = vmul.f32 %v4667_v37, %v7755_v44  ;;  %v2918_v54 = vmul.f32 %v4668_v20, %v7755_v44  ;;  %v4684_v58 = vld [vmem:[%s7697_s25 + $0x63] sm:$0xff]  ;;  %v4685_v48 = vld [vmem:[%s7697_s25 + $0x6b] sm:$0xff] }
 0x32d   : >> { %v2919_v28 = vmul.f32 %v4669_v52, %v7755_v44  ;;  %v2920_v60 = vmul.f32 %v4670_v3, %v7755_v44  ;;  %v2921_v18 = vmul.f32 %v4671_v8, %v7755_v44  ;;  %v2922_v14 = vmul.f32 %v4672_v59, %v7755_v44  ;;  %v4680_v44 = vld [vmem:[%s7697_s25 + $0x82] sm:$0xff] }
 0x32e   : >> { %v2923_v34 = vadd.f32 %v2915_v42, %v2896_v51  ;;  %v2924_v53 = vadd.f32 %v2916_v47, %v2897_v22  ;;  %v2925_v5 = vadd.f32 %v2917_v30, %v2898_v24  ;;  %v2926_v9 = vadd.f32 %v2918_v54, %v2899_v29  ;;  %v4686_v51 = vld [vmem:[%s7697_s25 + $0x73] sm:$0xff]  ;;  %v4687_v22 = vld [vmem:[%s7697_s25 + $0x7b] sm:$0xff]  ;;  %v4688_v24 = vld [vmem:[%s7697_s25 + $0x83] sm:$0xff] }
 0x32f   : >> { %v2927_v61 = vadd.f32 %v2919_v28, %v2900_v11  ;;  %v2928_v35 = vadd.f32 %v2920_v60, %v2901_v13  ;;  %v2929_v23 = vadd.f32 %v2921_v18, %v2902_v26  ;;  %v2930_v0 = vadd.f32 %v2922_v14, %v2903_v12  ;;  %v4689_v42 = vld [vmem:[%s7697_s25 + $0x4c] sm:$0xff]  ;;  %v4690_v47 = vld [vmem:[%s7697_s25 + $0x54] sm:$0xff]  ;;  %v4691_v18 = vld [vmem:[%s7697_s25 + $0x5c] sm:$0xff] }
 0x330   : >> { %v2941_v2 = vstv %s7776_s0  ;;  %v2968_v25 = vstv %s7778_s12  ;;  %v2995_v45 = vstv %s7786_s18  ;;  %v4692_v14 = vld [vmem:[%s7697_s25 + $0x64] sm:$0xff] }
 0x331   : >> { %v2942_v15 = vmul.f32 %v4673_v33, %v2941_v2  ;;  %v2943_v27 = vmul.f32 %v4674_v21, %v2941_v2  ;;  %v2944_v55 = vmul.f32 %v4675_v10, %v2941_v2  ;;  %v2945_v49 = vmul.f32 %v4676_v32, %v2941_v2  ;;  %v4693_v33 = vld [vmem:[%s7697_s25 + $0x6c] sm:$0xff]  ;;  %v4694_v10 = vld [vmem:[%s7697_s25 + $0x74] sm:$0xff]  ;;  %v4695_v32 = vld [vmem:[%s7697_s25 + $0x7c] sm:$0xff] }
 0x332   : >> { %v2946_v38 = vmul.f32 %v4677_v57, %v2941_v2  ;;  %v2947_v36 = vmul.f32 %v4678_v41, %v2941_v2  ;;  %v2948_v7 = vmul.f32 %v4679_v16, %v2941_v2  ;;  %v2949_v63 = vmul.f32 %v4680_v44, %v2941_v2  ;;  %v4696_v57 = vld [vmem:[%s7697_s25 + $0x84] sm:$0xff] }
 0x333   : >> { %v2950_v43 = vadd.f32 %v2942_v15, %v2923_v34  ;;  %v2951_v37 = vadd.f32 %v2943_v27, %v2924_v53  ;;  %v2952_v20 = vadd.f32 %v2944_v55, %v2925_v5  ;;  %v2953_v52 = vadd.f32 %v2945_v49, %v2926_v9 }
 0x334   : >> { %v2954_v29 = vadd.f32 %v2946_v38, %v2927_v61  ;;  %v2955_v3 = vadd.f32 %v2947_v36, %v2928_v35  ;;  %v2956_v8 = vadd.f32 %v2948_v7, %v2929_v23  ;;  %v2957_v59 = vadd.f32 %v2949_v63, %v2930_v0 }
 0x335   : >> { %v2969_v11 = vmul.f32 %v4681_v1, %v2968_v25  ;;  %v2970_v13 = vmul.f32 %v4682_v50, %v2968_v25  ;;  %v2971_v26 = vmul.f32 %v4683_v39, %v2968_v25  ;;  %v2972_v12 = vmul.f32 %v4684_v58, %v2968_v25 }
 0x336   : >> { %v2973_v30 = vmul.f32 %v4685_v48, %v2968_v25  ;;  %v2974_v54 = vmul.f32 %v4686_v51, %v2968_v25  ;;  %v2975_v28 = vmul.f32 %v4687_v22, %v2968_v25  ;;  %v2976_v60 = vmul.f32 %v4688_v24, %v2968_v25 }
 0x337   : >> { %v2977_v21 = vadd.f32 %v2969_v11, %v2950_v43  ;;  %v2978_v34 = vadd.f32 %v2970_v13, %v2951_v37  ;;  %v2979_v53 = vadd.f32 %v2971_v26, %v2952_v20  ;;  %v2980_v5 = vadd.f32 %v2972_v12, %v2953_v52 }
 0x338   : >> { %v2981_v9 = vadd.f32 %v2973_v30, %v2954_v29  ;;  %v2982_v61 = vadd.f32 %v2974_v54, %v2955_v3  ;;  %v2983_v35 = vadd.f32 %v2975_v28, %v2956_v8  ;;  %v2984_v23 = vadd.f32 %v2976_v60, %v2957_v59 }
 0x339   : >> { %v2996_v41 = vmul.f32 %v4689_v42, %v2995_v45  ;;  %v2997_v16 = vmul.f32 %v4690_v47, %v2995_v45  ;;  %v2998_v44 = vmul.f32 %v4691_v18, %v2995_v45  ;;  %v2999_v0 = vmul.f32 %v4692_v14, %v2995_v45 }
 0x33a   : >> { %v3000_v2 = vmul.f32 %v4693_v33, %v2995_v45  ;;  %v3001_v25 = vmul.f32 %v4694_v10, %v2995_v45  ;;  %v3002_v15 = vmul.f32 %v4695_v32, %v2995_v45  ;;  %v3003_v27 = vmul.f32 %v4696_v57, %v2995_v45  ;;  %2724 = sbr.rel (!%p2722_p1) target bundleno = 776 (0x308), region = 233 }
 0x33b   : >> { %v3004_v55 = vadd.f32 %v2996_v41, %v2977_v21   ;;  %v3005_v49 = vadd.f32 %v2997_v16, %v2978_v34   ;;  %v3006_v1 = vadd.f32 %v2998_v44, %v2979_v53   ;;  %v3007_v50 = vadd.f32 %v2999_v0, %v2980_v5  }
 0x33c   : >> { %v3008_v38 = vadd.f32 %v3000_v2, %v2981_v9   ;;  %v3009_v36 = vadd.f32 %v3001_v25, %v2982_v61   ;;  %v3010_v7 = vadd.f32 %v3002_v15, %v2983_v35   ;;  %v3011_v63 = vadd.f32 %v3003_v27, %v2984_v23  }
 0x33d   : >> { %v8806_v47 = vmov %v3007_v50  ;;  %v8807_v30 = vmov %v3006_v1  ;;  %v8808_v54 = vmov %v3005_v49  ;;  %v8809_v28 = vmov %v3004_v55  ;;  %3016 = vrot.lane.b32.xlu1 (%p2722_p1), %v3006_v1, %s6048_s30  ;;  %3012 = vrot.lane.b32.xlu0 (%p2722_p1), %v3004_v55, %s6048_s30 }
 0x33e   : >> { %v8802_v11 = vmov %v3011_v63  ;;  %v8803_v13 = vmov %v3010_v7  ;;  %v8804_v26 = vmov %v3009_v36  ;;  %v8805_v12 = vmov %v3008_v38  ;;  %3020 = vrot.lane.b32.xlu2 (%p2722_p1), %v3008_v38, %s6048_s30 }
 0x33f   : > { %v7900_v47 = vmov 0.0   ;;  %v7906_v30 = vmov 0.0   ;;  %v7908_v54 = vmov 0.0   ;;  %v7910_v28 = vmov 0.0  }
 0x340   : > { %v7912_v60 = vmov 0.0   ;;  %v7914_v18 = vmov 0.0  }
 0x345   : > { %3018 = vrot.lane.b32.xlu1 %v3007_v50, %s6048_s30  ;;  %3014 = vrot.lane.b32.xlu0 %v3005_v49, %s6048_s30 }
 0x346   : > { %3022 = vrot.lane.b32.xlu2 %v3009_v36, %s6048_s30 }
 0x34d   : > { %3026 = vrot.lane.b32.xlu1 %v3011_v63, %s6048_s30  ;;  %3024 = vrot.lane.b32.xlu0 %v3010_v7, %s6048_s30  ;;  %s7916_s30 = smov 0  }
 0x398   : > { %v3021_v45 = vpop.permute.xlu2 %3020 }
 0x399   : > { %v3032_v39 = vsel %vm1568_vm13, %v3021_v45, 0.0 }
 0x39a   : > { %v7863_v58 = vadd.f32 %v3032_v39, %v7628_v40 }
 0x3a0   : > { %v3023_v48 = vpop.permute.xlu2 %3022 }
 0x3a1   : > { %v3033_v43 = vsel %vm1568_vm13, %v3023_v48, 0.0 }
 0x3a2   : > { %v7868_v37 = vadd.f32 %v3033_v43, %v7632_v31 }
 0x3af   : > { %v3017_v20 = vpop.permute.xlu1 %3016  ;;  %v3013_v52 = vpop.permute.xlu0 %3012 }
 0x3b0   : > { %v3030_v51 = vsel %vm1568_vm13, %v3017_v20, 0.0  ;;  %v3028_v22 = vsel %vm1568_vm13, %v3013_v52, 0.0 }
 0x3b1   : > { %v7875_v24 = vadd.f32 %v3030_v51, %v7636_v56  ;;  %v7878_v40 = vadd.f32 %v3028_v22, %v7640_v46 }
 0x3b7   : > { %v3019_v29 = vpop.permute.xlu1 %3018  ;;  %v3015_v3 = vpop.permute.xlu0 %3014 }
 0x3b8   : > { %v3031_v31 = vsel %vm1568_vm13, %v3019_v29, 0.0  ;;  %v3029_v8 = vsel %vm1568_vm13, %v3015_v3, 0.0 }
 0x3b9   : > { %v7885_v59 = vadd.f32 %v3031_v31, %v7644_v17  ;;  %v7888_v11 = vadd.f32 %v3029_v8, %v7648_v62  ;;  %v7902_v17 = vmov 0.0   ;;  %v7904_v62 = vmov 0.0  }
 0x3bf   : > { %v3027_v13 = vpop.permute.xlu1 %3026  ;;  %v3025_v56 = vpop.permute.xlu0 %3024 }
 0x3c0   : > { %v3035_v46 = vsel %vm1568_vm13, %v3027_v13, 0.0  ;;  %v3034_v26 = vsel %vm1568_vm13, %v3025_v56, 0.0 }
 0x3c1   : > { %v7895_v12 = vadd.f32 %v3035_v46, %v7652_v6  ;;  %v7898_v42 = vadd.f32 %v3034_v26, %v7656_v19 }
 0x3c2 LB: >> { %s7930_s28 = smul.u32 50, %s5961_s30  ;;  %s4697_s25 = sshll.u32 %s5961_s30, 1  ;;  %s5961_s30 = sphi %s7916_s30, %s3049_s30   ;;  %v5957_v18 = vphi %v7914_v18, %v8817_v18   ;;  %v5953_v60 = vphi %v7912_v60, %v8816_v60   ;;  %v5949_v28 = vphi %v7910_v28, %v8815_v28   ;;  %v5945_v54 = vphi %v7908_v54, %v8814_v54   ;;  %v5941_v30 = vphi %v7906_v30, %v8813_v30   ;;  %v5937_v62 = vphi %v7904_v62, %v8812_v62   ;;  %v5933_v17 = vphi %v7902_v17, %v8811_v17   ;;  %v5929_v47 = vphi %v7900_v47, %v8810_v47  }
 0x3c3   : >> { %s4698_s26 = smul.u32 144, %s5961_s30  ;;  %s3197_s27 = sadd.s32 1, %s4697_s25 }
 0x3c4   : >> { %s3060_s21 = sadd.s32 2, %s7930_s28  ;;  %s3089_s4 = sadd.s32 7, %s7930_s28 }
 0x3c5   : >> { %s3061_s20 = sld [smem:[#allocation18 + %s3060_s21]]  ;;  %s3116_s11 = sadd.s32 12, %s7930_s28 }
 0x3c6   : >> { %s7937_s2 = sld [smem:[#allocation18 + %s3089_s4]]  ;;  %s7939_s0 = scalar_lea.vmem [#allocation3], %s4698_s26 }
 0x3c7   : >> { %v3064_v6 = vld [vmem:[%s7939_s0] sm:$0xff]  ;;  %v3065_v19 = vld [vmem:[%s7939_s0 + $0x8] sm:$0xff]  ;;  %s7943_s12 = sld [smem:[#allocation18 + %s3116_s11]]  ;;  %v3066_v14 = vld [vmem:[%s7939_s0 + $0x10] sm:$0xff]  ;;  %s7948_s18 = smul.u32 25, %s3197_s27 }
 0x3c8   : >> { %v3067_v33 = vld [vmem:[%s7939_s0 + $0x18] sm:$0xff]  ;;  %v3068_v21 = vld [vmem:[%s7939_s0 + $0x20] sm:$0xff]  ;;  %v3069_v34 = vld [vmem:[%s7939_s0 + $0x28] sm:$0xff]  ;;  %s3143_s25 = sadd.s32 17, %s7930_s28  ;;  %s3170_s26 = sadd.s32 22, %s7930_s28 }
 0x3c9   : >> { %v3070_v53 = vld [vmem:[%s7939_s0 + $0x30] sm:$0xff]  ;;  %v3071_v5 = vld [vmem:[%s7939_s0 + $0x38] sm:$0xff]  ;;  %v3091_v44 = vld [vmem:[%s7939_s0 + $0x1] sm:$0xff]  ;;  %s3199_s21 = sadd.s32 2, %s7948_s18  ;;  %s7961_s4 = sld [smem:[#allocation18 + %s3143_s25]] }
 0x3ca   : >> { %v3092_v0 = vld [vmem:[%s7939_s0 + $0x9] sm:$0xff]  ;;  %v3093_v15 = vld [vmem:[%s7939_s0 + $0x11] sm:$0xff]  ;;  %v3094_v27 = vld [vmem:[%s7939_s0 + $0x19] sm:$0xff]  ;;  %s3228_s28 = sadd.s32 7, %s7948_s18  ;;  %s7971_s11 = sld [smem:[#allocation18 + %s3199_s21]] }
 0x3cb   : >> { %v3072_v10 = vstv %s3061_s20  ;;  %v3095_v55 = vld [vmem:[%s7939_s0 + $0x21] sm:$0xff]  ;;  %v3096_v36 = vld [vmem:[%s7939_s0 + $0x29] sm:$0xff]  ;;  %v3097_v7 = vld [vmem:[%s7939_s0 + $0x31] sm:$0xff]  ;;  %s7967_s20 = sld [smem:[#allocation18 + %s3170_s26]]  ;;  %s3309_s25 = sadd.s32 22, %s7948_s18 }
 0x3cc   : >> { %v3073_v32 = vmul.f32 %v3072_v10, %v3064_v6  ;;  %v3074_v57 = vmul.f32 %v3072_v10, %v3065_v19  ;;  %v3075_v9 = vmul.f32 %v3072_v10, %v3066_v14  ;;  %v3076_v61 = vmul.f32 %v3072_v10, %v3067_v33  ;;  %v3098_v63 = vld [vmem:[%s7939_s0 + $0x39] sm:$0xff]  ;;  %v3118_v29 = vld [vmem:[%s7939_s0 + $0x2] sm:$0xff]  ;;  %v3119_v3 = vld [vmem:[%s7939_s0 + $0xa] sm:$0xff]  ;;  %s7975_s27 = sld [smem:[#allocation18 + %s3228_s28]]  ;;  %s3049_s30 = sadd.s32 1, %s5961_s30  }
 0x3cd   : >> { %v3077_v35 = vmul.f32 %v3072_v10, %v3068_v21  ;;  %v3078_v23 = vmul.f32 %v3072_v10, %v3069_v34  ;;  %v3079_v41 = vmul.f32 %v3072_v10, %v3070_v53  ;;  %v3080_v16 = vmul.f32 %v3072_v10, %v3071_v5  ;;  %v3120_v46 = vld [vmem:[%s7939_s0 + $0x12] sm:$0xff]  ;;  %v3121_v26 = vld [vmem:[%s7939_s0 + $0x1a] sm:$0xff]  ;;  %p3046_p2 = scmp.ge.s32.totalorder %s3049_s30, 10  }
 0x3ce   : >> { %v3081_v2 = vadd.f32 %v5957_v18, %v3073_v32  ;;  %v3082_v25 = vadd.f32 %v5953_v60, %v3074_v57  ;;  %v3083_v49 = vadd.f32 %v5949_v28, %v3075_v9  ;;  %v3084_v1 = vadd.f32 %v5945_v54, %v3076_v61  ;;  %v3123_v28 = vld [vmem:[%s7939_s0 + $0x2a] sm:$0xff]  ;;  %v3124_v60 = vld [vmem:[%s7939_s0 + $0x32] sm:$0xff]  ;;  %v3125_v18 = vld [vmem:[%s7939_s0 + $0x3a] sm:$0xff]  ;;  %s8134_s30 = smov (%p3046_p2), 0  }
 0x3cf   : >> { %v3085_v50 = vadd.f32 %v5941_v30, %v3077_v35  ;;  %v3086_v38 = vadd.f32 %v5937_v62, %v3078_v23  ;;  %v3087_v45 = vadd.f32 %v5933_v17, %v3079_v41  ;;  %v3088_v39 = vadd.f32 %v5929_v47, %v3080_v16  ;;  %v3122_v47 = vld [vmem:[%s7939_s0 + $0x22] sm:$0xff]  ;;  %v3146_v35 = vld [vmem:[%s7939_s0 + $0xb] sm:$0xff] }
 0x3d0   : >> { %v3099_v48 = vstv %s7937_s2  ;;  %v3126_v43 = vstv %s7943_s12  ;;  %v3145_v61 = vld [vmem:[%s7939_s0 + $0x3] sm:$0xff]  ;;  %s3255_s2 = sadd.s32 12, %s7948_s18  ;;  %s3282_s12 = sadd.s32 17, %s7948_s18 }
 0x3d1   : >> { %v3100_v20 = vmul.f32 %v3099_v48, %v3091_v44  ;;  %v3101_v52 = vmul.f32 %v3099_v48, %v3092_v0  ;;  %v3102_v51 = vmul.f32 %v3099_v48, %v3093_v15  ;;  %v3103_v22 = vmul.f32 %v3099_v48, %v3094_v27  ;;  %v3147_v0 = vld [vmem:[%s7939_s0 + $0x13] sm:$0xff]  ;;  %s8018_s26 = sld [smem:[#allocation18 + %s3255_s2]] }
 0x3d2   : >> { %v3104_v31 = vmul.f32 %v3099_v48, %v3095_v55  ;;  %v3105_v8 = vmul.f32 %v3099_v48, %v3096_v36  ;;  %v3106_v13 = vmul.f32 %v3099_v48, %v3097_v7  ;;  %v3107_v56 = vmul.f32 %v3099_v48, %v3098_v63  ;;  %s8020_s21 = sld [smem:[#allocation18 + %s3282_s12]] }
 0x3d3   : >> { %v3108_v17 = vadd.f32 %v3100_v20, %v3081_v2  ;;  %v3109_v62 = vadd.f32 %v3101_v52, %v3082_v25  ;;  %v3110_v30 = vadd.f32 %v3102_v51, %v3083_v49  ;;  %v3111_v54 = vadd.f32 %v3103_v22, %v3084_v1  ;;  %v3148_v2 = vld [vmem:[%s7939_s0 + $0x1b] sm:$0xff]  ;;  %v3149_v25 = vld [vmem:[%s7939_s0 + $0x23] sm:$0xff]  ;;  %v3150_v1 = vld [vmem:[%s7939_s0 + $0x2b] sm:$0xff]  ;;  %s8028_s18 = sld [smem:[#allocation18 + %s3309_s25]] }
 0x3d4   : >> { %v3112_v6 = vadd.f32 %v3104_v31, %v3085_v50  ;;  %v3113_v19 = vadd.f32 %v3105_v8, %v3086_v38  ;;  %v3114_v14 = vadd.f32 %v3106_v13, %v3087_v45  ;;  %v3115_v33 = vadd.f32 %v3107_v56, %v3088_v39  ;;  %v3151_v50 = vld [vmem:[%s7939_s0 + $0x33] sm:$0xff]  ;;  %v3152_v38 = vld [vmem:[%s7939_s0 + $0x3b] sm:$0xff]  ;;  %v3172_v52 = vld [vmem:[%s7939_s0 + $0x4] sm:$0xff] }
 0x3d5   : >> { %v3127_v21 = vmul.f32 %v3126_v43, %v3118_v29  ;;  %v3128_v34 = vmul.f32 %v3126_v43, %v3119_v3  ;;  %v3129_v53 = vmul.f32 %v3126_v43, %v3120_v46  ;;  %v3130_v5 = vmul.f32 %v3126_v43, %v3121_v26  ;;  %v3173_v51 = vld [vmem:[%s7939_s0 + $0xc] sm:$0xff]  ;;  %v3174_v8 = vld [vmem:[%s7939_s0 + $0x14] sm:$0xff]  ;;  %v3175_v13 = vld [vmem:[%s7939_s0 + $0x1c] sm:$0xff] }
 0x3d6   : >> { %v3131_v10 = vmul.f32 %v3126_v43, %v3122_v47  ;;  %v3132_v32 = vmul.f32 %v3126_v43, %v3123_v28  ;;  %v3133_v57 = vmul.f32 %v3126_v43, %v3124_v60  ;;  %v3134_v9 = vmul.f32 %v3126_v43, %v3125_v18  ;;  %v3176_v56 = vld [vmem:[%s7939_s0 + $0x24] sm:$0xff] }
 0x3d7   : >> { %v3135_v23 = vadd.f32 %v3127_v21, %v3108_v17  ;;  %v3136_v41 = vadd.f32 %v3128_v34, %v3109_v62  ;;  %v3137_v16 = vadd.f32 %v3129_v53, %v3110_v30  ;;  %v3138_v44 = vadd.f32 %v3130_v5, %v3111_v54  ;;  %v3177_v62 = vld [vmem:[%s7939_s0 + $0x2c] sm:$0xff]  ;;  %v3178_v30 = vld [vmem:[%s7939_s0 + $0x34] sm:$0xff]  ;;  %v3179_v54 = vld [vmem:[%s7939_s0 + $0x3c] sm:$0xff] }
 0x3d8   : >> { %v3139_v15 = vadd.f32 %v3131_v10, %v3112_v6  ;;  %v3140_v27 = vadd.f32 %v3132_v32, %v3113_v19  ;;  %v3141_v55 = vadd.f32 %v3133_v57, %v3114_v14  ;;  %v3142_v49 = vadd.f32 %v3134_v9, %v3115_v33  ;;  %v4701_v34 = vld [vmem:[%s7939_s0 + $0x48] sm:$0xff]  ;;  %v4702_v53 = vld [vmem:[%s7939_s0 + $0x50] sm:$0xff]  ;;  %v4703_v9 = vld [vmem:[%s7939_s0 + $0x58] sm:$0xff] }
 0x3d9   : >> { %v3153_v36 = vstv %s7961_s4  ;;  %v3180_v7 = vstv %s7967_s20  ;;  %v7994_v63 = vstv %s7971_s11  ;;  %v7997_v45 = vstv %s7975_s27 }
 0x3da   : >> { %v3154_v39 = vmul.f32 %v3153_v36, %v3145_v61  ;;  %v3155_v48 = vmul.f32 %v3153_v36, %v3146_v35  ;;  %v3156_v43 = vmul.f32 %v3153_v36, %v3147_v0  ;;  %v3157_v20 = vmul.f32 %v3153_v36, %v3148_v2  ;;  %v4704_v61 = vld [vmem:[%s7939_s0 + $0x60] sm:$0xff]  ;;  %v4705_v35 = vld [vmem:[%s7939_s0 + $0x68] sm:$0xff]  ;;  %v4706_v0 = vld [vmem:[%s7939_s0 + $0x70] sm:$0xff] }
 0x3db   : >> { %v3158_v22 = vmul.f32 %v3153_v36, %v3149_v25  ;;  %v3159_v29 = vmul.f32 %v3153_v36, %v3150_v1  ;;  %v3160_v3 = vmul.f32 %v3153_v36, %v3151_v50  ;;  %v3161_v31 = vmul.f32 %v3153_v36, %v3152_v38  ;;  %v4707_v2 = vld [vmem:[%s7939_s0 + $0x78] sm:$0xff]  ;;  %v4708_v25 = vld [vmem:[%s7939_s0 + $0x80] sm:$0xff] }
 0x3dc   : >> { %v3162_v46 = vadd.f32 %v3154_v39, %v3135_v23  ;;  %v3163_v26 = vadd.f32 %v3155_v48, %v3136_v41  ;;  %v3164_v47 = vadd.f32 %v3156_v43, %v3137_v16  ;;  %v3165_v17 = vadd.f32 %v3157_v20, %v3138_v44  ;;  %v4710_v39 = vld [vmem:[%s7939_s0 + $0x51] sm:$0xff] }
 0x3dd   : >> { %v3166_v28 = vadd.f32 %v3158_v22, %v3139_v15  ;;  %v3167_v60 = vadd.f32 %v3159_v29, %v3140_v27  ;;  %v3168_v18 = vadd.f32 %v3160_v3, %v3141_v55  ;;  %v3169_v6 = vadd.f32 %v3161_v31, %v3142_v49  ;;  %v4712_v22 = vld [vmem:[%s7939_s0 + $0x61] sm:$0xff]  ;;  %v4713_v29 = vld [vmem:[%s7939_s0 + $0x69] sm:$0xff] }
 0x3de   : >> { %v3181_v19 = vmul.f32 %v3180_v7, %v3172_v52  ;;  %v3182_v14 = vmul.f32 %v3180_v7, %v3173_v51  ;;  %v3183_v33 = vmul.f32 %v3180_v7, %v3174_v8  ;;  %v3184_v21 = vmul.f32 %v3180_v7, %v3175_v13  ;;  %v4711_v51 = vld [vmem:[%s7939_s0 + $0x59] sm:$0xff] }
 0x3df   : >> { %v3185_v5 = vmul.f32 %v3180_v7, %v3176_v56  ;;  %v3186_v10 = vmul.f32 %v3180_v7, %v3177_v62  ;;  %v3187_v32 = vmul.f32 %v3180_v7, %v3178_v30  ;;  %v3188_v57 = vmul.f32 %v3180_v7, %v3179_v54  ;;  %v4709_v7 = vld [vmem:[%s7939_s0 + $0x49] sm:$0xff]  ;;  %v4714_v56 = vld [vmem:[%s7939_s0 + $0x71] sm:$0xff] }
 0x3e0   : >> { %v3189_v23 = vadd.f32 %v3181_v19, %v3162_v46  ;;  %v3190_v41 = vadd.f32 %v3182_v14, %v3163_v26  ;;  %v3191_v16 = vadd.f32 %v3183_v33, %v3164_v47  ;;  %v3192_v44 = vadd.f32 %v3184_v21, %v3165_v17  ;;  %v4715_v46 = vld [vmem:[%s7939_s0 + $0x79] sm:$0xff]  ;;  %v4716_v26 = vld [vmem:[%s7939_s0 + $0x81] sm:$0xff]  ;;  %v4717_v33 = vld [vmem:[%s7939_s0 + $0x4a] sm:$0xff] }
 0x3e1   : >> { %v3193_v15 = vadd.f32 %v3185_v5, %v3166_v28  ;;  %v3194_v27 = vadd.f32 %v3186_v10, %v3167_v60  ;;  %v3195_v55 = vadd.f32 %v3187_v32, %v3168_v18  ;;  %v3196_v49 = vadd.f32 %v3188_v57, %v3169_v6  ;;  %v4718_v21 = vld [vmem:[%s7939_s0 + $0x52] sm:$0xff]  ;;  %v4719_v10 = vld [vmem:[%s7939_s0 + $0x5a] sm:$0xff]  ;;  %v4720_v32 = vld [vmem:[%s7939_s0 + $0x62] sm:$0xff] }
 0x3e2   : >> { %v3212_v1 = vmul.f32 %v4701_v34, %v7994_v63  ;;  %v3213_v50 = vmul.f32 %v4702_v53, %v7994_v63  ;;  %v3214_v38 = vmul.f32 %v4703_v9, %v7994_v63  ;;  %v3215_v36 = vmul.f32 %v4704_v61, %v7994_v63  ;;  %v4721_v57 = vld [vmem:[%s7939_s0 + $0x6a] sm:$0xff] }
 0x3e3   : >> { %v3216_v48 = vmul.f32 %v4705_v35, %v7994_v63  ;;  %v3217_v43 = vmul.f32 %v4706_v0, %v7994_v63  ;;  %v3218_v20 = vmul.f32 %v4707_v2, %v7994_v63  ;;  %v3219_v52 = vmul.f32 %v4708_v25, %v7994_v63 }
 0x3e4   : >> { %v3220_v3 = vadd.f32 %v3212_v1, %v3189_v23  ;;  %v3221_v31 = vadd.f32 %v3213_v50, %v3190_v41  ;;  %v3222_v8 = vadd.f32 %v3214_v38, %v3191_v16  ;;  %v3223_v13 = vadd.f32 %v3215_v36, %v3192_v44  ;;  %v4722_v41 = vld [vmem:[%s7939_s0 + $0x72] sm:$0xff]  ;;  %v4723_v16 = vld [vmem:[%s7939_s0 + $0x7a] sm:$0xff] }
 0x3e5   : >> { %v3224_v47 = vadd.f32 %v3216_v48, %v3193_v15  ;;  %v3225_v17 = vadd.f32 %v3217_v43, %v3194_v27  ;;  %v3226_v62 = vadd.f32 %v3218_v20, %v3195_v55  ;;  %v3227_v30 = vadd.f32 %v3219_v52, %v3196_v49  ;;  %v4725_v1 = vld [vmem:[%s7939_s0 + $0x4b] sm:$0xff]  ;;  %v4726_v50 = vld [vmem:[%s7939_s0 + $0x53] sm:$0xff]  ;;  %v4727_v48 = vld [vmem:[%s7939_s0 + $0x5b] sm:$0xff] }
 0x3e6   : >> { %v3239_v63 = vmul.f32 %v4709_v7, %v7997_v45  ;;  %v3240_v54 = vmul.f32 %v4710_v39, %v7997_v45  ;;  %v3241_v28 = vmul.f32 %v4711_v51, %v7997_v45  ;;  %v3242_v60 = vmul.f32 %v4712_v22, %v7997_v45  ;;  %v4728_v43 = vld [vmem:[%s7939_s0 + $0x63] sm:$0xff]  ;;  %v4729_v20 = vld [vmem:[%s7939_s0 + $0x6b] sm:$0xff] }
 0x3e7   : >> { %v3243_v18 = vmul.f32 %v4713_v29, %v7997_v45  ;;  %v3244_v6 = vmul.f32 %v4714_v56, %v7997_v45  ;;  %v3245_v19 = vmul.f32 %v4715_v46, %v7997_v45  ;;  %v3246_v14 = vmul.f32 %v4716_v26, %v7997_v45  ;;  %v4724_v45 = vld [vmem:[%s7939_s0 + $0x82] sm:$0xff] }
 0x3e8   : >> { %v3247_v34 = vadd.f32 %v3239_v63, %v3220_v3  ;;  %v3248_v53 = vadd.f32 %v3240_v54, %v3221_v31  ;;  %v3249_v5 = vadd.f32 %v3241_v28, %v3222_v8  ;;  %v3250_v9 = vadd.f32 %v3242_v60, %v3223_v13  ;;  %v4730_v3 = vld [vmem:[%s7939_s0 + $0x73] sm:$0xff]  ;;  %v4731_v31 = vld [vmem:[%s7939_s0 + $0x7b] sm:$0xff]  ;;  %v4732_v8 = vld [vmem:[%s7939_s0 + $0x83] sm:$0xff] }
 0x3e9   : >> { %v3251_v61 = vadd.f32 %v3243_v18, %v3224_v47  ;;  %v3252_v35 = vadd.f32 %v3244_v6, %v3225_v17  ;;  %v3253_v23 = vadd.f32 %v3245_v19, %v3226_v62  ;;  %v3254_v44 = vadd.f32 %v3246_v14, %v3227_v30  ;;  %v4733_v63 = vld [vmem:[%s7939_s0 + $0x4c] sm:$0xff]  ;;  %v4734_v54 = vld [vmem:[%s7939_s0 + $0x54] sm:$0xff]  ;;  %v4735_v19 = vld [vmem:[%s7939_s0 + $0x5c] sm:$0xff] }
 0x3ea   : >> { %v3265_v0 = vstv %s8018_s26  ;;  %v3292_v2 = vstv %s8020_s21  ;;  %v3319_v25 = vstv %s8028_s18  ;;  %v4736_v14 = vld [vmem:[%s7939_s0 + $0x64] sm:$0xff] }
 0x3eb   : >> { %v3266_v15 = vmul.f32 %v4717_v33, %v3265_v0  ;;  %v3267_v27 = vmul.f32 %v4718_v21, %v3265_v0  ;;  %v3268_v55 = vmul.f32 %v4719_v10, %v3265_v0  ;;  %v3269_v49 = vmul.f32 %v4720_v32, %v3265_v0  ;;  %v4737_v33 = vld [vmem:[%s7939_s0 + $0x6c] sm:$0xff]  ;;  %v4738_v10 = vld [vmem:[%s7939_s0 + $0x74] sm:$0xff]  ;;  %v4739_v32 = vld [vmem:[%s7939_s0 + $0x7c] sm:$0xff] }
 0x3ec   : >> { %v3270_v38 = vmul.f32 %v4721_v57, %v3265_v0  ;;  %v3271_v36 = vmul.f32 %v4722_v41, %v3265_v0  ;;  %v3272_v7 = vmul.f32 %v4723_v16, %v3265_v0  ;;  %v3273_v39 = vmul.f32 %v4724_v45, %v3265_v0  ;;  %v4740_v57 = vld [vmem:[%s7939_s0 + $0x84] sm:$0xff] }
 0x3ed   : >> { %v3274_v52 = vadd.f32 %v3266_v15, %v3247_v34  ;;  %v3275_v51 = vadd.f32 %v3267_v27, %v3248_v53  ;;  %v3276_v22 = vadd.f32 %v3268_v55, %v3249_v5  ;;  %v3277_v29 = vadd.f32 %v3269_v49, %v3250_v9 }
 0x3ee   : >> { %v3278_v13 = vadd.f32 %v3270_v38, %v3251_v61  ;;  %v3279_v56 = vadd.f32 %v3271_v36, %v3252_v35  ;;  %v3280_v46 = vadd.f32 %v3272_v7, %v3253_v23  ;;  %v3281_v26 = vadd.f32 %v3273_v39, %v3254_v44 }
 0x3ef   : >> { %v3293_v47 = vmul.f32 %v4725_v1, %v3292_v2  ;;  %v3294_v17 = vmul.f32 %v4726_v50, %v3292_v2  ;;  %v3295_v62 = vmul.f32 %v4727_v48, %v3292_v2  ;;  %v3296_v30 = vmul.f32 %v4728_v43, %v3292_v2 }
 0x3f0   : >> { %v3297_v28 = vmul.f32 %v4729_v20, %v3292_v2  ;;  %v3298_v60 = vmul.f32 %v4730_v3, %v3292_v2  ;;  %v3299_v18 = vmul.f32 %v4731_v31, %v3292_v2  ;;  %v3300_v6 = vmul.f32 %v4732_v8, %v3292_v2 }
 0x3f1   : >> { %v3301_v21 = vadd.f32 %v3293_v47, %v3274_v52  ;;  %v3302_v34 = vadd.f32 %v3294_v17, %v3275_v51  ;;  %v3303_v53 = vadd.f32 %v3295_v62, %v3276_v22  ;;  %v3304_v5 = vadd.f32 %v3296_v30, %v3277_v29 }
 0x3f2   : >> { %v3305_v9 = vadd.f32 %v3297_v28, %v3278_v13  ;;  %v3306_v61 = vadd.f32 %v3298_v60, %v3279_v56  ;;  %v3307_v35 = vadd.f32 %v3299_v18, %v3280_v46  ;;  %v3308_v23 = vadd.f32 %v3300_v6, %v3281_v26 }
 0x3f3   : >> { %v3320_v41 = vmul.f32 %v4733_v63, %v3319_v25  ;;  %v3321_v16 = vmul.f32 %v4734_v54, %v3319_v25  ;;  %v3322_v45 = vmul.f32 %v4735_v19, %v3319_v25  ;;  %v3323_v44 = vmul.f32 %v4736_v14, %v3319_v25 }
 0x3f4   : >> { %v3324_v0 = vmul.f32 %v4737_v33, %v3319_v25  ;;  %v3325_v2 = vmul.f32 %v4738_v10, %v3319_v25  ;;  %v3326_v15 = vmul.f32 %v4739_v32, %v3319_v25  ;;  %v3327_v27 = vmul.f32 %v4740_v57, %v3319_v25  ;;  %3048 = sbr.rel (!%p3046_p2) target bundleno = 962 (0x3c2), region = 244 }
 0x3f5   : >> { %v3328_v55 = vadd.f32 %v3320_v41, %v3301_v21   ;;  %v3329_v49 = vadd.f32 %v3321_v16, %v3302_v34   ;;  %v3330_v1 = vadd.f32 %v3322_v45, %v3303_v53   ;;  %v3331_v50 = vadd.f32 %v3323_v44, %v3304_v5  }
 0x3f6   : >> { %v3332_v38 = vadd.f32 %v3324_v0, %v3305_v9   ;;  %v3333_v36 = vadd.f32 %v3325_v2, %v3306_v61   ;;  %v3334_v7 = vadd.f32 %v3326_v15, %v3307_v35   ;;  %v3335_v39 = vadd.f32 %v3327_v27, %v3308_v23  }
 0x3f7   : >> { %v8814_v54 = vmov %v3331_v50  ;;  %v8815_v28 = vmov %v3330_v1  ;;  %v8816_v60 = vmov %v3329_v49  ;;  %v8817_v18 = vmov %v3328_v55 }
 0x3f8   : >> { %v8810_v47 = vmov %v3335_v39  ;;  %v8811_v17 = vmov %v3334_v7  ;;  %v8812_v62 = vmov %v3333_v36  ;;  %v8813_v30 = vmov %v3332_v38 }
 0x3f9   : > { %v8095_v25 = vadd.f32 %v3328_v55, %v7878_v40  ;;  %v8098_v48 = vadd.f32 %v3329_v49, %v7888_v11  ;;  %v8101_v43 = vadd.f32 %v3330_v1, %v7875_v24  ;;  %v8104_v20 = vadd.f32 %v3331_v50, %v7885_v59 }
 0x3fa   : > { %v8107_v52 = vadd.f32 %v3332_v38, %v7863_v58  ;;  %v8110_v51 = vadd.f32 %v3333_v36, %v7868_v37  ;;  %v8113_v22 = vadd.f32 %v3334_v7, %v7898_v42  ;;  %v8116_v40 = vadd.f32 %v3335_v39, %v7895_v12 }
 0x3fb   : > { %v8118_v11 = vmov 0.0   ;;  %v8120_v29 = vmov 0.0   ;;  %v8122_v24 = vmov 0.0   ;;  %v8124_v59 = vmov 0.0  }
 0x3fc   : > { %v8126_v3 = vmov 0.0   ;;  %v8128_v58 = vmov 0.0   ;;  %v8130_v37 = vmov 0.0   ;;  %v8132_v31 = vmov 0.0  }
 0x3fd LB: >> { %s8148_s0 = smul.u32 50, %s5997_s30  ;;  %s4741_s4 = sshll.u32 %s5997_s30, 1  ;;  %s5997_s30 = sphi %s8134_s30, %s3349_s30   ;;  %v5993_v31 = vphi %v8132_v31, %v8825_v31   ;;  %v5989_v37 = vphi %v8130_v37, %v8824_v37   ;;  %v5985_v58 = vphi %v8128_v58, %v8823_v58   ;;  %v5981_v3 = vphi %v8126_v3, %v8822_v3   ;;  %v5977_v59 = vphi %v8124_v59, %v8821_v59   ;;  %v5973_v24 = vphi %v8122_v24, %v8820_v24   ;;  %v5969_v29 = vphi %v8120_v29, %v8819_v29   ;;  %v5965_v11 = vphi %v8118_v11, %v8818_v11  }
 0x3fe   : >> { %s4742_s28 = smul.u32 144, %s5997_s30  ;;  %s3497_s12 = sadd.s32 1, %s4741_s4 }
 0x3ff   : >> { %s3360_s20 = sadd.s32 3, %s8148_s0  ;;  %s3389_s11 = sadd.s32 8, %s8148_s0 }
 0x400   : >> { %s3361_s27 = sld [smem:[#allocation18 + %s3360_s20]]  ;;  %s3416_s2 = sadd.s32 13, %s8148_s0 }
 0x401   : >> { %s8155_s25 = sld [smem:[#allocation18 + %s3389_s11]]  ;;  %s8157_s26 = scalar_lea.vmem [#allocation3], %s4742_s28 }
 0x402   : >> { %v3364_v12 = vld [vmem:[%s8157_s26] sm:$0xff]  ;;  %v3365_v42 = vld [vmem:[%s8157_s26 + $0x8] sm:$0xff]  ;;  %s8161_s21 = sld [smem:[#allocation18 + %s3416_s2]]  ;;  %v3366_v8 = vld [vmem:[%s8157_s26 + $0x10] sm:$0xff]  ;;  %s8166_s18 = smul.u32 25, %s3497_s12 }
 0x403   : >> { %v3367_v13 = vld [vmem:[%s8157_s26 + $0x18] sm:$0xff]  ;;  %v3368_v56 = vld [vmem:[%s8157_s26 + $0x20] sm:$0xff]  ;;  %v3369_v46 = vld [vmem:[%s8157_s26 + $0x28] sm:$0xff]  ;;  %s3443_s4 = sadd.s32 18, %s8148_s0  ;;  %s3470_s28 = sadd.s32 23, %s8148_s0 }
 0x404   : >> { %v3370_v26 = vld [vmem:[%s8157_s26 + $0x30] sm:$0xff]  ;;  %v3371_v47 = vld [vmem:[%s8157_s26 + $0x38] sm:$0xff]  ;;  %v3391_v19 = vld [vmem:[%s8157_s26 + $0x1] sm:$0xff]  ;;  %s3499_s20 = sadd.s32 3, %s8166_s18  ;;  %s8179_s11 = sld [smem:[#allocation18 + %s3443_s4]] }
 0x405   : >> { %v3392_v14 = vld [vmem:[%s8157_s26 + $0x9] sm:$0xff]  ;;  %v3393_v34 = vld [vmem:[%s8157_s26 + $0x11] sm:$0xff]  ;;  %v3394_v53 = vld [vmem:[%s8157_s26 + $0x19] sm:$0xff]  ;;  %s3528_s0 = sadd.s32 8, %s8166_s18  ;;  %s8189_s2 = sld [smem:[#allocation18 + %s3499_s20]] }
 0x406   : >> { %v3372_v17 = vstv %s3361_s27  ;;  %v3395_v5 = vld [vmem:[%s8157_s26 + $0x21] sm:$0xff]  ;;  %v3396_v61 = vld [vmem:[%s8157_s26 + $0x29] sm:$0xff]  ;;  %v3397_v35 = vld [vmem:[%s8157_s26 + $0x31] sm:$0xff]  ;;  %s8185_s27 = sld [smem:[#allocation18 + %s3470_s28]]  ;;  %s3609_s4 = sadd.s32 23, %s8166_s18 }
 0x407   : >> { %v3373_v62 = vmul.f32 %v3372_v17, %v3364_v12  ;;  %v3374_v30 = vmul.f32 %v3372_v17, %v3365_v42  ;;  %v3375_v63 = vmul.f32 %v3372_v17, %v3366_v8  ;;  %v3376_v54 = vmul.f32 %v3372_v17, %v3367_v13  ;;  %v3398_v23 = vld [vmem:[%s8157_s26 + $0x39] sm:$0xff]  ;;  %v3418_v55 = vld [vmem:[%s8157_s26 + $0x2] sm:$0xff]  ;;  %v3419_v49 = vld [vmem:[%s8157_s26 + $0xa] sm:$0xff]  ;;  %s8193_s12 = sld [smem:[#allocation18 + %s3528_s0]]  ;;  %s3349_s30 = sadd.s32 1, %s5997_s30  }
 0x408   : >> { %v3377_v28 = vmul.f32 %v3372_v17, %v3368_v56  ;;  %v3378_v60 = vmul.f32 %v3372_v17, %v3369_v46  ;;  %v3379_v18 = vmul.f32 %v3372_v17, %v3370_v26  ;;  %v3380_v6 = vmul.f32 %v3372_v17, %v3371_v47  ;;  %v3420_v7 = vld [vmem:[%s8157_s26 + $0x12] sm:$0xff]  ;;  %v3421_v39 = vld [vmem:[%s8157_s26 + $0x1a] sm:$0xff]  ;;  %p3346_p3 = scmp.ge.s32.totalorder %s3349_s30, 10  }
 0x409   : >> { %v3381_v33 = vadd.f32 %v5993_v31, %v3373_v62  ;;  %v3382_v21 = vadd.f32 %v5989_v37, %v3374_v30  ;;  %v3383_v10 = vadd.f32 %v5985_v58, %v3375_v63  ;;  %v3384_v32 = vadd.f32 %v5981_v3, %v3376_v54  ;;  %v3423_v58 = vld [vmem:[%s8157_s26 + $0x2a] sm:$0xff]  ;;  %v3424_v37 = vld [vmem:[%s8157_s26 + $0x32] sm:$0xff]  ;;  %v3425_v31 = vld [vmem:[%s8157_s26 + $0x3a] sm:$0xff] }
 0x40a   : >> { %v3385_v57 = vadd.f32 %v5977_v59, %v3377_v28  ;;  %v3386_v9 = vadd.f32 %v5973_v24, %v3378_v60  ;;  %v3387_v41 = vadd.f32 %v5969_v29, %v3379_v18  ;;  %v3388_v16 = vadd.f32 %v5965_v11, %v3380_v6  ;;  %v3422_v11 = vld [vmem:[%s8157_s26 + $0x22] sm:$0xff]  ;;  %v3446_v28 = vld [vmem:[%s8157_s26 + $0xb] sm:$0xff] }
 0x40b   : >> { %v3399_v45 = vstv %s8155_s25  ;;  %v3426_v44 = vstv %s8161_s21  ;;  %v3445_v54 = vld [vmem:[%s8157_s26 + $0x3] sm:$0xff]  ;;  %s3555_s25 = sadd.s32 13, %s8166_s18  ;;  %s3582_s21 = sadd.s32 18, %s8166_s18 }
 0x40c   : >> { %v3400_v0 = vmul.f32 %v3399_v45, %v3391_v19  ;;  %v3401_v2 = vmul.f32 %v3399_v45, %v3392_v14  ;;  %v3402_v15 = vmul.f32 %v3399_v45, %v3393_v34  ;;  %v3403_v27 = vmul.f32 %v3399_v45, %v3394_v53  ;;  %v3447_v14 = vld [vmem:[%s8157_s26 + $0x13] sm:$0xff]  ;;  %s8236_s28 = sld [smem:[#allocation18 + %s3555_s25]] }
 0x40d   : >> { %v3404_v1 = vmul.f32 %v3399_v45, %v3395_v5  ;;  %v3405_v50 = vmul.f32 %v3399_v45, %v3396_v61  ;;  %v3406_v38 = vmul.f32 %v3399_v45, %v3397_v35  ;;  %v3407_v36 = vmul.f32 %v3399_v45, %v3398_v23  ;;  %s8238_s20 = sld [smem:[#allocation18 + %s3582_s21]] }
 0x40e   : >> { %v3408_v29 = vadd.f32 %v3400_v0, %v3381_v33  ;;  %v3409_v24 = vadd.f32 %v3401_v2, %v3382_v21  ;;  %v3410_v59 = vadd.f32 %v3402_v15, %v3383_v10  ;;  %v3411_v3 = vadd.f32 %v3403_v27, %v3384_v32  ;;  %v3448_v33 = vld [vmem:[%s8157_s26 + $0x1b] sm:$0xff]  ;;  %v3449_v21 = vld [vmem:[%s8157_s26 + $0x23] sm:$0xff]  ;;  %v3450_v32 = vld [vmem:[%s8157_s26 + $0x2b] sm:$0xff]  ;;  %s8246_s18 = sld [smem:[#allocation18 + %s3609_s4]] }
 0x40f   : >> { %v3412_v12 = vadd.f32 %v3404_v1, %v3385_v57  ;;  %v3413_v42 = vadd.f32 %v3405_v50, %v3386_v9  ;;  %v3414_v8 = vadd.f32 %v3406_v38, %v3387_v41  ;;  %v3415_v13 = vadd.f32 %v3407_v36, %v3388_v16  ;;  %v3451_v57 = vld [vmem:[%s8157_s26 + $0x33] sm:$0xff]  ;;  %v3452_v9 = vld [vmem:[%s8157_s26 + $0x3b] sm:$0xff]  ;;  %v3472_v2 = vld [vmem:[%s8157_s26 + $0x4] sm:$0xff] }
 0x410   : >> { %v3427_v56 = vmul.f32 %v3426_v44, %v3418_v55  ;;  %v3428_v46 = vmul.f32 %v3426_v44, %v3419_v49  ;;  %v3429_v26 = vmul.f32 %v3426_v44, %v3420_v7  ;;  %v3430_v47 = vmul.f32 %v3426_v44, %v3421_v39  ;;  %v3473_v15 = vld [vmem:[%s8157_s26 + $0xc] sm:$0xff]  ;;  %v3474_v50 = vld [vmem:[%s8157_s26 + $0x14] sm:$0xff]  ;;  %v3475_v38 = vld [vmem:[%s8157_s26 + $0x1c] sm:$0xff] }
 0x411   : >> { %v3431_v17 = vmul.f32 %v3426_v44, %v3422_v11  ;;  %v3432_v62 = vmul.f32 %v3426_v44, %v3423_v58  ;;  %v3433_v30 = vmul.f32 %v3426_v44, %v3424_v37  ;;  %v3434_v63 = vmul.f32 %v3426_v44, %v3425_v31  ;;  %v3476_v36 = vld [vmem:[%s8157_s26 + $0x24] sm:$0xff] }
 0x412   : >> { %v3435_v60 = vadd.f32 %v3427_v56, %v3408_v29  ;;  %v3436_v18 = vadd.f32 %v3428_v46, %v3409_v24  ;;  %v3437_v6 = vadd.f32 %v3429_v26, %v3410_v59  ;;  %v3438_v19 = vadd.f32 %v3430_v47, %v3411_v3  ;;  %v3477_v24 = vld [vmem:[%s8157_s26 + $0x2c] sm:$0xff]  ;;  %v3478_v59 = vld [vmem:[%s8157_s26 + $0x34] sm:$0xff]  ;;  %v3479_v3 = vld [vmem:[%s8157_s26 + $0x3c] sm:$0xff] }
 0x413   : >> { %v3439_v34 = vadd.f32 %v3431_v17, %v3412_v12  ;;  %v3440_v53 = vadd.f32 %v3432_v62, %v3413_v42  ;;  %v3441_v5 = vadd.f32 %v3433_v30, %v3414_v8  ;;  %v3442_v10 = vadd.f32 %v3434_v63, %v3415_v13  ;;  %v4745_v46 = vld [vmem:[%s8157_s26 + $0x48] sm:$0xff]  ;;  %v4746_v26 = vld [vmem:[%s8157_s26 + $0x50] sm:$0xff]  ;;  %v4747_v63 = vld [vmem:[%s8157_s26 + $0x58] sm:$0xff] }
 0x414   : >> { %v3453_v61 = vstv %s8179_s11  ;;  %v3480_v35 = vstv %s8185_s27  ;;  %v8212_v23 = vstv %s8189_s2  ;;  %v8215_v41 = vstv %s8193_s12 }
 0x415   : >> { %v3454_v16 = vmul.f32 %v3453_v61, %v3445_v54  ;;  %v3455_v45 = vmul.f32 %v3453_v61, %v3446_v28  ;;  %v3456_v44 = vmul.f32 %v3453_v61, %v3447_v14  ;;  %v3457_v0 = vmul.f32 %v3453_v61, %v3448_v33  ;;  %v4748_v54 = vld [vmem:[%s8157_s26 + $0x60] sm:$0xff]  ;;  %v4749_v28 = vld [vmem:[%s8157_s26 + $0x68] sm:$0xff]  ;;  %v4750_v14 = vld [vmem:[%s8157_s26 + $0x70] sm:$0xff] }
 0x416   : >> { %v3458_v27 = vmul.f32 %v3453_v61, %v3449_v21  ;;  %v3459_v55 = vmul.f32 %v3453_v61, %v3450_v32  ;;  %v3460_v49 = vmul.f32 %v3453_v61, %v3451_v57  ;;  %v3461_v1 = vmul.f32 %v3453_v61, %v3452_v9  ;;  %v4751_v33 = vld [vmem:[%s8157_s26 + $0x78] sm:$0xff]  ;;  %v4752_v21 = vld [vmem:[%s8157_s26 + $0x80] sm:$0xff] }
 0x417   : >> { %v3462_v7 = vadd.f32 %v3454_v16, %v3435_v60  ;;  %v3463_v39 = vadd.f32 %v3455_v45, %v3436_v18  ;;  %v3464_v11 = vadd.f32 %v3456_v44, %v3437_v6  ;;  %v3465_v29 = vadd.f32 %v3457_v0, %v3438_v19  ;;  %v4754_v16 = vld [vmem:[%s8157_s26 + $0x51] sm:$0xff] }
 0x418   : >> { %v3466_v58 = vadd.f32 %v3458_v27, %v3439_v34  ;;  %v3467_v37 = vadd.f32 %v3459_v55, %v3440_v53  ;;  %v3468_v31 = vadd.f32 %v3460_v49, %v3441_v5  ;;  %v3469_v12 = vadd.f32 %v3461_v1, %v3442_v10  ;;  %v4756_v27 = vld [vmem:[%s8157_s26 + $0x61] sm:$0xff]  ;;  %v4757_v55 = vld [vmem:[%s8157_s26 + $0x69] sm:$0xff] }
 0x419   : >> { %v3481_v42 = vmul.f32 %v3480_v35, %v3472_v2  ;;  %v3482_v8 = vmul.f32 %v3480_v35, %v3473_v15  ;;  %v3483_v13 = vmul.f32 %v3480_v35, %v3474_v50  ;;  %v3484_v56 = vmul.f32 %v3480_v35, %v3475_v38  ;;  %v4755_v15 = vld [vmem:[%s8157_s26 + $0x59] sm:$0xff] }
 0x41a   : >> { %v3485_v47 = vmul.f32 %v3480_v35, %v3476_v36  ;;  %v3486_v17 = vmul.f32 %v3480_v35, %v3477_v24  ;;  %v3487_v62 = vmul.f32 %v3480_v35, %v3478_v59  ;;  %v3488_v30 = vmul.f32 %v3480_v35, %v3479_v3  ;;  %v4753_v35 = vld [vmem:[%s8157_s26 + $0x49] sm:$0xff]  ;;  %v4758_v36 = vld [vmem:[%s8157_s26 + $0x71] sm:$0xff] }
 0x41b   : >> { %v3489_v60 = vadd.f32 %v3481_v42, %v3462_v7  ;;  %v3490_v18 = vadd.f32 %v3482_v8, %v3463_v39  ;;  %v3491_v6 = vadd.f32 %v3483_v13, %v3464_v11  ;;  %v3492_v19 = vadd.f32 %v3484_v56, %v3465_v29  ;;  %v4759_v7 = vld [vmem:[%s8157_s26 + $0x79] sm:$0xff]  ;;  %v4760_v39 = vld [vmem:[%s8157_s26 + $0x81] sm:$0xff]  ;;  %v4761_v13 = vld [vmem:[%s8157_s26 + $0x4a] sm:$0xff] }
 0x41c   : >> { %v3493_v34 = vadd.f32 %v3485_v47, %v3466_v58  ;;  %v3494_v53 = vadd.f32 %v3486_v17, %v3467_v37  ;;  %v3495_v5 = vadd.f32 %v3487_v62, %v3468_v31  ;;  %v3496_v10 = vadd.f32 %v3488_v30, %v3469_v12  ;;  %v4762_v56 = vld [vmem:[%s8157_s26 + $0x52] sm:$0xff]  ;;  %v4763_v17 = vld [vmem:[%s8157_s26 + $0x5a] sm:$0xff]  ;;  %v4764_v62 = vld [vmem:[%s8157_s26 + $0x62] sm:$0xff] }
 0x41d   : >> { %v3512_v32 = vmul.f32 %v4745_v46, %v8212_v23  ;;  %v3513_v57 = vmul.f32 %v4746_v26, %v8212_v23  ;;  %v3514_v9 = vmul.f32 %v4747_v63, %v8212_v23  ;;  %v3515_v61 = vmul.f32 %v4748_v54, %v8212_v23  ;;  %v4765_v30 = vld [vmem:[%s8157_s26 + $0x6a] sm:$0xff] }
 0x41e   : >> { %v3516_v45 = vmul.f32 %v4749_v28, %v8212_v23  ;;  %v3517_v44 = vmul.f32 %v4750_v14, %v8212_v23  ;;  %v3518_v0 = vmul.f32 %v4751_v33, %v8212_v23  ;;  %v3519_v2 = vmul.f32 %v4752_v21, %v8212_v23 }
 0x41f   : >> { %v3520_v49 = vadd.f32 %v3512_v32, %v3489_v60  ;;  %v3521_v1 = vadd.f32 %v3513_v57, %v3490_v18  ;;  %v3522_v50 = vadd.f32 %v3514_v9, %v3491_v6  ;;  %v3523_v38 = vadd.f32 %v3515_v61, %v3492_v19  ;;  %v4766_v18 = vld [vmem:[%s8157_s26 + $0x72] sm:$0xff]  ;;  %v4767_v6 = vld [vmem:[%s8157_s26 + $0x7a] sm:$0xff] }
 0x420   : >> { %v3524_v11 = vadd.f32 %v3516_v45, %v3493_v34  ;;  %v3525_v29 = vadd.f32 %v3517_v44, %v3494_v53  ;;  %v3526_v24 = vadd.f32 %v3518_v0, %v3495_v5  ;;  %v3527_v59 = vadd.f32 %v3519_v2, %v3496_v10  ;;  %v4769_v32 = vld [vmem:[%s8157_s26 + $0x4b] sm:$0xff]  ;;  %v4770_v57 = vld [vmem:[%s8157_s26 + $0x53] sm:$0xff]  ;;  %v4771_v45 = vld [vmem:[%s8157_s26 + $0x5b] sm:$0xff] }
 0x421   : >> { %v3539_v23 = vmul.f32 %v4753_v35, %v8215_v41  ;;  %v3540_v3 = vmul.f32 %v4754_v16, %v8215_v41  ;;  %v3541_v58 = vmul.f32 %v4755_v15, %v8215_v41  ;;  %v3542_v37 = vmul.f32 %v4756_v27, %v8215_v41  ;;  %v4772_v44 = vld [vmem:[%s8157_s26 + $0x63] sm:$0xff]  ;;  %v4773_v0 = vld [vmem:[%s8157_s26 + $0x6b] sm:$0xff] }
 0x422   : >> { %v3543_v31 = vmul.f32 %v4757_v55, %v8215_v41  ;;  %v3544_v12 = vmul.f32 %v4758_v36, %v8215_v41  ;;  %v3545_v42 = vmul.f32 %v4759_v7, %v8215_v41  ;;  %v3546_v8 = vmul.f32 %v4760_v39, %v8215_v41  ;;  %v4768_v41 = vld [vmem:[%s8157_s26 + $0x82] sm:$0xff] }
 0x423   : >> { %v3547_v46 = vadd.f32 %v3539_v23, %v3520_v49  ;;  %v3548_v26 = vadd.f32 %v3540_v3, %v3521_v1  ;;  %v3549_v47 = vadd.f32 %v3541_v58, %v3522_v50  ;;  %v3550_v63 = vadd.f32 %v3542_v37, %v3523_v38  ;;  %v4774_v49 = vld [vmem:[%s8157_s26 + $0x73] sm:$0xff]  ;;  %v4775_v1 = vld [vmem:[%s8157_s26 + $0x7b] sm:$0xff]  ;;  %v4776_v50 = vld [vmem:[%s8157_s26 + $0x83] sm:$0xff] }
 0x424   : >> { %v3551_v54 = vadd.f32 %v3543_v31, %v3524_v11  ;;  %v3552_v28 = vadd.f32 %v3544_v12, %v3525_v29  ;;  %v3553_v60 = vadd.f32 %v3545_v42, %v3526_v24  ;;  %v3554_v19 = vadd.f32 %v3546_v8, %v3527_v59  ;;  %v4777_v23 = vld [vmem:[%s8157_s26 + $0x4c] sm:$0xff]  ;;  %v4778_v3 = vld [vmem:[%s8157_s26 + $0x54] sm:$0xff]  ;;  %v4779_v42 = vld [vmem:[%s8157_s26 + $0x5c] sm:$0xff] }
 0x425   : >> { %v3565_v14 = vstv %s8236_s28  ;;  %v3592_v33 = vstv %s8238_s20  ;;  %v3619_v21 = vstv %s8246_s18  ;;  %v4780_v8 = vld [vmem:[%s8157_s26 + $0x64] sm:$0xff] }
 0x426   : >> { %v3566_v34 = vmul.f32 %v4761_v13, %v3565_v14  ;;  %v3567_v53 = vmul.f32 %v4762_v56, %v3565_v14  ;;  %v3568_v5 = vmul.f32 %v4763_v17, %v3565_v14  ;;  %v3569_v10 = vmul.f32 %v4764_v62, %v3565_v14  ;;  %v4781_v13 = vld [vmem:[%s8157_s26 + $0x6c] sm:$0xff]  ;;  %v4782_v17 = vld [vmem:[%s8157_s26 + $0x74] sm:$0xff]  ;;  %v4783_v62 = vld [vmem:[%s8157_s26 + $0x7c] sm:$0xff] }
 0x427   : >> { %v3570_v9 = vmul.f32 %v4765_v30, %v3565_v14  ;;  %v3571_v61 = vmul.f32 %v4766_v18, %v3565_v14  ;;  %v3572_v35 = vmul.f32 %v4767_v6, %v3565_v14  ;;  %v3573_v16 = vmul.f32 %v4768_v41, %v3565_v14  ;;  %v4784_v30 = vld [vmem:[%s8157_s26 + $0x84] sm:$0xff] }
 0x428   : >> { %v3574_v2 = vadd.f32 %v3566_v34, %v3547_v46  ;;  %v3575_v15 = vadd.f32 %v3567_v53, %v3548_v26  ;;  %v3576_v27 = vadd.f32 %v3568_v5, %v3549_v47  ;;  %v3577_v55 = vadd.f32 %v3569_v10, %v3550_v63 }
 0x429   : >> { %v3578_v38 = vadd.f32 %v3570_v9, %v3551_v54  ;;  %v3579_v36 = vadd.f32 %v3571_v61, %v3552_v28  ;;  %v3580_v7 = vadd.f32 %v3572_v35, %v3553_v60  ;;  %v3581_v39 = vadd.f32 %v3573_v16, %v3554_v19 }
 0x42a   : >> { %v3593_v11 = vmul.f32 %v4769_v32, %v3592_v33  ;;  %v3594_v29 = vmul.f32 %v4770_v57, %v3592_v33  ;;  %v3595_v24 = vmul.f32 %v4771_v45, %v3592_v33  ;;  %v3596_v59 = vmul.f32 %v4772_v44, %v3592_v33 }
 0x42b   : >> { %v3597_v58 = vmul.f32 %v4773_v0, %v3592_v33  ;;  %v3598_v37 = vmul.f32 %v4774_v49, %v3592_v33  ;;  %v3599_v31 = vmul.f32 %v4775_v1, %v3592_v33  ;;  %v3600_v12 = vmul.f32 %v4776_v50, %v3592_v33 }
 0x42c   : >> { %v3601_v56 = vadd.f32 %v3593_v11, %v3574_v2  ;;  %v3602_v46 = vadd.f32 %v3594_v29, %v3575_v15  ;;  %v3603_v26 = vadd.f32 %v3595_v24, %v3576_v27  ;;  %v3604_v47 = vadd.f32 %v3596_v59, %v3577_v55 }
 0x42d   : >> { %v3605_v63 = vadd.f32 %v3597_v58, %v3578_v38  ;;  %v3606_v54 = vadd.f32 %v3598_v37, %v3579_v36  ;;  %v3607_v28 = vadd.f32 %v3599_v31, %v3580_v7  ;;  %v3608_v60 = vadd.f32 %v3600_v12, %v3581_v39 }
 0x42e   : >> { %v3620_v18 = vmul.f32 %v4777_v23, %v3619_v21  ;;  %v3621_v6 = vmul.f32 %v4778_v3, %v3619_v21  ;;  %v3622_v41 = vmul.f32 %v4779_v42, %v3619_v21  ;;  %v3623_v19 = vmul.f32 %v4780_v8, %v3619_v21 }
 0x42f   : >> { %v3624_v14 = vmul.f32 %v4781_v13, %v3619_v21  ;;  %v3625_v33 = vmul.f32 %v4782_v17, %v3619_v21  ;;  %v3626_v34 = vmul.f32 %v4783_v62, %v3619_v21  ;;  %v3627_v53 = vmul.f32 %v4784_v30, %v3619_v21  ;;  %3348 = sbr.rel (!%p3346_p3) target bundleno = 1021 (0x3fd), region = 255 }
 0x430   : >> { %v3628_v5 = vadd.f32 %v3620_v18, %v3601_v56   ;;  %v3629_v10 = vadd.f32 %v3621_v6, %v3602_v46   ;;  %v3630_v32 = vadd.f32 %v3622_v41, %v3603_v26   ;;  %v3631_v57 = vadd.f32 %v3623_v19, %v3604_v47  }
 0x431   : >> { %v3632_v9 = vadd.f32 %v3624_v14, %v3605_v63   ;;  %v3633_v61 = vadd.f32 %v3625_v33, %v3606_v54   ;;  %v3634_v35 = vadd.f32 %v3626_v34, %v3607_v28   ;;  %v3635_v16 = vadd.f32 %v3627_v53, %v3608_v60  }
 0x432   : >> { %v8822_v3 = vmov %v3631_v57  ;;  %v8823_v58 = vmov %v3630_v32  ;;  %v8824_v37 = vmov %v3629_v10  ;;  %v8825_v31 = vmov %v3628_v5  ;;  %3640 = vrot.lane.b32.xlu1 (%p3346_p3), %v3630_v32, %s6049_s1  ;;  %3636 = vrot.lane.b32.xlu0 (%p3346_p3), %v3628_v5, %s6049_s1 }
 0x433   : >> { %v8818_v11 = vmov %v3635_v16  ;;  %v8819_v29 = vmov %v3634_v35  ;;  %v8820_v24 = vmov %v3633_v61  ;;  %v8821_v59 = vmov %v3632_v9  ;;  %3644 = vrot.lane.b32.xlu2 (%p3346_p3), %v3632_v9, %s6049_s1 }
 0x434   : > { %v8360_v3 = vmov 0.0   ;;  %v8366_v58 = vmov 0.0   ;;  %v8368_v37 = vmov 0.0   ;;  %v8370_v31 = vmov 0.0  }
 0x435   : > { %v8372_v12 = vmov 0.0   ;;  %v8374_v42 = vmov 0.0  }
 0x43a   : > { %3642 = vrot.lane.b32.xlu1 %v3631_v57, %s6049_s1  ;;  %3638 = vrot.lane.b32.xlu0 %v3629_v10, %s6049_s1 }
 0x43b   : > { %3646 = vrot.lane.b32.xlu2 %v3633_v61, %s6049_s1 }
 0x442   : > { %3650 = vrot.lane.b32.xlu1 %v3635_v16, %s6049_s1  ;;  %3648 = vrot.lane.b32.xlu0 %v3634_v35, %s6049_s1  ;;  %s8376_s1 = smov 0  }
 0x48d   : > { %v3645_v21 = vpop.permute.xlu2 %3644 }
 0x48e   : > { %v3656_v45 = vsel %vm1611_vm14, %v3645_v21, 0.0 }
 0x48f   : > { %v8323_v44 = vadd.f32 %v3656_v45, %v8107_v52 }
 0x495   : > { %v3647_v0 = vpop.permute.xlu2 %3646 }
 0x496   : > { %v3657_v2 = vsel %vm1611_vm14, %v3647_v0, 0.0 }
 0x497   : > { %v8328_v15 = vadd.f32 %v3657_v2, %v8110_v51 }
 0x4a4   : > { %v3641_v27 = vpop.permute.xlu1 %3640  ;;  %v3637_v55 = vpop.permute.xlu0 %3636 }
 0x4a5   : > { %v3654_v49 = vsel %vm1611_vm14, %v3641_v27, 0.0  ;;  %v3652_v1 = vsel %vm1611_vm14, %v3637_v55, 0.0 }
 0x4a6   : > { %v8335_v50 = vadd.f32 %v3654_v49, %v8101_v43  ;;  %v8338_v52 = vadd.f32 %v3652_v1, %v8095_v25 }
 0x4ac   : > { %v3643_v38 = vpop.permute.xlu1 %3642  ;;  %v3639_v36 = vpop.permute.xlu0 %3638 }
 0x4ad   : > { %v3655_v51 = vsel %vm1611_vm14, %v3643_v38, 0.0  ;;  %v3653_v7 = vsel %vm1611_vm14, %v3639_v36, 0.0 }
 0x4ae   : > { %v8345_v39 = vadd.f32 %v3655_v51, %v8104_v20  ;;  %v8348_v11 = vadd.f32 %v3653_v7, %v8098_v48  ;;  %v8362_v20 = vmov 0.0   ;;  %v8364_v48 = vmov 0.0  }
 0x4b4   : > { %v3651_v29 = vpop.permute.xlu1 %3650  ;;  %v3649_v43 = vpop.permute.xlu0 %3648 }
 0x4b5   : > { %v3659_v25 = vsel %vm1611_vm14, %v3651_v29, 0.0  ;;  %v3658_v24 = vsel %vm1611_vm14, %v3649_v43, 0.0 }
 0x4b6   : > { %v8355_v59 = vadd.f32 %v3659_v25, %v8116_v40  ;;  %v8358_v23 = vadd.f32 %v3658_v24, %v8113_v22 }
 0x4b7 LB: >> { %s8390_s30 = smul.u32 50, %s6033_s1  ;;  %s4785_s26 = sshll.u32 %s6033_s1, 1  ;;  %s6033_s1 = sphi %s8376_s1, %s3673_s1   ;;  %v6029_v42 = vphi %v8374_v42, %v8833_v42   ;;  %v6025_v12 = vphi %v8372_v12, %v8832_v12   ;;  %v6021_v31 = vphi %v8370_v31, %v8831_v31   ;;  %v6017_v37 = vphi %v8368_v37, %v8830_v37   ;;  %v6013_v58 = vphi %v8366_v58, %v8829_v58   ;;  %v6009_v48 = vphi %v8364_v48, %v8828_v48   ;;  %v6005_v20 = vphi %v8362_v20, %v8827_v20   ;;  %v6001_v3 = vphi %v8360_v3, %v8826_v3  }
 0x4b8   : >> { %s4786_s11 = smul.u32 144, %s6033_s1  ;;  %s3821_s25 = sadd.s32 1, %s4785_s26 }
 0x4b9   : >> { %s3684_s0 = sadd.s32 4, %s8390_s30  ;;  %s3713_s27 = sadd.s32 9, %s8390_s30 }
 0x4ba   : >> { %s3685_s2 = sld [smem:[#allocation18 + %s3684_s0]]  ;;  %s3740_s12 = sadd.s32 14, %s8390_s30 }
 0x4bb   : >> { %s8397_s21 = sld [smem:[#allocation18 + %s3713_s27]]  ;;  %s8399_s4 = scalar_lea.vmem [#allocation3], %s4786_s11 }
 0x4bc   : >> { %v3688_v22 = vld [vmem:[%s8399_s4] sm:$0xff]  ;;  %v3689_v40 = vld [vmem:[%s8399_s4 + $0x8] sm:$0xff]  ;;  %s8403_s28 = sld [smem:[#allocation18 + %s3740_s12]]  ;;  %v3690_v8 = vld [vmem:[%s8399_s4 + $0x10] sm:$0xff]  ;;  %s8408_s20 = smul.u32 25, %s3821_s25 }
 0x4bd   : >> { %v3691_v13 = vld [vmem:[%s8399_s4 + $0x18] sm:$0xff]  ;;  %v3692_v56 = vld [vmem:[%s8399_s4 + $0x20] sm:$0xff]  ;;  %v3693_v46 = vld [vmem:[%s8399_s4 + $0x28] sm:$0xff]  ;;  %s3767_s18 = sadd.s32 19, %s8390_s30  ;;  %s3794_s26 = sadd.s32 24, %s8390_s30 }
 0x4be   : >> { %v3694_v26 = vld [vmem:[%s8399_s4 + $0x30] sm:$0xff]  ;;  %v3695_v47 = vld [vmem:[%s8399_s4 + $0x38] sm:$0xff]  ;;  %v3715_v41 = vld [vmem:[%s8399_s4 + $0x1] sm:$0xff]  ;;  %s3823_s11 = sadd.s32 4, %s8408_s20  ;;  %s8421_s0 = sld [smem:[#allocation18 + %s3767_s18]] }
 0x4bf   : >> { %v3716_v19 = vld [vmem:[%s8399_s4 + $0x9] sm:$0xff]  ;;  %v3717_v34 = vld [vmem:[%s8399_s4 + $0x11] sm:$0xff]  ;;  %v3718_v53 = vld [vmem:[%s8399_s4 + $0x19] sm:$0xff]  ;;  %s3852_s30 = sadd.s32 9, %s8408_s20  ;;  %s8427_s27 = sld [smem:[#allocation18 + %s3794_s26]] }
 0x4c0   : >> { %v3696_v17 = vstv %s3685_s2  ;;  %v3719_v5 = vld [vmem:[%s8399_s4 + $0x21] sm:$0xff]  ;;  %v3720_v61 = vld [vmem:[%s8399_s4 + $0x29] sm:$0xff]  ;;  %v3721_v35 = vld [vmem:[%s8399_s4 + $0x31] sm:$0xff]  ;;  %s8431_s2 = sld [smem:[#allocation18 + %s3823_s11]]  ;;  %s3879_s25 = sadd.s32 14, %s8408_s20 }
 0x4c1   : >> { %v3697_v62 = vmul.f32 %v3696_v17, %v3688_v22  ;;  %v3698_v30 = vmul.f32 %v3696_v17, %v3689_v40  ;;  %v3699_v63 = vmul.f32 %v3696_v17, %v3690_v8  ;;  %v3700_v54 = vmul.f32 %v3696_v17, %v3691_v13  ;;  %v3722_v16 = vld [vmem:[%s8399_s4 + $0x39] sm:$0xff]  ;;  %v3742_v38 = vld [vmem:[%s8399_s4 + $0x2] sm:$0xff]  ;;  %v3743_v36 = vld [vmem:[%s8399_s4 + $0xa] sm:$0xff]  ;;  %s8435_s12 = sld [smem:[#allocation18 + %s3852_s30]]  ;;  %s3673_s1 = sadd.s32 1, %s6033_s1  }
 0x4c2   : >> { %v3701_v28 = vmul.f32 %v3696_v17, %v3692_v56  ;;  %v3702_v60 = vmul.f32 %v3696_v17, %v3693_v46  ;;  %v3703_v18 = vmul.f32 %v3696_v17, %v3694_v26  ;;  %v3704_v6 = vmul.f32 %v3696_v17, %v3695_v47  ;;  %v3744_v25 = vld [vmem:[%s8399_s4 + $0x12] sm:$0xff]  ;;  %v3745_v24 = vld [vmem:[%s8399_s4 + $0x1a] sm:$0xff]  ;;  %s8478_s18 = sld [smem:[#allocation18 + %s3879_s25]]  ;;  %p3670_p4 = scmp.ge.s32.totalorder %s3673_s1, 10  }
 0x4c3   : >> { %v3705_v14 = vadd.f32 %v6029_v42, %v3697_v62  ;;  %v3706_v33 = vadd.f32 %v6025_v12, %v3698_v30  ;;  %v3707_v10 = vadd.f32 %v6021_v31, %v3699_v63  ;;  %v3708_v32 = vadd.f32 %v6017_v37, %v3700_v54  ;;  %v3747_v31 = vld [vmem:[%s8399_s4 + $0x2a] sm:$0xff]  ;;  %v3748_v12 = vld [vmem:[%s8399_s4 + $0x32] sm:$0xff]  ;;  %v3749_v42 = vld [vmem:[%s8399_s4 + $0x3a] sm:$0xff] }
 0x4c4   : >> { %v3709_v57 = vadd.f32 %v6013_v58, %v3701_v28  ;;  %v3710_v9 = vadd.f32 %v6009_v48, %v3702_v60  ;;  %v3711_v21 = vadd.f32 %v6005_v20, %v3703_v18  ;;  %v3712_v45 = vadd.f32 %v6001_v3, %v3704_v6  ;;  %v3746_v3 = vld [vmem:[%s8399_s4 + $0x22] sm:$0xff]  ;;  %v3770_v28 = vld [vmem:[%s8399_s4 + $0xb] sm:$0xff] }
 0x4c5   : >> { %v3723_v0 = vstv %s8397_s21  ;;  %v3750_v2 = vstv %s8403_s28  ;;  %v3769_v54 = vld [vmem:[%s8399_s4 + $0x3] sm:$0xff]  ;;  %s3906_s21 = sadd.s32 19, %s8408_s20  ;;  %s3933_s28 = sadd.s32 24, %s8408_s20 }
 0x4c6   : >> { %v3724_v27 = vmul.f32 %v3723_v0, %v3715_v41  ;;  %v3725_v55 = vmul.f32 %v3723_v0, %v3716_v19  ;;  %v3726_v49 = vmul.f32 %v3723_v0, %v3717_v34  ;;  %v3727_v1 = vmul.f32 %v3723_v0, %v3718_v53  ;;  %v3771_v19 = vld [vmem:[%s8399_s4 + $0x13] sm:$0xff]  ;;  %s8480_s26 = sld [smem:[#allocation18 + %s3906_s21]] }
 0x4c7   : >> { %v3728_v51 = vmul.f32 %v3723_v0, %v3719_v5  ;;  %v3729_v7 = vmul.f32 %v3723_v0, %v3720_v61  ;;  %v3730_v29 = vmul.f32 %v3723_v0, %v3721_v35  ;;  %v3731_v43 = vmul.f32 %v3723_v0, %v3722_v16  ;;  %s8488_s20 = sld [smem:[#allocation18 + %s3933_s28]] }
 0x4c8   : >> { %v3732_v20 = vadd.f32 %v3724_v27, %v3705_v14  ;;  %v3733_v48 = vadd.f32 %v3725_v55, %v3706_v33  ;;  %v3734_v58 = vadd.f32 %v3726_v49, %v3707_v10  ;;  %v3735_v37 = vadd.f32 %v3727_v1, %v3708_v32  ;;  %v3772_v14 = vld [vmem:[%s8399_s4 + $0x1b] sm:$0xff]  ;;  %v3773_v33 = vld [vmem:[%s8399_s4 + $0x23] sm:$0xff]  ;;  %v3774_v32 = vld [vmem:[%s8399_s4 + $0x2b] sm:$0xff] }
 0x4c9   : >> { %v3736_v22 = vadd.f32 %v3728_v51, %v3709_v57  ;;  %v3737_v40 = vadd.f32 %v3729_v7, %v3710_v9  ;;  %v3738_v8 = vadd.f32 %v3730_v29, %v3711_v21  ;;  %v3739_v13 = vadd.f32 %v3731_v43, %v3712_v45  ;;  %v3775_v57 = vld [vmem:[%s8399_s4 + $0x33] sm:$0xff]  ;;  %v3776_v9 = vld [vmem:[%s8399_s4 + $0x3b] sm:$0xff]  ;;  %v3796_v55 = vld [vmem:[%s8399_s4 + $0x4] sm:$0xff] }
 0x4ca   : >> { %v3751_v56 = vmul.f32 %v3750_v2, %v3742_v38  ;;  %v3752_v46 = vmul.f32 %v3750_v2, %v3743_v36  ;;  %v3753_v26 = vmul.f32 %v3750_v2, %v3744_v25  ;;  %v3754_v47 = vmul.f32 %v3750_v2, %v3745_v24  ;;  %v3797_v49 = vld [vmem:[%s8399_s4 + $0xc] sm:$0xff]  ;;  %v3798_v7 = vld [vmem:[%s8399_s4 + $0x14] sm:$0xff]  ;;  %v3799_v29 = vld [vmem:[%s8399_s4 + $0x1c] sm:$0xff] }
 0x4cb   : >> { %v3755_v17 = vmul.f32 %v3750_v2, %v3746_v3  ;;  %v3756_v62 = vmul.f32 %v3750_v2, %v3747_v31  ;;  %v3757_v30 = vmul.f32 %v3750_v2, %v3748_v12  ;;  %v3758_v63 = vmul.f32 %v3750_v2, %v3749_v42  ;;  %v3800_v43 = vld [vmem:[%s8399_s4 + $0x24] sm:$0xff] }
 0x4cc   : >> { %v3759_v60 = vadd.f32 %v3751_v56, %v3732_v20  ;;  %v3760_v18 = vadd.f32 %v3752_v46, %v3733_v48  ;;  %v3761_v6 = vadd.f32 %v3753_v26, %v3734_v58  ;;  %v3762_v41 = vadd.f32 %v3754_v47, %v3735_v37  ;;  %v3801_v48 = vld [vmem:[%s8399_s4 + $0x2c] sm:$0xff]  ;;  %v3802_v58 = vld [vmem:[%s8399_s4 + $0x34] sm:$0xff]  ;;  %v3803_v37 = vld [vmem:[%s8399_s4 + $0x3c] sm:$0xff] }
 0x4cd   : >> { %v3763_v34 = vadd.f32 %v3755_v17, %v3736_v22  ;;  %v3764_v53 = vadd.f32 %v3756_v62, %v3737_v40  ;;  %v3765_v5 = vadd.f32 %v3757_v30, %v3738_v8  ;;  %v3766_v10 = vadd.f32 %v3758_v63, %v3739_v13  ;;  %v4789_v46 = vld [vmem:[%s8399_s4 + $0x48] sm:$0xff]  ;;  %v4790_v26 = vld [vmem:[%s8399_s4 + $0x50] sm:$0xff]  ;;  %v4791_v63 = vld [vmem:[%s8399_s4 + $0x58] sm:$0xff] }
 0x4ce   : >> { %v3777_v61 = vstv %s8421_s0  ;;  %v3804_v35 = vstv %s8427_s27  ;;  %v8454_v16 = vstv %s8431_s2  ;;  %v8457_v21 = vstv %s8435_s12  ;;  %s8840_s27 = sand.u32 (%p3670_p4), 1, %s5841_s14  }
 0x4cf   : >> { %v3778_v45 = vmul.f32 %v3777_v61, %v3769_v54  ;;  %v3779_v0 = vmul.f32 %v3777_v61, %v3770_v28  ;;  %v3780_v2 = vmul.f32 %v3777_v61, %v3771_v19  ;;  %v3781_v27 = vmul.f32 %v3777_v61, %v3772_v14  ;;  %v4792_v54 = vld [vmem:[%s8399_s4 + $0x60] sm:$0xff]  ;;  %v4793_v28 = vld [vmem:[%s8399_s4 + $0x68] sm:$0xff]  ;;  %v4794_v19 = vld [vmem:[%s8399_s4 + $0x70] sm:$0xff]  ;;  %s4195_s2 = scalar_lea.sflag (%p3670_p4), [#allocation6], %s8840_s27 }
 0x4d0   : >> { %v3782_v1 = vmul.f32 %v3777_v61, %v3773_v33  ;;  %v3783_v38 = vmul.f32 %v3777_v61, %v3774_v32  ;;  %v3784_v36 = vmul.f32 %v3777_v61, %v3775_v57  ;;  %v3785_v51 = vmul.f32 %v3777_v61, %v3776_v9  ;;  %v4795_v14 = vld [vmem:[%s8399_s4 + $0x78] sm:$0xff]  ;;  %v4796_v33 = vld [vmem:[%s8399_s4 + $0x80] sm:$0xff] }
 0x4d1   : >> { %v3786_v25 = vadd.f32 %v3778_v45, %v3759_v60  ;;  %v3787_v24 = vadd.f32 %v3779_v0, %v3760_v18  ;;  %v3788_v3 = vadd.f32 %v3780_v2, %v3761_v6  ;;  %v3789_v20 = vadd.f32 %v3781_v27, %v3762_v41  ;;  %v4798_v45 = vld [vmem:[%s8399_s4 + $0x51] sm:$0xff] }
 0x4d2   : >> { %v3790_v31 = vadd.f32 %v3782_v1, %v3763_v34  ;;  %v3791_v12 = vadd.f32 %v3783_v38, %v3764_v53  ;;  %v3792_v42 = vadd.f32 %v3784_v36, %v3765_v5  ;;  %v3793_v22 = vadd.f32 %v3785_v51, %v3766_v10  ;;  %v4800_v1 = vld [vmem:[%s8399_s4 + $0x61] sm:$0xff]  ;;  %v4801_v38 = vld [vmem:[%s8399_s4 + $0x69] sm:$0xff] }
 0x4d3   : >> { %v3805_v40 = vmul.f32 %v3804_v35, %v3796_v55  ;;  %v3806_v8 = vmul.f32 %v3804_v35, %v3797_v49  ;;  %v3807_v13 = vmul.f32 %v3804_v35, %v3798_v7  ;;  %v3808_v56 = vmul.f32 %v3804_v35, %v3799_v29  ;;  %v4799_v49 = vld [vmem:[%s8399_s4 + $0x59] sm:$0xff] }
 0x4d4   : >> { %v3809_v47 = vmul.f32 %v3804_v35, %v3800_v43  ;;  %v3810_v17 = vmul.f32 %v3804_v35, %v3801_v48  ;;  %v3811_v62 = vmul.f32 %v3804_v35, %v3802_v58  ;;  %v3812_v30 = vmul.f32 %v3804_v35, %v3803_v37  ;;  %v4797_v35 = vld [vmem:[%s8399_s4 + $0x49] sm:$0xff]  ;;  %v4802_v43 = vld [vmem:[%s8399_s4 + $0x71] sm:$0xff] }
 0x4d5   : >> { %v3813_v60 = vadd.f32 %v3805_v40, %v3786_v25  ;;  %v3814_v18 = vadd.f32 %v3806_v8, %v3787_v24  ;;  %v3815_v6 = vadd.f32 %v3807_v13, %v3788_v3  ;;  %v3816_v41 = vadd.f32 %v3808_v56, %v3789_v20  ;;  %v4803_v25 = vld [vmem:[%s8399_s4 + $0x79] sm:$0xff]  ;;  %v4804_v24 = vld [vmem:[%s8399_s4 + $0x81] sm:$0xff]  ;;  %v4805_v13 = vld [vmem:[%s8399_s4 + $0x4a] sm:$0xff] }
 0x4d6   : >> { %v3817_v34 = vadd.f32 %v3809_v47, %v3790_v31  ;;  %v3818_v53 = vadd.f32 %v3810_v17, %v3791_v12  ;;  %v3819_v5 = vadd.f32 %v3811_v62, %v3792_v42  ;;  %v3820_v10 = vadd.f32 %v3812_v30, %v3793_v22  ;;  %v4806_v56 = vld [vmem:[%s8399_s4 + $0x52] sm:$0xff]  ;;  %v4807_v17 = vld [vmem:[%s8399_s4 + $0x5a] sm:$0xff]  ;;  %v4808_v62 = vld [vmem:[%s8399_s4 + $0x62] sm:$0xff] }
 0x4d7   : >> { %v3836_v32 = vmul.f32 %v4789_v46, %v8454_v16  ;;  %v3837_v57 = vmul.f32 %v4790_v26, %v8454_v16  ;;  %v3838_v9 = vmul.f32 %v4791_v63, %v8454_v16  ;;  %v3839_v61 = vmul.f32 %v4792_v54, %v8454_v16  ;;  %v4809_v30 = vld [vmem:[%s8399_s4 + $0x6a] sm:$0xff] }
 0x4d8   : >> { %v3840_v0 = vmul.f32 %v4793_v28, %v8454_v16  ;;  %v3841_v2 = vmul.f32 %v4794_v19, %v8454_v16  ;;  %v3842_v27 = vmul.f32 %v4795_v14, %v8454_v16  ;;  %v3843_v55 = vmul.f32 %v4796_v33, %v8454_v16 }
 0x4d9   : >> { %v3844_v36 = vadd.f32 %v3836_v32, %v3813_v60  ;;  %v3845_v51 = vadd.f32 %v3837_v57, %v3814_v18  ;;  %v3846_v7 = vadd.f32 %v3838_v9, %v3815_v6  ;;  %v3847_v29 = vadd.f32 %v3839_v61, %v3816_v41  ;;  %v4810_v18 = vld [vmem:[%s8399_s4 + $0x72] sm:$0xff]  ;;  %v4811_v6 = vld [vmem:[%s8399_s4 + $0x7a] sm:$0xff] }
 0x4da   : >> { %v3848_v3 = vadd.f32 %v3840_v0, %v3817_v34  ;;  %v3849_v20 = vadd.f32 %v3841_v2, %v3818_v53  ;;  %v3850_v48 = vadd.f32 %v3842_v27, %v3819_v5  ;;  %v3851_v58 = vadd.f32 %v3843_v55, %v3820_v10  ;;  %v4813_v32 = vld [vmem:[%s8399_s4 + $0x4b] sm:$0xff]  ;;  %v4814_v57 = vld [vmem:[%s8399_s4 + $0x53] sm:$0xff]  ;;  %v4815_v0 = vld [vmem:[%s8399_s4 + $0x5b] sm:$0xff] }
 0x4db   : >> { %v3863_v16 = vmul.f32 %v4797_v35, %v8457_v21  ;;  %v3864_v37 = vmul.f32 %v4798_v45, %v8457_v21  ;;  %v3865_v31 = vmul.f32 %v4799_v49, %v8457_v21  ;;  %v3866_v12 = vmul.f32 %v4800_v1, %v8457_v21  ;;  %v4816_v2 = vld [vmem:[%s8399_s4 + $0x63] sm:$0xff]  ;;  %v4817_v27 = vld [vmem:[%s8399_s4 + $0x6b] sm:$0xff] }
 0x4dc   : >> { %v3867_v42 = vmul.f32 %v4801_v38, %v8457_v21  ;;  %v3868_v22 = vmul.f32 %v4802_v43, %v8457_v21  ;;  %v3869_v40 = vmul.f32 %v4803_v25, %v8457_v21  ;;  %v3870_v8 = vmul.f32 %v4804_v24, %v8457_v21  ;;  %v4812_v21 = vld [vmem:[%s8399_s4 + $0x82] sm:$0xff] }
 0x4dd   : >> { %v3871_v46 = vadd.f32 %v3863_v16, %v3844_v36  ;;  %v3872_v26 = vadd.f32 %v3864_v37, %v3845_v51  ;;  %v3873_v47 = vadd.f32 %v3865_v31, %v3846_v7  ;;  %v3874_v63 = vadd.f32 %v3866_v12, %v3847_v29  ;;  %v4818_v36 = vld [vmem:[%s8399_s4 + $0x73] sm:$0xff]  ;;  %v4819_v51 = vld [vmem:[%s8399_s4 + $0x7b] sm:$0xff]  ;;  %v4820_v7 = vld [vmem:[%s8399_s4 + $0x83] sm:$0xff] }
 0x4de   : >> { %v3875_v54 = vadd.f32 %v3867_v42, %v3848_v3  ;;  %v3876_v28 = vadd.f32 %v3868_v22, %v3849_v20  ;;  %v3877_v60 = vadd.f32 %v3869_v40, %v3850_v48  ;;  %v3878_v41 = vadd.f32 %v3870_v8, %v3851_v58  ;;  %v4821_v16 = vld [vmem:[%s8399_s4 + $0x4c] sm:$0xff]  ;;  %v4822_v37 = vld [vmem:[%s8399_s4 + $0x54] sm:$0xff]  ;;  %v4823_v40 = vld [vmem:[%s8399_s4 + $0x5c] sm:$0xff] }
 0x4df   : >> { %v3889_v19 = vstv %s8478_s18  ;;  %v3916_v14 = vstv %s8480_s26  ;;  %v3943_v33 = vstv %s8488_s20  ;;  %v4824_v8 = vld [vmem:[%s8399_s4 + $0x64] sm:$0xff]  ;;  %s5587_s18 = scalar_lea.hbm (%p3670_p4), %s8729_s10, 128 }
 0x4e0   : >> { %v3890_v34 = vmul.f32 %v4805_v13, %v3889_v19  ;;  %v3891_v53 = vmul.f32 %v4806_v56, %v3889_v19  ;;  %v3892_v5 = vmul.f32 %v4807_v17, %v3889_v19  ;;  %v3893_v10 = vmul.f32 %v4808_v62, %v3889_v19  ;;  %v4825_v13 = vld [vmem:[%s8399_s4 + $0x6c] sm:$0xff]  ;;  %v4826_v17 = vld [vmem:[%s8399_s4 + $0x74] sm:$0xff]  ;;  %v4827_v62 = vld [vmem:[%s8399_s4 + $0x7c] sm:$0xff] }
 0x4e1   : >> { %v3894_v9 = vmul.f32 %v4809_v30, %v3889_v19  ;;  %v3895_v61 = vmul.f32 %v4810_v18, %v3889_v19  ;;  %v3896_v35 = vmul.f32 %v4811_v6, %v3889_v19  ;;  %v3897_v45 = vmul.f32 %v4812_v21, %v3889_v19  ;;  %v4828_v30 = vld [vmem:[%s8399_s4 + $0x84] sm:$0xff]  ;;  %s4829_s4 = sld [smem:[#allocation12 + $0x2]] (%p3670_p4) }
 0x4e2   : >> { %v3898_v55 = vadd.f32 %v3890_v34, %v3871_v46  ;;  %v3899_v49 = vadd.f32 %v3891_v53, %v3872_v26  ;;  %v3900_v1 = vadd.f32 %v3892_v5, %v3873_v47  ;;  %v3901_v38 = vadd.f32 %v3893_v10, %v3874_v63 }
 0x4e3   : >> { %v3902_v29 = vadd.f32 %v3894_v9, %v3875_v54  ;;  %v3903_v43 = vadd.f32 %v3895_v61, %v3876_v28  ;;  %v3904_v25 = vadd.f32 %v3896_v35, %v3877_v60  ;;  %v3905_v24 = vadd.f32 %v3897_v45, %v3878_v41 }
 0x4e4   : >> { %v3917_v3 = vmul.f32 %v4813_v32, %v3916_v14  ;;  %v3918_v20 = vmul.f32 %v4814_v57, %v3916_v14  ;;  %v3919_v48 = vmul.f32 %v4815_v0, %v3916_v14  ;;  %v3920_v58 = vmul.f32 %v4816_v2, %v3916_v14 }
 0x4e5   : >> { %v3921_v31 = vmul.f32 %v4817_v27, %v3916_v14  ;;  %v3922_v12 = vmul.f32 %v4818_v36, %v3916_v14  ;;  %v3923_v42 = vmul.f32 %v4819_v51, %v3916_v14  ;;  %v3924_v22 = vmul.f32 %v4820_v7, %v3916_v14 }
 0x4e6   : >> { %v3925_v56 = vadd.f32 %v3917_v3, %v3898_v55  ;;  %v3926_v46 = vadd.f32 %v3918_v20, %v3899_v49  ;;  %v3927_v26 = vadd.f32 %v3919_v48, %v3900_v1  ;;  %v3928_v47 = vadd.f32 %v3920_v58, %v3901_v38 }
 0x4e7   : >> { %v3929_v63 = vadd.f32 %v3921_v31, %v3902_v29  ;;  %v3930_v54 = vadd.f32 %v3922_v12, %v3903_v43  ;;  %v3931_v28 = vadd.f32 %v3923_v42, %v3904_v25  ;;  %v3932_v60 = vadd.f32 %v3924_v22, %v3905_v24 }
 0x4e8   : >> { %v3944_v18 = vmul.f32 %v4821_v16, %v3943_v33  ;;  %v3945_v6 = vmul.f32 %v4822_v37, %v3943_v33  ;;  %v3946_v21 = vmul.f32 %v4823_v40, %v3943_v33  ;;  %v3947_v41 = vmul.f32 %v4824_v8, %v3943_v33 }
 0x4e9   : >> { %v3948_v19 = vmul.f32 %v4825_v13, %v3943_v33  ;;  %v3949_v14 = vmul.f32 %v4826_v17, %v3943_v33  ;;  %v3950_v34 = vmul.f32 %v4827_v62, %v3943_v33  ;;  %v3951_v53 = vmul.f32 %v4828_v30, %v3943_v33  ;;  %3672 = sbr.rel (!%p3670_p4) target bundleno = 1207 (0x4b7), region = 266 }
 0x4ea   : >> { %v3952_v5 = vadd.f32 %v3944_v18, %v3925_v56   ;;  %v3953_v10 = vadd.f32 %v3945_v6, %v3926_v46   ;;  %v3954_v32 = vadd.f32 %v3946_v21, %v3927_v26   ;;  %v3955_v57 = vadd.f32 %v3947_v41, %v3928_v47  }
 0x4eb   : >> { %v3956_v9 = vadd.f32 %v3948_v19, %v3929_v63   ;;  %v3957_v61 = vadd.f32 %v3949_v14, %v3930_v54   ;;  %v3958_v35 = vadd.f32 %v3950_v34, %v3931_v28   ;;  %v3959_v45 = vadd.f32 %v3951_v53, %v3932_v60  }
 0x4ec   : >> { %v8830_v37 = vmov %v3955_v57  ;;  %v8831_v31 = vmov %v3954_v32  ;;  %v8832_v12 = vmov %v3953_v10  ;;  %v8833_v42 = vmov %v3952_v5  ;;  %3964 = vrot.lane.b32.xlu1 (%p3670_p4), %v3954_v32, %s6050_s3  ;;  %3960 = vrot.lane.b32.xlu0 (%p3670_p4), %v3952_v5, %s6050_s3 }
 0x4ed   : >> { %v8826_v3 = vmov %v3959_v45  ;;  %v8827_v20 = vmov %v3958_v35  ;;  %v8828_v48 = vmov %v3957_v61  ;;  %v8829_v58 = vmov %v3956_v9  ;;  %3968 = vrot.lane.b32.xlu2 (%p3670_p4), %v3956_v9, %s6050_s3 }
 0x4ee   : > { %v8564_v2 = vstv %s4829_s4 }
 0x4f4   : > { %3966 = vrot.lane.b32.xlu1 %v3955_v57, %s6050_s3  ;;  %3962 = vrot.lane.b32.xlu0 %v3953_v10, %s6050_s3 }
 0x4f5   : > { %3970 = vrot.lane.b32.xlu2 %v3957_v61, %s6050_s3 }
 0x4fc   : > { %3974 = vrot.lane.b32.xlu1 %v3959_v45, %s6050_s3  ;;  %3972 = vrot.lane.b32.xlu0 %v3958_v35, %s6050_s3  ;;  %s4835_s3 = sshll.u32 %s6130_s17, 6  ;;  %s4207_s17 = sshll.u32 %s7201_s29, 4  ;;  %s4208_s17 = int_to_ptr.vmem [resolvable:$true] %s4207_s17 }
 0x4fd   : > { %s4206_s0 = scalar_lea.hbm %s8729_s10, %s4835_s3 }
 0x4fe   : > { %s4209_s30 = sshll.u32 %s4206_s0, 4  ;;  %s4210_s30 = int_to_ptr.hbm [resolvable:$true] %s4209_s30 }
 0x4ff   : > { %s5581_s12 = sshra.s32 %s4210_s30, 4  ;;  %s5582_s12 = int_to_ptr.hbm [resolvable:$true] %s5581_s12 }
 0x500   : > { %s5583_s25 = scalar_lea.hbm %s5582_s12, 64  ;;  %p5588_p10 = scmp.lt.s32.totalorder %s5582_s12, %s8729_s10 }
 0x501   : > { %p5584_p7 = scmp.ne.s32.totalorder %s5582_s12, %s5583_s25  ;;  %p5589_p11 = scmp.lt.s32.totalorder %s5587_s18, %s5583_s25 }
 0x503   : > { %p5585_p8 = pnand %p5584_p7, %p6147_p5  ;;  %p5590_p12 = por %p5589_p11, %p5588_p10 }
 0x505   : > { %p5586_p9 = pneg %p5585_p8 }
 0x507   : > { %p5591_p13 = pnand %p5590_p12, %p5586_p9 }
 0x547   : > { %v3969_v33 = vpop.permute.xlu2 %3968 }
 0x548   : > { %v3980_v0 = vsel %vm1645_vm15, %v3969_v33, 0.0 }
 0x549   : > { %v3988_v27 = vadd.f32 %v3980_v0, %v8323_v44 }
 0x54b   : > { %v8568_v55 = vadd.f32 %v8564_v2, %v3988_v27 }
 0x54d   : > { %v4006_v49 = vand.u32 2147483647, %v8568_v55  ;;  %vm4166_vm12 = vcmp.ge.f32.partialorder %v8568_v55, 0.0 }
 0x54f   : > { %v4014_v1 = vsub.f32 0.0, %v4006_v49  ;;  %v3971_v38 = vpop.permute.xlu2 %3970 }
 0x550   : > { %v3981_v36 = vsel %vm1645_vm15, %v3971_v38, 0.0 }
 0x551   : > { %v4026_v51 = vmul.f32 1.442695, %v4014_v1  ;;  %v3989_v7 = vadd.f32 %v3981_v36, %v8328_v15 }
 0x553   : > { %5355 = vpow2.f32 %v4026_v51  ;;  %v8575_v29 = vadd.f32 %v8564_v2, %v3989_v7 }
 0x555   : > { %v4007_v43 = vand.u32 2147483647, %v8575_v29  ;;  %vm4167_vm4 = vcmp.ge.f32.partialorder %v8575_v29, 0.0 }
 0x557   : > { %v4015_v44 = vsub.f32 0.0, %v4007_v43 }
 0x559   : > { %v5356_v25 = vpop.eup %5355  ;;  %v4028_v24 = vmul.f32 1.442695, %v4015_v44 }
 0x55a   : > { %v4038_v3 = vadd.f32 1.0, %v5356_v25 }
 0x55b   : > { %5357 = vpow2.f32 %v4028_v24 }
 0x55c   : > { %5359 = vrcp.f32 %v4038_v3  ;;  %vm4107_vm9 = vweird.f32 %v4038_v3  ;;  %v4111_v8 = vand.u32 2147483647, %v4038_v3  ;;  %v4113_v13 = vand.u32 2147483648, %v4038_v3 }
 0x55e   : > { %v3965_v20 = vpop.permute.xlu1 %3964  ;;  %v3961_v58 = vpop.permute.xlu0 %3960  ;;  %vm8596_vm5 = vcmp.eq.f32.partialorder %v4111_v8, 8.507059e+37  ;;  %v4114_v63 = vor.u32 1.1754944e-38, %v4113_v13 }
 0x55f   : > { %v3978_v48 = vsel %vm1645_vm15, %v3965_v20, 0.0  ;;  %v3976_v37 = vsel %vm1645_vm15, %v3961_v58, 0.0 }
 0x560   : > { %v3986_v15 = vadd.f32 %v3978_v48, %v8335_v50  ;;  %v3984_v42 = vadd.f32 %v3976_v37, %v8338_v52 }
 0x561   : > { %v5358_v16 = vpop.eup %5357 }
 0x562   : > { %v5360_v31 = vpop.eup %5359  ;;  %v4039_v12 = vadd.f32 1.0, %v5358_v16  ;;  %v8585_v40 = vadd.f32 %v8564_v2, %v3986_v15  ;;  %v8589_v50 = vadd.f32 %v8564_v2, %v3984_v42 }
 0x563   : > { %v4103_v22 = vmul.f32 %v5360_v31, %v4038_v3  ;;  %vm4108_vm10 = vweird.f32 %v5360_v31 }
 0x564   : > { %5361 = vrcp.f32 %v4039_v12  ;;  %v4004_v46 = vand.u32 2147483647, %v8585_v40  ;;  %v4002_v17 = vand.u32 2147483647, %v8589_v50  ;;  %vm8592_vm11 = vmor %vm4107_vm9, %vm4108_vm10  ;;  %vm4122_vm13 = vweird.f32 %v4039_v12 }
 0x565   : > { %v4104_v56 = vsub.f32 1.0, %v4103_v22  ;;  %v4128_v53 = vand.u32 2147483648, %v4039_v12  ;;  %v4126_v61 = vand.u32 2147483647, %v4039_v12  ;;  %vm4164_vm10 = vcmp.ge.f32.partialorder %v8585_v40, 0.0 }
 0x566   : > { %v4012_v47 = vsub.f32 0.0, %v4004_v46  ;;  %v3967_v52 = vpop.permute.xlu1 %3966  ;;  %v3963_v28 = vpop.permute.xlu0 %3962  ;;  %v4010_v6 = vsub.f32 0.0, %v4002_v17 }
 0x567   : > { %v4105_v26 = vmul.f32 %v5360_v31, %v4104_v56  ;;  %v3979_v54 = vsel %vm1645_vm15, %v3967_v52, 0.0  ;;  %v3977_v19 = vsel %vm1645_vm15, %v3963_v28, 0.0  ;;  %vm4127_vm2 = vcmp.eq.f32.partialorder %v4126_v61, 8.507059e+37 }
 0x568   : > { %v4022_v18 = vmul.f32 1.442695, %v4012_v47  ;;  %v3987_v21 = vadd.f32 %v3979_v54, %v8345_v39  ;;  %v4018_v10 = vmul.f32 1.442695, %v4010_v6  ;;  %v3985_v32 = vadd.f32 %v3977_v19, %v8348_v11 }
 0x569   : > { %v4106_v60 = vadd.f32 %v5360_v31, %v4105_v26  ;;  %v4129_v11 = vor.u32 1.1754944e-38, %v4128_v53 }
 0x56a   : > { %v5362_v41 = vpop.eup %5361  ;;  %5363 = vpow2.f32 %v4022_v18  ;;  %v8611_v39 = vadd.f32 %v8564_v2, %v3987_v21  ;;  %v8616_v45 = vadd.f32 %v8564_v2, %v3985_v32 }
 0x56b   : > { %v4110_v14 = vsel %vm8592_vm11, %v5360_v31, %v4106_v60  ;;  %v4118_v34 = vmul.f32 %v5362_v41, %v4039_v12  ;;  %vm4123_vm14 = vweird.f32 %v5362_v41  ;;  %5365 = vpow2.f32 %v4018_v10 }
 0x56c   : > { %v4115_v5 = vsel %vm8596_vm5, %v4114_v63, %v4110_v14  ;;  %v4005_v35 = vand.u32 2147483647, %v8611_v39  ;;  %vm8622_vm1 = vmor %vm4122_vm13, %vm4123_vm14  ;;  %v4003_v38 = vand.u32 2147483647, %v8616_v45  ;;  %vm4162_vm5 = vcmp.ge.f32.partialorder %v8589_v50, 0.0 }
 0x56d   : > { %v4174_v57 = vsub.f32 1.0, %v4115_v5  ;;  %v4119_v9 = vsub.f32 1.0, %v4118_v34 }
 0x56e   : > { %v3975_v27 = vpop.permute.xlu1 %3974  ;;  %v4013_v1 = vsub.f32 0.0, %v4005_v35  ;;  %v3973_v51 = vpop.permute.xlu0 %3972  ;;  %v4011_v24 = vsub.f32 0.0, %v4003_v38 }
 0x56f   : > { %v4182_v33 = vsel %vm4166_vm12, %v4115_v5, %v4174_v57  ;;  %v4120_v0 = vmul.f32 %v5362_v41, %v4119_v9  ;;  %v3983_v36 = vsel %vm1645_vm15, %v3975_v27, 0.0  ;;  %v3982_v3 = vsel %vm1645_vm15, %v3973_v51, 0.0 }
 0x570   : > { %4190 = vst [vmem:[%s7201_s29 + $0x20] sm:$0xff] %v4182_v33  ;;  %v5364_v7 = vpop.eup %5363  ;;  %v3991_v55 = vadd.f32 %v3983_v36, %v8355_v59  ;;  %v4024_v25 = vmul.f32 1.442695, %v4013_v1  ;;  %v3990_v37 = vadd.f32 %v3982_v3, %v8358_v23  ;;  %v4020_v31 = vmul.f32 1.442695, %v4011_v24 }
 0x571   : > { %v4121_v43 = vadd.f32 %v5362_v41, %v4120_v0  ;;  %v4036_v44 = vadd.f32 1.0, %v5364_v7  ;;  %v5366_v58 = vpop.eup %5365 }
 0x572   : > { %v8635_v48 = vadd.f32 %v8564_v2, %v3991_v55  ;;  %v4034_v59 = vadd.f32 1.0, %v5366_v58  ;;  %v8642_v22 = vadd.f32 %v8564_v2, %v3990_v37 }
 0x573   : > { %v4125_v20 = vsel %vm8622_vm1, %v5362_v41, %v4121_v43  ;;  %5367 = vrcp.f32 %v4036_v44  ;;  %v4083_v62 = vand.u32 2147483648, %v4036_v44  ;;  %v4081_v2 = vand.u32 2147483647, %v4036_v44 }
 0x574   : > { %v4130_v16 = vsel %vm4127_vm2, %v4129_v11, %v4125_v20  ;;  %5369 = vpow2.f32 %v4024_v25  ;;  %v4009_v4 = vand.u32 2147483647, %v8635_v48  ;;  %v4008_v46 = vand.u32 2147483647, %v8642_v22 }
 0x575   : > { %v4175_v15 = vsub.f32 1.0, %v4130_v16  ;;  %5371 = vrcp.f32 %v4034_v59  ;;  %vm4077_vm7 = vweird.f32 %v4036_v44  ;;  %v4053_v6 = vand.u32 2147483648, %v4034_v59 }
 0x576   : > { %5373 = vpow2.f32 %v4020_v31  ;;  %v4017_v42 = vsub.f32 0.0, %v4009_v4  ;;  %v4016_v17 = vsub.f32 0.0, %v4008_v46  ;;  %v4084_v41 = vor.u32 1.1754944e-38, %v4083_v62 }
 0x577   : > { %v4183_v12 = vsel %vm4167_vm4, %v4130_v16, %v4175_v15  ;;  %v4051_v14 = vand.u32 2147483647, %v4034_v59  ;;  %vm4082_vm0 = vcmp.eq.f32.partialorder %v4081_v2, 8.507059e+37  ;;  %vm4047_vm8 = vweird.f32 %v4034_v59 }
 0x578   : > { %4191 = vst [vmem:[%s7201_s29 + $0x28] sm:$0xff] %v4183_v12  ;;  %v4032_v13 = vmul.f32 1.442695, %v4017_v42  ;;  %v4030_v60 = vmul.f32 1.442695, %v4016_v17  ;;  %v4054_v9 = vor.u32 1.1754944e-38, %v4053_v6 }
 0x579   : > { %v5368_v8 = vpop.eup %5367  ;;  %vm4052_vm11 = vcmp.eq.f32.partialorder %v4051_v14, 8.507059e+37  ;;  %vm4165_vm4 = vcmp.ge.f32.partialorder %v8611_v39, 0.0 }
 0x57a   : > { %v5370_v29 = vpop.eup %5369  ;;  %v4073_v56 = vmul.f32 %v5368_v8, %v4036_v44  ;;  %5375 = vpow2.f32 %v4032_v13  ;;  %vm4078_vm15 = vweird.f32 %v5368_v8 }
 0x57b   : > { %v8645_v26 = vadd.f32 1.0, %v5370_v29  ;;  %v5372_v23 = vpop.eup %5371  ;;  %vm4079_vm3 = vmor %vm4077_vm7, %vm4078_vm15 }
 0x57c   : > { %v4074_v47 = vsub.f32 1.0, %v4073_v56  ;;  %v5374_v52 = vpop.eup %5373  ;;  %v4043_v30 = vmul.f32 %v5372_v23, %v4034_v59  ;;  %vm4048_vm6 = vweird.f32 %v5372_v23 }
 0x57d   : > { %5377 = vrcp.f32 %v8645_v26  ;;  %v8648_v54 = vadd.f32 1.0, %v5374_v52  ;;  %vm4049_vm9 = vmor %vm4047_vm8, %vm4048_vm6  ;;  %v4098_v11 = vand.u32 2147483648, %v8645_v26  ;;  %v4096_v40 = vand.u32 2147483647, %v8645_v26 }
 0x57e   : > { %v4075_v63 = vmul.f32 %v5368_v8, %v4074_v47  ;;  %v4044_v28 = vsub.f32 1.0, %v4043_v30  ;;  %vm4092_vm13 = vweird.f32 %v8645_v26  ;;  %vm4163_vm8 = vcmp.ge.f32.partialorder %v8616_v45, 0.0 }
 0x57f   : > { %5379 = vrcp.f32 %v8648_v54  ;;  %v4099_v24 = vor.u32 1.1754944e-38, %v4098_v11  ;;  %v4066_v3 = vand.u32 2147483647, %v8648_v54  ;;  %v4068_v20 = vand.u32 2147483648, %v8648_v54 }
 0x580   : > { %v4076_v18 = vadd.f32 %v5368_v8, %v4075_v63  ;;  %v5376_v21 = vpop.eup %5375  ;;  %v4045_v19 = vmul.f32 %v5372_v23, %v4044_v28  ;;  %5381 = vpow2.f32 %v4030_v60  ;;  %vm4097_vm2 = vcmp.eq.f32.partialorder %v4096_v40, 8.507059e+37 }
 0x581   : > { %v8651_v53 = vadd.f32 1.0, %v5376_v21  ;;  %vm4062_vm15 = vweird.f32 %v8648_v54  ;;  %v4069_v4 = vor.u32 1.1754944e-38, %v4068_v20 }
 0x582   : > { %v4080_v34 = vsel %vm4079_vm3, %v5368_v8, %v4076_v18  ;;  %v4046_v32 = vadd.f32 %v5372_v23, %v4045_v19  ;;  %vm4067_vm3 = vcmp.eq.f32.partialorder %v4066_v3, 8.507059e+37 }
 0x583   : > { %v5378_v5 = vpop.eup %5377  ;;  %v4085_v10 = vsel %vm4082_vm0, %v4084_v41, %v4080_v34  ;;  %5383 = vrcp.f32 %v8651_v53  ;;  %v4158_v12 = vand.u32 2147483648, %v8651_v53  ;;  %v4156_v13 = vand.u32 2147483647, %v8651_v53 }
 0x584   : > { %v4172_v57 = vsub.f32 1.0, %v4085_v10  ;;  %v4088_v61 = vmul.f32 %v5378_v5, %v8645_v26  ;;  %v4050_v35 = vsel %vm4049_vm9, %v5372_v23, %v4046_v32  ;;  %vm4093_vm12 = vweird.f32 %v5378_v5 }
 0x585   : > { %v5380_v33 = vpop.eup %5379  ;;  %v4055_v27 = vsel %vm4052_vm11, %v4054_v9, %v4050_v35  ;;  %vm4094_vm14 = vmor %vm4092_vm13, %vm4093_vm12  ;;  %vm4152_vm0 = vweird.f32 %v8651_v53  ;;  %v4159_v23 = vor.u32 1.1754944e-38, %v4158_v12  ;;  %vm4169_vm11 = vcmp.ge.f32.partialorder %v8635_v48, 0.0 }
 0x586   : > { %v4180_v0 = vsel %vm4164_vm10, %v4085_v10, %v4172_v57  ;;  %v4089_v49 = vsub.f32 1.0, %v4088_v61  ;;  %v4170_v1 = vsub.f32 1.0, %v4055_v27  ;;  %v4058_v38 = vmul.f32 %v5380_v33, %v8648_v54  ;;  %v5382_v36 = vpop.eup %5381 }
 0x587   : > { %4188 = vst [vmem:[%s7201_s29 + $0x10] sm:$0xff] %v4180_v0  ;;  %v8662_v55 = vadd.f32 1.0, %v5382_v36  ;;  %vm4063_vm1 = vweird.f32 %v5380_v33  ;;  %vm4157_vm10 = vcmp.eq.f32.partialorder %v4156_v13, 8.507059e+37 }
 0x588   : > { %v4090_v51 = vmul.f32 %v5378_v5, %v4089_v49  ;;  %v4178_v7 = vsel %vm4162_vm5, %v4055_v27, %v4170_v1  ;;  %v4059_v43 = vsub.f32 1.0, %v4058_v38  ;;  %vm4064_vm7 = vmor %vm4062_vm15, %vm4063_vm1  ;;  %vm4168_vm1 = vcmp.ge.f32.partialorder %v8642_v22, 0.0 }
 0x589   : > { %v5384_v44 = vpop.eup %5383  ;;  %4186 = vst [vmem:[%s7201_s29] sm:$0xff] %v4178_v7  ;;  %5385 = vrcp.f32 %v8662_v55  ;;  %v4143_v2 = vand.u32 2147483648, %v8662_v55  ;;  %v4141_v45 = vand.u32 2147483647, %v8662_v55  ;;  %vm4137_vm12 = vweird.f32 %v8662_v55 }
 0x58a   : > { %v4091_v25 = vadd.f32 %v5378_v5, %v4090_v51  ;;  %v4060_v50 = vmul.f32 %v5380_v33, %v4059_v43  ;;  %v4148_v58 = vmul.f32 %v5384_v44, %v8651_v53  ;;  %vm4153_vm6 = vweird.f32 %v5384_v44 }
 0x58b   : > { %vm4154_vm9 = vmor %vm4152_vm0, %vm4153_vm6  ;;  %v4144_v18 = vor.u32 1.1754944e-38, %v4143_v2 }
 0x58c   : > { %v4095_v16 = vsel %vm4094_vm14, %v5378_v5, %v4091_v25  ;;  %v4061_v59 = vadd.f32 %v5380_v33, %v4060_v50  ;;  %v4149_v37 = vsub.f32 1.0, %v4148_v58  ;;  %vm4142_vm14 = vcmp.eq.f32.partialorder %v4141_v45, 8.507059e+37 }
 0x58d   : > { %v4100_v15 = vsel %vm4097_vm2, %v4099_v24, %v4095_v16 }
 0x58e   : > { %v4173_v31 = vsub.f32 1.0, %v4100_v15  ;;  %v4065_v42 = vsel %vm4064_vm7, %v5380_v33, %v4061_v59  ;;  %v4150_v8 = vmul.f32 %v5384_v44, %v4149_v37 }
 0x58f   : > { %v4070_v29 = vsel %vm4067_vm3, %v4069_v4, %v4065_v42  ;;  %v5386_v56 = vpop.eup %5385 }
 0x590   : > { %v4181_v39 = vsel %vm4165_vm4, %v4100_v15, %v4173_v31  ;;  %v4171_v46 = vsub.f32 1.0, %v4070_v29  ;;  %v4151_v26 = vadd.f32 %v5384_v44, %v4150_v8  ;;  %v4133_v47 = vmul.f32 %v5386_v56, %v8662_v55 }
 0x591   : > { %4189 = vst [vmem:[%s7201_s29 + $0x18] sm:$0xff] %v4181_v39  ;;  %vm4138_vm5 = vweird.f32 %v5386_v56 }
 0x592   : > { %v4179_v17 = vsel %vm4163_vm8, %v4070_v29, %v4171_v46  ;;  %v4155_v52 = vsel %vm4154_vm9, %v5384_v44, %v4151_v26  ;;  %v4134_v30 = vsub.f32 1.0, %v4133_v47  ;;  %vm4139_vm13 = vmor %vm4137_vm12, %vm4138_vm5 }
 0x593   : > { %4187 = vst [vmem:[%s7201_s29 + $0x8] sm:$0xff] %v4179_v17  ;;  %v4160_v62 = vsel %vm4157_vm10, %v4159_v23, %v4155_v52 }
 0x594   : > { %v4177_v63 = vsub.f32 1.0, %v4160_v62  ;;  %v4135_v54 = vmul.f32 %v5386_v56, %v4134_v30 }
 0x596   : > { %v4185_v28 = vsel %vm4169_vm11, %v4160_v62, %v4177_v63  ;;  %v4136_v60 = vadd.f32 %v5386_v56, %v4135_v54 }
 0x597   : > { %4193 = vst [vmem:[%s7201_s29 + $0x38] sm:$0xff] %v4185_v28 }
 0x598   : > { %v4140_v48 = vsel %vm4139_vm13, %v5386_v56, %v4136_v60 }
 0x599   : > { %v4145_v6 = vsel %vm4142_vm14, %v4144_v18, %v4140_v48 }
 0x59a   : > { %v4176_v21 = vsub.f32 1.0, %v4145_v6 }
 0x59c   : > { %v4184_v41 = vsel %vm4168_vm1, %v4145_v6, %v4176_v21 }
 0x59d   : > { %4192 = vst [vmem:[%s7201_s29 + $0x30] sm:$0xff] %v4184_v41 }
 0x59e   : > { %5594 = shalt.err (!%p5591_p13)
}
 0x59f   : > { %s6052_s29 = smov 128   ;;  %s6053_s4 = smov 8  }
 0x5a0   : > { %4876 = dma.vmem_to_hbm [thread:$0]  (%p6147_p5), %s4208_s17, 1024, %s4210_s30, %s4195_s2, %s6052_s29, %s6052_s29, %s6053_s4  }
 0x5a1 PF: > { %p4933_p0 = scmp.ge.s32.totalorder %s5849_s16, 2  ;;  %s4224_s3 = sand.u32 1, %s5837_s13  }
 0x5a2   : > { %s4225_s1 = scalar_lea.sflag [#allocation6], %s4224_s3 }
 0x5a3   : > { %p4910_p1 = pnand %p4933_p0, %p6151_p6 }
 0x5a5   : > { %p4911_p2 = pneg %p4910_p1 }
 0x5a7   : > { %5832 = dma.done.wait (%p4911_p2), %s4225_s1, 1024  }
 0x5a8   : > { %5834 = vsyncadd (%p4911_p2), %s4225_s1, 4294966272  ;;  %p28_p3 = scmp.ge.s32.totalorder %s6134_s19, 4   ;;  %s8841_s13 = smov %s5841_s14 }
 0x5a9   : > { %s8842_s14 = smov %s5845_s15  ;;  %s8843_s15 = smov %s6145_s22 }
 0x5aa   : > { %s8844_s16 = smov %s6134_s19  ;;  %30 = sbr.rel (!%p28_p3) target bundleno = 17 (0x11), region = 277 }
 0x5af   :  { %4231 = vsyncpa [#allocation5], 1 }
 0x5b0   :  { %4233 = vsyncpa [#allocation5 + $0x1], 1 }
 0x5b1   :  { %4234 = vsyncpa [#allocation22], 1 }
 0x5b2   :  { %4235 = vsyncpa [#allocation6], 1 }
 0x5b3   :  { %4237 = vsyncpa [#allocation6 + $0x1], 1 }
 0x5b4   :  { %4238 = vsyncpa [#allocation7], 1 }
 0x5b5   :  { %4240 = vsyncpa [#allocation7 + $0x1], 1 }
 0x5b6   :  { %4241 = vsyncpa [#allocation10], 1 }
 0x5b7   :  { %4242 = vsyncpa [#allocation13], 1 }
 0x5b8   :  { %4243 = vsyncpa [#allocation17], 1 }
 0x5b9   :  { %4244 = vsyncpa [#allocation8], 1 }
 0x5ba   :  { %4246 = vsyncpa [#allocation8 + $0x1], 1 }
 0x5bb   :  { %4247 = vsyncpa [#allocation19], 1 }

</bundles_post_ra>
